<compile_context>
chip_gen: v5e
topology: v5e:2x2
jax: 0.10.0
libtpu: 0.0.40
codegen_flags: <defaults>
</compile_context>

<pallas_src>
import jax
import jax.numpy as jnp
from jax import lax
from jax.experimental import pallas as pl
from jax.experimental.pallas import tpu as pltpu


# ----------------------------- Pallas kernel -------------------------------

def lstm_fused_kernel(x_ref,
                      w_ih0_ref, w_hh0_ref, b0_ref,
                      w1_ref, b1_ref,
                      fc_w_ref, fc_b_ref,
                      out_ref,
                      xw0_sc, h1_sc):
    """Fused forward: LSTM layer0 || LSTM layer1 (wavefront) -> Linear -> Softmax.

    x_ref:      (S, D_in)   input sequence
    w_ih0_ref:  (D_in, 4H)  layer-0 input weight (transposed, gate cols i,f,o,g)
    w_hh0_ref:  (H, 4H)     layer-0 recurrent weight (transposed, i,f,o,g)
    b0_ref:     (1, 4H)     layer-0 bias_ih + bias_hh (i,f,o,g)
    w1_ref:     (2H, 4H)    layer-1 stacked [w_ih1; w_hh1] (transposed, i,f,o,g)
    b1_ref:     (1, 4H)     layer-1 bias_ih + bias_hh (i,f,o,g)
    fc_w_ref:   (H, C)      fc weight (transposed)
    fc_b_ref:   (1, C)      fc bias
    out_ref:    (S, C)      softmax probabilities
    xw0_sc:     (S, 4H)     VMEM scratch: batched layer-0 input projection
    h1_sc:      (S, H)      VMEM scratch: layer-1 hidden states (fc input)
    """
    S = x_ref.shape[0]
    H = w_hh0_ref.shape[0]

    # Batched layer-0 input projection for all timesteps: one big MXU matmul,
    # staged in VMEM so each step's read is a cheap sublane-indexed load.
    xw0_sc[...] = jnp.dot(x_ref[...], w_ih0_ref[...],
                          preferred_element_type=jnp.float32) + b0_ref[...]

    w_hh0 = w_hh0_ref[...]
    w1 = w1_ref[...]
    b1 = b1_ref[...]

    def gate_math(gates, c_prev):
        # Gate columns are pre-permuted to (i, f, o, g): one sigmoid dispatch
        # over the contiguous 3H sigmoid gates + one tanh over g.
        sig = jax.nn.sigmoid(gates[:, 0:3 * H])
        g = jnp.tanh(gates[:, 3 * H:4 * H])
        i = sig[:, 0:H]
        f = sig[:, H:2 * H]
        o = sig[:, 2 * H:3 * H]
        c = f * c_prev + i * g
        h = o * jnp.tanh(c)
        return h, c

    zeros = jnp.zeros((1, H), jnp.float32)
    h0, c0 = zeros, zeros
    h1, c1 = zeros, zeros

    # Wavefront: iteration t does layer-0 step t and layer-1 step t-1 (which
    # consumes the h0 produced in the previous iteration) -> two independent
    # dependency chains per iteration, ~S+1 serial steps total.
    for t in range(S + 1):
        h0_new, c0_new = None, None
        if t < S:
            if t == 0:
                # h0 == 0: skip the recurrent matmul entirely.
                gates0 = xw0_sc[0:1, :]
            else:
                gates0 = xw0_sc[t:t + 1, :] + jnp.dot(
                    h0, w_hh0, preferred_element_type=jnp.float32)
            h0_new, c0_new = gate_math(gates0, c0)
        if t >= 1:
            s = t - 1
            if s == 0:
                # h1 == 0: only the input half of the stacked weight.
                gates1 = jnp.dot(h0, w1[0:H, :],
                                 preferred_element_type=jnp.float32) + b1
            else:
                hh = jnp.concatenate([h0, h1], axis=1)       # (1, 2H)
                gates1 = jnp.dot(hh, w1,
                                 preferred_element_type=jnp.float32) + b1
            h1, c1 = gate_math(gates1, c1)
            h1_sc[s:s + 1, :] = h1        # full-lane-width plain store
        if t < S:
            h0, c0 = h0_new, c0_new

    # fc + softmax over the class axis (dim=1).
    logits = jnp.dot(h1_sc[...], fc_w_ref[...],
                     preferred_element_type=jnp.float32) + fc_b_ref[...]
    m = jnp.max(logits, axis=1, keepdims=True)
    e = jnp.exp(logits - m)
    out_ref[...] = e / jnp.sum(e, axis=1, keepdims=True)


# ------------------------------ JAX wrapper --------------------------------

def lstm_model_forward(x, kparams):
    S = x.shape[0]
    H = kparams["w_hh0_t"].shape[0]
    C = kparams["fc_w_t"].shape[1]

    vmem = pl.BlockSpec(memory_space=pltpu.MemorySpace.VMEM)
    return pl.pallas_call(
        lstm_fused_kernel,
        out_shape=jax.ShapeDtypeStruct((S, C), jnp.float32),
        in_specs=[vmem] * 8,
        out_specs=vmem,
        scratch_shapes=[pltpu.VMEM((S, 4 * H), jnp.float32),
                        pltpu.VMEM((S, H), jnp.float32)],
    )(x,
      kparams["w_ih0_t"], kparams["w_hh0_t"], kparams["b0"],
      kparams["w1_stacked"], kparams["b1"],
      kparams["fc_w_t"], kparams["fc_b"])


# ------------------------- deterministic parameters ------------------------

def init_params(key, input_size, hidden, num_layers, num_classes):
    """PyTorch-equivalent init; gate columns kept in PyTorch order (i,f,g,o)."""
    k = 1.0 / float(jnp.sqrt(jnp.float32(hidden)))
    layers = []
    for l in range(num_layers):
        d_in = input_size if l == 0 else hidden
        key, k1, k2, k3, k4 = jax.random.split(key, 5)
        w_ih = jax.random.uniform(k1, (4 * hidden, d_in), jnp.float32, -k, k)
        w_hh = jax.random.uniform(k2, (4 * hidden, hidden), jnp.float32, -k, k)
        b_ih = jax.random.uniform(k3, (4 * hidden,), jnp.float32, -k, k)
        b_hh = jax.random.uniform(k4, (4 * hidden,), jnp.float32, -k, k)
        layers.append(dict(w_ih_t=jnp.transpose(w_ih),
                           w_hh_t=jnp.transpose(w_hh),
                           bias=(b_ih + b_hh)[None, :]))
    key, kf1, kf2 = jax.random.split(key, 3)
    fc_w = jax.random.uniform(kf1, (num_classes, hidden), jnp.float32, -k, k)
    fc_b = jax.random.uniform(kf2, (num_classes,), jnp.float32, -k, k)
    return dict(lstm=layers, fc_w_t=jnp.transpose(fc_w), fc_b=fc_b[None, :])


def _permute_gate_cols(w_t, H):
    """Columns [i | f | g | o] -> [i | f | o | g] (host-side, free)."""
    return jnp.concatenate([w_t[:, 0:2 * H],
                            w_t[:, 3 * H:4 * H],
                            w_t[:, 2 * H:3 * H]], axis=1)


def prepare_kernel_params(params):
    """Host-side weight prep: gate permutation + layer-1 weight stacking."""
    l0, l1 = params["lstm"]
    H = l0["w_hh_t"].shape[0]
    w_ih0 = _permute_gate_cols(l0["w_ih_t"], H)
    w_hh0 = _permute_gate_cols(l0["w_hh_t"], H)
    b0 = _permute_gate_cols(l0["bias"], H)
    w_ih1 = _permute_gate_cols(l1["w_ih_t"], H)
    w_hh1 = _permute_gate_cols(l1["w_hh_t"], H)
    b1 = _permute_gate_cols(l1["bias"], H)
    w1_stacked = jnp.concatenate([w_ih1, w_hh1], axis=0)   # (2H, 4H)
    return dict(w_ih0_t=w_ih0, w_hh0_t=w_hh0, b0=b0,
                w1_stacked=w1_stacked, b1=b1,
                fc_w_t=params["fc_w_t"], fc_b=params["fc_b"])


# ------------------------------ pure-JAX reference -------------------------

def reference_forward(x, params):
    h_seq = x
    for layer in params["lstm"]:
        H = layer["w_hh_t"].shape[0]
        w_ih_t, w_hh_t, b = layer["w_ih_t"], layer["w_hh_t"], layer["bias"][0]

        def step(carry, x_t, w_ih_t=w_ih_t, w_hh_t=w_hh_t, b=b, H=H):
            h, c = carry
            gates = x_t @ w_ih_t + h @ w_hh_t + b
            i = jax.nn.sigmoid(gates[0:H])
            f = jax.nn.sigmoid(gates[H:2 * H])
            g = jnp.tanh(gates[2 * H:3 * H])
            o = jax.nn.sigmoid(gates[3 * H:4 * H])
            c = f * c + i * g
            h = o * jnp.tanh(c)
            return (h, c), h

        init = (jnp.zeros((H,), jnp.float32), jnp.zeros((H,), jnp.float32))
        _, h_seq = lax.scan(step, init, h_seq)
    logits = h_seq @ params["fc_w_t"] + params["fc_b"][0]
    return jax.nn.softmax(logits, axis=1)


# ----------------------------------- main -----------------------------------

if __name__ == "__main__":
    SEQ = 8           # sequence length
    INPUT_SIZE = 20   # matches the module's input_size
    HIDDEN = 128      # reduced from 512 for a small test (multiple of 128)
    NUM_LAYERS = 2
    NUM_CLASSES = 2

    key = jax.random.PRNGKey(0)
    key, kx = jax.random.split(key)
    x = jax.random.normal(kx, (SEQ, INPUT_SIZE), jnp.float32)
    params = init_params(key, INPUT_SIZE, HIDDEN, NUM_LAYERS, NUM_CLASSES)
    kparams = prepare_kernel_params(params)

    out = lstm_model_forward(x, kparams)
    out = jax.block_until_ready(out)

    ref = reference_forward(x, params)
    assert out.shape == (SEQ, NUM_CLASSES), out.shape
    assert jnp.allclose(out, ref, atol=1e-5, rtol=1e-5), "mismatch vs JAX reference"

    print("KERNEL_OK")
</pallas_src>

<mosaic_0001>
module attributes {stable_mosaic.version = 11 : i64} {
  func.func @lstm_fused_kernel(%arg0: memref<8x20xf32, #tpu.memory_space<vmem>>, %arg1: memref<20x512xf32, #tpu.memory_space<vmem>>, %arg2: memref<128x512xf32, #tpu.memory_space<vmem>>, %arg3: memref<1x512xf32, #tpu.memory_space<vmem>>, %arg4: memref<256x512xf32, #tpu.memory_space<vmem>>, %arg5: memref<1x512xf32, #tpu.memory_space<vmem>>, %arg6: memref<128x2xf32, #tpu.memory_space<vmem>>, %arg7: memref<1x2xf32, #tpu.memory_space<vmem>>, %arg8: memref<8x2xf32, #tpu.memory_space<vmem>>, %arg9: memref<8x512xf32, #tpu.memory_space<vmem>>, %arg10: memref<8x128xf32, #tpu.memory_space<vmem>>) attributes {dimension_semantics = [], scalar_prefetch = 0 : i64, scratch_operands = 2 : i64, tpu.core_type = #tpu.core_type<tc>} {
    %c0 = arith.constant 0 : index
    %c0_0 = arith.constant 0 : index
    %0 = vector.load %arg0[%c0, %c0_0] : memref<8x20xf32, #tpu.memory_space<vmem>>, vector<8x20xf32>
    %c0_1 = arith.constant 0 : index
    %c0_2 = arith.constant 0 : index
    %1 = vector.load %arg1[%c0_1, %c0_2] : memref<20x512xf32, #tpu.memory_space<vmem>>, vector<20x512xf32>
    %cst = arith.constant dense<0.000000e+00> : vector<8x512xf32>
    %2 = tpu.matmul %0, %1, %cst {dimension_numbers = #tpu.dot_dimension_numbers<[1], [0], [0], [1], [0, 0, 1, 1], [], []>} : vector<8x20xf32>, vector<20x512xf32>, vector<8x512xf32> -> vector<8x512xf32>
    %c0_3 = arith.constant 0 : index
    %c0_4 = arith.constant 0 : index
    %3 = vector.load %arg3[%c0_3, %c0_4] : memref<1x512xf32, #tpu.memory_space<vmem>>, vector<1x512xf32>
    %4 = vector.broadcast %3 : vector<1x512xf32> to vector<8x512xf32>
    %5 = arith.addf %2, %4 : vector<8x512xf32>
    %c0_5 = arith.constant 0 : index
    %c0_6 = arith.constant 0 : index
    %6 = vector.load %arg9[%c0_5, %c0_6] : memref<8x512xf32, #tpu.memory_space<vmem>>, vector<8x512xf32>
    tpu.vector_store %arg9[%c0_5, %c0_6], %5 {strides = array<i32>} : memref<8x512xf32, #tpu.memory_space<vmem>>, vector<8x512xf32>,
    %c0_7 = arith.constant 0 : index
    %c0_8 = arith.constant 0 : index
    %7 = vector.load %arg2[%c0_7, %c0_8] : memref<128x512xf32, #tpu.memory_space<vmem>>, vector<128x512xf32>
    %c0_9 = arith.constant 0 : index
    %c0_10 = arith.constant 0 : index
    %8 = vector.load %arg4[%c0_9, %c0_10] : memref<256x512xf32, #tpu.memory_space<vmem>>, vector<256x512xf32>
    %c0_11 = arith.constant 0 : index
    %c0_12 = arith.constant 0 : index
    %9 = vector.load %arg5[%c0_11, %c0_12] : memref<1x512xf32, #tpu.memory_space<vmem>>, vector<1x512xf32>
    %cst_13 = arith.constant 0.000000e+00 : f32
    %10 = vector.broadcast %cst_13 : f32 to vector<1x128xf32>
    %c0_14 = arith.constant 0 : index
    %c0_15 = arith.constant 0 : index
    %11 = vector.load %arg9[%c0_14, %c0_15] : memref<8x512xf32, #tpu.memory_space<vmem>>, vector<1x512xf32>
    %12 = vector.extract_strided_slice %11 {offsets = [0, 0], sizes = [1, 384], strides = [1, 1]} : vector<1x512xf32> to vector<1x384xf32>
    %13 = arith.negf %12 : vector<1x384xf32>
    %14 = math.exp %13 : vector<1x384xf32>
    %cst_16 = arith.constant 1.000000e+00 : f32
    %15 = vector.broadcast %cst_16 : f32 to vector<1x384xf32>
    %16 = arith.addf %15, %14 : vector<1x384xf32>
    %17 = arith.divf %15, %16 : vector<1x384xf32>
    %18 = vector.extract_strided_slice %11 {offsets = [0, 384], sizes = [1, 128], strides = [1, 1]} : vector<1x512xf32> to vector<1x128xf32>
    %19 = math.tanh %18 : vector<1x128xf32>
    %20 = vector.extract_strided_slice %17 {offsets = [0, 0], sizes = [1, 128], strides = [1, 1]} : vector<1x384xf32> to vector<1x128xf32>
    %21 = vector.extract_strided_slice %17 {offsets = [0, 128], sizes = [1, 128], strides = [1, 1]} : vector<1x384xf32> to vector<1x128xf32>
    %22 = vector.extract_strided_slice %17 {offsets = [0, 256], sizes = [1, 128], strides = [1, 1]} : vector<1x384xf32> to vector<1x128xf32>
    %23 = arith.mulf %21, %10 : vector<1x128xf32>
    %24 = arith.mulf %20, %19 : vector<1x128xf32>
    %25 = arith.addf %23, %24 : vector<1x128xf32>
    %26 = math.tanh %25 : vector<1x128xf32>
    %27 = arith.mulf %22, %26 : vector<1x128xf32>
    %c1 = arith.constant 1 : index
    %c0_17 = arith.constant 0 : index
    %28 = vector.load %arg9[%c1, %c0_17] : memref<8x512xf32, #tpu.memory_space<vmem>>, vector<1x512xf32>
    %cst_18 = arith.constant dense<0.000000e+00> : vector<1x512xf32>
    %29 = tpu.matmul %27, %7, %cst_18 {dimension_numbers = #tpu.dot_dimension_numbers<[1], [0], [0], [1], [0, 0, 1, 1], [], []>} : vector<1x128xf32>, vector<128x512xf32>, vector<1x512xf32> -> vector<1x512xf32>
    %30 = arith.addf %28, %29 : vector<1x512xf32>
    %31 = vector.extract_strided_slice %30 {offsets = [0, 0], sizes = [1, 384], strides = [1, 1]} : vector<1x512xf32> to vector<1x384xf32>
    %32 = arith.negf %31 : vector<1x384xf32>
    %33 = math.exp %32 : vector<1x384xf32>
    %cst_19 = arith.constant 1.000000e+00 : f32
    %34 = vector.broadcast %cst_19 : f32 to vector<1x384xf32>
    %35 = arith.addf %34, %33 : vector<1x384xf32>
    %36 = arith.divf %34, %35 : vector<1x384xf32>
    %37 = vector.extract_strided_slice %30 {offsets = [0, 384], sizes = [1, 128], strides = [1, 1]} : vector<1x512xf32> to vector<1x128xf32>
    %38 = math.tanh %37 : vector<1x128xf32>
    %39 = vector.extract_strided_slice %36 {offsets = [0, 0], sizes = [1, 128], strides = [1, 1]} : vector<1x384xf32> to vector<1x128xf32>
    %40 = vector.extract_strided_slice %36 {offsets = [0, 128], sizes = [1, 128], strides = [1, 1]} : vector<1x384xf32> to vector<1x128xf32>
    %41 = vector.extract_strided_slice %36 {offsets = [0, 256], sizes = [1, 128], strides = [1, 1]} : vector<1x384xf32> to vector<1x128xf32>
    %42 = arith.mulf %40, %25 : vector<1x128xf32>
    %43 = arith.mulf %39, %38 : vector<1x128xf32>
    %44 = arith.addf %42, %43 : vector<1x128xf32>
    %45 = math.tanh %44 : vector<1x128xf32>
    %46 = arith.mulf %41, %45 : vector<1x128xf32>
    %47 = vector.extract_strided_slice %8 {offsets = [0, 0], sizes = [128, 512], strides = [1, 1]} : vector<256x512xf32> to vector<128x512xf32>
    %cst_20 = arith.constant dense<0.000000e+00> : vector<1x512xf32>
    %48 = tpu.matmul %27, %47, %cst_20 {dimension_numbers = #tpu.dot_dimension_numbers<[1], [0], [0], [1], [0, 0, 1, 1], [], []>} : vector<1x128xf32>, vector<128x512xf32>, vector<1x512xf32> -> vector<1x512xf32>
    %49 = arith.addf %48, %9 : vector<1x512xf32>
    %50 = vector.extract_strided_slice %49 {offsets = [0, 0], sizes = [1, 384], strides = [1, 1]} : vector<1x512xf32> to vector<1x384xf32>
    %51 = arith.negf %50 : vector<1x384xf32>
    %52 = math.exp %51 : vector<1x384xf32>
    %cst_21 = arith.constant 1.000000e+00 : f32
    %53 = vector.broadcast %cst_21 : f32 to vector<1x384xf32>
    %54 = arith.addf %53, %52 : vector<1x384xf32>
    %55 = arith.divf %53, %54 : vector<1x384xf32>
    %56 = vector.extract_strided_slice %49 {offsets = [0, 384], sizes = [1, 128], strides = [1, 1]} : vector<1x512xf32> to vector<1x128xf32>
    %57 = math.tanh %56 : vector<1x128xf32>
    %58 = vector.extract_strided_slice %55 {offsets = [0, 0], sizes = [1, 128], strides = [1, 1]} : vector<1x384xf32> to vector<1x128xf32>
    %59 = vector.extract_strided_slice %55 {offsets = [0, 128], sizes = [1, 128], strides = [1, 1]} : vector<1x384xf32> to vector<1x128xf32>
    %60 = vector.extract_strided_slice %55 {offsets = [0, 256], sizes = [1, 128], strides = [1, 1]} : vector<1x384xf32> to vector<1x128xf32>
    %61 = arith.mulf %59, %10 : vector<1x128xf32>
    %62 = arith.mulf %58, %57 : vector<1x128xf32>
    %63 = arith.addf %61, %62 : vector<1x128xf32>
    %64 = math.tanh %63 : vector<1x128xf32>
    %65 = arith.mulf %60, %64 : vector<1x128xf32>
    %c0_22 = arith.constant 0 : index
    %c0_23 = arith.constant 0 : index
    %66 = vector.load %arg10[%c0_22, %c0_23] : memref<8x128xf32, #tpu.memory_space<vmem>>, vector<1x128xf32>
    tpu.vector_store %arg10[%c0_22, %c0_23], %65 {strides = array<i32>} : memref<8x128xf32, #tpu.memory_space<vmem>>, vector<1x128xf32>,
    %c2 = arith.constant 2 : index
    %c0_24 = arith.constant 0 : index
    %67 = vector.load %arg9[%c2, %c0_24] : memref<8x512xf32, #tpu.memory_space<vmem>>, vector<1x512xf32>
    %cst_25 = arith.constant dense<0.000000e+00> : vector<1x512xf32>
    %68 = tpu.matmul %46, %7, %cst_25 {dimension_numbers = #tpu.dot_dimension_numbers<[1], [0], [0], [1], [0, 0, 1, 1], [], []>} : vector<1x128xf32>, vector<128x512xf32>, vector<1x512xf32> -> vector<1x512xf32>
    %69 = arith.addf %67, %68 : vector<1x512xf32>
    %70 = vector.extract_strided_slice %69 {offsets = [0, 0], sizes = [1, 384], strides = [1, 1]} : vector<1x512xf32> to vector<1x384xf32>
    %71 = arith.negf %70 : vector<1x384xf32>
    %72 = math.exp %71 : vector<1x384xf32>
    %cst_26 = arith.constant 1.000000e+00 : f32
    %73 = vector.broadcast %cst_26 : f32 to vector<1x384xf32>
    %74 = arith.addf %73, %72 : vector<1x384xf32>
    %75 = arith.divf %73, %74 : vector<1x384xf32>
    %76 = vector.extract_strided_slice %69 {offsets = [0, 384], sizes = [1, 128], strides = [1, 1]} : vector<1x512xf32> to vector<1x128xf32>
    %77 = math.tanh %76 : vector<1x128xf32>
    %78 = vector.extract_strided_slice %75 {offsets = [0, 0], sizes = [1, 128], strides = [1, 1]} : vector<1x384xf32> to vector<1x128xf32>
    %79 = vector.extract_strided_slice %75 {offsets = [0, 128], sizes = [1, 128], strides = [1, 1]} : vector<1x384xf32> to vector<1x128xf32>
    %80 = vector.extract_strided_slice %75 {offsets = [0, 256], sizes = [1, 128], strides = [1, 1]} : vector<1x384xf32> to vector<1x128xf32>
    %81 = arith.mulf %79, %44 : vector<1x128xf32>
    %82 = arith.mulf %78, %77 : vector<1x128xf32>
    %83 = arith.addf %81, %82 : vector<1x128xf32>
    %84 = math.tanh %83 : vector<1x128xf32>
    %85 = arith.mulf %80, %84 : vector<1x128xf32>
    %86 = tpu.concatenate %46, %65 in 1 : vector<1x128xf32>, vector<1x128xf32> -> vector<1x256xf32>
    %cst_27 = arith.constant dense<0.000000e+00> : vector<1x512xf32>
    %87 = tpu.matmul %86, %8, %cst_27 {dimension_numbers = #tpu.dot_dimension_numbers<[1], [0], [0], [1], [0, 0, 1, 1], [], []>} : vector<1x256xf32>, vector<256x512xf32>, vector<1x512xf32> -> vector<1x512xf32>
    %88 = arith.addf %87, %9 : vector<1x512xf32>
    %89 = vector.extract_strided_slice %88 {offsets = [0, 0], sizes = [1, 384], strides = [1, 1]} : vector<1x512xf32> to vector<1x384xf32>
    %90 = arith.negf %89 : vector<1x384xf32>
    %91 = math.exp %90 : vector<1x384xf32>
    %cst_28 = arith.constant 1.000000e+00 : f32
    %92 = vector.broadcast %cst_28 : f32 to vector<1x384xf32>
    %93 = arith.addf %92, %91 : vector<1x384xf32>
    %94 = arith.divf %92, %93 : vector<1x384xf32>
    %95 = vector.extract_strided_slice %88 {offsets = [0, 384], sizes = [1, 128], strides = [1, 1]} : vector<1x512xf32> to vector<1x128xf32>
    %96 = math.tanh %95 : vector<1x128xf32>
    %97 = vector.extract_strided_slice %94 {offsets = [0, 0], sizes = [1, 128], strides = [1, 1]} : vector<1x384xf32> to vector<1x128xf32>
    %98 = vector.extract_strided_slice %94 {offsets = [0, 128], sizes = [1, 128], strides = [1, 1]} : vector<1x384xf32> to vector<1x128xf32>
    %99 = vector.extract_strided_slice %94 {offsets = [0, 256], sizes = [1, 128], strides = [1, 1]} : vector<1x384xf32> to vector<1x128xf32>
    %100 = arith.mulf %98, %63 : vector<1x128xf32>
    %101 = arith.mulf %97, %96 : vector<1x128xf32>
    %102 = arith.addf %100, %101 : vector<1x128xf32>
    %103 = math.tanh %102 : vector<1x128xf32>
    %104 = arith.mulf %99, %103 : vector<1x128xf32>
    %c1_29 = arith.constant 1 : index
    %c0_30 = arith.constant 0 : index
    %105 = vector.load %arg10[%c1_29, %c0_30] : memref<8x128xf32, #tpu.memory_space<vmem>>, vector<1x128xf32>
    tpu.vector_store %arg10[%c1_29, %c0_30], %104 {strides = array<i32>} : memref<8x128xf32, #tpu.memory_space<vmem>>, vector<1x128xf32>,
    %c3 = arith.constant 3 : index
    %c0_31 = arith.constant 0 : index
    %106 = vector.load %arg9[%c3, %c0_31] : memref<8x512xf32, #tpu.memory_space<vmem>>, vector<1x512xf32>
    %cst_32 = arith.constant dense<0.000000e+00> : vector<1x512xf32>
    %107 = tpu.matmul %85, %7, %cst_32 {dimension_numbers = #tpu.dot_dimension_numbers<[1], [0], [0], [1], [0, 0, 1, 1], [], []>} : vector<1x128xf32>, vector<128x512xf32>, vector<1x512xf32> -> vector<1x512xf32>
    %108 = arith.addf %106, %107 : vector<1x512xf32>
    %109 = vector.extract_strided_slice %108 {offsets = [0, 0], sizes = [1, 384], strides = [1, 1]} : vector<1x512xf32> to vector<1x384xf32>
    %110 = arith.negf %109 : vector<1x384xf32>
    %111 = math.exp %110 : vector<1x384xf32>
    %cst_33 = arith.constant 1.000000e+00 : f32
    %112 = vector.broadcast %cst_33 : f32 to vector<1x384xf32>
    %113 = arith.addf %112, %111 : vector<1x384xf32>
    %114 = arith.divf %112, %113 : vector<1x384xf32>
    %115 = vector.extract_strided_slice %108 {offsets = [0, 384], sizes = [1, 128], strides = [1, 1]} : vector<1x512xf32> to vector<1x128xf32>
    %116 = math.tanh %115 : vector<1x128xf32>
    %117 = vector.extract_strided_slice %114 {offsets = [0, 0], sizes = [1, 128], strides = [1, 1]} : vector<1x384xf32> to vector<1x128xf32>
    %118 = vector.extract_strided_slice %114 {offsets = [0, 128], sizes = [1, 128], strides = [1, 1]} : vector<1x384xf32> to vector<1x128xf32>
    %119 = vector.extract_strided_slice %114 {offsets = [0, 256], sizes = [1, 128], strides = [1, 1]} : vector<1x384xf32> to vector<1x128xf32>
    %120 = arith.mulf %118, %83 : vector<1x128xf32>
    %121 = arith.mulf %117, %116 : vector<1x128xf32>
    %122 = arith.addf %120, %121 : vector<1x128xf32>
    %123 = math.tanh %122 : vector<1x128xf32>
    %124 = arith.mulf %119, %123 : vector<1x128xf32>
    %125 = tpu.concatenate %85, %104 in 1 : vector<1x128xf32>, vector<1x128xf32> -> vector<1x256xf32>
    %cst_34 = arith.constant dense<0.000000e+00> : vector<1x512xf32>
    %126 = tpu.matmul %125, %8, %cst_34 {dimension_numbers = #tpu.dot_dimension_numbers<[1], [0], [0], [1], [0, 0, 1, 1], [], []>} : vector<1x256xf32>, vector<256x512xf32>, vector<1x512xf32> -> vector<1x512xf32>
    %127 = arith.addf %126, %9 : vector<1x512xf32>
    %128 = vector.extract_strided_slice %127 {offsets = [0, 0], sizes = [1, 384], strides = [1, 1]} : vector<1x512xf32> to vector<1x384xf32>
    %129 = arith.negf %128 : vector<1x384xf32>
    %130 = math.exp %129 : vector<1x384xf32>
    %cst_35 = arith.constant 1.000000e+00 : f32
    %131 = vector.broadcast %cst_35 : f32 to vector<1x384xf32>
    %132 = arith.addf %131, %130 : vector<1x384xf32>
    %133 = arith.divf %131, %132 : vector<1x384xf32>
    %134 = vector.extract_strided_slice %127 {offsets = [0, 384], sizes = [1, 128], strides = [1, 1]} : vector<1x512xf32> to vector<1x128xf32>
    %135 = math.tanh %134 : vector<1x128xf32>
    %136 = vector.extract_strided_slice %133 {offsets = [0, 0], sizes = [1, 128], strides = [1, 1]} : vector<1x384xf32> to vector<1x128xf32>
    %137 = vector.extract_strided_slice %133 {offsets = [0, 128], sizes = [1, 128], strides = [1, 1]} : vector<1x384xf32> to vector<1x128xf32>
    %138 = vector.extract_strided_slice %133 {offsets = [0, 256], sizes = [1, 128], strides = [1, 1]} : vector<1x384xf32> to vector<1x128xf32>
    %139 = arith.mulf %137, %102 : vector<1x128xf32>
    %140 = arith.mulf %136, %135 : vector<1x128xf32>
    %141 = arith.addf %139, %140 : vector<1x128xf32>
    %142 = math.tanh %141 : vector<1x128xf32>
    %143 = arith.mulf %138, %142 : vector<1x128xf32>
    %c2_36 = arith.constant 2 : index
    %c0_37 = arith.constant 0 : index
    %144 = vector.load %arg10[%c2_36, %c0_37] : memref<8x128xf32, #tpu.memory_space<vmem>>, vector<1x128xf32>
    tpu.vector_store %arg10[%c2_36, %c0_37], %143 {strides = array<i32>} : memref<8x128xf32, #tpu.memory_space<vmem>>, vector<1x128xf32>,
    %c4 = arith.constant 4 : index
    %c0_38 = arith.constant 0 : index
    %145 = vector.load %arg9[%c4, %c0_38] : memref<8x512xf32, #tpu.memory_space<vmem>>, vector<1x512xf32>
    %cst_39 = arith.constant dense<0.000000e+00> : vector<1x512xf32>
    %146 = tpu.matmul %124, %7, %cst_39 {dimension_numbers = #tpu.dot_dimension_numbers<[1], [0], [0], [1], [0, 0, 1, 1], [], []>} : vector<1x128xf32>, vector<128x512xf32>, vector<1x512xf32> -> vector<1x512xf32>
    %147 = arith.addf %145, %146 : vector<1x512xf32>
    %148 = vector.extract_strided_slice %147 {offsets = [0, 0], sizes = [1, 384], strides = [1, 1]} : vector<1x512xf32> to vector<1x384xf32>
    %149 = arith.negf %148 : vector<1x384xf32>
    %150 = math.exp %149 : vector<1x384xf32>
    %cst_40 = arith.constant 1.000000e+00 : f32
    %151 = vector.broadcast %cst_40 : f32 to vector<1x384xf32>
    %152 = arith.addf %151, %150 : vector<1x384xf32>
    %153 = arith.divf %151, %152 : vector<1x384xf32>
    %154 = vector.extract_strided_slice %147 {offsets = [0, 384], sizes = [1, 128], strides = [1, 1]} : vector<1x512xf32> to vector<1x128xf32>
    %155 = math.tanh %154 : vector<1x128xf32>
    %156 = vector.extract_strided_slice %153 {offsets = [0, 0], sizes = [1, 128], strides = [1, 1]} : vector<1x384xf32> to vector<1x128xf32>
    %157 = vector.extract_strided_slice %153 {offsets = [0, 128], sizes = [1, 128], strides = [1, 1]} : vector<1x384xf32> to vector<1x128xf32>
    %158 = vector.extract_strided_slice %153 {offsets = [0, 256], sizes = [1, 128], strides = [1, 1]} : vector<1x384xf32> to vector<1x128xf32>
    %159 = arith.mulf %157, %122 : vector<1x128xf32>
    %160 = arith.mulf %156, %155 : vector<1x128xf32>
    %161 = arith.addf %159, %160 : vector<1x128xf32>
    %162 = math.tanh %161 : vector<1x128xf32>
    %163 = arith.mulf %158, %162 : vector<1x128xf32>
    %164 = tpu.concatenate %124, %143 in 1 : vector<1x128xf32>, vector<1x128xf32> -> vector<1x256xf32>
    %cst_41 = arith.constant dense<0.000000e+00> : vector<1x512xf32>
    %165 = tpu.matmul %164, %8, %cst_41 {dimension_numbers = #tpu.dot_dimension_numbers<[1], [0], [0], [1], [0, 0, 1, 1], [], []>} : vector<1x256xf32>, vector<256x512xf32>, vector<1x512xf32> -> vector<1x512xf32>
    %166 = arith.addf %165, %9 : vector<1x512xf32>
    %167 = vector.extract_strided_slice %166 {offsets = [0, 0], sizes = [1, 384], strides = [1, 1]} : vector<1x512xf32> to vector<1x384xf32>
    %168 = arith.negf %167 : vector<1x384xf32>
    %169 = math.exp %168 : vector<1x384xf32>
    %cst_42 = arith.constant 1.000000e+00 : f32
    %170 = vector.broadcast %cst_42 : f32 to vector<1x384xf32>
    %171 = arith.addf %170, %169 : vector<1x384xf32>
    %172 = arith.divf %170, %171 : vector<1x384xf32>
    %173 = vector.extract_strided_slice %166 {offsets = [0, 384], sizes = [1, 128], strides = [1, 1]} : vector<1x512xf32> to vector<1x128xf32>
    %174 = math.tanh %173 : vector<1x128xf32>
    %175 = vector.extract_strided_slice %172 {offsets = [0, 0], sizes = [1, 128], strides = [1, 1]} : vector<1x384xf32> to vector<1x128xf32>
    %176 = vector.extract_strided_slice %172 {offsets = [0, 128], sizes = [1, 128], strides = [1, 1]} : vector<1x384xf32> to vector<1x128xf32>
    %177 = vector.extract_strided_slice %172 {offsets = [0, 256], sizes = [1, 128], strides = [1, 1]} : vector<1x384xf32> to vector<1x128xf32>
    %178 = arith.mulf %176, %141 : vector<1x128xf32>
    %179 = arith.mulf %175, %174 : vector<1x128xf32>
    %180 = arith.addf %178, %179 : vector<1x128xf32>
    %181 = math.tanh %180 : vector<1x128xf32>
    %182 = arith.mulf %177, %181 : vector<1x128xf32>
    %c3_43 = arith.constant 3 : index
    %c0_44 = arith.constant 0 : index
    %183 = vector.load %arg10[%c3_43, %c0_44] : memref<8x128xf32, #tpu.memory_space<vmem>>, vector<1x128xf32>
    tpu.vector_store %arg10[%c3_43, %c0_44], %182 {strides = array<i32>} : memref<8x128xf32, #tpu.memory_space<vmem>>, vector<1x128xf32>,
    %c5 = arith.constant 5 : index
    %c0_45 = arith.constant 0 : index
    %184 = vector.load %arg9[%c5, %c0_45] : memref<8x512xf32, #tpu.memory_space<vmem>>, vector<1x512xf32>
    %cst_46 = arith.constant dense<0.000000e+00> : vector<1x512xf32>
    %185 = tpu.matmul %163, %7, %cst_46 {dimension_numbers = #tpu.dot_dimension_numbers<[1], [0], [0], [1], [0, 0, 1, 1], [], []>} : vector<1x128xf32>, vector<128x512xf32>, vector<1x512xf32> -> vector<1x512xf32>
    %186 = arith.addf %184, %185 : vector<1x512xf32>
    %187 = vector.extract_strided_slice %186 {offsets = [0, 0], sizes = [1, 384], strides = [1, 1]} : vector<1x512xf32> to vector<1x384xf32>
    %188 = arith.negf %187 : vector<1x384xf32>
    %189 = math.exp %188 : vector<1x384xf32>
    %cst_47 = arith.constant 1.000000e+00 : f32
    %190 = vector.broadcast %cst_47 : f32 to vector<1x384xf32>
    %191 = arith.addf %190, %189 : vector<1x384xf32>
    %192 = arith.divf %190, %191 : vector<1x384xf32>
    %193 = vector.extract_strided_slice %186 {offsets = [0, 384], sizes = [1, 128], strides = [1, 1]} : vector<1x512xf32> to vector<1x128xf32>
    %194 = math.tanh %193 : vector<1x128xf32>
    %195 = vector.extract_strided_slice %192 {offsets = [0, 0], sizes = [1, 128], strides = [1, 1]} : vector<1x384xf32> to vector<1x128xf32>
    %196 = vector.extract_strided_slice %192 {offsets = [0, 128], sizes = [1, 128], strides = [1, 1]} : vector<1x384xf32> to vector<1x128xf32>
    %197 = vector.extract_strided_slice %192 {offsets = [0, 256], sizes = [1, 128], strides = [1, 1]} : vector<1x384xf32> to vector<1x128xf32>
    %198 = arith.mulf %196, %161 : vector<1x128xf32>
    %199 = arith.mulf %195, %194 : vector<1x128xf32>
    %200 = arith.addf %198, %199 : vector<1x128xf32>
    %201 = math.tanh %200 : vector<1x128xf32>
    %202 = arith.mulf %197, %201 : vector<1x128xf32>
    %203 = tpu.concatenate %163, %182 in 1 : vector<1x128xf32>, vector<1x128xf32> -> vector<1x256xf32>
    %cst_48 = arith.constant dense<0.000000e+00> : vector<1x512xf32>
    %204 = tpu.matmul %203, %8, %cst_48 {dimension_numbers = #tpu.dot_dimension_numbers<[1], [0], [0], [1], [0, 0, 1, 1], [], []>} : vector<1x256xf32>, vector<256x512xf32>, vector<1x512xf32> -> vector<1x512xf32>
    %205 = arith.addf %204, %9 : vector<1x512xf32>
    %206 = vector.extract_strided_slice %205 {offsets = [0, 0], sizes = [1, 384], strides = [1, 1]} : vector<1x512xf32> to vector<1x384xf32>
    %207 = arith.negf %206 : vector<1x384xf32>
    %208 = math.exp %207 : vector<1x384xf32>
    %cst_49 = arith.constant 1.000000e+00 : f32
    %209 = vector.broadcast %cst_49 : f32 to vector<1x384xf32>
    %210 = arith.addf %209, %208 : vector<1x384xf32>
    %211 = arith.divf %209, %210 : vector<1x384xf32>
    %212 = vector.extract_strided_slice %205 {offsets = [0, 384], sizes = [1, 128], strides = [1, 1]} : vector<1x512xf32> to vector<1x128xf32>
    %213 = math.tanh %212 : vector<1x128xf32>
    %214 = vector.extract_strided_slice %211 {offsets = [0, 0], sizes = [1, 128], strides = [1, 1]} : vector<1x384xf32> to vector<1x128xf32>
    %215 = vector.extract_strided_slice %211 {offsets = [0, 128], sizes = [1, 128], strides = [1, 1]} : vector<1x384xf32> to vector<1x128xf32>
    %216 = vector.extract_strided_slice %211 {offsets = [0, 256], sizes = [1, 128], strides = [1, 1]} : vector<1x384xf32> to vector<1x128xf32>
    %217 = arith.mulf %215, %180 : vector<1x128xf32>
    %218 = arith.mulf %214, %213 : vector<1x128xf32>
    %219 = arith.addf %217, %218 : vector<1x128xf32>
    %220 = math.tanh %219 : vector<1x128xf32>
    %221 = arith.mulf %216, %220 : vector<1x128xf32>
    %c4_50 = arith.constant 4 : index
    %c0_51 = arith.constant 0 : index
    %222 = vector.load %arg10[%c4_50, %c0_51] : memref<8x128xf32, #tpu.memory_space<vmem>>, vector<1x128xf32>
    tpu.vector_store %arg10[%c4_50, %c0_51], %221 {strides = array<i32>} : memref<8x128xf32, #tpu.memory_space<vmem>>, vector<1x128xf32>,
    %c6 = arith.constant 6 : index
    %c0_52 = arith.constant 0 : index
    %223 = vector.load %arg9[%c6, %c0_52] : memref<8x512xf32, #tpu.memory_space<vmem>>, vector<1x512xf32>
    %cst_53 = arith.constant dense<0.000000e+00> : vector<1x512xf32>
    %224 = tpu.matmul %202, %7, %cst_53 {dimension_numbers = #tpu.dot_dimension_numbers<[1], [0], [0], [1], [0, 0, 1, 1], [], []>} : vector<1x128xf32>, vector<128x512xf32>, vector<1x512xf32> -> vector<1x512xf32>
    %225 = arith.addf %223, %224 : vector<1x512xf32>
    %226 = vector.extract_strided_slice %225 {offsets = [0, 0], sizes = [1, 384], strides = [1, 1]} : vector<1x512xf32> to vector<1x384xf32>
    %227 = arith.negf %226 : vector<1x384xf32>
    %228 = math.exp %227 : vector<1x384xf32>
    %cst_54 = arith.constant 1.000000e+00 : f32
    %229 = vector.broadcast %cst_54 : f32 to vector<1x384xf32>
    %230 = arith.addf %229, %228 : vector<1x384xf32>
    %231 = arith.divf %229, %230 : vector<1x384xf32>
    %232 = vector.extract_strided_slice %225 {offsets = [0, 384], sizes = [1, 128], strides = [1, 1]} : vector<1x512xf32> to vector<1x128xf32>
    %233 = math.tanh %232 : vector<1x128xf32>
    %234 = vector.extract_strided_slice %231 {offsets = [0, 0], sizes = [1, 128], strides = [1, 1]} : vector<1x384xf32> to vector<1x128xf32>
    %235 = vector.extract_strided_slice %231 {offsets = [0, 128], sizes = [1, 128], strides = [1, 1]} : vector<1x384xf32> to vector<1x128xf32>
    %236 = vector.extract_strided_slice %231 {offsets = [0, 256], sizes = [1, 128], strides = [1, 1]} : vector<1x384xf32> to vector<1x128xf32>
    %237 = arith.mulf %235, %200 : vector<1x128xf32>
    %238 = arith.mulf %234, %233 : vector<1x128xf32>
    %239 = arith.addf %237, %238 : vector<1x128xf32>
    %240 = math.tanh %239 : vector<1x128xf32>
    %241 = arith.mulf %236, %240 : vector<1x128xf32>
    %242 = tpu.concatenate %202, %221 in 1 : vector<1x128xf32>, vector<1x128xf32> -> vector<1x256xf32>
    %cst_55 = arith.constant dense<0.000000e+00> : vector<1x512xf32>
    %243 = tpu.matmul %242, %8, %cst_55 {dimension_numbers = #tpu.dot_dimension_numbers<[1], [0], [0], [1], [0, 0, 1, 1], [], []>} : vector<1x256xf32>, vector<256x512xf32>, vector<1x512xf32> -> vector<1x512xf32>
    %244 = arith.addf %243, %9 : vector<1x512xf32>
    %245 = vector.extract_strided_slice %244 {offsets = [0, 0], sizes = [1, 384], strides = [1, 1]} : vector<1x512xf32> to vector<1x384xf32>
    %246 = arith.negf %245 : vector<1x384xf32>
    %247 = math.exp %246 : vector<1x384xf32>
    %cst_56 = arith.constant 1.000000e+00 : f32
    %248 = vector.broadcast %cst_56 : f32 to vector<1x384xf32>
    %249 = arith.addf %248, %247 : vector<1x384xf32>
    %250 = arith.divf %248, %249 : vector<1x384xf32>
    %251 = vector.extract_strided_slice %244 {offsets = [0, 384], sizes = [1, 128], strides = [1, 1]} : vector<1x512xf32> to vector<1x128xf32>
    %252 = math.tanh %251 : vector<1x128xf32>
    %253 = vector.extract_strided_slice %250 {offsets = [0, 0], sizes = [1, 128], strides = [1, 1]} : vector<1x384xf32> to vector<1x128xf32>
    %254 = vector.extract_strided_slice %250 {offsets = [0, 128], sizes = [1, 128], strides = [1, 1]} : vector<1x384xf32> to vector<1x128xf32>
    %255 = vector.extract_strided_slice %250 {offsets = [0, 256], sizes = [1, 128], strides = [1, 1]} : vector<1x384xf32> to vector<1x128xf32>
    %256 = arith.mulf %254, %219 : vector<1x128xf32>
    %257 = arith.mulf %253, %252 : vector<1x128xf32>
    %258 = arith.addf %256, %257 : vector<1x128xf32>
    %259 = math.tanh %258 : vector<1x128xf32>
    %260 = arith.mulf %255, %259 : vector<1x128xf32>
    %c5_57 = arith.constant 5 : index
    %c0_58 = arith.constant 0 : index
    %261 = vector.load %arg10[%c5_57, %c0_58] : memref<8x128xf32, #tpu.memory_space<vmem>>, vector<1x128xf32>
    tpu.vector_store %arg10[%c5_57, %c0_58], %260 {strides = array<i32>} : memref<8x128xf32, #tpu.memory_space<vmem>>, vector<1x128xf32>,
    %c7 = arith.constant 7 : index
    %c0_59 = arith.constant 0 : index
    %262 = vector.load %arg9[%c7, %c0_59] : memref<8x512xf32, #tpu.memory_space<vmem>>, vector<1x512xf32>
    %cst_60 = arith.constant dense<0.000000e+00> : vector<1x512xf32>
    %263 = tpu.matmul %241, %7, %cst_60 {dimension_numbers = #tpu.dot_dimension_numbers<[1], [0], [0], [1], [0, 0, 1, 1], [], []>} : vector<1x128xf32>, vector<128x512xf32>, vector<1x512xf32> -> vector<1x512xf32>
    %264 = arith.addf %262, %263 : vector<1x512xf32>
    %265 = vector.extract_strided_slice %264 {offsets = [0, 0], sizes = [1, 384], strides = [1, 1]} : vector<1x512xf32> to vector<1x384xf32>
    %266 = arith.negf %265 : vector<1x384xf32>
    %267 = math.exp %266 : vector<1x384xf32>
    %cst_61 = arith.constant 1.000000e+00 : f32
    %268 = vector.broadcast %cst_61 : f32 to vector<1x384xf32>
    %269 = arith.addf %268, %267 : vector<1x384xf32>
    %270 = arith.divf %268, %269 : vector<1x384xf32>
    %271 = vector.extract_strided_slice %264 {offsets = [0, 384], sizes = [1, 128], strides = [1, 1]} : vector<1x512xf32> to vector<1x128xf32>
    %272 = math.tanh %271 : vector<1x128xf32>
    %273 = vector.extract_strided_slice %270 {offsets = [0, 0], sizes = [1, 128], strides = [1, 1]} : vector<1x384xf32> to vector<1x128xf32>
    %274 = vector.extract_strided_slice %270 {offsets = [0, 128], sizes = [1, 128], strides = [1, 1]} : vector<1x384xf32> to vector<1x128xf32>
    %275 = vector.extract_strided_slice %270 {offsets = [0, 256], sizes = [1, 128], strides = [1, 1]} : vector<1x384xf32> to vector<1x128xf32>
    %276 = arith.mulf %274, %239 : vector<1x128xf32>
    %277 = arith.mulf %273, %272 : vector<1x128xf32>
    %278 = arith.addf %276, %277 : vector<1x128xf32>
    %279 = math.tanh %278 : vector<1x128xf32>
    %280 = arith.mulf %275, %279 : vector<1x128xf32>
    %281 = tpu.concatenate %241, %260 in 1 : vector<1x128xf32>, vector<1x128xf32> -> vector<1x256xf32>
    %cst_62 = arith.constant dense<0.000000e+00> : vector<1x512xf32>
    %282 = tpu.matmul %281, %8, %cst_62 {dimension_numbers = #tpu.dot_dimension_numbers<[1], [0], [0], [1], [0, 0, 1, 1], [], []>} : vector<1x256xf32>, vector<256x512xf32>, vector<1x512xf32> -> vector<1x512xf32>
    %283 = arith.addf %282, %9 : vector<1x512xf32>
    %284 = vector.extract_strided_slice %283 {offsets = [0, 0], sizes = [1, 384], strides = [1, 1]} : vector<1x512xf32> to vector<1x384xf32>
    %285 = arith.negf %284 : vector<1x384xf32>
    %286 = math.exp %285 : vector<1x384xf32>
    %cst_63 = arith.constant 1.000000e+00 : f32
    %287 = vector.broadcast %cst_63 : f32 to vector<1x384xf32>
    %288 = arith.addf %287, %286 : vector<1x384xf32>
    %289 = arith.divf %287, %288 : vector<1x384xf32>
    %290 = vector.extract_strided_slice %283 {offsets = [0, 384], sizes = [1, 128], strides = [1, 1]} : vector<1x512xf32> to vector<1x128xf32>
    %291 = math.tanh %290 : vector<1x128xf32>
    %292 = vector.extract_strided_slice %289 {offsets = [0, 0], sizes = [1, 128], strides = [1, 1]} : vector<1x384xf32> to vector<1x128xf32>
    %293 = vector.extract_strided_slice %289 {offsets = [0, 128], sizes = [1, 128], strides = [1, 1]} : vector<1x384xf32> to vector<1x128xf32>
    %294 = vector.extract_strided_slice %289 {offsets = [0, 256], sizes = [1, 128], strides = [1, 1]} : vector<1x384xf32> to vector<1x128xf32>
    %295 = arith.mulf %293, %258 : vector<1x128xf32>
    %296 = arith.mulf %292, %291 : vector<1x128xf32>
    %297 = arith.addf %295, %296 : vector<1x128xf32>
    %298 = math.tanh %297 : vector<1x128xf32>
    %299 = arith.mulf %294, %298 : vector<1x128xf32>
    %c6_64 = arith.constant 6 : index
    %c0_65 = arith.constant 0 : index
    %300 = vector.load %arg10[%c6_64, %c0_65] : memref<8x128xf32, #tpu.memory_space<vmem>>, vector<1x128xf32>
    tpu.vector_store %arg10[%c6_64, %c0_65], %299 {strides = array<i32>} : memref<8x128xf32, #tpu.memory_space<vmem>>, vector<1x128xf32>,
    %301 = tpu.concatenate %280, %299 in 1 : vector<1x128xf32>, vector<1x128xf32> -> vector<1x256xf32>
    %cst_66 = arith.constant dense<0.000000e+00> : vector<1x512xf32>
    %302 = tpu.matmul %301, %8, %cst_66 {dimension_numbers = #tpu.dot_dimension_numbers<[1], [0], [0], [1], [0, 0, 1, 1], [], []>} : vector<1x256xf32>, vector<256x512xf32>, vector<1x512xf32> -> vector<1x512xf32>
    %303 = arith.addf %302, %9 : vector<1x512xf32>
    %304 = vector.extract_strided_slice %303 {offsets = [0, 0], sizes = [1, 384], strides = [1, 1]} : vector<1x512xf32> to vector<1x384xf32>
    %305 = arith.negf %304 : vector<1x384xf32>
    %306 = math.exp %305 : vector<1x384xf32>
    %cst_67 = arith.constant 1.000000e+00 : f32
    %307 = vector.broadcast %cst_67 : f32 to vector<1x384xf32>
    %308 = arith.addf %307, %306 : vector<1x384xf32>
    %309 = arith.divf %307, %308 : vector<1x384xf32>
    %310 = vector.extract_strided_slice %303 {offsets = [0, 384], sizes = [1, 128], strides = [1, 1]} : vector<1x512xf32> to vector<1x128xf32>
    %311 = math.tanh %310 : vector<1x128xf32>
    %312 = vector.extract_strided_slice %309 {offsets = [0, 0], sizes = [1, 128], strides = [1, 1]} : vector<1x384xf32> to vector<1x128xf32>
    %313 = vector.extract_strided_slice %309 {offsets = [0, 128], sizes = [1, 128], strides = [1, 1]} : vector<1x384xf32> to vector<1x128xf32>
    %314 = vector.extract_strided_slice %309 {offsets = [0, 256], sizes = [1, 128], strides = [1, 1]} : vector<1x384xf32> to vector<1x128xf32>
    %315 = arith.mulf %313, %297 : vector<1x128xf32>
    %316 = arith.mulf %312, %311 : vector<1x128xf32>
    %317 = arith.addf %315, %316 : vector<1x128xf32>
    %318 = math.tanh %317 : vector<1x128xf32>
    %319 = arith.mulf %314, %318 : vector<1x128xf32>
    %c7_68 = arith.constant 7 : index
    %c0_69 = arith.constant 0 : index
    %320 = vector.load %arg10[%c7_68, %c0_69] : memref<8x128xf32, #tpu.memory_space<vmem>>, vector<1x128xf32>
    tpu.vector_store %arg10[%c7_68, %c0_69], %319 {strides = array<i32>} : memref<8x128xf32, #tpu.memory_space<vmem>>, vector<1x128xf32>,
    %c0_70 = arith.constant 0 : index
    %c0_71 = arith.constant 0 : index
    %321 = vector.load %arg10[%c0_70, %c0_71] : memref<8x128xf32, #tpu.memory_space<vmem>>, vector<8x128xf32>
    %c0_72 = arith.constant 0 : index
    %c0_73 = arith.constant 0 : index
    %322 = vector.load %arg6[%c0_72, %c0_73] : memref<128x2xf32, #tpu.memory_space<vmem>>, vector<128x2xf32>
    %cst_74 = arith.constant dense<0.000000e+00> : vector<8x2xf32>
    %323 = tpu.matmul %321, %322, %cst_74 {dimension_numbers = #tpu.dot_dimension_numbers<[1], [0], [0], [1], [0, 0, 1, 1], [], []>} : vector<8x128xf32>, vector<128x2xf32>, vector<8x2xf32> -> vector<8x2xf32>
    %c0_75 = arith.constant 0 : index
    %c0_76 = arith.constant 0 : index
    %324 = vector.load %arg7[%c0_75, %c0_76] : memref<1x2xf32, #tpu.memory_space<vmem>>, vector<1x2xf32>
    %325 = vector.broadcast %324 : vector<1x2xf32> to vector<8x2xf32>
    %326 = arith.addf %323, %325 : vector<8x2xf32>
    %cst_77 = arith.constant dense<0xFF800000> : vector<8xf32>
    %327 = vector.multi_reduction <maximumf>, %326, %cst_77 [1] : vector<8x2xf32> to vector<8xf32>
    %328 = vector.shape_cast %327 : vector<8xf32> to vector<8x1xf32>
    %329 = vector.broadcast %328 : vector<8x1xf32> to vector<8x2xf32>
    %330 = arith.subf %326, %329 : vector<8x2xf32>
    %331 = math.exp %330 : vector<8x2xf32>
    %cst_78 = arith.constant dense<0.000000e+00> : vector<8xf32>
    %332 = vector.multi_reduction <add>, %331, %cst_78 [1] : vector<8x2xf32> to vector<8xf32>
    %333 = vector.shape_cast %332 : vector<8xf32> to vector<8x1xf32>
    %334 = vector.broadcast %333 : vector<8x1xf32> to vector<8x2xf32>
    %335 = arith.divf %331, %334 : vector<8x2xf32>
    %c0_79 = arith.constant 0 : index
    %c0_80 = arith.constant 0 : index
    %336 = vector.load %arg8[%c0_79, %c0_80] : memref<8x2xf32, #tpu.memory_space<vmem>>, vector<8x2xf32>
    tpu.vector_store %arg8[%c0_79, %c0_80], %335 {strides = array<i32>} : memref<8x2xf32, #tpu.memory_space<vmem>>, vector<8x2xf32>,
    return
  }
}

</mosaic_0001>

<bundles_post_ra>
// kernel: tpu_custom_call.1
= control target key start
LH: loop header
LB: loop body
LE: loop exit
PB: predicated region body
PF: predicated region fallthrough
CT: control target
= control target key end

     0   :  { %13 = vsyncpa [#allocation5], 0  ;;  %s7085_s0 = inlined_call_operand.vmem [shape: f32[8,20], index: 0, kind: input, shape index: {}]   ;;  %s7086_s1 = inlined_call_operand.vmem [shape: f32[20,512], index: 1, kind: input, shape index: {}]   ;;  %s7087_s2 = inlined_call_operand.hbm [shape: f32[128,512], index: 2, kind: input, shape index: {}]   ;;  %s7088_s3 = inlined_call_operand.vmem [shape: f32[1,512], index: 3, kind: input, shape index: {}]   ;;  %s7089_s4 = inlined_call_operand.hbm [shape: f32[256,512], index: 4, kind: input, shape index: {}]   ;;  %s7090_s5 = inlined_call_operand.vmem [shape: f32[1,512], index: 5, kind: input, shape index: {}]   ;;  %s7091_s6 = inlined_call_operand.vmem [shape: f32[128,2], index: 6, kind: input, shape index: {}]   ;;  %s7092_s7 = inlined_call_operand.vmem [shape: f32[1,2], index: 7, kind: input, shape index: {}]   ;;  %s7093_s8 = inlined_call_operand.vmem [shape: f32[8,2], index: 8, kind: output, shape index: {}]  }
   0x1   :  { %s23_s29 = sshll.u32 %s7087_s2, 4  ;;  %s24_s29 = int_to_ptr.hbm [resolvable:$true] %s23_s29 }
   0x2   :  { %14 = vsyncpa [#allocation7], 0  ;;  %s3935_s30 = smov [#allocation4]   ;;  %s38_s12 = sshll.u32 %s7089_s4, 4  ;;  %s39_s12 = int_to_ptr.hbm [resolvable:$true] %s38_s12 }
   0x3   :  { %s25_s9 = sshll.u32 %s3935_s30, 4  ;;  %s3936_s13 = smov 512   ;;  %s26_s9 = int_to_ptr.vmem [resolvable:$true] %s25_s9 }
   0x4   :  { %s3937_s14 = smov 32   ;;  %s3938_s15 = smov [#allocation6]  }
   0x5   :  { %31 = dma.hbm_to_vmem [thread:$0]  %s24_s29, 8192, %s26_s9, [#allocation5], %s3936_s13, %s3936_s13, %s3937_s14  }
   0x6   :  { %s40_s16 = sshll.u32 %s3938_s15, 4  ;;  %s41_s16 = int_to_ptr.vmem [resolvable:$true] %s40_s16 }
   0x7   :  { %46 = dma.hbm_to_vmem [thread:$0]  %s39_s12, 16384, %s41_s16, [#allocation7], %s3936_s13, %s3936_s13, %s3937_s14  }
   0x8   :  { %3931 = dma.done.wait [#allocation5], 8192  }
   0x9   :  { %3932 = vsyncadd [#allocation5], 4294959104 }
   0xa   :  { %3933 = dma.done.wait [#allocation7], 16384  }
   0xb   :  { %3934 = vsyncadd [#allocation7], 4294950912  ;;  %vm88_vm0 = vcmask 1043456   ;;  %v70_v0 = vld [vmem:[%s7086_s1 + $0x40] sm:$0xf]  ;;  %v68_v4 = vld [vmem:[%s7086_s1 + $0x30] sm:$0xff] }
   0xc   :  { %v66_v1 = vld [vmem:[%s7086_s1 + $0x20] sm:$0xff]  ;;  %v72_v2 = vld [vmem:[%s7086_s1 + $0x50] sm:$0xf]  ;;  %3098 = vmatpush.msk.msra.mxu1 %vm88_vm0, %v70_v0  ;;  %v73_v3 = vld [vmem:[%s7086_s1 + $0x58] sm:$0xf]  ;;  %vm84_vm1 = vcmask 162816  }
   0xd   :  { %3102 = vmatpush.msk.msra.mxu2 %vm88_vm0, %v72_v2  ;;  %3104 = vmatpush.msk.msra.mxu3 %vm88_vm0, %v73_v3  ;;  %v62_v5 = vld [vmem:[%s7086_s1] sm:$0xff]  ;;  %v69_v6 = vld [vmem:[%s7086_s1 + $0x38] sm:$0xff]  ;;  %v64_v8 = vld [vmem:[%s7086_s1 + $0x10] sm:$0xff]  ;;  %vm501_vm6 = vcmask 1040384   ;;  %vm503_vm7 = vcmask 1042434   ;;  %vm505_vm8 = vcmask 1041408  }
   0xe   :  { %115 = vmatpush.msra.mxu1 %v66_v1  ;;  %v61_v7 = vld [vmem:[%s7085_s0] sm:$0xff]  ;;  %v65_v9 = vld [vmem:[%s7086_s1 + $0x18] sm:$0xff]  ;;  %v71_v10 = vld [vmem:[%s7086_s1 + $0x48] sm:$0xf] }
   0xf   :  { %155 = vmatpush.msra.mxu2 %v68_v4  ;;  %175 = vmatpush.msra.mxu3 %v69_v6  ;;  %v67_v11 = vld [vmem:[%s7086_s1 + $0x28] sm:$0xff]  ;;  %v4039_v14 = vld [vmem:[#allocation4 + $0x1e8] sm:$0xff]  ;;  %v4041_v15 = vld [vmem:[#allocation4 + $0x1f0] sm:$0xff] }
  0x10   :  { %116 = vmatpush.msra.mxu1 %v62_v5  ;;  %v63_v12 = vld [vmem:[%s7086_s1 + $0x8] sm:$0xff]  ;;  %v4045_v16 = vld [vmem:[#allocation4 + $0x1f8] sm:$0xff]  ;;  %v4051_v18 = vld [vmem:[#allocation4 + $0x1c8] sm:$0xff] }
  0x11   :  { %156 = vmatpush.msra.mxu2 %v64_v8  ;;  %3099 = vmatmul.msk.f32.vlgmr.msra.gmra.mxu1 %vm84_vm1, %v61_v7  ;;  %v4037_v13 = vld [vmem:[#allocation4 + $0x1e0] sm:$0xff]  ;;  %v4053_v19 = vld [vmem:[#allocation4 + $0x1d0] sm:$0xff]  ;;  %v4057_v20 = vld [vmem:[#allocation4 + $0x1d8] sm:$0xff] }
  0x12   :  { %176 = vmatpush.msra.mxu3 %v65_v9  ;;  %3100 = vmatpush.msk.msrb.mxu1 %vm88_vm0, %v71_v10  ;;  %v4049_v17 = vld [vmem:[#allocation4 + $0x1c0] sm:$0xff]  ;;  %v4063_v22 = vld [vmem:[#allocation4 + $0x1a8] sm:$0xff]  ;;  %v4065_v23 = vld [vmem:[#allocation4 + $0x1b0] sm:$0xff] }
  0x13   :  { %3103 = vmatmul.msk.f32.vlgmr.msra.gmra.mxu2 %vm84_vm1, %v61_v7  ;;  %3105 = vmatmul.msk.f32.vlgmr.msra.gmra.mxu3 %vm84_vm1, %v61_v7  ;;  %v4061_v21 = vld [vmem:[#allocation4 + $0x1a0] sm:$0xff]  ;;  %v4069_v24 = vld [vmem:[#allocation4 + $0x1b8] sm:$0xff]  ;;  %v4075_v26 = vld [vmem:[#allocation4 + $0x188] sm:$0xff] }
  0x14   :  { %135 = vmatpush.msrb.mxu1 %v67_v11  ;;  %414 = vmatpush.msra.mxu0 %v4037_v13  ;;  %v4073_v25 = vld [vmem:[#allocation4 + $0x180] sm:$0xff]  ;;  %v4077_v27 = vld [vmem:[#allocation4 + $0x190] sm:$0xff]  ;;  %v4081_v28 = vld [vmem:[#allocation4 + $0x198] sm:$0xff] }
  0x15   :  { %454 = vmatpush.msrb.mxu2 %v4041_v15  ;;  %474 = vmatpush.msrb.mxu3 %v4045_v16  ;;  %v4085_v29 = vld [vmem:[#allocation4 + $0x160] sm:$0xff]  ;;  %v4087_v30 = vld [vmem:[#allocation4 + $0x168] sm:$0xff]  ;;  %v4089_v31 = vld [vmem:[#allocation4 + $0x170] sm:$0xff] }
  0x16   :  { %136 = vmatpush.msrb.mxu1 %v63_v12  ;;  %415 = vmatpush.msra.mxu0 %v4049_v17  ;;  %v4093_v32 = vld [vmem:[#allocation4 + $0x178] sm:$0xff]  ;;  %v4097_v33 = vld [vmem:[#allocation4 + $0x140] sm:$0xff]  ;;  %v4099_v34 = vld [vmem:[#allocation4 + $0x148] sm:$0xff] }
  0x17   :  { %455 = vmatpush.msrb.mxu2 %v4053_v19  ;;  %475 = vmatpush.msrb.mxu3 %v4057_v20  ;;  %v4101_v35 = vld [vmem:[#allocation4 + $0x150] sm:$0xff]  ;;  %v4105_v36 = vld [vmem:[#allocation4 + $0x158] sm:$0xff]  ;;  %v4109_v37 = vld [vmem:[#allocation4 + $0x120] sm:$0xff] }
  0x18   :  { %434 = vmatpush.msra.mxu1 %v4039_v14  ;;  %416 = vmatpush.msra.mxu0 %v4061_v21  ;;  %v4111_v38 = vld [vmem:[#allocation4 + $0x128] sm:$0xff]  ;;  %v4113_v39 = vld [vmem:[#allocation4 + $0x130] sm:$0xff]  ;;  %v4117_v40 = vld [vmem:[#allocation4 + $0x138] sm:$0xff] }
  0x19   :  { %3101 = vmatmul.msk.f32.vlgmr.msrb.gmra.mxu1 %vm84_vm1, %v61_v7  ;;  %456 = vmatpush.msrb.mxu2 %v4065_v23  ;;  %v4121_v41 = vld [vmem:[#allocation4 + $0x100] sm:$0xff]  ;;  %v4123_v42 = vld [vmem:[#allocation4 + $0x108] sm:$0xff]  ;;  %v4125_v43 = vld [vmem:[#allocation4 + $0x110] sm:$0xff] }
  0x1a   :  { %435 = vmatpush.msra.mxu1 %v4051_v18  ;;  %476 = vmatpush.msrb.mxu3 %v4069_v24  ;;  %v4129_v44 = vld [vmem:[#allocation4 + $0x118] sm:$0xff]  ;;  %v4133_v45 = vld [vmem:[#allocation4 + $0xe0] sm:$0xff]  ;;  %v4135_v46 = vld [vmem:[#allocation4 + $0xe8] sm:$0xff] }
  0x1b   :  { %417 = vmatpush.msra.mxu0 %v4073_v25  ;;  %457 = vmatpush.msrb.mxu2 %v4077_v27  ;;  %v4137_v47 = vld [vmem:[#allocation4 + $0xf0] sm:$0xff]  ;;  %v4142_v48 = vld [vmem:[%s7088_s3] sm:$0xf]  ;;  %v4150_v50 = vld [vmem:[#allocation4 + $0xc0] sm:$0xff] }
  0x1c   :  { %436 = vmatpush.msra.mxu1 %v4063_v22  ;;  %477 = vmatpush.msrb.mxu3 %v4081_v28  ;;  %v4146_v49 = vld [vmem:[#allocation4 + $0xf8] sm:$0xff]  ;;  %v4152_v51 = vld [vmem:[#allocation4 + $0xc8] sm:$0xff]  ;;  %v4154_v52 = vld [vmem:[#allocation4 + $0xd0] sm:$0xff]  ;;  %v76_v54 = vperm.slane %v4142_v48, 0  ;;  %v78_v11 = vperm.slane %v4142_v48, 2 }
  0x1d   :  { %418 = vmatpush.msra.mxu0 %v4085_v29  ;;  %458 = vmatpush.msrb.mxu2 %v4089_v31  ;;  %v4158_v53 = vld [vmem:[#allocation4 + $0xd8] sm:$0xff]  ;;  %v4163_v55 = vld [vmem:[#allocation4 + $0xa0] sm:$0xff]  ;;  %v4165_v56 = vld [vmem:[#allocation4 + $0xa8] sm:$0xff] }
  0x1e   :  { %437 = vmatpush.msra.mxu1 %v4075_v26  ;;  %478 = vmatpush.msrb.mxu3 %v4093_v32  ;;  %v4167_v57 = vld [vmem:[#allocation4 + $0xb0] sm:$0xff]  ;;  %v4171_v58 = vld [vmem:[#allocation4 + $0xb8] sm:$0xff]  ;;  %v4175_v59 = vld [vmem:[#allocation4 + $0x80] sm:$0xff] }
  0x1f   :  { %419 = vmatpush.msra.mxu0 %v4097_v33  ;;  %459 = vmatpush.msrb.mxu2 %v4101_v35  ;;  %v4177_v60 = vld [vmem:[#allocation4 + $0x88] sm:$0xff]  ;;  %v4179_v61 = vld [vmem:[#allocation4 + $0x90] sm:$0xff]  ;;  %v4183_v63 = vld [vmem:[#allocation4 + $0x98] sm:$0xff] }
  0x20   :  { %438 = vmatpush.msra.mxu1 %v4087_v30  ;;  %479 = vmatpush.msrb.mxu3 %v4105_v36  ;;  %7472 = vst [vmem:[#allocation10_spill] sm:$0xff] %v4177_v60  ;;  %v4185_v0 = vld [vmem:[#allocation4 + $0x60] sm:$0xff]  ;;  %v4187_v1 = vld [vmem:[#allocation4 + $0x68] sm:$0xff]  ;;  %v4191_v3 = vld [vmem:[#allocation4 + $0x70] sm:$0xff] }
  0x21   :  { %420 = vmatpush.msra.mxu0 %v4109_v37  ;;  %460 = vmatpush.msrb.mxu2 %v4113_v39  ;;  %7473 = vst [vmem:[#allocation11_spill] sm:$0xff] %v4179_v61  ;;  %v4193_v4 = vld [vmem:[#allocation4 + $0x78] sm:$0xff]  ;;  %v4195_v5 = vld [vmem:[#allocation4 + $0x40] sm:$0xff]  ;;  %v4199_v6 = vld [vmem:[#allocation4 + $0x48] sm:$0xff] }
  0x22   :  { %439 = vmatpush.msra.mxu1 %v4099_v34  ;;  %480 = vmatpush.msrb.mxu3 %v4117_v40  ;;  %7474 = vst [vmem:[#allocation12_spill] sm:$0xff] %v4183_v63  ;;  %v4201_v7 = vld [vmem:[#allocation4 + $0x50] sm:$0xff]  ;;  %v4203_v8 = vld [vmem:[#allocation4 + $0x58] sm:$0xff]  ;;  %v4207_v9 = vld [vmem:[#allocation4 + $0x20] sm:$0xff] }
  0x23   :  { %421 = vmatpush.msra.mxu0 %v4121_v41  ;;  %461 = vmatpush.msrb.mxu2 %v4125_v43  ;;  %7475 = vst [vmem:[#allocation13_spill] sm:$0xff] %v4185_v0  ;;  %v4209_v10 = vld [vmem:[#allocation4 + $0x28] sm:$0xff]  ;;  %v4214_v12 = vld [vmem:[#allocation4 + $0x30] sm:$0xff] }
  0x24   :  { %440 = vmatpush.msra.mxu1 %v4111_v38  ;;  %481 = vmatpush.msrb.mxu3 %v4129_v44  ;;  %7476 = vst [vmem:[#allocation14_spill] sm:$0xff] %v4187_v1 }
  0x25   :  { %422 = vmatpush.msra.mxu0 %v4133_v45  ;;  %462 = vmatpush.msrb.mxu2 %v4137_v47  ;;  %7477 = vst [vmem:[#allocation15_spill] sm:$0xff] %v4191_v3 }
  0x26   :  { %441 = vmatpush.msra.mxu1 %v4123_v42  ;;  %482 = vmatpush.msrb.mxu3 %v4146_v49  ;;  %7478 = vst [vmem:[#allocation16_spill] sm:$0xff] %v4193_v4 }
  0x27   :  { %423 = vmatpush.msra.mxu0 %v4150_v50  ;;  %463 = vmatpush.msrb.mxu2 %v4154_v52  ;;  %7479 = vst [vmem:[#allocation17_spill] sm:$0xff] %v4195_v5 }
  0x28   :  { %442 = vmatpush.msra.mxu1 %v4135_v46  ;;  %483 = vmatpush.msrb.mxu3 %v4158_v53  ;;  %7480 = vst [vmem:[#allocation18_spill] sm:$0xff] %v4199_v6 }
  0x29   :  { %424 = vmatpush.msra.mxu0 %v4163_v55  ;;  %464 = vmatpush.msrb.mxu2 %v4167_v57  ;;  %7481 = vst [vmem:[#allocation19_spill] sm:$0xff] %v4201_v7 }
  0x2a   :  { %443 = vmatpush.msra.mxu1 %v4152_v51  ;;  %484 = vmatpush.msrb.mxu3 %v4171_v58  ;;  %7482 = vst [vmem:[#allocation20_spill] sm:$0xff] %v4203_v8 }
  0x2b   :  { %425 = vmatpush.msra.mxu0 %v4175_v59  ;;  %465 = vmatpush.msrb.mxu2 %v4179_v61  ;;  %7483 = vst [vmem:[#allocation21_spill] sm:$0xff] %v4207_v9 }
  0x2c   :  { %444 = vmatpush.msra.mxu1 %v4165_v56  ;;  %485 = vmatpush.msrb.mxu3 %v4183_v63  ;;  %7484 = vst [vmem:[#allocation22_spill] sm:$0xff] %v4209_v10 }
  0x2d   :  { %426 = vmatpush.msra.mxu0 %v4185_v0  ;;  %466 = vmatpush.msrb.mxu2 %v4191_v3  ;;  %7485 = vst [vmem:[#allocation23_spill] sm:$0xff] %v4214_v12  ;;  %v4224_v3 = vld [vmem:[#allocation4 + $0x8] sm:$0xff] }
  0x2e   :  { %445 = vmatpush.msra.mxu1 %v4177_v60  ;;  %486 = vmatpush.msrb.mxu3 %v4193_v4  ;;  %v4222_v4 = vld [vmem:[#allocation4] sm:$0xff]  ;;  %7487 = vst [vmem:[#allocation25_spill] sm:$0xff] %v4224_v3 }
  0x2f   :  { %427 = vmatpush.msra.mxu0 %v4195_v5  ;;  %467 = vmatpush.msrb.mxu2 %v4201_v7  ;;  %v4230_v5 = vld [vmem:[#allocation4 + $0x18] sm:$0xff] }
  0x30   :  { %446 = vmatpush.msra.mxu1 %v4187_v1  ;;  %487 = vmatpush.msrb.mxu3 %v4203_v8  ;;  %7489 = vst [vmem:[#allocation27_spill] sm:$0xff] %v4230_v5  ;;  %v4236_v8 = vld [vmem:[#allocation6 + $0x1e8] sm:$0xff] }
  0x31   :  { %428 = vmatpush.msra.mxu0 %v4207_v9  ;;  %468 = vmatpush.msrb.mxu2 %v4214_v12  ;;  %7491 = vst [vmem:[#allocation29_spill] sm:$0xff] %v4236_v8  ;;  %v4242_v9 = vld [vmem:[#allocation6 + $0x1f8] sm:$0xff]  ;;  %v4248_v12 = vld [vmem:[#allocation6 + $0x1c8] sm:$0xff] }
  0x32   :  { %447 = vmatpush.msra.mxu1 %v4199_v6  ;;  %v4228_v6 = vld [vmem:[#allocation4 + $0x10] sm:$0xff]  ;;  %7493 = vst [vmem:[#allocation31_spill] sm:$0xff] %v4242_v9 }
  0x33   :  { %7488 = vst [vmem:[#allocation26_spill] sm:$0xff] %v4228_v6  ;;  %429 = vmatpush.msra.mxu0 %v4222_v4  ;;  %469 = vmatpush.msrb.mxu2 %v4228_v6 }
  0x34   :  { %448 = vmatpush.msra.mxu1 %v4209_v10  ;;  %v4240_v10 = vld [vmem:[#allocation6 + $0x1f0] sm:$0xff]  ;;  %7495 = vst [vmem:[#allocation33_spill] sm:$0xff] %v4248_v12 }
  0x35   :  { %7492 = vst [vmem:[#allocation30_spill] sm:$0xff] %v4240_v10  ;;  %591 = vmatpush.msra.mxu2 %v4240_v10  ;;  %v4282_v10 = vld [vmem:[#allocation6 + $0x160] sm:$0xff] }
  0x36   :  { %449 = vmatpush.msra.mxu1 %v4224_v3  ;;  %7506 = vst [vmem:[#allocation44_spill] sm:$0xff] %v4282_v10 }
  0x38   :  { %571 = vmatpush.msrb.mxu1 %v4236_v8 }
  0x3a   :  { %572 = vmatpush.msrb.mxu1 %v4248_v12 }
  0x8e   :  { %v118_v62 = vpop.f32.mrf.mxu1 }
  0x8f   :  { %v119_v2 = vadd.f32 %v118_v62, %v76_v54  ;;  %v4216_v54 = vld [vmem:[#allocation4 + $0x38] sm:$0xff]  ;;  %v77_v62 = vperm.slane %v4142_v48, 1 }
  0x90   :  { %7486 = vst [vmem:[#allocation24_spill] sm:$0xff] %v4216_v54  ;;  %488 = vmatpush.msrb.mxu3 %v4216_v54  ;;  %v4246_v54 = vld [vmem:[#allocation6 + $0x1c0] sm:$0xff] }
  0x91   :  { %181 = vst [vmem:[#allocation2] sm:$0xff] %v119_v2  ;;  %v79_v2 = vperm.slane %v4142_v48, 3  ;;  %v4234_v48 = vld [vmem:[#allocation6 + $0x1e0] sm:$0xff] }
  0x92   :  { %7490 = vst [vmem:[#allocation28_spill] sm:$0xff] %v4234_v48  ;;  %489 = vmatpush.msrb.mxu3 %v4230_v5  ;;  %551 = vmatpush.msrb.mxu0 %v4234_v48 }
  0x93   :  { %7494 = vst [vmem:[#allocation32_spill] sm:$0xff] %v4246_v54 }
  0x94   :  { %611 = vmatpush.msra.mxu3 %v4242_v9  ;;  %552 = vmatpush.msrb.mxu0 %v4246_v54  ;;  %v4278_v9 = vld [vmem:[#allocation6 + $0x198] sm:$0xff] }
  0x95   :  { %7505 = vst [vmem:[#allocation43_spill] sm:$0xff] %v4278_v9 }
  0x96   :  { %v158_v1 = vpop.f32.mrf.mxu2  ;;  %v138_v7 = vpop.f32.mrf.mxu1 }
  0x97   :  { %v159_v0 = vadd.f32 %v158_v1, %v78_v11  ;;  %v178_v63 = vpop.f32.mrf.mxu3  ;;  %v139_v61 = vadd.f32 %v138_v7, %v77_v62  ;;  %v4252_v1 = vld [vmem:[#allocation6 + $0x1d0] sm:$0xff]  ;;  %v4254_v11 = vld [vmem:[#allocation6 + $0x1d8] sm:$0xff]  ;;  %v4260_v7 = vld [vmem:[#allocation6 + $0x1a8] sm:$0xff] }
  0x98   :  { %v179_v60 = vadd.f32 %v178_v63, %v79_v2  ;;  %7496 = vst [vmem:[#allocation34_spill] sm:$0xff] %v4252_v1  ;;  %v4258_v63 = vld [vmem:[#allocation6 + $0x1a0] sm:$0xff]  ;;  %v4266_v62 = vld [vmem:[#allocation6 + $0x1b8] sm:$0xff]  ;;  %592 = vmatpush.msra.mxu2 %v4252_v1  ;;  %612 = vmatpush.msra.mxu3 %v4254_v11  ;;  %v4272_v2 = vld [vmem:[#allocation6 + $0x188] sm:$0xff] }
  0x99   :  { %183 = vst [vmem:[#allocation2 + $0x10] sm:$0xff] %v159_v0  ;;  %v4264_v0 = vld [vmem:[#allocation6 + $0x1b0] sm:$0xff]  ;;  %553 = vmatpush.msrb.mxu0 %v4258_v63  ;;  %573 = vmatpush.msrb.mxu1 %v4260_v7  ;;  %v4284_v1 = vld [vmem:[#allocation6 + $0x168] sm:$0xff] }
  0x9a   :  { %7497 = vst [vmem:[#allocation35_spill] sm:$0xff] %v4254_v11  ;;  %593 = vmatpush.msra.mxu2 %v4264_v0  ;;  %613 = vmatpush.msra.mxu3 %v4266_v62  ;;  %v4288_v11 = vld [vmem:[#allocation6 + $0x170] sm:$0xff] }
  0x9b   :  { %182 = vst [vmem:[#allocation2 + $0x8] sm:$0xff] %v139_v61  ;;  %v4270_v61 = vld [vmem:[#allocation6 + $0x180] sm:$0xff]  ;;  %574 = vmatpush.msrb.mxu1 %v4272_v2 }
  0x9c   :  { %7498 = vst [vmem:[#allocation36_spill] sm:$0xff] %v4258_v63  ;;  %554 = vmatpush.msrb.mxu0 %v4270_v61  ;;  %v4290_v63 = vld [vmem:[#allocation6 + $0x178] sm:$0xff]  ;;  %614 = vmatpush.msra.mxu3 %v4278_v9  ;;  %v4310_v9 = vld [vmem:[#allocation6 + $0x128] sm:$0xff] }
  0x9d   :  { %7499 = vst [vmem:[#allocation37_spill] sm:$0xff] %v4260_v7  ;;  %v4294_v7 = vld [vmem:[#allocation6 + $0x140] sm:$0xff]  ;;  %575 = vmatpush.msrb.mxu1 %v4284_v1 }
  0x9e   :  { %184 = vst [vmem:[#allocation2 + $0x18] sm:$0xff] %v179_v60  ;;  %v4276_v60 = vld [vmem:[#allocation6 + $0x190] sm:$0xff]  ;;  %555 = vmatpush.msrb.mxu0 %v4282_v10  ;;  %615 = vmatpush.msra.mxu3 %v4290_v63  ;;  %v4317_v10 = vld [vmem:[#allocation6 + $0x138] sm:$0xff] }
  0x9f   :  { %7500 = vst [vmem:[#allocation38_spill] sm:$0xff] %v4264_v0  ;;  %594 = vmatpush.msra.mxu2 %v4276_v60  ;;  %v4296_v0 = vld [vmem:[#allocation6 + $0x148] sm:$0xff] }
  0xa0   :  { %7501 = vst [vmem:[#allocation39_spill] sm:$0xff] %v4266_v62  ;;  %v4300_v62 = vld [vmem:[#allocation6 + $0x150] sm:$0xff]  ;;  %556 = vmatpush.msrb.mxu0 %v4294_v7  ;;  %576 = vmatpush.msrb.mxu1 %v4296_v0 }
  0xa1   :  { %7502 = vst [vmem:[#allocation40_spill] sm:$0xff] %v4270_v61  ;;  %v4302_v61 = vld [vmem:[#allocation6 + $0x158] sm:$0xff]  ;;  %595 = vmatpush.msra.mxu2 %v4288_v11 }
  0xa2   :  { %7503 = vst [vmem:[#allocation41_spill] sm:$0xff] %v4272_v2  ;;  %616 = vmatpush.msra.mxu3 %v4302_v61  ;;  %577 = vmatpush.msrb.mxu1 %v4310_v9 }
  0xa3   :  { %7504 = vst [vmem:[#allocation42_spill] sm:$0xff] %v4276_v60  ;;  %v4308_v60 = vld [vmem:[#allocation6 + $0x120] sm:$0xff]  ;;  %596 = vmatpush.msra.mxu2 %v4300_v62 }
  0xa4   :  { %7507 = vst [vmem:[#allocation45_spill] sm:$0xff] %v4284_v1  ;;  %v4315_v1 = vld [vmem:[#allocation6 + $0x130] sm:$0xff]  ;;  %557 = vmatpush.msrb.mxu0 %v4308_v60  ;;  %617 = vmatpush.msra.mxu3 %v4317_v10 }
  0xa5   :  { %7508 = vst [vmem:[#allocation46_spill] sm:$0xff] %v4288_v11  ;;  %v4304_v2 = vld [vmem:[#allocation2] ss:$8 sm:$0xf]  ;;  %597 = vmatpush.msra.mxu2 %v4315_v1 }
  0xa6   :  { %7509 = vst [vmem:[#allocation47_spill] sm:$0xff] %v4290_v63  ;;  %v3106_v12 = vmul.f32 -1.442695, %v4304_v2  ;;  %v4321_v11 = vld [vmem:[#allocation6 + $0x100] sm:$0xff]  ;;  %v4323_v63 = vld [vmem:[#allocation6 + $0x108] sm:$0xff]  ;;  %v399_v48 = vrot.slane %v4304_v2, 3 }
  0xa7   :  { %7510 = vst [vmem:[#allocation48_spill] sm:$0xff] %v4294_v7  ;;  %v4327_v7 = vld [vmem:[#allocation6 + $0x110] sm:$0xff]  ;;  %558 = vmatpush.msrb.mxu0 %v4321_v11  ;;  %578 = vmatpush.msrb.mxu1 %v4323_v63 }
  0xa8   :  { %7511 = vst [vmem:[#allocation49_spill] sm:$0xff] %v4296_v0  ;;  %3143 = vpow2.f32 %v3106_v12  ;;  %v4329_v0 = vld [vmem:[#allocation6 + $0x118] sm:$0xff]  ;;  %v4339_v12 = vld [vmem:[#allocation6 + $0xf0] sm:$0xff]  ;;  %598 = vmatpush.msra.mxu2 %v4327_v7 }
  0xa9   :  { %7512 = vst [vmem:[#allocation50_spill] sm:$0xff] %v4300_v62  ;;  %v4333_v62 = vld [vmem:[#allocation6 + $0xe0] sm:$0xff]  ;;  %618 = vmatpush.msra.mxu3 %v4329_v0 }
  0xaa   :  { %7513 = vst [vmem:[#allocation51_spill] sm:$0xff] %v4302_v61  ;;  %v4335_v61 = vld [vmem:[#allocation6 + $0xe8] sm:$0xff]  ;;  %559 = vmatpush.msrb.mxu0 %v4333_v62  ;;  %599 = vmatpush.msra.mxu2 %v4339_v12 }
  0xab   :  { %7514 = vst [vmem:[#allocation52_spill] sm:$0xff] %v4308_v60  ;;  %v4341_v60 = vld [vmem:[#allocation6 + $0xf8] sm:$0xff]  ;;  %579 = vmatpush.msrb.mxu1 %v4335_v61 }
  0xac   :  { %7515 = vst [vmem:[#allocation53_spill] sm:$0xff] %v4310_v9  ;;  %v4345_v9 = vld [vmem:[#allocation6 + $0xc0] sm:$0xff]  ;;  %619 = vmatpush.msra.mxu3 %v4341_v60 }
  0xad   :  { %7516 = vst [vmem:[#allocation54_spill] sm:$0xff] %v4315_v1  ;;  %v4347_v1 = vld [vmem:[#allocation6 + $0xc8] sm:$0xff]  ;;  %560 = vmatpush.msrb.mxu0 %v4345_v9 }
  0xae   :  { %7517 = vst [vmem:[#allocation55_spill] sm:$0xff] %v4317_v10  ;;  %v4351_v10 = vld [vmem:[#allocation6 + $0xd0] sm:$0xff]  ;;  %580 = vmatpush.msrb.mxu1 %v4347_v1 }
  0xaf   :  { %7518 = vst [vmem:[#allocation56_spill] sm:$0xff] %v4321_v11  ;;  %v4353_v11 = vld [vmem:[#allocation6 + $0xd8] sm:$0xff]  ;;  %600 = vmatpush.msra.mxu2 %v4351_v10 }
  0xb0   :  { %7519 = vst [vmem:[#allocation57_spill] sm:$0xff] %v4323_v63  ;;  %v4357_v63 = vld [vmem:[#allocation6 + $0xa0] sm:$0xff]  ;;  %620 = vmatpush.msra.mxu3 %v4353_v11 }
  0xb1   :  { %7520 = vst [vmem:[#allocation58_spill] sm:$0xff] %v4327_v7  ;;  %v4359_v7 = vld [vmem:[#allocation6 + $0xa8] sm:$0xff]  ;;  %561 = vmatpush.msrb.mxu0 %v4357_v63 }
  0xb2   :  { %7521 = vst [vmem:[#allocation59_spill] sm:$0xff] %v4329_v0  ;;  %v3144_v0 = vpop.eup %3143  ;;  %581 = vmatpush.msrb.mxu1 %v4359_v7 }
  0xb3   :  { %7522 = vst [vmem:[#allocation60_spill] sm:$0xff] %v4333_v62  ;;  %v4363_v62 = vld [vmem:[#allocation6 + $0xb0] sm:$0xff]  ;;  %v4367_v54 = vadd.f32 1.0, %v3144_v0  ;;  %v4386_v0 = vld [vmem:[#allocation6 + $0x60] sm:$0xff] }
  0xb4   :  { %7523 = vst [vmem:[#allocation61_spill] sm:$0xff] %v4335_v61  ;;  %v4365_v61 = vld [vmem:[#allocation6 + $0xb8] sm:$0xff]  ;;  %601 = vmatpush.msra.mxu2 %v4363_v62 }
  0xb5   :  { %7524 = vst [vmem:[#allocation62_spill] sm:$0xff] %v4339_v12  ;;  %v4373_v12 = vld [vmem:[#allocation6 + $0x88] sm:$0xff]  ;;  %3145 = vrcp.f32 %v4367_v54  ;;  %621 = vmatpush.msra.mxu3 %v4365_v61  ;;  %vm388_vm3 = vweird.f32 %v4367_v54 }
  0xb6   :  { %7525 = vst [vmem:[#allocation63_spill] sm:$0xff] %v4341_v60  ;;  %v4371_v60 = vld [vmem:[#allocation6 + $0x80] sm:$0xff]  ;;  %582 = vmatpush.msrb.mxu1 %v4373_v12  ;;  %3147 = vtanh.f32 %v399_v48 }
  0xb7   :  { %7526 = vst [vmem:[#allocation64_spill] sm:$0xff] %v4345_v9  ;;  %v4377_v9 = vld [vmem:[#allocation6 + $0x90] sm:$0xff]  ;;  %562 = vmatpush.msrb.mxu0 %v4371_v60  ;;  %v4546_v48 = vld [vmem:[#allocation6 + $0x3c0] sm:$0xff] }
  0xb8   :  { %7527 = vst [vmem:[#allocation65_spill] sm:$0xff] %v4347_v1  ;;  %v4379_v1 = vld [vmem:[#allocation6 + $0x98] sm:$0xff]  ;;  %602 = vmatpush.msra.mxu2 %v4377_v9 }
  0xb9   :  { %7528 = vst [vmem:[#allocation66_spill] sm:$0xff] %v4351_v10  ;;  %v4390_v10 = vld [vmem:[#allocation6 + $0x70] sm:$0xff]  ;;  %622 = vmatpush.msra.mxu3 %v4379_v1  ;;  %563 = vmatpush.msrb.mxu0 %v4386_v0 }
  0xba   :  { %7529 = vst [vmem:[#allocation67_spill] sm:$0xff] %v4353_v11  ;;  %v4388_v11 = vld [vmem:[#allocation6 + $0x68] sm:$0xff]  ;;  %603 = vmatpush.msra.mxu2 %v4390_v10 }
  0xbb   :  { %7530 = vst [vmem:[#allocation68_spill] sm:$0xff] %v4357_v63  ;;  %v4396_v63 = vld [vmem:[#allocation6 + $0x40] sm:$0xff]  ;;  %583 = vmatpush.msrb.mxu1 %v4388_v11 }
  0xbc   :  { %7531 = vst [vmem:[#allocation69_spill] sm:$0xff] %v4359_v7  ;;  %v4394_v7 = vld [vmem:[#allocation6 + $0x78] sm:$0xff]  ;;  %564 = vmatpush.msrb.mxu0 %v4396_v63 }
  0xbd   :  { %7532 = vst [vmem:[#allocation70_spill] sm:$0xff] %v4363_v62  ;;  %v4398_v62 = vld [vmem:[#allocation6 + $0x48] sm:$0xff]  ;;  %623 = vmatpush.msra.mxu3 %v4394_v7 }
  0xbe   :  { %7533 = vst [vmem:[#allocation71_spill] sm:$0xff] %v4365_v61  ;;  %v4402_v61 = vld [vmem:[#allocation6 + $0x50] sm:$0xff]  ;;  %584 = vmatpush.msrb.mxu1 %v4398_v62 }
  0xbf   :  { %7534 = vst [vmem:[#allocation72_spill] sm:$0xff] %v4371_v60  ;;  %v4414_v60 = vld [vmem:[#allocation6 + $0x30] sm:$0xff]  ;;  %604 = vmatpush.msra.mxu2 %v4402_v61 }
  0xc0   :  { %7535 = vst [vmem:[#allocation73_spill] sm:$0xff] %v4373_v12  ;;  %v4404_v12 = vld [vmem:[#allocation6 + $0x58] sm:$0xff] }
  0xc1   :  { %7536 = vst [vmem:[#allocation74_spill] sm:$0xff] %v4377_v9  ;;  %v4408_v9 = vld [vmem:[#allocation6 + $0x20] sm:$0xff]  ;;  %624 = vmatpush.msra.mxu3 %v4404_v12  ;;  %605 = vmatpush.msra.mxu2 %v4414_v60 }
  0xc2   :  { %7537 = vst [vmem:[#allocation75_spill] sm:$0xff] %v4379_v1  ;;  %v4410_v1 = vld [vmem:[#allocation6 + $0x28] sm:$0xff]  ;;  %565 = vmatpush.msrb.mxu0 %v4408_v9 }
  0xc3   :  { %7538 = vst [vmem:[#allocation76_spill] sm:$0xff] %v4386_v0  ;;  %v4416_v0 = vld [vmem:[#allocation6 + $0x38] sm:$0xff]  ;;  %585 = vmatpush.msrb.mxu1 %v4410_v1 }
  0xc4   :  { %7539 = vst [vmem:[#allocation77_spill] sm:$0xff] %v4388_v11  ;;  %v3146_v11 = vpop.eup %3145  ;;  %625 = vmatpush.msra.mxu3 %v4416_v0 }
  0xc5   :  { %7540 = vst [vmem:[#allocation78_spill] sm:$0xff] %v4390_v10  ;;  %v4420_v10 = vld [vmem:[#allocation6] sm:$0xff]  ;;  %v384_v8 = vmul.f32 %v3146_v11, %v4367_v54  ;;  %vm389_vm2 = vweird.f32 %v3146_v11 }
  0xc6   :  { %7541 = vst [vmem:[#allocation79_spill] sm:$0xff] %v4394_v7  ;;  %v4422_v7 = vld [vmem:[#allocation6 + $0x8] sm:$0xff]  ;;  %566 = vmatpush.msrb.mxu0 %v4420_v10  ;;  %vm390_vm4 = vmor %vm388_vm3, %vm389_vm2 }
  0xc7   :  { %7542 = vst [vmem:[#allocation80_spill] sm:$0xff] %v4396_v63  ;;  %v4429_v63 = vld [vmem:[#allocation6 + $0x18] sm:$0xff]  ;;  %586 = vmatpush.msrb.mxu1 %v4422_v7 }
  0xc8   :  { %7543 = vst [vmem:[#allocation81_spill] sm:$0xff] %v4398_v62  ;;  %v4427_v62 = vld [vmem:[#allocation6 + $0x10] sm:$0xff]  ;;  %626 = vmatpush.msra.mxu3 %v4429_v63 }
  0xc9   :  { %7544 = vst [vmem:[#allocation82_spill] sm:$0xff] %v4402_v61  ;;  %v394_v61 = vand.u32 2147483648, %v4367_v54  ;;  %606 = vmatpush.msra.mxu2 %v4427_v62 }
  0xca   :  { %7545 = vst [vmem:[#allocation83_spill] sm:$0xff] %v4404_v12  ;;  %v385_v12 = vsub.f32 1.0, %v384_v8 }
  0xcb   :  { %7546 = vst [vmem:[#allocation84_spill] sm:$0xff] %v4408_v9  ;;  %v392_v9 = vand.u32 2147483647, %v4367_v54  ;;  %v395_v8 = vor.u32 1.1754944e-38, %v394_v61  ;;  %v4542_v54 = vld [vmem:[#allocation6 + $0x3e8] sm:$0xff] }
  0xcc   :  { %7547 = vst [vmem:[#allocation85_spill] sm:$0xff] %v4410_v1  ;;  %v386_v1 = vmul.f32 %v3146_v11, %v385_v12 }
  0xcd   :  { %7548 = vst [vmem:[#allocation86_spill] sm:$0xff] %v4414_v60  ;;  %vm393_vm5 = vcmp.eq.f32.partialorder %v392_v9, 8.507059e+37 }
  0xce   :  { %7549 = vst [vmem:[#allocation87_spill] sm:$0xff] %v4416_v0  ;;  %v387_v2 = vadd.f32 %v3146_v11, %v386_v1  ;;  %v4548_v1 = vld [vmem:[#allocation6 + $0x3c8] sm:$0xff] }
  0xcf   :  { %7550 = vst [vmem:[#allocation88_spill] sm:$0xff] %v4420_v10  ;;  %v3148_v10 = vpop.eup %3147 }
  0xd0   :  { %7551 = vst [vmem:[#allocation89_spill] sm:$0xff] %v4422_v7  ;;  %v391_v0 = vsel %vm390_vm4, %v3146_v11, %v387_v2  ;;  %v4552_v11 = vld [vmem:[#allocation6 + $0x3a0] sm:$0xff]  ;;  %v4565_v2 = vld [vmem:[%s7090_s5] sm:$0xf] }
  0xd1   :  { %7552 = vst [vmem:[#allocation90_spill] sm:$0xff] %v4427_v62  ;;  %v396_v60 = vsel %vm393_vm5, %v395_v8, %v391_v0  ;;  %v4560_v0 = vld [vmem:[#allocation6 + $0x388] sm:$0xff]  ;;  %v4569_v8 = vld [vmem:[#allocation6 + $0x360] sm:$0xff] }
  0xd2   :  { %7553 = vst [vmem:[#allocation91_spill] sm:$0xff] %v4429_v63  ;;  %v403_v7 = vrot.slane %v396_v60, 1  ;;  %v406_v6 = vmul.f32 %v3148_v10, %v396_v60  ;;  %v409_v12 = vrot.slane %v396_v60, 2  ;;  %v4540_v10 = vld [vmem:[#allocation6 + $0x3e0] sm:$0xff] }
  0xd3   :  { %v4558_v60 = vld [vmem:[#allocation6 + $0x380] sm:$0xff] }
  0xd4   :  { %v405_v5 = vmul.f32 0.0, %v403_v7 }
  0xd6   :  { %v4441_v62 = vadd.f32 %v406_v6, %v405_v5  ;;  %v7601_v5 = vld [vmem:[#allocation85_spill] sm:$0xff]  ;;  %v7602_v6 = vld [vmem:[#allocation88_spill] sm:$0xff] }
  0xd7   :  { %v7603_v9 = vld [vmem:[#allocation89_spill] sm:$0xff] }
  0xd8   :  { %3149 = vtanh.f32 %v4441_v62 }
  0xde   :  { %v3150_v63 = vpop.eup %3149 }
  0xdf   :  { %v411_v3 = vmul.f32 %v3150_v63, %v409_v12  ;;  %v4554_v63 = vld [vmem:[#allocation6 + $0x3a8] sm:$0xff] }
  0xe0   :  { %v4571_v12 = vld [vmem:[#allocation6 + $0x368] sm:$0xff] }
  0xe1   :  { %430 = vmatmul.f32.vlgmr.msra.gmra.mxu0 %v411_v3  ;;  %450 = vmatmul.f32.vlgmr.msra.gmra.mxu1 %v411_v3 }
  0xe2   :  { %470 = vmatmul.f32.vlgmr.msrb.gmra.mxu2 %v411_v3  ;;  %490 = vmatmul.f32.vlgmr.msrb.gmra.mxu3 %v411_v3 }
  0xe3   :  { %697 = vmatpush.msra.mxu0 %v4037_v13  ;;  %717 = vmatpush.msra.mxu1 %v4039_v14  ;;  %v7554_v13 = vld [vmem:[#allocation10_spill] sm:$0xff]  ;;  %v7555_v14 = vld [vmem:[#allocation11_spill] sm:$0xff] }
  0xe4   :  { %737 = vmatpush.msrb.mxu2 %v4041_v15  ;;  %757 = vmatpush.msrb.mxu3 %v4045_v16  ;;  %v7556_v15 = vld [vmem:[#allocation12_spill] sm:$0xff]  ;;  %v7557_v16 = vld [vmem:[#allocation13_spill] sm:$0xff] }
  0xe5   :  { %698 = vmatpush.msra.mxu0 %v4049_v17  ;;  %718 = vmatpush.msra.mxu1 %v4051_v18  ;;  %v7558_v17 = vld [vmem:[#allocation14_spill] sm:$0xff]  ;;  %v7559_v18 = vld [vmem:[#allocation15_spill] sm:$0xff] }
  0xe6   :  { %738 = vmatpush.msrb.mxu2 %v4053_v19  ;;  %758 = vmatpush.msrb.mxu3 %v4057_v20  ;;  %v7560_v19 = vld [vmem:[#allocation16_spill] sm:$0xff]  ;;  %v7561_v20 = vld [vmem:[#allocation17_spill] sm:$0xff] }
  0xe7   :  { %699 = vmatpush.msra.mxu0 %v4061_v21  ;;  %719 = vmatpush.msra.mxu1 %v4063_v22  ;;  %v7562_v21 = vld [vmem:[#allocation18_spill] sm:$0xff]  ;;  %v7563_v22 = vld [vmem:[#allocation19_spill] sm:$0xff] }
  0xe8   :  { %739 = vmatpush.msrb.mxu2 %v4065_v23  ;;  %759 = vmatpush.msrb.mxu3 %v4069_v24  ;;  %v7564_v23 = vld [vmem:[#allocation20_spill] sm:$0xff]  ;;  %v7565_v24 = vld [vmem:[#allocation21_spill] sm:$0xff] }
  0xe9   :  { %567 = vmatmul.f32.vlgmr.msrb.gmra.mxu0 %v411_v3  ;;  %587 = vmatmul.f32.vlgmr.msrb.gmra.mxu1 %v411_v3 }
  0xea   :  { %607 = vmatmul.f32.vlgmr.msra.gmra.mxu2 %v411_v3  ;;  %627 = vmatmul.f32.vlgmr.msra.gmra.mxu3 %v411_v3  ;;  %v7599_v3 = vld [vmem:[#allocation81_spill] sm:$0xff] }
  0xeb   :  { %700 = vmatpush.msra.mxu0 %v4073_v25  ;;  %720 = vmatpush.msra.mxu1 %v4075_v26  ;;  %v7566_v25 = vld [vmem:[#allocation22_spill] sm:$0xff]  ;;  %v7567_v26 = vld [vmem:[#allocation23_spill] sm:$0xff] }
  0xec   :  { %740 = vmatpush.msrb.mxu2 %v4077_v27  ;;  %760 = vmatpush.msrb.mxu3 %v4081_v28  ;;  %v7568_v27 = vld [vmem:[#allocation24_spill] sm:$0xff]  ;;  %v7569_v28 = vld [vmem:[#allocation25_spill] sm:$0xff] }
  0xed   :  { %701 = vmatpush.msra.mxu0 %v4085_v29  ;;  %721 = vmatpush.msra.mxu1 %v4087_v30  ;;  %v7570_v29 = vld [vmem:[#allocation26_spill] sm:$0xff]  ;;  %v7571_v30 = vld [vmem:[#allocation27_spill] sm:$0xff] }
  0xee   :  { %741 = vmatpush.msrb.mxu2 %v4089_v31  ;;  %761 = vmatpush.msrb.mxu3 %v4093_v32  ;;  %v7572_v31 = vld [vmem:[#allocation28_spill] sm:$0xff]  ;;  %v7573_v32 = vld [vmem:[#allocation29_spill] sm:$0xff] }
  0xef   :  { %702 = vmatpush.msra.mxu0 %v4097_v33  ;;  %722 = vmatpush.msra.mxu1 %v4099_v34  ;;  %v7574_v33 = vld [vmem:[#allocation32_spill] sm:$0xff]  ;;  %v7575_v34 = vld [vmem:[#allocation33_spill] sm:$0xff] }
  0xf0   :  { %742 = vmatpush.msrb.mxu2 %v4101_v35  ;;  %762 = vmatpush.msrb.mxu3 %v4105_v36  ;;  %v7576_v35 = vld [vmem:[#allocation36_spill] sm:$0xff]  ;;  %v7577_v36 = vld [vmem:[#allocation37_spill] sm:$0xff] }
  0xf1   :  { %703 = vmatpush.msra.mxu0 %v4109_v37  ;;  %723 = vmatpush.msra.mxu1 %v4111_v38  ;;  %v7578_v37 = vld [vmem:[#allocation40_spill] sm:$0xff]  ;;  %v7579_v38 = vld [vmem:[#allocation41_spill] sm:$0xff] }
  0xf2   :  { %743 = vmatpush.msrb.mxu2 %v4113_v39  ;;  %763 = vmatpush.msrb.mxu3 %v4117_v40  ;;  %v7580_v39 = vld [vmem:[#allocation44_spill] sm:$0xff]  ;;  %v7581_v40 = vld [vmem:[#allocation45_spill] sm:$0xff] }
  0xf3   :  { %704 = vmatpush.msra.mxu0 %v4121_v41  ;;  %724 = vmatpush.msra.mxu1 %v4123_v42  ;;  %v7582_v41 = vld [vmem:[#allocation48_spill] sm:$0xff]  ;;  %v7583_v42 = vld [vmem:[#allocation49_spill] sm:$0xff] }
  0xf4   :  { %744 = vmatpush.msrb.mxu2 %v4125_v43  ;;  %764 = vmatpush.msrb.mxu3 %v4129_v44  ;;  %v7584_v43 = vld [vmem:[#allocation52_spill] sm:$0xff]  ;;  %v7585_v44 = vld [vmem:[#allocation53_spill] sm:$0xff] }
  0xf5   :  { %705 = vmatpush.msra.mxu0 %v4133_v45  ;;  %725 = vmatpush.msra.mxu1 %v4135_v46  ;;  %v7586_v45 = vld [vmem:[#allocation56_spill] sm:$0xff]  ;;  %v7587_v46 = vld [vmem:[#allocation57_spill] sm:$0xff] }
  0xf6   :  { %745 = vmatpush.msrb.mxu2 %v4137_v47  ;;  %765 = vmatpush.msrb.mxu3 %v4146_v49  ;;  %v7588_v47 = vld [vmem:[#allocation60_spill] sm:$0xff]  ;;  %v7589_v49 = vld [vmem:[#allocation61_spill] sm:$0xff] }
  0xf7   :  { %706 = vmatpush.msra.mxu0 %v4150_v50  ;;  %726 = vmatpush.msra.mxu1 %v4152_v51  ;;  %v7590_v50 = vld [vmem:[#allocation64_spill] sm:$0xff]  ;;  %v7591_v51 = vld [vmem:[#allocation65_spill] sm:$0xff] }
  0xf8   :  { %746 = vmatpush.msrb.mxu2 %v4154_v52  ;;  %766 = vmatpush.msrb.mxu3 %v4158_v53  ;;  %v7592_v52 = vld [vmem:[#allocation68_spill] sm:$0xff]  ;;  %v7593_v53 = vld [vmem:[#allocation69_spill] sm:$0xff] }
  0xf9   :  { %707 = vmatpush.msra.mxu0 %v4163_v55  ;;  %727 = vmatpush.msra.mxu1 %v4165_v56  ;;  %v7594_v55 = vld [vmem:[#allocation72_spill] sm:$0xff]  ;;  %v7595_v56 = vld [vmem:[#allocation73_spill] sm:$0xff] }
  0xfa   :  { %747 = vmatpush.msrb.mxu2 %v4167_v57  ;;  %767 = vmatpush.msrb.mxu3 %v4171_v58  ;;  %v7596_v57 = vld [vmem:[#allocation76_spill] sm:$0xff]  ;;  %v7597_v58 = vld [vmem:[#allocation77_spill] sm:$0xff] }
  0xfb   :  { %708 = vmatpush.msra.mxu0 %v4175_v59  ;;  %728 = vmatpush.msra.mxu1 %v7554_v13  ;;  %v7598_v59 = vld [vmem:[#allocation80_spill] sm:$0xff]  ;;  %v4576_v13 = vperm.slane %v4565_v2, 0 }
  0xfc   :  { %748 = vmatpush.msrb.mxu2 %v7555_v14  ;;  %768 = vmatpush.msrb.mxu3 %v7556_v15  ;;  %v4579_v14 = vperm.slane %v4565_v2, 1  ;;  %v4581_v15 = vld [vmem:[#allocation6 + $0x340] sm:$0xff] }
  0xfd   :  { %709 = vmatpush.msra.mxu0 %v7557_v16  ;;  %729 = vmatpush.msra.mxu1 %v7558_v17  ;;  %7604 = vst [vmem:[#allocation10_spill] sm:$0xff] %v4576_v13  ;;  %v4583_v16 = vld [vmem:[#allocation6 + $0x348] sm:$0xff] }
  0xfe   :  { %749 = vmatpush.msrb.mxu2 %v7559_v18  ;;  %769 = vmatpush.msrb.mxu3 %v7560_v19  ;;  %7605 = vst [vmem:[#allocation11_spill] sm:$0xff] %v4579_v14 }
  0xff   :  { %710 = vmatpush.msra.mxu0 %v7561_v20  ;;  %730 = vmatpush.msra.mxu1 %v7562_v21  ;;  %v4587_v20 = vld [vmem:[#allocation6 + $0x320] sm:$0xff]  ;;  %v4589_v21 = vld [vmem:[#allocation6 + $0x328] sm:$0xff] }
 0x100   :  { %750 = vmatpush.msrb.mxu2 %v7563_v22  ;;  %770 = vmatpush.msrb.mxu3 %v7564_v23 }
 0x101   :  { %711 = vmatpush.msra.mxu0 %v7565_v24  ;;  %731 = vmatpush.msra.mxu1 %v7566_v25 }
 0x102   :  { %751 = vmatpush.msrb.mxu2 %v7567_v26  ;;  %771 = vmatpush.msrb.mxu3 %v7568_v27 }
 0x103   :  { %712 = vmatpush.msra.mxu0 %v4222_v4  ;;  %732 = vmatpush.msra.mxu1 %v7569_v28  ;;  %v7600_v4 = vld [vmem:[#allocation84_spill] sm:$0xff]  ;;  %v4595_v28 = vld [vmem:[#allocation6 + $0x300] sm:$0xff] }
 0x104   :  { %752 = vmatpush.msrb.mxu2 %v7570_v29  ;;  %772 = vmatpush.msrb.mxu3 %v7571_v30  ;;  %v4597_v29 = vld [vmem:[#allocation6 + $0x308] sm:$0xff] }
 0x105   :  { %822 = vmatpush.msrb.mxu0 %v7572_v31  ;;  %842 = vmatpush.msrb.mxu1 %v4540_v10  ;;  %v413_v31 = vld [vmem:[#allocation2 + $0x1] ss:$8 sm:$0xf] }
 0x106   :  { %862 = vmatpush.msra.mxu2 %v7573_v32  ;;  %882 = vmatpush.msra.mxu3 %v4542_v54 }
 0x107   :  { %823 = vmatpush.msrb.mxu0 %v7574_v33  ;;  %843 = vmatpush.msrb.mxu1 %v4546_v48 }
 0x108   :  { %863 = vmatpush.msra.mxu2 %v7575_v34  ;;  %883 = vmatpush.msra.mxu3 %v4548_v1 }
 0x109   :  { %824 = vmatpush.msrb.mxu0 %v7576_v35  ;;  %844 = vmatpush.msrb.mxu1 %v4552_v11 }
 0x10a   :  { %864 = vmatpush.msra.mxu2 %v7577_v36  ;;  %884 = vmatpush.msra.mxu3 %v4554_v63  ;;  %v4604_v36 = vld [vmem:[#allocation6 + $0x2e0] sm:$0xff] }
 0x10b   :  { %825 = vmatpush.msrb.mxu0 %v7578_v37  ;;  %845 = vmatpush.msrb.mxu1 %v4558_v60  ;;  %v4606_v37 = vld [vmem:[#allocation6 + $0x2e8] sm:$0xff] }
 0x10c   :  { %865 = vmatpush.msra.mxu2 %v7579_v38  ;;  %885 = vmatpush.msra.mxu3 %v4560_v0 }
 0x10d   :  { %826 = vmatpush.msrb.mxu0 %v7580_v39  ;;  %846 = vmatpush.msrb.mxu1 %v4569_v8  ;;  %v4609_v39 = vperm.slane %v4565_v2, 2 }
 0x10e   :  { %866 = vmatpush.msra.mxu2 %v7581_v40  ;;  %886 = vmatpush.msra.mxu3 %v4571_v12  ;;  %v4613_v40 = vld [vmem:[#allocation6 + $0x2c0] sm:$0xff] }
 0x10f   :  { %827 = vmatpush.msrb.mxu0 %v7582_v41  ;;  %847 = vmatpush.msrb.mxu1 %v4581_v15  ;;  %7606 = vst [vmem:[#allocation12_spill] sm:$0xff] %v4609_v39  ;;  %v4615_v41 = vld [vmem:[#allocation6 + $0x2c8] sm:$0xff] }
 0x110   :  { %867 = vmatpush.msra.mxu2 %v7583_v42  ;;  %887 = vmatpush.msra.mxu3 %v4583_v16 }
 0x111   :  { %828 = vmatpush.msrb.mxu0 %v7584_v43  ;;  %848 = vmatpush.msrb.mxu1 %v4587_v20 }
 0x112   :  { %868 = vmatpush.msra.mxu2 %v7585_v44  ;;  %888 = vmatpush.msra.mxu3 %v4589_v21  ;;  %v4619_v44 = vld [vmem:[#allocation6 + $0x2a0] sm:$0xff] }
 0x113   :  { %829 = vmatpush.msrb.mxu0 %v7586_v45  ;;  %849 = vmatpush.msrb.mxu1 %v4595_v28  ;;  %v4621_v45 = vld [vmem:[#allocation6 + $0x2a8] sm:$0xff] }
 0x114   :  { %869 = vmatpush.msra.mxu2 %v7587_v46  ;;  %889 = vmatpush.msra.mxu3 %v4597_v29 }
 0x115   :  { %830 = vmatpush.msrb.mxu0 %v7588_v47  ;;  %850 = vmatpush.msrb.mxu1 %v4604_v36  ;;  %v4626_v47 = vld [vmem:[#allocation6 + $0x280] sm:$0xff] }
 0x116   :  { %870 = vmatpush.msra.mxu2 %v7589_v49  ;;  %890 = vmatpush.msra.mxu3 %v4606_v37  ;;  %v4628_v49 = vld [vmem:[#allocation6 + $0x288] sm:$0xff] }
 0x117   :  { %831 = vmatpush.msrb.mxu0 %v7590_v50  ;;  %851 = vmatpush.msrb.mxu1 %v4613_v40 }
 0x118   :  { %871 = vmatpush.msra.mxu2 %v7591_v51  ;;  %891 = vmatpush.msra.mxu3 %v4615_v41 }
 0x119   :  { %832 = vmatpush.msrb.mxu0 %v7592_v52  ;;  %852 = vmatpush.msrb.mxu1 %v4619_v44  ;;  %v4632_v52 = vld [vmem:[#allocation6 + $0x260] sm:$0xff] }
 0x11a   :  { %872 = vmatpush.msra.mxu2 %v7593_v53  ;;  %892 = vmatpush.msra.mxu3 %v4621_v45  ;;  %v4634_v53 = vld [vmem:[#allocation6 + $0x268] sm:$0xff] }
 0x11b   :  { %833 = vmatpush.msrb.mxu0 %v7594_v55  ;;  %853 = vmatpush.msrb.mxu1 %v4626_v47 }
 0x11c   :  { %873 = vmatpush.msra.mxu2 %v7595_v56  ;;  %893 = vmatpush.msra.mxu3 %v4628_v49 }
 0x11d   :  { %834 = vmatpush.msrb.mxu0 %v7596_v57  ;;  %854 = vmatpush.msrb.mxu1 %v4632_v52 }
 0x11e   :  { %874 = vmatpush.msra.mxu2 %v7597_v58  ;;  %894 = vmatpush.msra.mxu3 %v4634_v53  ;;  %v4640_v58 = vld [vmem:[#allocation6 + $0x240] sm:$0xff] }
 0x11f   :  { %835 = vmatpush.msrb.mxu0 %v7598_v59  ;;  %v4642_v59 = vld [vmem:[#allocation6 + $0x248] sm:$0xff]  ;;  %855 = vmatpush.msrb.mxu1 %v4640_v58 }
 0x120   :  { %875 = vmatpush.msra.mxu2 %v7599_v3  ;;  %895 = vmatpush.msra.mxu3 %v4642_v59 }
 0x121   :  { %836 = vmatpush.msrb.mxu0 %v7600_v4 }
 0x122   :  { %876 = vmatpush.msra.mxu2 %v7601_v5  ;;  %v4650_v5 = vperm.slane %v4565_v2, 3 }
 0x123   :  { %837 = vmatpush.msrb.mxu0 %v7602_v6  ;;  %v4652_v6 = vld [vmem:[#allocation6 + $0x220] sm:$0xff] }
 0x124   :  { %877 = vmatpush.msra.mxu2 %v7603_v9  ;;  %7607 = vst [vmem:[#allocation13_spill] sm:$0xff] %v4650_v5  ;;  %v4654_v9 = vld [vmem:[#allocation6 + $0x228] sm:$0xff]  ;;  %856 = vmatpush.msrb.mxu1 %v4652_v6 }
 0x125   :  { %896 = vmatpush.msra.mxu3 %v4654_v9 }
 0x15e   :  { %v431_v7 = vpop.f32.mrf.mxu0  ;;  %v451_v61 = vpop.f32.mrf.mxu1 }
 0x15f   :  { %v498_v17 = vrot.slane %v451_v61, 7 }
 0x161   :  { %v502_v30 = vsel %vm501_vm6, %v431_v7, %v498_v17  ;;  %v4656_v7 = vld [vmem:[#allocation6 + $0x200] sm:$0xff]  ;;  %v4660_v17 = vld [vmem:[#allocation6 + $0x208] sm:$0xff] }
 0x162   :  { %857 = vmatpush.msrb.mxu1 %v4656_v7  ;;  %897 = vmatpush.msra.mxu3 %v4660_v17 }
 0x165   :  { %v471_v18 = vpop.f32.mrf.mxu2  ;;  %v491_v19 = vpop.f32.mrf.mxu3 }
 0x166   :  { %v499_v22 = vrot.slane %v471_v18, 6  ;;  %v500_v23 = vrot.slane %v491_v19, 5  ;;  %v568_v24 = vpop.f32.mrf.mxu0  ;;  %v588_v25 = vpop.f32.mrf.mxu1 }
 0x167   :  { %v569_v26 = vadd.f32 %v568_v24, %v4576_v13  ;;  %v589_v27 = vadd.f32 %v588_v25, %v4579_v14 }
 0x168   :  { %v504_v32 = vsel %vm503_vm7, %v499_v22, %v500_v23 }
 0x169   :  { %v506_v33 = vsel %vm505_vm8, %v502_v30, %v504_v32  ;;  %v3108_v34 = vmul.f32 -1.442695, %v569_v26  ;;  %v3109_v35 = vmul.f32 -1.442695, %v589_v27 }
 0x16a   :  { %v508_v38 = vadd.f32 %v506_v33, %v413_v31 }
 0x16b   :  { %3151 = vpow2.f32 %v3108_v34 }
 0x16c   :  { %v3107_v42 = vmul.f32 -1.442695, %v508_v38  ;;  %3153 = vpow2.f32 %v3109_v35  ;;  %v529_v19 = vrot.slane %v508_v38, 3 }
 0x16d   :  { %v608_v43 = vpop.f32.mrf.mxu2  ;;  %v628_v61 = vpop.f32.mrf.mxu3 }
 0x16e   :  { %3155 = vpow2.f32 %v3107_v42  ;;  %v609_v46 = vadd.f32 %v608_v43, %v4609_v39  ;;  %v629_v22 = vadd.f32 %v628_v61, %v4650_v5 }
 0x170   :  { %v3110_v50 = vmul.f32 -1.442695, %v609_v46 }
 0x171   :  { %v3152_v51 = vpop.eup %3151 }
 0x172   :  { %v3154_v55 = vpop.eup %3153  ;;  %v640_v56 = vadd.f32 1.0, %v3152_v51  ;;  %3157 = vpow2.f32 %v3110_v50 }
 0x173   :  { %v4638_v57 = vadd.f32 1.0, %v3154_v55 }
 0x174   :  { %v3156_v3 = vpop.eup %3155  ;;  %3159 = vrcp.f32 %v640_v56  ;;  %v652_v27 = vand.u32 2147483647, %v640_v56  ;;  %v654_v32 = vand.u32 2147483648, %v640_v56  ;;  %vm648_vm10 = vweird.f32 %v640_v56 }
 0x175   :  { %v4646_v4 = vadd.f32 1.0, %v3156_v3  ;;  %3161 = vrcp.f32 %v4638_v57  ;;  %vm663_vm9 = vweird.f32 %v4638_v57  ;;  %v669_v35 = vand.u32 2147483648, %v4638_v57 }
 0x176   :  { %v667_v42 = vand.u32 2147483647, %v4638_v57  ;;  %vm4674_vm12 = vcmp.eq.f32.partialorder %v652_v27, 8.507059e+37 }
 0x177   :  { %3163 = vrcp.f32 %v4646_v4  ;;  %v522_v55 = vand.u32 2147483647, %v4646_v4  ;;  %v524_v3 = vand.u32 2147483648, %v4646_v4  ;;  %vm518_vm0 = vweird.f32 %v4646_v4 }
 0x178   :  { %v3158_v18 = vpop.eup %3157  ;;  %vm668_vm2 = vcmp.eq.f32.partialorder %v667_v42, 8.507059e+37 }
 0x179   :  { %v4665_v2 = vadd.f32 1.0, %v3158_v18  ;;  %v655_v18 = vor.u32 1.1754944e-38, %v654_v32  ;;  %vm523_vm4 = vcmp.eq.f32.partialorder %v522_v55, 8.507059e+37 }
 0x17a   :  { %v3160_v23 = vpop.eup %3159 }
 0x17b   :  { %v3162_v24 = vpop.eup %3161  ;;  %v644_v25 = vmul.f32 %v3160_v23, %v640_v56  ;;  %3165 = vrcp.f32 %v4665_v2  ;;  %vm649_vm11 = vweird.f32 %v3160_v23  ;;  %v525_v56 = vor.u32 1.1754944e-38, %v524_v3 }
 0x17c   :  { %3167 = vtanh.f32 %v529_v19  ;;  %v659_v26 = vmul.f32 %v3162_v24, %v4638_v57  ;;  %vm664_vm13 = vweird.f32 %v3162_v24  ;;  %vm650_vm15 = vmor %vm648_vm10, %vm649_vm11  ;;  %v684_v50 = vand.u32 2147483648, %v4665_v2 }
 0x17d   :  { %v3164_v30 = vpop.eup %3163  ;;  %v645_v31 = vsub.f32 1.0, %v644_v25  ;;  %3169 = vtanh.f32 %v629_v22  ;;  %vm665_vm1 = vmor %vm663_vm9, %vm664_vm13  ;;  %vm678_vm9 = vweird.f32 %v4665_v2 }
 0x17e   :  { %v514_v33 = vmul.f32 %v3164_v30, %v4646_v4  ;;  %v660_v34 = vsub.f32 1.0, %v659_v26  ;;  %vm519_vm14 = vweird.f32 %v3164_v30 }
 0x17f   :  { %v646_v38 = vmul.f32 %v3160_v23, %v645_v31  ;;  %v670_v31 = vor.u32 1.1754944e-38, %v669_v35  ;;  %vm520_vm3 = vmor %vm518_vm0, %vm519_vm14 }
 0x180   :  { %v515_v43 = vsub.f32 1.0, %v514_v33  ;;  %v661_v46 = vmul.f32 %v3162_v24, %v660_v34 }
 0x181   :  { %v3166_v51 = vpop.eup %3165  ;;  %v647_v61 = vadd.f32 %v3160_v23, %v646_v38 }
 0x182   :  { %v3168_v19 = vpop.eup %3167  ;;  %v516_v22 = vmul.f32 %v3164_v30, %v515_v43  ;;  %v674_v25 = vmul.f32 %v3166_v51, %v4665_v2  ;;  %v662_v26 = vadd.f32 %v3162_v24, %v661_v46  ;;  %vm679_vm5 = vweird.f32 %v3166_v51 }
 0x183   :  { %v3170_v27 = vpop.eup %3169  ;;  %v651_v33 = vsel %vm650_vm15, %v3160_v23, %v647_v61  ;;  %vm680_vm10 = vmor %vm678_vm9, %vm679_vm5 }
 0x184   :  { %v517_v32 = vadd.f32 %v3164_v30, %v516_v22  ;;  %v675_v34 = vsub.f32 1.0, %v674_v25  ;;  %v656_v38 = vsel %vm4674_vm12, %v655_v18, %v651_v33  ;;  %v666_v43 = vsel %vm665_vm1, %v3162_v24, %v662_v26  ;;  %v4704_v26 = vld [vmem:[#allocation6 + $0x3f0] sm:$0xff]  ;;  %v7611_v33 = vld [vmem:[#allocation31_spill] sm:$0xff] }
 0x185   :  { %v671_v5 = vsel %vm668_vm2, %v670_v31, %v666_v43  ;;  %v690_v46 = vmul.f32 %v3170_v27, %v656_v38  ;;  %v682_v24 = vand.u32 2147483647, %v4665_v2  ;;  %v4708_v2 = vld [vmem:[#allocation6 + $0x3f8] sm:$0xff]  ;;  %v7610_v27 = vld [vmem:[#allocation30_spill] sm:$0xff]  ;;  %v7613_v43 = vld [vmem:[#allocation35_spill] sm:$0xff] }
 0x186   :  { %v521_v39 = vsel %vm520_vm3, %v3164_v30, %v517_v32  ;;  %v676_v4 = vmul.f32 %v3166_v51, %v675_v34  ;;  %v689_v35 = vmul.f32 0.0, %v671_v5  ;;  %v685_v5 = vor.u32 1.1754944e-38, %v684_v50  ;;  %v4716_v31 = vld [vmem:[#allocation6 + $0x3d8] sm:$0xff]  ;;  %v4720_v32 = vld [vmem:[#allocation6 + $0x3b0] sm:$0xff]  ;;  %v7612_v34 = vld [vmem:[#allocation34_spill] sm:$0xff] }
 0x187   :  { %v526_v23 = vsel %vm523_vm4, %v525_v56, %v521_v39  ;;  %vm683_vm11 = vcmp.eq.f32.partialorder %v682_v24, 8.507059e+37  ;;  %v4724_v38 = vld [vmem:[#allocation6 + $0x3b8] sm:$0xff]  ;;  %v4728_v56 = vld [vmem:[#allocation6 + $0x390] sm:$0xff]  ;;  %v7618_v50 = vld [vmem:[#allocation46_spill] sm:$0xff] }
 0x188   :  { %v533_v61 = vrot.slane %v526_v23, 1  ;;  %v4689_v14 = vadd.f32 %v690_v46, %v689_v35  ;;  %v677_v57 = vadd.f32 %v3166_v51, %v676_v4  ;;  %v536_v22 = vmul.f32 %v3168_v19, %v526_v23  ;;  %v7614_v46 = vld [vmem:[#allocation38_spill] sm:$0xff]  ;;  %v4732_v4 = vld [vmem:[#allocation6 + $0x398] sm:$0xff]  ;;  %v7615_v35 = vld [vmem:[#allocation39_spill] sm:$0xff] }
 0x189   :  { %v539_v18 = vrot.slane %v526_v23, 2  ;;  %v7616_v23 = vld [vmem:[#allocation42_spill] sm:$0xff]  ;;  %v4752_v24 = vld [vmem:[#allocation6 + $0x358] sm:$0xff] }
 0x18a   :  { %v535_v42 = vmul.f32 %v533_v61, %v4441_v62  ;;  %3171 = vtanh.f32 %v4689_v14  ;;  %v681_v39 = vsel %vm680_vm10, %v3166_v51, %v677_v57  ;;  %v4712_v51 = vld [vmem:[#allocation6 + $0x3d0] sm:$0xff]  ;;  %v7617_v61 = vld [vmem:[#allocation43_spill] sm:$0xff] }
 0x18b   :  { %v686_v3 = vsel %vm683_vm11, %v685_v5, %v681_v39  ;;  %v4740_v57 = vld [vmem:[#allocation6 + $0x370] sm:$0xff]  ;;  %v7619_v39 = vld [vmem:[#allocation47_spill] sm:$0xff] }
 0x18c   :  { %v4696_v30 = vadd.f32 %v536_v22, %v535_v42  ;;  %v4744_v42 = vld [vmem:[#allocation6 + $0x378] sm:$0xff]  ;;  %v4748_v22 = vld [vmem:[#allocation6 + $0x350] sm:$0xff] }
 0x18d   :  { %v4756_v5 = vld [vmem:[#allocation6 + $0x330] sm:$0xff] }
 0x18e   :  { %3173 = vtanh.f32 %v4696_v30 }
 0x190   :  { %v3172_v55 = vpop.eup %3171 }
 0x191   :  { %v4699_v62 = vmul.f32 %v3172_v55, %v686_v3  ;;  %v7620_v55 = vld [vmem:[#allocation50_spill] sm:$0xff]  ;;  %v4760_v3 = vld [vmem:[#allocation6 + $0x338] sm:$0xff] }
 0x193   :  { %694 = vst [vmem:[#allocation3] sm:$0x1] %v4699_v62 }
 0x194   :  { %v3174_v19 = vpop.eup %3173 }
 0x195   :  { %v4702_v25 = vmul.f32 %v3174_v19, %v539_v18  ;;  %v7621_v18 = vld [vmem:[#allocation51_spill] sm:$0xff]  ;;  %v4764_v19 = vld [vmem:[#allocation6 + $0x310] sm:$0xff] }
 0x197   :  { %713 = vmatmul.f32.vlgmr.msra.gmra.mxu0 %v4702_v25  ;;  %733 = vmatmul.f32.vlgmr.msra.gmra.mxu1 %v4702_v25 }
 0x198   :  { %753 = vmatmul.f32.vlgmr.msrb.gmra.mxu2 %v4702_v25  ;;  %773 = vmatmul.f32.vlgmr.msrb.gmra.mxu3 %v4702_v25 }
 0x199   :  { %902 = vmatpush.msra.mxu0 %v7610_v27  ;;  %922 = vmatpush.msra.mxu1 %v4704_v26  ;;  %v7622_v27 = vld [vmem:[#allocation54_spill] sm:$0xff] }
 0x19a   :  { %942 = vmatpush.msrb.mxu2 %v7611_v33  ;;  %962 = vmatpush.msrb.mxu3 %v4708_v2  ;;  %v4768_v33 = vld [vmem:[#allocation6 + $0x318] sm:$0xff] }
 0x19b   :  { %903 = vmatpush.msra.mxu0 %v7612_v34  ;;  %923 = vmatpush.msra.mxu1 %v4712_v51  ;;  %v7623_v34 = vld [vmem:[#allocation55_spill] sm:$0xff] }
 0x19c   :  { %943 = vmatpush.msrb.mxu2 %v7613_v43  ;;  %963 = vmatpush.msrb.mxu3 %v4716_v31  ;;  %v4772_v43 = vld [vmem:[#allocation6 + $0x2f0] sm:$0xff] }
 0x19d   :  { %904 = vmatpush.msra.mxu0 %v7614_v46  ;;  %924 = vmatpush.msra.mxu1 %v4720_v32  ;;  %v7624_v46 = vld [vmem:[#allocation58_spill] sm:$0xff] }
 0x19e   :  { %944 = vmatpush.msrb.mxu2 %v7615_v35  ;;  %964 = vmatpush.msrb.mxu3 %v4724_v38  ;;  %v4776_v35 = vld [vmem:[#allocation6 + $0x2f8] sm:$0xff] }
 0x19f   :  { %905 = vmatpush.msra.mxu0 %v7616_v23  ;;  %925 = vmatpush.msra.mxu1 %v4728_v56  ;;  %7625 = vst [vmem:[#allocation14_spill] sm:$0xff] %v4776_v35  ;;  %v7626_v23 = vld [vmem:[#allocation59_spill] sm:$0xff] }
 0x1a0   :  { %945 = vmatpush.msrb.mxu2 %v7617_v61  ;;  %965 = vmatpush.msrb.mxu3 %v4732_v4  ;;  %v4780_v61 = vld [vmem:[#allocation6 + $0x2d0] sm:$0xff] }
 0x1a1   :  { %838 = vmatmul.f32.vlgmr.msrb.gmra.mxu0 %v4702_v25  ;;  %858 = vmatmul.f32.vlgmr.msrb.gmra.mxu1 %v4699_v62  ;;  %7627 = vst [vmem:[#allocation15_spill] sm:$0xff] %v4780_v61 }
 0x1a2   :  { %878 = vmatmul.f32.vlgmr.msra.gmra.mxu2 %v4702_v25  ;;  %898 = vmatmul.f32.vlgmr.msra.gmra.mxu3 %v4699_v62 }
 0x1a3   :  { %906 = vmatpush.msra.mxu0 %v7618_v50  ;;  %926 = vmatpush.msra.mxu1 %v4740_v57  ;;  %v7628_v50 = vld [vmem:[#allocation62_spill] sm:$0xff] }
 0x1a4   :  { %946 = vmatpush.msrb.mxu2 %v7619_v39  ;;  %966 = vmatpush.msrb.mxu3 %v4744_v42  ;;  %v4784_v39 = vld [vmem:[#allocation6 + $0x2d8] sm:$0xff] }
 0x1a5   :  { %907 = vmatpush.msra.mxu0 %v7620_v55  ;;  %927 = vmatpush.msra.mxu1 %v4748_v22  ;;  %7629 = vst [vmem:[#allocation16_spill] sm:$0xff] %v4784_v39  ;;  %v7630_v55 = vld [vmem:[#allocation63_spill] sm:$0xff] }
 0x1a6   :  { %947 = vmatpush.msrb.mxu2 %v7621_v18  ;;  %967 = vmatpush.msrb.mxu3 %v4752_v24  ;;  %v4788_v18 = vld [vmem:[#allocation6 + $0x2b0] sm:$0xff] }
 0x1a7   :  { %908 = vmatpush.msra.mxu0 %v7622_v27  ;;  %928 = vmatpush.msra.mxu1 %v4756_v5  ;;  %7631 = vst [vmem:[#allocation17_spill] sm:$0xff] %v4788_v18  ;;  %v7632_v27 = vld [vmem:[#allocation66_spill] sm:$0xff] }
 0x1a8   :  { %948 = vmatpush.msrb.mxu2 %v7623_v34  ;;  %968 = vmatpush.msrb.mxu3 %v4760_v3  ;;  %v4792_v34 = vld [vmem:[#allocation6 + $0x2b8] sm:$0xff] }
 0x1a9   :  { %909 = vmatpush.msra.mxu0 %v7624_v46  ;;  %929 = vmatpush.msra.mxu1 %v4764_v19  ;;  %7633 = vst [vmem:[#allocation18_spill] sm:$0xff] %v4792_v34  ;;  %v7634_v46 = vld [vmem:[#allocation67_spill] sm:$0xff] }
 0x1aa   :  { %949 = vmatpush.msrb.mxu2 %v7626_v23  ;;  %969 = vmatpush.msrb.mxu3 %v4768_v33  ;;  %v4796_v23 = vld [vmem:[#allocation6 + $0x290] sm:$0xff] }
 0x1ab   :  { %910 = vmatpush.msra.mxu0 %v7628_v50  ;;  %930 = vmatpush.msra.mxu1 %v4772_v43  ;;  %7635 = vst [vmem:[#allocation19_spill] sm:$0xff] %v4796_v23  ;;  %v7636_v50 = vld [vmem:[#allocation70_spill] sm:$0xff] }
 0x1ac   :  { %950 = vmatpush.msrb.mxu2 %v7630_v55  ;;  %970 = vmatpush.msrb.mxu3 %v4776_v35  ;;  %v4800_v55 = vld [vmem:[#allocation6 + $0x298] sm:$0xff]  ;;  %v7638_v35 = vld [vmem:[#allocation71_spill] sm:$0xff] }
 0x1ad   :  { %911 = vmatpush.msra.mxu0 %v7632_v27  ;;  %931 = vmatpush.msra.mxu1 %v4780_v61  ;;  %7637 = vst [vmem:[#allocation20_spill] sm:$0xff] %v4800_v55  ;;  %v4804_v27 = vld [vmem:[#allocation6 + $0x270] sm:$0xff]  ;;  %v7640_v61 = vld [vmem:[#allocation74_spill] sm:$0xff] }
 0x1ae   :  { %951 = vmatpush.msrb.mxu2 %v7634_v46  ;;  %971 = vmatpush.msrb.mxu3 %v4784_v39  ;;  %7639 = vst [vmem:[#allocation21_spill] sm:$0xff] %v4804_v27  ;;  %v4808_v46 = vld [vmem:[#allocation6 + $0x278] sm:$0xff]  ;;  %v7642_v39 = vld [vmem:[#allocation75_spill] sm:$0xff] }
 0x1af   :  { %912 = vmatpush.msra.mxu0 %v7636_v50  ;;  %932 = vmatpush.msra.mxu1 %v4788_v18  ;;  %7641 = vst [vmem:[#allocation22_spill] sm:$0xff] %v4808_v46  ;;  %v4812_v50 = vld [vmem:[#allocation6 + $0x250] sm:$0xff]  ;;  %v7644_v18 = vld [vmem:[#allocation78_spill] sm:$0xff] }
 0x1b0   :  { %952 = vmatpush.msrb.mxu2 %v7638_v35  ;;  %972 = vmatpush.msrb.mxu3 %v4792_v34  ;;  %7643 = vst [vmem:[#allocation23_spill] sm:$0xff] %v4812_v50  ;;  %v4816_v35 = vld [vmem:[#allocation6 + $0x258] sm:$0xff]  ;;  %v7645_v34 = vld [vmem:[#allocation79_spill] sm:$0xff] }
 0x1b1   :  { %913 = vmatpush.msra.mxu0 %v7640_v61  ;;  %933 = vmatpush.msra.mxu1 %v4796_v23  ;;  %v4820_v61 = vld [vmem:[#allocation6 + $0x230] sm:$0xff]  ;;  %v7646_v23 = vld [vmem:[#allocation82_spill] sm:$0xff] }
 0x1b2   :  { %953 = vmatpush.msrb.mxu2 %v7642_v39  ;;  %973 = vmatpush.msrb.mxu3 %v4800_v55  ;;  %v4824_v39 = vld [vmem:[#allocation6 + $0x238] sm:$0xff]  ;;  %v7647_v55 = vld [vmem:[#allocation83_spill] sm:$0xff] }
 0x1b3   :  { %914 = vmatpush.msra.mxu0 %v7644_v18  ;;  %934 = vmatpush.msra.mxu1 %v4804_v27  ;;  %v4828_v18 = vld [vmem:[#allocation6 + $0x210] sm:$0xff]  ;;  %v7648_v27 = vld [vmem:[#allocation86_spill] sm:$0xff] }
 0x1b4   :  { %954 = vmatpush.msrb.mxu2 %v7645_v34  ;;  %974 = vmatpush.msrb.mxu3 %v4808_v46  ;;  %v4832_v34 = vld [vmem:[#allocation6 + $0x218] sm:$0xff]  ;;  %v7649_v46 = vld [vmem:[#allocation87_spill] sm:$0xff] }
 0x1b5   :  { %915 = vmatpush.msra.mxu0 %v7646_v23  ;;  %935 = vmatpush.msra.mxu1 %v4812_v50  ;;  %v7650_v23 = vld [vmem:[#allocation90_spill] sm:$0xff]  ;;  %v7651_v50 = vld [vmem:[#allocation91_spill] sm:$0xff] }
 0x1b6   :  { %955 = vmatpush.msrb.mxu2 %v7647_v55  ;;  %975 = vmatpush.msrb.mxu3 %v4816_v35  ;;  %v4844_v55 = vld [vmem:[#allocation4 + $0x1e0] sm:$0xff] }
 0x1b7   :  { %916 = vmatpush.msra.mxu0 %v7648_v27  ;;  %936 = vmatpush.msra.mxu1 %v4820_v61  ;;  %v4847_v27 = vld [vmem:[#allocation4 + $0x1e8] sm:$0xff] }
 0x1b8   :  { %956 = vmatpush.msrb.mxu2 %v7649_v46  ;;  %976 = vmatpush.msrb.mxu3 %v4824_v39  ;;  %7652 = vst [vmem:[#allocation24_spill] sm:$0xff] %v4847_v27  ;;  %v4850_v46 = vld [vmem:[#allocation4 + $0x1f0] sm:$0xff] }
 0x1b9   :  { %917 = vmatpush.msra.mxu0 %v7650_v23  ;;  %937 = vmatpush.msra.mxu1 %v4828_v18  ;;  %7653 = vst [vmem:[#allocation25_spill] sm:$0xff] %v4850_v46  ;;  %v4856_v23 = vld [vmem:[#allocation4 + $0x1c0] sm:$0xff] }
 0x1ba   :  { %957 = vmatpush.msrb.mxu2 %v7651_v50  ;;  %977 = vmatpush.msrb.mxu3 %v4832_v34  ;;  %v4853_v50 = vld [vmem:[#allocation4 + $0x1f8] sm:$0xff]  ;;  %7655 = vst [vmem:[#allocation27_spill] sm:$0xff] %v4856_v23 }
 0x1bb   :  { %918 = vmatmul.f32.vlgmr.msra.gmra.mxu0 %v4702_v25  ;;  %938 = vmatmul.f32.vlgmr.msra.gmra.mxu1 %v4699_v62  ;;  %7654 = vst [vmem:[#allocation26_spill] sm:$0xff] %v4853_v50 }
 0x1bc   :  { %958 = vmatmul.f32.vlgmr.msrb.gmra.mxu2 %v4702_v25  ;;  %978 = vmatmul.f32.vlgmr.msrb.gmra.mxu3 %v4699_v62  ;;  %v4859_v62 = vld [vmem:[#allocation4 + $0x1c8] sm:$0xff]  ;;  %v4862_v25 = vld [vmem:[#allocation4 + $0x1d0] sm:$0xff] }
 0x1bd   :  { %1048 = vmatpush.msrb.mxu0 %v4844_v55  ;;  %1068 = vmatpush.msrb.mxu1 %v4847_v27  ;;  %7656 = vst [vmem:[#allocation28_spill] sm:$0xff] %v4859_v62  ;;  %v4865_v27 = vld [vmem:[#allocation4 + $0x1d8] sm:$0xff] }
 0x1be   :  { %1088 = vmatpush.msra.mxu2 %v4850_v46  ;;  %1108 = vmatpush.msra.mxu3 %v4853_v50  ;;  %7657 = vst [vmem:[#allocation29_spill] sm:$0xff] %v4862_v25  ;;  %v4868_v46 = vld [vmem:[#allocation4 + $0x1a0] sm:$0xff]  ;;  %v4871_v50 = vld [vmem:[#allocation4 + $0x1a8] sm:$0xff] }
 0x1bf   :  { %1049 = vmatpush.msrb.mxu0 %v4856_v23  ;;  %1069 = vmatpush.msrb.mxu1 %v4859_v62  ;;  %7658 = vst [vmem:[#allocation32_spill] sm:$0xff] %v4865_v27  ;;  %v4874_v23 = vld [vmem:[#allocation4 + $0x1b0] sm:$0xff]  ;;  %v4877_v62 = vld [vmem:[#allocation4 + $0x1b8] sm:$0xff] }
 0x1c0   :  { %1089 = vmatpush.msra.mxu2 %v4862_v25  ;;  %1109 = vmatpush.msra.mxu3 %v4865_v27  ;;  %7659 = vst [vmem:[#allocation33_spill] sm:$0xff] %v4868_v46  ;;  %v4880_v25 = vld [vmem:[#allocation4 + $0x180] sm:$0xff]  ;;  %v4883_v27 = vld [vmem:[#allocation4 + $0x188] sm:$0xff] }
 0x1c1   :  { %1050 = vmatpush.msrb.mxu0 %v4868_v46  ;;  %7660 = vst [vmem:[#allocation36_spill] sm:$0xff] %v4871_v50  ;;  %1070 = vmatpush.msrb.mxu1 %v4871_v50  ;;  %v4886_v46 = vld [vmem:[#allocation4 + $0x190] sm:$0xff]  ;;  %v4889_v50 = vld [vmem:[#allocation4 + $0x198] sm:$0xff] }
 0x1c2   :  { %7661 = vst [vmem:[#allocation37_spill] sm:$0xff] %v4874_v23  ;;  %1090 = vmatpush.msra.mxu2 %v4874_v23  ;;  %1110 = vmatpush.msra.mxu3 %v4877_v62  ;;  %v4892_v23 = vld [vmem:[#allocation4 + $0x160] sm:$0xff] }
 0x1c3   :  { %7662 = vst [vmem:[#allocation40_spill] sm:$0xff] %v4877_v62  ;;  %1051 = vmatpush.msrb.mxu0 %v4880_v25  ;;  %1071 = vmatpush.msrb.mxu1 %v4883_v27  ;;  %v4895_v62 = vld [vmem:[#allocation4 + $0x168] sm:$0xff] }
 0x1c4   :  { %7663 = vst [vmem:[#allocation41_spill] sm:$0xff] %v4880_v25  ;;  %1091 = vmatpush.msra.mxu2 %v4886_v46  ;;  %1111 = vmatpush.msra.mxu3 %v4889_v50  ;;  %v4898_v25 = vld [vmem:[#allocation4 + $0x170] sm:$0xff] }
 0x1c5   :  { %7664 = vst [vmem:[#allocation44_spill] sm:$0xff] %v4883_v27  ;;  %1052 = vmatpush.msrb.mxu0 %v4892_v23  ;;  %1072 = vmatpush.msrb.mxu1 %v4895_v62  ;;  %v4901_v27 = vld [vmem:[#allocation4 + $0x178] sm:$0xff] }
 0x1c6   :  { %7665 = vst [vmem:[#allocation45_spill] sm:$0xff] %v4886_v46  ;;  %1092 = vmatpush.msra.mxu2 %v4898_v25  ;;  %1112 = vmatpush.msra.mxu3 %v4901_v27  ;;  %v4904_v46 = vld [vmem:[#allocation4 + $0x140] sm:$0xff] }
 0x1c7   :  { %7666 = vst [vmem:[#allocation48_spill] sm:$0xff] %v4889_v50  ;;  %1053 = vmatpush.msrb.mxu0 %v4904_v46  ;;  %v4907_v50 = vld [vmem:[#allocation4 + $0x148] sm:$0xff] }
 0x1c8   :  { %7667 = vst [vmem:[#allocation49_spill] sm:$0xff] %v4892_v23  ;;  %1073 = vmatpush.msrb.mxu1 %v4907_v50  ;;  %v4910_v23 = vld [vmem:[#allocation4 + $0x150] sm:$0xff] }
 0x1c9   :  { %7668 = vst [vmem:[#allocation52_spill] sm:$0xff] %v4895_v62  ;;  %1093 = vmatpush.msra.mxu2 %v4910_v23  ;;  %v4913_v62 = vld [vmem:[#allocation4 + $0x158] sm:$0xff] }
 0x1ca   :  { %7669 = vst [vmem:[#allocation53_spill] sm:$0xff] %v4898_v25  ;;  %1113 = vmatpush.msra.mxu3 %v4913_v62  ;;  %v4916_v25 = vld [vmem:[#allocation4 + $0x120] sm:$0xff] }
 0x1cb   :  { %7670 = vst [vmem:[#allocation56_spill] sm:$0xff] %v4901_v27  ;;  %1054 = vmatpush.msrb.mxu0 %v4916_v25  ;;  %v4919_v27 = vld [vmem:[#allocation4 + $0x128] sm:$0xff] }
 0x1cc   :  { %7671 = vst [vmem:[#allocation57_spill] sm:$0xff] %v4904_v46  ;;  %1074 = vmatpush.msrb.mxu1 %v4919_v27  ;;  %v4922_v46 = vld [vmem:[#allocation4 + $0x130] sm:$0xff] }
 0x1cd   :  { %7672 = vst [vmem:[#allocation60_spill] sm:$0xff] %v4907_v50  ;;  %1094 = vmatpush.msra.mxu2 %v4922_v46  ;;  %v4925_v50 = vld [vmem:[#allocation4 + $0x138] sm:$0xff] }
 0x1ce   :  { %7673 = vst [vmem:[#allocation61_spill] sm:$0xff] %v4910_v23  ;;  %1114 = vmatpush.msra.mxu3 %v4925_v50  ;;  %v4928_v23 = vld [vmem:[#allocation4 + $0x100] sm:$0xff] }
 0x1cf   :  { %7674 = vst [vmem:[#allocation64_spill] sm:$0xff] %v4913_v62  ;;  %1055 = vmatpush.msrb.mxu0 %v4928_v23  ;;  %v4931_v62 = vld [vmem:[#allocation4 + $0x108] sm:$0xff] }
 0x1d0   :  { %7675 = vst [vmem:[#allocation65_spill] sm:$0xff] %v4916_v25  ;;  %1075 = vmatpush.msrb.mxu1 %v4931_v62  ;;  %v4934_v25 = vld [vmem:[#allocation4 + $0x110] sm:$0xff] }
 0x1d1   :  { %7676 = vst [vmem:[#allocation68_spill] sm:$0xff] %v4919_v27  ;;  %1095 = vmatpush.msra.mxu2 %v4934_v25  ;;  %v4937_v27 = vld [vmem:[#allocation4 + $0x118] sm:$0xff] }
 0x1d2   :  { %7677 = vst [vmem:[#allocation69_spill] sm:$0xff] %v4922_v46  ;;  %1115 = vmatpush.msra.mxu3 %v4937_v27  ;;  %v4940_v46 = vld [vmem:[#allocation4 + $0xe0] sm:$0xff] }
 0x1d3   :  { %7678 = vst [vmem:[#allocation72_spill] sm:$0xff] %v4925_v50  ;;  %1056 = vmatpush.msrb.mxu0 %v4940_v46  ;;  %v4943_v50 = vld [vmem:[#allocation4 + $0xe8] sm:$0xff] }
 0x1d4   :  { %7679 = vst [vmem:[#allocation73_spill] sm:$0xff] %v4928_v23  ;;  %1076 = vmatpush.msrb.mxu1 %v4943_v50  ;;  %v4946_v23 = vld [vmem:[#allocation4 + $0xf0] sm:$0xff] }
 0x1d5   :  { %7680 = vst [vmem:[#allocation76_spill] sm:$0xff] %v4931_v62  ;;  %1096 = vmatpush.msra.mxu2 %v4946_v23  ;;  %v4949_v62 = vld [vmem:[#allocation4 + $0xf8] sm:$0xff] }
 0x1d6   :  { %7681 = vst [vmem:[#allocation77_spill] sm:$0xff] %v4934_v25  ;;  %1116 = vmatpush.msra.mxu3 %v4949_v62  ;;  %v4952_v25 = vld [vmem:[#allocation4 + $0xc0] sm:$0xff] }
 0x1d7   :  { %7682 = vst [vmem:[#allocation80_spill] sm:$0xff] %v4937_v27  ;;  %1057 = vmatpush.msrb.mxu0 %v4952_v25  ;;  %v4955_v27 = vld [vmem:[#allocation4 + $0xc8] sm:$0xff] }
 0x1d8   :  { %7683 = vst [vmem:[#allocation81_spill] sm:$0xff] %v4940_v46  ;;  %1077 = vmatpush.msrb.mxu1 %v4955_v27  ;;  %v4958_v46 = vld [vmem:[#allocation4 + $0xd0] sm:$0xff] }
 0x1d9   :  { %7684 = vst [vmem:[#allocation84_spill] sm:$0xff] %v4943_v50  ;;  %1097 = vmatpush.msra.mxu2 %v4958_v46  ;;  %v4961_v50 = vld [vmem:[#allocation4 + $0xd8] sm:$0xff] }
 0x1da   :  { %7685 = vst [vmem:[#allocation85_spill] sm:$0xff] %v4946_v23  ;;  %1117 = vmatpush.msra.mxu3 %v4961_v50  ;;  %v4964_v23 = vld [vmem:[#allocation4 + $0xa0] sm:$0xff] }
 0x1db   :  { %7686 = vst [vmem:[#allocation88_spill] sm:$0xff] %v4949_v62  ;;  %1058 = vmatpush.msrb.mxu0 %v4964_v23  ;;  %v4967_v62 = vld [vmem:[#allocation4 + $0xa8] sm:$0xff] }
 0x1dc   :  { %7687 = vst [vmem:[#allocation89_spill] sm:$0xff] %v4952_v25  ;;  %1078 = vmatpush.msrb.mxu1 %v4967_v62  ;;  %v4970_v25 = vld [vmem:[#allocation4 + $0xb0] sm:$0xff] }
 0x1dd   :  { %7688 = vst [vmem:[#allocation30_spill] sm:$0xff] %v4955_v27  ;;  %1098 = vmatpush.msra.mxu2 %v4970_v25  ;;  %v4973_v27 = vld [vmem:[#allocation4 + $0xb8] sm:$0xff] }
 0x1de   :  { %7689 = vst [vmem:[#allocation31_spill] sm:$0xff] %v4958_v46  ;;  %1118 = vmatpush.msra.mxu3 %v4973_v27  ;;  %v4976_v46 = vld [vmem:[#allocation4 + $0x80] sm:$0xff] }
 0x1df   :  { %7690 = vst [vmem:[#allocation34_spill] sm:$0xff] %v4961_v50  ;;  %1059 = vmatpush.msrb.mxu0 %v4976_v46  ;;  %v4979_v50 = vld [vmem:[#allocation4 + $0x88] sm:$0xff] }
 0x1e0   :  { %7691 = vst [vmem:[#allocation35_spill] sm:$0xff] %v4964_v23  ;;  %1079 = vmatpush.msrb.mxu1 %v4979_v50  ;;  %v4982_v23 = vld [vmem:[#allocation4 + $0x90] sm:$0xff] }
 0x1e1   :  { %7692 = vst [vmem:[#allocation38_spill] sm:$0xff] %v4967_v62  ;;  %1099 = vmatpush.msra.mxu2 %v4982_v23  ;;  %v4985_v62 = vld [vmem:[#allocation4 + $0x98] sm:$0xff] }
 0x1e2   :  { %7693 = vst [vmem:[#allocation39_spill] sm:$0xff] %v4970_v25  ;;  %1119 = vmatpush.msra.mxu3 %v4985_v62  ;;  %v4988_v25 = vld [vmem:[#allocation4 + $0x60] sm:$0xff] }
 0x1e3   :  { %7694 = vst [vmem:[#allocation42_spill] sm:$0xff] %v4973_v27  ;;  %1060 = vmatpush.msrb.mxu0 %v4988_v25  ;;  %v4991_v27 = vld [vmem:[#allocation4 + $0x68] sm:$0xff] }
 0x1e4   :  { %7695 = vst [vmem:[#allocation43_spill] sm:$0xff] %v4976_v46  ;;  %1080 = vmatpush.msrb.mxu1 %v4991_v27  ;;  %v4994_v46 = vld [vmem:[#allocation4 + $0x70] sm:$0xff] }
 0x1e5   :  { %7696 = vst [vmem:[#allocation46_spill] sm:$0xff] %v4979_v50  ;;  %1100 = vmatpush.msra.mxu2 %v4994_v46  ;;  %v4997_v50 = vld [vmem:[#allocation4 + $0x78] sm:$0xff] }
 0x1e6   :  { %7697 = vst [vmem:[#allocation47_spill] sm:$0xff] %v4982_v23  ;;  %1120 = vmatpush.msra.mxu3 %v4997_v50  ;;  %v5000_v23 = vld [vmem:[#allocation4 + $0x40] sm:$0xff] }
 0x1e7   :  { %7698 = vst [vmem:[#allocation50_spill] sm:$0xff] %v4985_v62  ;;  %1061 = vmatpush.msrb.mxu0 %v5000_v23  ;;  %v5003_v62 = vld [vmem:[#allocation4 + $0x48] sm:$0xff] }
 0x1e8   :  { %7699 = vst [vmem:[#allocation51_spill] sm:$0xff] %v4988_v25  ;;  %1081 = vmatpush.msrb.mxu1 %v5003_v62  ;;  %v5006_v25 = vld [vmem:[#allocation4 + $0x50] sm:$0xff] }
 0x1e9   :  { %7700 = vst [vmem:[#allocation54_spill] sm:$0xff] %v4991_v27  ;;  %1101 = vmatpush.msra.mxu2 %v5006_v25  ;;  %v5009_v27 = vld [vmem:[#allocation4 + $0x58] sm:$0xff] }
 0x1ea   :  { %7701 = vst [vmem:[#allocation55_spill] sm:$0xff] %v4994_v46  ;;  %1121 = vmatpush.msra.mxu3 %v5009_v27  ;;  %v5012_v46 = vld [vmem:[#allocation4 + $0x20] sm:$0xff] }
 0x1eb   :  { %7702 = vst [vmem:[#allocation58_spill] sm:$0xff] %v4997_v50  ;;  %1062 = vmatpush.msrb.mxu0 %v5012_v46  ;;  %v5015_v50 = vld [vmem:[#allocation4 + $0x28] sm:$0xff] }
 0x1ec   :  { %7703 = vst [vmem:[#allocation59_spill] sm:$0xff] %v5000_v23  ;;  %1082 = vmatpush.msrb.mxu1 %v5015_v50  ;;  %v5018_v23 = vld [vmem:[#allocation4 + $0x30] sm:$0xff] }
 0x1ed   :  { %7704 = vst [vmem:[#allocation62_spill] sm:$0xff] %v5003_v62  ;;  %1102 = vmatpush.msra.mxu2 %v5018_v23  ;;  %v5021_v62 = vld [vmem:[#allocation4 + $0x38] sm:$0xff] }
 0x1ee   :  { %7705 = vst [vmem:[#allocation63_spill] sm:$0xff] %v5006_v25  ;;  %1122 = vmatpush.msra.mxu3 %v5021_v62  ;;  %v5024_v25 = vld [vmem:[#allocation4] sm:$0xff] }
 0x1ef   :  { %7706 = vst [vmem:[#allocation66_spill] sm:$0xff] %v5009_v27  ;;  %1063 = vmatpush.msrb.mxu0 %v5024_v25  ;;  %v5027_v27 = vld [vmem:[#allocation4 + $0x8] sm:$0xff] }
 0x1f0   :  { %7707 = vst [vmem:[#allocation67_spill] sm:$0xff] %v5012_v46  ;;  %1083 = vmatpush.msrb.mxu1 %v5027_v27  ;;  %v5030_v46 = vld [vmem:[#allocation4 + $0x10] sm:$0xff] }
 0x1f1   :  { %7708 = vst [vmem:[#allocation70_spill] sm:$0xff] %v5015_v50  ;;  %1103 = vmatpush.msra.mxu2 %v5030_v46  ;;  %v5033_v50 = vld [vmem:[#allocation4 + $0x18] sm:$0xff] }
 0x1f2   :  { %7709 = vst [vmem:[#allocation71_spill] sm:$0xff] %v5018_v23  ;;  %1123 = vmatpush.msra.mxu3 %v5033_v50  ;;  %v5036_v23 = vld [vmem:[#allocation6 + $0x1e0] sm:$0xff]  ;;  %1193 = vmatpush.msra.mxu1 %v4540_v10  ;;  %v5056_v10 = vld [vmem:[#allocation6 + $0x1a8] sm:$0xff] }
 0x1f3   :  { %7710 = vst [vmem:[#allocation74_spill] sm:$0xff] %v5021_v62  ;;  %1173 = vmatpush.msra.mxu0 %v5036_v23  ;;  %v5040_v62 = vld [vmem:[#allocation6 + $0x1e8] sm:$0xff] }
 0x1f4   :  { %7711 = vst [vmem:[#allocation75_spill] sm:$0xff] %v5027_v27  ;;  %1213 = vmatpush.msrb.mxu2 %v5040_v62  ;;  %1233 = vmatpush.msrb.mxu3 %v4542_v54  ;;  %v5044_v27 = vld [vmem:[#allocation6 + $0x1c0] sm:$0xff] }
 0x1f5   :  { %7712 = vst [vmem:[#allocation78_spill] sm:$0xff] %v5030_v46  ;;  %1174 = vmatpush.msra.mxu0 %v5044_v27  ;;  %1194 = vmatpush.msra.mxu1 %v4546_v48  ;;  %v5048_v46 = vld [vmem:[#allocation6 + $0x1c8] sm:$0xff]  ;;  %v5060_v54 = vld [vmem:[#allocation6 + $0x180] sm:$0xff] }
 0x1f6   :  { %7713 = vst [vmem:[#allocation79_spill] sm:$0xff] %v5036_v23  ;;  %1214 = vmatpush.msrb.mxu2 %v5048_v46  ;;  %1234 = vmatpush.msrb.mxu3 %v4548_v1  ;;  %v5052_v23 = vld [vmem:[#allocation6 + $0x1a0] sm:$0xff]  ;;  %v5064_v48 = vld [vmem:[#allocation6 + $0x188] sm:$0xff] }
 0x1f7   :  { %1175 = vmatpush.msra.mxu0 %v5052_v23  ;;  %1195 = vmatpush.msra.mxu1 %v4552_v11  ;;  %v5068_v1 = vld [vmem:[#allocation6 + $0x160] sm:$0xff]  ;;  %v5072_v11 = vld [vmem:[#allocation6 + $0x168] sm:$0xff] }
 0x1f8   :  { %1215 = vmatpush.msrb.mxu2 %v5056_v10  ;;  %1235 = vmatpush.msrb.mxu3 %v4554_v63  ;;  %v5076_v63 = vld [vmem:[#allocation6 + $0x140] sm:$0xff] }
 0x1f9   :  { %1176 = vmatpush.msra.mxu0 %v5060_v54  ;;  %1196 = vmatpush.msra.mxu1 %v4558_v60  ;;  %v5080_v60 = vld [vmem:[#allocation6 + $0x148] sm:$0xff] }
 0x1fa   :  { %1216 = vmatpush.msrb.mxu2 %v5064_v48  ;;  %1236 = vmatpush.msrb.mxu3 %v4560_v0  ;;  %7714 = vst [vmem:[#allocation82_spill] sm:$0xff] %v5080_v60  ;;  %v5084_v0 = vld [vmem:[#allocation6 + $0x120] sm:$0xff] }
 0x1fb   :  { %1177 = vmatpush.msra.mxu0 %v5068_v1  ;;  %1197 = vmatpush.msra.mxu1 %v4569_v8  ;;  %7715 = vst [vmem:[#allocation83_spill] sm:$0xff] %v5084_v0  ;;  %v5088_v8 = vld [vmem:[#allocation6 + $0x128] sm:$0xff] }
 0x1fc   :  { %1217 = vmatpush.msrb.mxu2 %v5072_v11  ;;  %1237 = vmatpush.msrb.mxu3 %v4571_v12  ;;  %7716 = vst [vmem:[#allocation86_spill] sm:$0xff] %v5088_v8  ;;  %v5092_v12 = vld [vmem:[#allocation6 + $0x100] sm:$0xff] }
 0x1fd   :  { %1178 = vmatpush.msra.mxu0 %v5076_v63  ;;  %1198 = vmatpush.msra.mxu1 %v4581_v15  ;;  %7717 = vst [vmem:[#allocation87_spill] sm:$0xff] %v5092_v12  ;;  %v5096_v15 = vld [vmem:[#allocation6 + $0x108] sm:$0xff] }
 0x1fe   :  { %1218 = vmatpush.msrb.mxu2 %v5080_v60  ;;  %1238 = vmatpush.msrb.mxu3 %v4583_v16  ;;  %7718 = vst [vmem:[#allocation90_spill] sm:$0xff] %v5096_v15  ;;  %v5100_v16 = vld [vmem:[#allocation6 + $0xe0] sm:$0xff]  ;;  %v7737_v60 = vld [vmem:[#allocation13_spill] sm:$0xff] }
 0x1ff   :  { %1179 = vmatpush.msra.mxu0 %v5084_v0  ;;  %1199 = vmatpush.msra.mxu1 %v4587_v20  ;;  %7719 = vst [vmem:[#allocation91_spill] sm:$0xff] %v5100_v16  ;;  %v5104_v20 = vld [vmem:[#allocation6 + $0xe8] sm:$0xff] }
 0x200   :  { %1219 = vmatpush.msrb.mxu2 %v5088_v8  ;;  %1239 = vmatpush.msrb.mxu3 %v4589_v21  ;;  %7720 = vst [vmem:[#allocation92_spill] sm:$0xff] %v5104_v20  ;;  %v5108_v21 = vld [vmem:[#allocation6 + $0xc0] sm:$0xff] }
 0x201   :  { %1180 = vmatpush.msra.mxu0 %v5092_v12  ;;  %1200 = vmatpush.msra.mxu1 %v4595_v28  ;;  %7721 = vst [vmem:[#allocation93_spill] sm:$0xff] %v5108_v21  ;;  %v5112_v28 = vld [vmem:[#allocation6 + $0xc8] sm:$0xff] }
 0x202   :  { %1220 = vmatpush.msrb.mxu2 %v5096_v15  ;;  %1240 = vmatpush.msrb.mxu3 %v4597_v29  ;;  %7722 = vst [vmem:[#allocation94_spill] sm:$0xff] %v5112_v28  ;;  %v5116_v29 = vld [vmem:[#allocation6 + $0xa0] sm:$0xff] }
 0x203   :  { %1181 = vmatpush.msra.mxu0 %v5100_v16  ;;  %1201 = vmatpush.msra.mxu1 %v4604_v36  ;;  %7723 = vst [vmem:[#allocation95_spill] sm:$0xff] %v5116_v29  ;;  %v5120_v36 = vld [vmem:[#allocation6 + $0xa8] sm:$0xff] }
 0x204   :  { %1221 = vmatpush.msrb.mxu2 %v5104_v20  ;;  %1241 = vmatpush.msrb.mxu3 %v4606_v37  ;;  %7724 = vst [vmem:[#allocation96_spill] sm:$0xff] %v5120_v36  ;;  %v5124_v37 = vld [vmem:[#allocation6 + $0x80] sm:$0xff] }
 0x205   :  { %1182 = vmatpush.msra.mxu0 %v5108_v21  ;;  %1202 = vmatpush.msra.mxu1 %v4613_v40  ;;  %7725 = vst [vmem:[#allocation97_spill] sm:$0xff] %v5124_v37  ;;  %v5128_v40 = vld [vmem:[#allocation6 + $0x88] sm:$0xff] }
 0x206   :  { %1222 = vmatpush.msrb.mxu2 %v5112_v28  ;;  %1242 = vmatpush.msrb.mxu3 %v4615_v41  ;;  %7726 = vst [vmem:[#allocation98_spill] sm:$0xff] %v5128_v40  ;;  %v5132_v41 = vld [vmem:[#allocation6 + $0x60] sm:$0xff] }
 0x207   :  { %1183 = vmatpush.msra.mxu0 %v5116_v29  ;;  %1203 = vmatpush.msra.mxu1 %v4619_v44  ;;  %7727 = vst [vmem:[#allocation99_spill] sm:$0xff] %v5132_v41  ;;  %v5136_v44 = vld [vmem:[#allocation6 + $0x68] sm:$0xff] }
 0x208   :  { %1223 = vmatpush.msrb.mxu2 %v5120_v36  ;;  %1243 = vmatpush.msrb.mxu3 %v4621_v45  ;;  %7728 = vst [vmem:[#allocation100_spill] sm:$0xff] %v5136_v44  ;;  %v5140_v45 = vld [vmem:[#allocation6 + $0x40] sm:$0xff] }
 0x209   :  { %1184 = vmatpush.msra.mxu0 %v5124_v37  ;;  %1204 = vmatpush.msra.mxu1 %v4626_v47  ;;  %7729 = vst [vmem:[#allocation101_spill] sm:$0xff] %v5140_v45  ;;  %v5144_v47 = vld [vmem:[#allocation6 + $0x48] sm:$0xff] }
 0x20a   :  { %1224 = vmatpush.msrb.mxu2 %v5128_v40  ;;  %1244 = vmatpush.msrb.mxu3 %v4628_v49  ;;  %7730 = vst [vmem:[#allocation102_spill] sm:$0xff] %v5144_v47  ;;  %v5148_v49 = vld [vmem:[#allocation6 + $0x20] sm:$0xff] }
 0x20b   :  { %1185 = vmatpush.msra.mxu0 %v5132_v41  ;;  %1205 = vmatpush.msra.mxu1 %v4632_v52  ;;  %7731 = vst [vmem:[#allocation103_spill] sm:$0xff] %v5148_v49  ;;  %v5152_v52 = vld [vmem:[#allocation6 + $0x28] sm:$0xff] }
 0x20c   :  { %1225 = vmatpush.msrb.mxu2 %v5136_v44  ;;  %1245 = vmatpush.msrb.mxu3 %v4634_v53  ;;  %7732 = vst [vmem:[#allocation104_spill] sm:$0xff] %v5152_v52  ;;  %v5156_v53 = vld [vmem:[#allocation6] sm:$0xff] }
 0x20d   :  { %1186 = vmatpush.msra.mxu0 %v5140_v45  ;;  %1206 = vmatpush.msra.mxu1 %v4640_v58  ;;  %7733 = vst [vmem:[#allocation105_spill] sm:$0xff] %v5156_v53  ;;  %v5160_v58 = vld [vmem:[#allocation6 + $0x8] sm:$0xff] }
 0x20e   :  { %1226 = vmatpush.msrb.mxu2 %v5144_v47  ;;  %1246 = vmatpush.msrb.mxu3 %v4642_v59  ;;  %7734 = vst [vmem:[#allocation106_spill] sm:$0xff] %v5160_v58  ;;  %v696_v40 = vld [vmem:[#allocation2 + $0x2] ss:$8 sm:$0xf] }
 0x20f   :  { %1187 = vmatpush.msra.mxu0 %v5148_v49  ;;  %1207 = vmatpush.msra.mxu1 %v4652_v6 }
 0x210   :  { %1227 = vmatpush.msrb.mxu2 %v5152_v52  ;;  %1247 = vmatpush.msrb.mxu3 %v4654_v9 }
 0x211   :  { %1188 = vmatpush.msra.mxu0 %v5156_v53  ;;  %1208 = vmatpush.msra.mxu1 %v4656_v7 }
 0x212   :  { %1228 = vmatpush.msrb.mxu2 %v5160_v58  ;;  %1248 = vmatpush.msrb.mxu3 %v4660_v17 }
 0x214   :  { %v714_v59 = vpop.f32.mrf.mxu0  ;;  %v734_v6 = vpop.f32.mrf.mxu1 }
 0x215   :  { %v781_v49 = vrot.slane %v734_v6, 7 }
 0x217   :  { %v784_v9 = vsel %vm501_vm6, %v714_v59, %v781_v49 }
 0x21b   :  { %v754_v47 = vpop.f32.mrf.mxu2  ;;  %v774_v45 = vpop.f32.mrf.mxu3 }
 0x21c   :  { %v782_v52 = vrot.slane %v754_v47, 6  ;;  %v783_v44 = vrot.slane %v774_v45, 5  ;;  %v7735_v47 = vld [vmem:[#allocation11_spill] sm:$0xff] }
 0x21e   :  { %v785_v41 = vsel %vm503_vm7, %v782_v52, %v783_v44  ;;  %v839_v53 = vpop.f32.mrf.mxu0  ;;  %v859_v36 = vpop.f32.mrf.mxu1 }
 0x21f   :  { %v786_v7 = vsel %vm505_vm8, %v784_v9, %v785_v41  ;;  %v840_v37 = vadd.f32 %v839_v53, %v4576_v13 }
 0x220   :  { %v788_v58 = vadd.f32 %v786_v7, %v696_v40 }
 0x221   :  { %v860_v17 = vadd.f32 %v859_v36, %v840_v37 }
 0x222   :  { %v3111_v29 = vmul.f32 -1.442695, %v788_v58  ;;  %v809_v53 = vrot.slane %v788_v58, 3 }
 0x223   :  { %v3112_v28 = vmul.f32 -1.442695, %v860_v17 }
 0x224   :  { %3175 = vpow2.f32 %v3111_v29 }
 0x225   :  { %v879_v6 = vpop.f32.mrf.mxu2  ;;  %3177 = vpow2.f32 %v3112_v28  ;;  %v899_v21 = vpop.f32.mrf.mxu3 }
 0x226   :  { %v880_v45 = vadd.f32 %v879_v6, %v7735_v47 }
 0x228   :  { %v900_v49 = vadd.f32 %v899_v21, %v880_v45  ;;  %v7736_v45 = vld [vmem:[#allocation12_spill] sm:$0xff] }
 0x22a   :  { %v3176_v59 = vpop.eup %3175  ;;  %v3113_v44 = vmul.f32 -1.442695, %v900_v49 }
 0x22b   :  { %v792_v52 = vadd.f32 1.0, %v3176_v59  ;;  %v3178_v20 = vpop.eup %3177 }
 0x22c   :  { %3179 = vpow2.f32 %v3113_v44  ;;  %v5169_v41 = vadd.f32 1.0, %v3178_v20 }
 0x22d   :  { %3181 = vrcp.f32 %v792_v52  ;;  %v804_v21 = vand.u32 2147483648, %v792_v52  ;;  %v802_v6 = vand.u32 2147483647, %v792_v52  ;;  %vm798_vm13 = vweird.f32 %v792_v52 }
 0x22e   :  { %3183 = vrcp.f32 %v5169_v41  ;;  %vm999_vm4 = vweird.f32 %v5169_v41 }
 0x22f   :  { %v805_v58 = vor.u32 1.1754944e-38, %v804_v21  ;;  %vm803_vm15 = vcmp.eq.f32.partialorder %v802_v6, 8.507059e+37 }
 0x232   :  { %v3180_v36 = vpop.eup %3179 }
 0x233   :  { %v3182_v37 = vpop.eup %3181  ;;  %v992_v40 = vadd.f32 1.0, %v3180_v36 }
 0x234   :  { %v794_v29 = vmul.f32 %v3182_v37, %v792_v52  ;;  %v5172_v28 = vpop.eup %3183  ;;  %vm799_vm12 = vweird.f32 %v3182_v37 }
 0x235   :  { %3185 = vrcp.f32 %v992_v40  ;;  %v995_v7 = vmul.f32 %v5172_v28, %v5169_v41  ;;  %vm800_vm14 = vmor %vm798_vm13, %vm799_vm12  ;;  %vm1014_vm1 = vweird.f32 %v992_v40  ;;  %vm1000_vm2 = vweird.f32 %v5172_v28 }
 0x236   :  { %v795_v9 = vsub.f32 1.0, %v794_v29  ;;  %3187 = vtanh.f32 %v809_v53  ;;  %vm1001_vm5 = vmor %vm999_vm4, %vm1000_vm2 }
 0x237   :  { %v996_v47 = vsub.f32 1.0, %v995_v7 }
 0x238   :  { %v796_v17 = vmul.f32 %v3182_v37, %v795_v9  ;;  %v919_v20 = vpop.f32.mrf.mxu0  ;;  %v939_v44 = vpop.f32.mrf.mxu1 }
 0x239   :  { %v920_v49 = vadd.f32 %v919_v20, %v7736_v45  ;;  %v997_v20 = vmul.f32 %v5172_v28, %v996_v47  ;;  %v1003_v47 = vand.u32 2147483647, %v5169_v41 }
 0x23a   :  { %v797_v59 = vadd.f32 %v3182_v37, %v796_v17 }
 0x23b   :  { %v3186_v36 = vpop.eup %3185  ;;  %v940_v13 = vadd.f32 %v939_v44, %v920_v49  ;;  %vm1004_vm10 = vcmp.eq.f32.partialorder %v1003_v47, 8.507059e+37  ;;  %v5244_v47 = vld [vmem:[#allocation6 + $0x178] sm:$0xff] }
 0x23c   :  { %v801_v29 = vsel %vm800_vm14, %v3182_v37, %v797_v59  ;;  %v1010_v16 = vmul.f32 %v3186_v36, %v992_v40  ;;  %v3188_v0 = vpop.eup %3187  ;;  %vm1015_vm0 = vweird.f32 %v3186_v36 }
 0x23d   :  { %v806_v15 = vsel %vm803_vm15, %v805_v58, %v801_v29  ;;  %v3114_v12 = vmul.f32 -1.442695, %v940_v13  ;;  %v1020_v13 = vand.u32 2147483648, %v992_v40  ;;  %vm1016_vm3 = vmor %vm1014_vm1, %vm1015_vm0 }
 0x23e   :  { %v813_v9 = vrot.slane %v806_v15, 1  ;;  %v1011_v8 = vsub.f32 1.0, %v1010_v16  ;;  %v816_v17 = vmul.f32 %v3188_v0, %v806_v15  ;;  %v1018_v16 = vand.u32 2147483647, %v992_v40 }
 0x23f   :  { %3189 = vpow2.f32 %v3114_v12  ;;  %v959_v53 = vpop.f32.mrf.mxu2  ;;  %v979_v7 = vpop.f32.mrf.mxu3  ;;  %v998_v12 = vadd.f32 %v5172_v28, %v997_v20  ;;  %v1005_v0 = vand.u32 2147483648, %v5169_v41  ;;  %v1021_v59 = vor.u32 1.1754944e-38, %v1020_v13  ;;  %v5216_v13 = vld [vmem:[#allocation6 + $0x1d8] sm:$0xff] }
 0x240   :  { %v815_v52 = vmul.f32 %v813_v9, %v4696_v30  ;;  %v1012_v45 = vmul.f32 %v3186_v36, %v1011_v8  ;;  %v960_v21 = vadd.f32 %v959_v53, %v7737_v60  ;;  %vm1019_vm9 = vcmp.eq.f32.partialorder %v1018_v16, 8.507059e+37  ;;  %v5230_v16 = vld [vmem:[#allocation6 + $0x190] sm:$0xff] }
 0x241   :  { %v1002_v44 = vsel %vm1001_vm5, %v5172_v28, %v998_v12  ;;  %v819_v40 = vrot.slane %v806_v15, 2  ;;  %v1006_v58 = vor.u32 1.1754944e-38, %v1005_v0  ;;  %v5202_v28 = vld [vmem:[#allocation6 + $0x1f0] sm:$0xff]  ;;  %v5225_v12 = vld [vmem:[#allocation6 + $0x1b8] sm:$0xff] }
 0x242   :  { %v5180_v49 = vadd.f32 %v816_v17, %v815_v52  ;;  %v980_v37 = vadd.f32 %v979_v7, %v960_v21  ;;  %v1013_v6 = vadd.f32 %v3186_v36, %v1012_v45 }
 0x243   :  { %v1007_v52 = vsel %vm1004_vm10, %v1006_v58, %v1002_v44  ;;  %v5273_v44 = vld [vmem:[#allocation6 + $0x118] sm:$0xff] }
 0x244   :  { %3191 = vtanh.f32 %v5180_v49  ;;  %v1017_v45 = vsel %vm1016_vm3, %v3186_v36, %v1013_v6  ;;  %v5289_v58 = vld [vmem:[#allocation6 + $0xd8] sm:$0xff] }
 0x245   :  { %v3190_v30 = vpop.eup %3189  ;;  %3193 = vtanh.f32 %v980_v37  ;;  %v1022_v29 = vsel %vm1019_vm9, %v1021_v59, %v1017_v45  ;;  %v5210_v37 = vld [vmem:[#allocation6 + $0x1d0] sm:$0xff]  ;;  %v5265_v59 = vld [vmem:[#allocation6 + $0x138] sm:$0xff] }
 0x246   :  { %v5186_v8 = vadd.f32 1.0, %v3190_v30  ;;  %v1040_v17 = vmul.f32 %v1022_v29, %v4689_v14  ;;  %v5206_v14 = vld [vmem:[#allocation6 + $0x1f8] sm:$0xff]  ;;  %v5250_v45 = vld [vmem:[#allocation6 + $0x150] sm:$0xff] }
 0x247   :  { %v5293_v29 = vld [vmem:[#allocation6 + $0xb0] sm:$0xff] }
 0x248   :  { %3195 = vrcp.f32 %v5186_v8  ;;  %v1035_v6 = vand.u32 2147483648, %v5186_v8  ;;  %vm1029_vm12 = vweird.f32 %v5186_v8 }
 0x24a   :  { %v3192_v9 = vpop.eup %3191  ;;  %v1036_v30 = vor.u32 1.1754944e-38, %v1035_v6  ;;  %v5313_v6 = vld [vmem:[#allocation6 + $0x78] sm:$0xff] }
 0x24b   :  { %v3194_v53 = vpop.eup %3193  ;;  %v5192_v20 = vmul.f32 %v3192_v9, %v819_v40  ;;  %v5285_v40 = vld [vmem:[#allocation6 + $0xd0] sm:$0xff]  ;;  %v5297_v9 = vld [vmem:[#allocation6 + $0xb8] sm:$0xff] }
 0x24c   :  { %v1041_v41 = vmul.f32 %v3194_v53, %v1007_v52  ;;  %v7742_v53 = vld [vmem:[#allocation18_spill] sm:$0xff]  ;;  %v5301_v52 = vld [vmem:[#allocation6 + $0x90] sm:$0xff] }
 0x24d   :  { %1064 = vmatmul.f32.vlgmr.msrb.gmra.mxu0 %v5192_v20  ;;  %1084 = vmatmul.f32.vlgmr.msrb.gmra.mxu1 %v5192_v20 }
 0x24e   :  { %v3196_v36 = vpop.eup %3195  ;;  %v5197_v21 = vadd.f32 %v1041_v41, %v1040_v17  ;;  %1104 = vmatmul.f32.vlgmr.msra.gmra.mxu2 %v5192_v20  ;;  %1124 = vmatmul.f32.vlgmr.msra.gmra.mxu3 %v5192_v20  ;;  %v7743_v17 = vld [vmem:[#allocation19_spill] sm:$0xff]  ;;  %v5305_v41 = vld [vmem:[#allocation6 + $0x98] sm:$0xff] }
 0x24f   :  { %v1025_v15 = vmul.f32 %v3196_v36, %v5186_v8  ;;  %1253 = vmatpush.msrb.mxu0 %v5202_v28  ;;  %1273 = vmatpush.msrb.mxu1 %v4704_v26  ;;  %vm1030_vm11 = vweird.f32 %v3196_v36 }
 0x250   :  { %1293 = vmatpush.msra.mxu2 %v5206_v14  ;;  %1313 = vmatpush.msra.mxu3 %v4708_v2  ;;  %3197 = vtanh.f32 %v5197_v21  ;;  %v5220_v2 = vld [vmem:[#allocation6 + $0x1b0] sm:$0xff]  ;;  %vm1031_vm13 = vmor %vm1029_vm12, %vm1030_vm11 }
 0x251   :  { %v1026_v7 = vsub.f32 1.0, %v1025_v15  ;;  %1254 = vmatpush.msrb.mxu0 %v5210_v37  ;;  %1274 = vmatpush.msrb.mxu1 %v4712_v51  ;;  %v1033_v51 = vand.u32 2147483647, %v5186_v8  ;;  %v5240_v8 = vld [vmem:[#allocation6 + $0x170] sm:$0xff] }
 0x252   :  { %1294 = vmatpush.msra.mxu2 %v5216_v13  ;;  %1314 = vmatpush.msra.mxu3 %v4716_v31  ;;  %v5309_v15 = vld [vmem:[#allocation6 + $0x70] sm:$0xff] }
 0x253   :  { %v1027_v26 = vmul.f32 %v3196_v36, %v1026_v7  ;;  %1255 = vmatpush.msrb.mxu0 %v5220_v2  ;;  %1275 = vmatpush.msrb.mxu1 %v4720_v32  ;;  %v5234_v32 = vld [vmem:[#allocation6 + $0x198] sm:$0xff]  ;;  %vm1034_vm14 = vcmp.eq.f32.partialorder %v1033_v51, 8.507059e+37  ;;  %v5317_v51 = vld [vmem:[#allocation6 + $0x50] sm:$0xff] }
 0x254   :  { %1295 = vmatpush.msra.mxu2 %v5225_v12  ;;  %1315 = vmatpush.msra.mxu3 %v4724_v38  ;;  %v7745_v7 = vld [vmem:[#allocation21_spill] sm:$0xff] }
 0x255   :  { %1256 = vmatpush.msrb.mxu0 %v5230_v16  ;;  %1276 = vmatpush.msrb.mxu1 %v4728_v56  ;;  %v1028_v31 = vadd.f32 %v3196_v36, %v1027_v26  ;;  %v7746_v26 = vld [vmem:[#allocation22_spill] sm:$0xff] }
 0x256   :  { %1296 = vmatpush.msra.mxu2 %v5234_v32  ;;  %1316 = vmatpush.msra.mxu3 %v4732_v4  ;;  %v3198_v0 = vpop.eup %3197 }
 0x257   :  { %1189 = vmatmul.f32.vlgmr.msra.gmra.mxu0 %v5192_v20  ;;  %1229 = vmatmul.f32.vlgmr.msrb.gmra.mxu2 %v5192_v20  ;;  %v1032_v38 = vsel %vm1031_vm13, %v3196_v36, %v1028_v31  ;;  %v7744_v36 = vld [vmem:[#allocation20_spill] sm:$0xff]  ;;  %v7747_v31 = vld [vmem:[#allocation23_spill] sm:$0xff] }
 0x258   :  { %1257 = vmatpush.msrb.mxu0 %v5240_v8  ;;  %1277 = vmatpush.msrb.mxu1 %v4740_v57  ;;  %v1037_v56 = vsel %vm1034_vm14, %v1036_v30, %v1032_v38  ;;  %v5257_v57 = vld [vmem:[#allocation6 + $0x158] sm:$0xff]  ;;  %v5325_v38 = vld [vmem:[#allocation6 + $0x30] sm:$0xff] }
 0x259   :  { %1297 = vmatpush.msra.mxu2 %v5244_v47  ;;  %1317 = vmatpush.msra.mxu3 %v4744_v42  ;;  %v5248_v4 = vmul.f32 %v3198_v0, %v1037_v56  ;;  %v5261_v42 = vld [vmem:[#allocation6 + $0x130] sm:$0xff]  ;;  %v5321_v30 = vld [vmem:[#allocation6 + $0x58] sm:$0xff] }
 0x25a   :  { %1258 = vmatpush.msrb.mxu0 %v5250_v45  ;;  %1278 = vmatpush.msrb.mxu1 %v4748_v22  ;;  %v5269_v22 = vld [vmem:[#allocation6 + $0x110] sm:$0xff]  ;;  %v5329_v0 = vld [vmem:[#allocation6 + $0x38] sm:$0xff] }
 0x25b   :  { %1045 = vst [vmem:[#allocation3 + $0x1] sm:$0x1] %v5248_v4  ;;  %1209 = vmatmul.f32.vlgmr.msra.gmra.mxu1 %v5248_v4  ;;  %1249 = vmatmul.f32.vlgmr.msrb.gmra.mxu3 %v5248_v4  ;;  %v5333_v56 = vld [vmem:[#allocation6 + $0x10] sm:$0xff] }
 0x25c   :  { %1298 = vmatpush.msra.mxu2 %v5257_v57  ;;  %1318 = vmatpush.msra.mxu3 %v4752_v24  ;;  %v5277_v24 = vld [vmem:[#allocation6 + $0xf0] sm:$0xff] }
 0x25d   :  { %1259 = vmatpush.msrb.mxu0 %v5261_v42  ;;  %1279 = vmatpush.msrb.mxu1 %v4756_v5  ;;  %v5281_v5 = vld [vmem:[#allocation6 + $0xf8] sm:$0xff] }
 0x25e   :  { %1299 = vmatpush.msra.mxu2 %v5265_v59  ;;  %1319 = vmatpush.msra.mxu3 %v4760_v3  ;;  %v7738_v3 = vld [vmem:[#allocation14_spill] sm:$0xff] }
 0x25f   :  { %1260 = vmatpush.msrb.mxu0 %v5269_v22  ;;  %1280 = vmatpush.msrb.mxu1 %v4764_v19  ;;  %v7739_v19 = vld [vmem:[#allocation15_spill] sm:$0xff] }
 0x260   :  { %1300 = vmatpush.msra.mxu2 %v5273_v44  ;;  %1320 = vmatpush.msra.mxu3 %v4768_v33  ;;  %v7740_v33 = vld [vmem:[#allocation16_spill] sm:$0xff] }
 0x261   :  { %1261 = vmatpush.msrb.mxu0 %v5277_v24  ;;  %1281 = vmatpush.msrb.mxu1 %v4772_v43  ;;  %v7741_v43 = vld [vmem:[#allocation17_spill] sm:$0xff] }
 0x262   :  { %1301 = vmatpush.msra.mxu2 %v5281_v5  ;;  %1321 = vmatpush.msra.mxu3 %v7738_v3  ;;  %v5337_v3 = vld [vmem:[#allocation6 + $0x18] sm:$0xff] }
 0x263   :  { %1262 = vmatpush.msrb.mxu0 %v5285_v40  ;;  %1282 = vmatpush.msrb.mxu1 %v7739_v19  ;;  %v7752_v19 = vld [vmem:[#allocation28_spill] sm:$0xff] }
 0x264   :  { %1302 = vmatpush.msra.mxu2 %v5289_v58  ;;  %1322 = vmatpush.msra.mxu3 %v7740_v33  ;;  %v7754_v33 = vld [vmem:[#allocation32_spill] sm:$0xff] }
 0x265   :  { %1263 = vmatpush.msrb.mxu0 %v5293_v29  ;;  %1283 = vmatpush.msrb.mxu1 %v7741_v43  ;;  %v7755_v43 = vld [vmem:[#allocation33_spill] sm:$0xff] }
 0x266   :  { %1303 = vmatpush.msra.mxu2 %v5297_v9  ;;  %1323 = vmatpush.msra.mxu3 %v7742_v53  ;;  %v7759_v53 = vld [vmem:[#allocation41_spill] sm:$0xff] }
 0x267   :  { %1264 = vmatpush.msrb.mxu0 %v5301_v52  ;;  %1284 = vmatpush.msrb.mxu1 %v7743_v17  ;;  %v7760_v17 = vld [vmem:[#allocation44_spill] sm:$0xff] }
 0x268   :  { %1304 = vmatpush.msra.mxu2 %v5305_v41  ;;  %1324 = vmatpush.msra.mxu3 %v7744_v36  ;;  %v7761_v36 = vld [vmem:[#allocation45_spill] sm:$0xff] }
 0x269   :  { %1265 = vmatpush.msrb.mxu0 %v5309_v15  ;;  %1285 = vmatpush.msrb.mxu1 %v7745_v7  ;;  %v7762_v7 = vld [vmem:[#allocation48_spill] sm:$0xff] }
 0x26a   :  { %1305 = vmatpush.msra.mxu2 %v5313_v6  ;;  %1325 = vmatpush.msra.mxu3 %v7746_v26  ;;  %v7763_v26 = vld [vmem:[#allocation49_spill] sm:$0xff] }
 0x26b   :  { %1266 = vmatpush.msrb.mxu0 %v5317_v51  ;;  %1286 = vmatpush.msrb.mxu1 %v7747_v31  ;;  %v7764_v31 = vld [vmem:[#allocation52_spill] sm:$0xff] }
 0x26c   :  { %1306 = vmatpush.msra.mxu2 %v5321_v30  ;;  %1326 = vmatpush.msra.mxu3 %v4816_v35  ;;  %v7748_v35 = vld [vmem:[#allocation24_spill] sm:$0xff] }
 0x26d   :  { %1267 = vmatpush.msrb.mxu0 %v5325_v38  ;;  %1287 = vmatpush.msrb.mxu1 %v4820_v61  ;;  %v7749_v61 = vld [vmem:[#allocation25_spill] sm:$0xff] }
 0x26e   :  { %1307 = vmatpush.msra.mxu2 %v5329_v0  ;;  %1327 = vmatpush.msra.mxu3 %v4824_v39  ;;  %v7750_v39 = vld [vmem:[#allocation26_spill] sm:$0xff] }
 0x26f   :  { %1268 = vmatpush.msrb.mxu0 %v5333_v56  ;;  %1288 = vmatpush.msrb.mxu1 %v4828_v18  ;;  %v7751_v18 = vld [vmem:[#allocation27_spill] sm:$0xff] }
 0x270   :  { %1308 = vmatpush.msra.mxu2 %v5337_v3  ;;  %1328 = vmatpush.msra.mxu3 %v4832_v34  ;;  %v7753_v34 = vld [vmem:[#allocation29_spill] sm:$0xff] }
 0x271   :  { %1269 = vmatmul.f32.vlgmr.msrb.gmra.mxu0 %v5192_v20  ;;  %1289 = vmatmul.f32.vlgmr.msrb.gmra.mxu1 %v5248_v4 }
 0x272   :  { %1309 = vmatmul.f32.vlgmr.msra.gmra.mxu2 %v5192_v20  ;;  %1329 = vmatmul.f32.vlgmr.msra.gmra.mxu3 %v5248_v4  ;;  %v7756_v20 = vld [vmem:[#allocation36_spill] sm:$0xff]  ;;  %v7757_v4 = vld [vmem:[#allocation37_spill] sm:$0xff] }
 0x273   :  { %1399 = vmatpush.msra.mxu0 %v4844_v55  ;;  %1419 = vmatpush.msra.mxu1 %v7748_v35  ;;  %v7758_v55 = vld [vmem:[#allocation40_spill] sm:$0xff]  ;;  %v7765_v35 = vld [vmem:[#allocation53_spill] sm:$0xff] }
 0x274   :  { %1439 = vmatpush.msrb.mxu2 %v7749_v61  ;;  %1459 = vmatpush.msrb.mxu3 %v7750_v39  ;;  %v7766_v61 = vld [vmem:[#allocation56_spill] sm:$0xff]  ;;  %v7767_v39 = vld [vmem:[#allocation57_spill] sm:$0xff] }
 0x275   :  { %1400 = vmatpush.msra.mxu0 %v7751_v18  ;;  %1420 = vmatpush.msra.mxu1 %v7752_v19  ;;  %v7768_v18 = vld [vmem:[#allocation60_spill] sm:$0xff]  ;;  %v7769_v19 = vld [vmem:[#allocation61_spill] sm:$0xff] }
 0x276   :  { %1440 = vmatpush.msrb.mxu2 %v7753_v34  ;;  %1460 = vmatpush.msrb.mxu3 %v7754_v33  ;;  %v7770_v34 = vld [vmem:[#allocation64_spill] sm:$0xff]  ;;  %v7771_v33 = vld [vmem:[#allocation65_spill] sm:$0xff] }
 0x277   :  { %1401 = vmatpush.msra.mxu0 %v7755_v43  ;;  %1421 = vmatpush.msra.mxu1 %v7756_v20  ;;  %v7772_v43 = vld [vmem:[#allocation68_spill] sm:$0xff]  ;;  %v7773_v20 = vld [vmem:[#allocation69_spill] sm:$0xff] }
 0x278   :  { %1441 = vmatpush.msrb.mxu2 %v7757_v4  ;;  %1461 = vmatpush.msrb.mxu3 %v7758_v55  ;;  %v7774_v4 = vld [vmem:[#allocation72_spill] sm:$0xff]  ;;  %v7775_v55 = vld [vmem:[#allocation73_spill] sm:$0xff] }
 0x279   :  { %1402 = vmatpush.msra.mxu0 %v7759_v53  ;;  %1422 = vmatpush.msra.mxu1 %v7760_v17  ;;  %v7776_v53 = vld [vmem:[#allocation76_spill] sm:$0xff]  ;;  %v7777_v17 = vld [vmem:[#allocation77_spill] sm:$0xff] }
 0x27a   :  { %1442 = vmatpush.msrb.mxu2 %v7761_v36  ;;  %1462 = vmatpush.msrb.mxu3 %v7762_v7  ;;  %v7778_v36 = vld [vmem:[#allocation80_spill] sm:$0xff]  ;;  %v7779_v7 = vld [vmem:[#allocation81_spill] sm:$0xff] }
 0x27b   :  { %1403 = vmatpush.msra.mxu0 %v7763_v26  ;;  %1423 = vmatpush.msra.mxu1 %v7764_v31  ;;  %v7780_v26 = vld [vmem:[#allocation84_spill] sm:$0xff]  ;;  %v7781_v31 = vld [vmem:[#allocation85_spill] sm:$0xff] }
 0x27c   :  { %1443 = vmatpush.msrb.mxu2 %v7765_v35  ;;  %1463 = vmatpush.msrb.mxu3 %v7766_v61  ;;  %v7782_v35 = vld [vmem:[#allocation88_spill] sm:$0xff]  ;;  %v7783_v61 = vld [vmem:[#allocation89_spill] sm:$0xff] }
 0x27d   :  { %1404 = vmatpush.msra.mxu0 %v7767_v39  ;;  %1424 = vmatpush.msra.mxu1 %v7768_v18  ;;  %v7784_v39 = vld [vmem:[#allocation30_spill] sm:$0xff]  ;;  %v7785_v18 = vld [vmem:[#allocation31_spill] sm:$0xff] }
 0x27e   :  { %1444 = vmatpush.msrb.mxu2 %v7769_v19  ;;  %1464 = vmatpush.msrb.mxu3 %v7770_v34  ;;  %v7786_v19 = vld [vmem:[#allocation34_spill] sm:$0xff]  ;;  %v7787_v34 = vld [vmem:[#allocation35_spill] sm:$0xff] }
 0x27f   :  { %1405 = vmatpush.msra.mxu0 %v7771_v33  ;;  %1425 = vmatpush.msra.mxu1 %v7772_v43  ;;  %v7788_v33 = vld [vmem:[#allocation38_spill] sm:$0xff]  ;;  %v7789_v43 = vld [vmem:[#allocation39_spill] sm:$0xff] }
 0x280   :  { %1445 = vmatpush.msrb.mxu2 %v7773_v20  ;;  %1465 = vmatpush.msrb.mxu3 %v7774_v4  ;;  %v7790_v20 = vld [vmem:[#allocation42_spill] sm:$0xff]  ;;  %v7791_v4 = vld [vmem:[#allocation43_spill] sm:$0xff] }
 0x281   :  { %1406 = vmatpush.msra.mxu0 %v7775_v55  ;;  %1426 = vmatpush.msra.mxu1 %v7776_v53  ;;  %v7792_v55 = vld [vmem:[#allocation46_spill] sm:$0xff]  ;;  %v7793_v53 = vld [vmem:[#allocation47_spill] sm:$0xff] }
 0x282   :  { %1446 = vmatpush.msrb.mxu2 %v7777_v17  ;;  %1466 = vmatpush.msrb.mxu3 %v7778_v36  ;;  %v7794_v17 = vld [vmem:[#allocation50_spill] sm:$0xff]  ;;  %v7795_v36 = vld [vmem:[#allocation51_spill] sm:$0xff] }
 0x283   :  { %1407 = vmatpush.msra.mxu0 %v7779_v7  ;;  %1427 = vmatpush.msra.mxu1 %v7780_v26  ;;  %v7796_v7 = vld [vmem:[#allocation54_spill] sm:$0xff]  ;;  %v7797_v26 = vld [vmem:[#allocation55_spill] sm:$0xff] }
 0x284   :  { %1447 = vmatpush.msrb.mxu2 %v7781_v31  ;;  %1467 = vmatpush.msrb.mxu3 %v7782_v35  ;;  %v7798_v31 = vld [vmem:[#allocation58_spill] sm:$0xff]  ;;  %v7799_v35 = vld [vmem:[#allocation59_spill] sm:$0xff] }
 0x285   :  { %1408 = vmatpush.msra.mxu0 %v7783_v61  ;;  %1428 = vmatpush.msra.mxu1 %v7784_v39  ;;  %v7800_v61 = vld [vmem:[#allocation62_spill] sm:$0xff]  ;;  %v7801_v39 = vld [vmem:[#allocation63_spill] sm:$0xff] }
 0x286   :  { %1448 = vmatpush.msrb.mxu2 %v7785_v18  ;;  %1468 = vmatpush.msrb.mxu3 %v7786_v19  ;;  %v7802_v18 = vld [vmem:[#allocation66_spill] sm:$0xff]  ;;  %v7803_v19 = vld [vmem:[#allocation67_spill] sm:$0xff] }
 0x287   :  { %1409 = vmatpush.msra.mxu0 %v7787_v34  ;;  %1429 = vmatpush.msra.mxu1 %v7788_v33  ;;  %v7804_v34 = vld [vmem:[#allocation70_spill] sm:$0xff]  ;;  %v7805_v33 = vld [vmem:[#allocation71_spill] sm:$0xff] }
 0x288   :  { %1449 = vmatpush.msrb.mxu2 %v7789_v43  ;;  %1469 = vmatpush.msrb.mxu3 %v7790_v20  ;;  %v7806_v43 = vld [vmem:[#allocation74_spill] sm:$0xff]  ;;  %v7807_v20 = vld [vmem:[#allocation75_spill] sm:$0xff] }
 0x289   :  { %1410 = vmatpush.msra.mxu0 %v7791_v4  ;;  %1430 = vmatpush.msra.mxu1 %v7792_v55  ;;  %v7808_v4 = vld [vmem:[#allocation78_spill] sm:$0xff]  ;;  %v7809_v55 = vld [vmem:[#allocation79_spill] sm:$0xff] }
 0x28a   :  { %1450 = vmatpush.msrb.mxu2 %v7793_v53  ;;  %1470 = vmatpush.msrb.mxu3 %v7794_v17  ;;  %v5410_v53 = vld [vmem:[#allocation6 + $0x3e0] sm:$0xff]  ;;  %v5414_v17 = vld [vmem:[#allocation6 + $0x3e8] sm:$0xff] }
 0x28b   :  { %1411 = vmatpush.msra.mxu0 %v7795_v36  ;;  %1431 = vmatpush.msra.mxu1 %v7796_v7  ;;  %v5426_v36 = vld [vmem:[#allocation6 + $0x3a0] sm:$0xff]  ;;  %v5454_v7 = vld [vmem:[#allocation6 + $0x348] sm:$0xff] }
 0x28c   :  { %1451 = vmatpush.msrb.mxu2 %v7797_v26  ;;  %1471 = vmatpush.msrb.mxu3 %v7798_v31  ;;  %7811 = vst [vmem:[#allocation15_spill] sm:$0xff] %v5426_v36  ;;  %v5458_v26 = vld [vmem:[#allocation6 + $0x320] sm:$0xff]  ;;  %v5462_v31 = vld [vmem:[#allocation6 + $0x328] sm:$0xff] }
 0x28d   :  { %1412 = vmatpush.msra.mxu0 %v7799_v35  ;;  %1432 = vmatpush.msra.mxu1 %v7800_v61  ;;  %7819 = vst [vmem:[#allocation22_spill] sm:$0xff] %v5454_v7  ;;  %v5466_v35 = vld [vmem:[#allocation6 + $0x300] sm:$0xff] }
 0x28e   :  { %1452 = vmatpush.msrb.mxu2 %v7801_v39  ;;  %1472 = vmatpush.msrb.mxu3 %v7802_v18  ;;  %7821 = vst [vmem:[#allocation23_spill] sm:$0xff] %v5458_v26  ;;  %v7826_v61 = vld [vmem:[#allocation90_spill] sm:$0xff]  ;;  %v5470_v39 = vld [vmem:[#allocation6 + $0x308] sm:$0xff] }
 0x28f   :  { %1413 = vmatpush.msra.mxu0 %v7803_v19  ;;  %1433 = vmatpush.msra.mxu1 %v7804_v34  ;;  %7823 = vst [vmem:[#allocation24_spill] sm:$0xff] %v5462_v31  ;;  %v7828_v18 = vld [vmem:[#allocation91_spill] sm:$0xff]  ;;  %v5474_v19 = vld [vmem:[#allocation6 + $0x2e0] sm:$0xff]  ;;  %v7830_v34 = vld [vmem:[#allocation92_spill] sm:$0xff] }
 0x290   :  { %1453 = vmatpush.msrb.mxu2 %v7805_v33  ;;  %1473 = vmatpush.msrb.mxu3 %v7806_v43  ;;  %7825 = vst [vmem:[#allocation25_spill] sm:$0xff] %v5466_v35  ;;  %v5478_v33 = vld [vmem:[#allocation6 + $0x2e8] sm:$0xff]  ;;  %v7832_v43 = vld [vmem:[#allocation93_spill] sm:$0xff] }
 0x291   :  { %1414 = vmatpush.msra.mxu0 %v5024_v25  ;;  %1434 = vmatpush.msra.mxu1 %v7807_v20  ;;  %v5418_v25 = vld [vmem:[#allocation6 + $0x3c0] sm:$0xff]  ;;  %7827 = vst [vmem:[#allocation26_spill] sm:$0xff] %v5470_v39 }
 0x292   :  { %1454 = vmatpush.msrb.mxu2 %v7808_v4  ;;  %1474 = vmatpush.msrb.mxu3 %v5033_v50  ;;  %v5422_v50 = vld [vmem:[#allocation6 + $0x3c8] sm:$0xff]  ;;  %7829 = vst [vmem:[#allocation27_spill] sm:$0xff] %v5474_v19  ;;  %v5482_v20 = vld [vmem:[#allocation6 + $0x2c0] sm:$0xff] }
 0x293   :  { %1524 = vmatpush.msrb.mxu0 %v7809_v55  ;;  %1544 = vmatpush.msrb.mxu1 %v5410_v53  ;;  %7810 = vst [vmem:[#allocation14_spill] sm:$0xff] %v5422_v50  ;;  %v7834_v4 = vld [vmem:[#allocation94_spill] sm:$0xff]  ;;  %v5486_v55 = vld [vmem:[#allocation6 + $0x2c8] sm:$0xff] }
 0x294   :  { %1564 = vmatpush.msra.mxu2 %v5040_v62  ;;  %1584 = vmatpush.msra.mxu3 %v5414_v17  ;;  %v5430_v62 = vld [vmem:[#allocation6 + $0x3a8] sm:$0xff]  ;;  %7831 = vst [vmem:[#allocation28_spill] sm:$0xff] %v5478_v33 }
 0x295   :  { %1525 = vmatpush.msrb.mxu0 %v5044_v27  ;;  %1545 = vmatpush.msrb.mxu1 %v5418_v25  ;;  %7812 = vst [vmem:[#allocation16_spill] sm:$0xff] %v5430_v62  ;;  %v5434_v27 = vld [vmem:[#allocation6 + $0x380] sm:$0xff] }
 0x296   :  { %1565 = vmatpush.msra.mxu2 %v5048_v46  ;;  %1585 = vmatpush.msra.mxu3 %v5422_v50  ;;  %7813 = vst [vmem:[#allocation17_spill] sm:$0xff] %v5434_v27  ;;  %v5438_v46 = vld [vmem:[#allocation6 + $0x388] sm:$0xff] }
 0x297   :  { %1526 = vmatpush.msrb.mxu0 %v5052_v23  ;;  %1546 = vmatpush.msrb.mxu1 %v5426_v36  ;;  %7814 = vst [vmem:[#allocation18_spill] sm:$0xff] %v5438_v46  ;;  %v5442_v23 = vld [vmem:[#allocation6 + $0x360] sm:$0xff] }
 0x298   :  { %1566 = vmatpush.msra.mxu2 %v5056_v10  ;;  %1586 = vmatpush.msra.mxu3 %v5430_v62  ;;  %7815 = vst [vmem:[#allocation19_spill] sm:$0xff] %v5442_v23  ;;  %v5446_v10 = vld [vmem:[#allocation6 + $0x368] sm:$0xff] }
 0x299   :  { %1527 = vmatpush.msrb.mxu0 %v5060_v54  ;;  %1547 = vmatpush.msrb.mxu1 %v5434_v27  ;;  %7816 = vst [vmem:[#allocation20_spill] sm:$0xff] %v5446_v10  ;;  %v5450_v54 = vld [vmem:[#allocation6 + $0x340] sm:$0xff] }
 0x29a   :  { %1567 = vmatpush.msra.mxu2 %v5064_v48  ;;  %1587 = vmatpush.msra.mxu3 %v5438_v46  ;;  %7817 = vst [vmem:[#allocation21_spill] sm:$0xff] %v5450_v54  ;;  %v7818_v48 = vld [vmem:[#allocation82_spill] sm:$0xff] }
 0x29b   :  { %1528 = vmatpush.msrb.mxu0 %v5068_v1  ;;  %1548 = vmatpush.msrb.mxu1 %v5442_v23  ;;  %v7820_v1 = vld [vmem:[#allocation83_spill] sm:$0xff]  ;;  %7833 = vst [vmem:[#allocation29_spill] sm:$0xff] %v5482_v20 }
 0x29c   :  { %1568 = vmatpush.msra.mxu2 %v5072_v11  ;;  %1588 = vmatpush.msra.mxu3 %v5446_v10  ;;  %v7822_v11 = vld [vmem:[#allocation86_spill] sm:$0xff]  ;;  %7835 = vst [vmem:[#allocation32_spill] sm:$0xff] %v5486_v55  ;;  %v7861_v10 = vld [vmem:[#allocation11_spill] sm:$0xff] }
 0x29d   :  { %1529 = vmatpush.msrb.mxu0 %v5076_v63  ;;  %1549 = vmatpush.msrb.mxu1 %v5450_v54  ;;  %v7824_v63 = vld [vmem:[#allocation87_spill] sm:$0xff] }
 0x29e   :  { %1569 = vmatpush.msra.mxu2 %v7818_v48  ;;  %1589 = vmatpush.msra.mxu3 %v5454_v7  ;;  %v7836_v48 = vld [vmem:[#allocation95_spill] sm:$0xff] }
 0x29f   :  { %1530 = vmatpush.msrb.mxu0 %v7820_v1  ;;  %1550 = vmatpush.msrb.mxu1 %v5458_v26  ;;  %v5490_v1 = vld [vmem:[#allocation6 + $0x2a0] sm:$0xff] }
 0x2a0   :  { %1570 = vmatpush.msra.mxu2 %v7822_v11  ;;  %1590 = vmatpush.msra.mxu3 %v5462_v31  ;;  %7837 = vst [vmem:[#allocation33_spill] sm:$0xff] %v5490_v1  ;;  %v7838_v11 = vld [vmem:[#allocation96_spill] sm:$0xff] }
 0x2a1   :  { %1531 = vmatpush.msrb.mxu0 %v7824_v63  ;;  %1551 = vmatpush.msrb.mxu1 %v5466_v35  ;;  %v5494_v63 = vld [vmem:[#allocation6 + $0x2a8] sm:$0xff] }
 0x2a2   :  { %1571 = vmatpush.msra.mxu2 %v7826_v61  ;;  %1591 = vmatpush.msra.mxu3 %v5470_v39  ;;  %7839 = vst [vmem:[#allocation36_spill] sm:$0xff] %v5494_v63  ;;  %v7840_v61 = vld [vmem:[#allocation97_spill] sm:$0xff] }
 0x2a3   :  { %1532 = vmatpush.msrb.mxu0 %v7828_v18  ;;  %1552 = vmatpush.msrb.mxu1 %v5474_v19  ;;  %v5498_v18 = vld [vmem:[#allocation6 + $0x280] sm:$0xff] }
 0x2a4   :  { %1572 = vmatpush.msra.mxu2 %v7830_v34  ;;  %1592 = vmatpush.msra.mxu3 %v5478_v33  ;;  %7841 = vst [vmem:[#allocation37_spill] sm:$0xff] %v5498_v18  ;;  %v7842_v34 = vld [vmem:[#allocation98_spill] sm:$0xff] }
 0x2a5   :  { %1533 = vmatpush.msrb.mxu0 %v7832_v43  ;;  %1553 = vmatpush.msrb.mxu1 %v5482_v20  ;;  %v5502_v43 = vld [vmem:[#allocation6 + $0x288] sm:$0xff] }
 0x2a6   :  { %1573 = vmatpush.msra.mxu2 %v7834_v4  ;;  %1593 = vmatpush.msra.mxu3 %v5486_v55  ;;  %7843 = vst [vmem:[#allocation40_spill] sm:$0xff] %v5502_v43  ;;  %v7844_v4 = vld [vmem:[#allocation99_spill] sm:$0xff] }
 0x2a7   :  { %1534 = vmatpush.msrb.mxu0 %v7836_v48  ;;  %1554 = vmatpush.msrb.mxu1 %v5490_v1  ;;  %v5506_v48 = vld [vmem:[#allocation6 + $0x260] sm:$0xff] }
 0x2a8   :  { %1574 = vmatpush.msra.mxu2 %v7838_v11  ;;  %1594 = vmatpush.msra.mxu3 %v5494_v63  ;;  %7845 = vst [vmem:[#allocation41_spill] sm:$0xff] %v5506_v48  ;;  %v7846_v11 = vld [vmem:[#allocation100_spill] sm:$0xff]  ;;  %v5510_v63 = vld [vmem:[#allocation6 + $0x268] sm:$0xff] }
 0x2a9   :  { %1535 = vmatpush.msrb.mxu0 %v7840_v61  ;;  %1555 = vmatpush.msrb.mxu1 %v5498_v18  ;;  %7847 = vst [vmem:[#allocation44_spill] sm:$0xff] %v5510_v63  ;;  %v7848_v61 = vld [vmem:[#allocation101_spill] sm:$0xff]  ;;  %v5514_v18 = vld [vmem:[#allocation6 + $0x240] sm:$0xff] }
 0x2aa   :  { %1575 = vmatpush.msra.mxu2 %v7842_v34  ;;  %1595 = vmatpush.msra.mxu3 %v5502_v43  ;;  %7849 = vst [vmem:[#allocation45_spill] sm:$0xff] %v5514_v18  ;;  %v7850_v34 = vld [vmem:[#allocation102_spill] sm:$0xff]  ;;  %v5518_v43 = vld [vmem:[#allocation6 + $0x248] sm:$0xff] }
 0x2ab   :  { %1536 = vmatpush.msrb.mxu0 %v7844_v4  ;;  %1556 = vmatpush.msrb.mxu1 %v5506_v48  ;;  %7851 = vst [vmem:[#allocation48_spill] sm:$0xff] %v5518_v43  ;;  %v7852_v4 = vld [vmem:[#allocation103_spill] sm:$0xff]  ;;  %v5522_v48 = vld [vmem:[#allocation6 + $0x220] sm:$0xff] }
 0x2ac   :  { %1576 = vmatpush.msra.mxu2 %v7846_v11  ;;  %1596 = vmatpush.msra.mxu3 %v5510_v63  ;;  %7853 = vst [vmem:[#allocation49_spill] sm:$0xff] %v5522_v48  ;;  %v7854_v11 = vld [vmem:[#allocation104_spill] sm:$0xff]  ;;  %v5526_v63 = vld [vmem:[#allocation6 + $0x228] sm:$0xff] }
 0x2ad   :  { %1537 = vmatpush.msrb.mxu0 %v7848_v61  ;;  %1557 = vmatpush.msrb.mxu1 %v5514_v18  ;;  %7855 = vst [vmem:[#allocation52_spill] sm:$0xff] %v5526_v63  ;;  %v7856_v61 = vld [vmem:[#allocation105_spill] sm:$0xff]  ;;  %v5530_v18 = vld [vmem:[#allocation6 + $0x200] sm:$0xff] }
 0x2ae   :  { %1577 = vmatpush.msra.mxu2 %v7850_v34  ;;  %1597 = vmatpush.msra.mxu3 %v5518_v43  ;;  %7857 = vst [vmem:[#allocation53_spill] sm:$0xff] %v5530_v18  ;;  %v7858_v34 = vld [vmem:[#allocation106_spill] sm:$0xff]  ;;  %v5534_v43 = vld [vmem:[#allocation6 + $0x208] sm:$0xff] }
 0x2af   :  { %1538 = vmatpush.msrb.mxu0 %v7852_v4  ;;  %1558 = vmatpush.msrb.mxu1 %v5522_v48  ;;  %7859 = vst [vmem:[#allocation56_spill] sm:$0xff] %v5534_v43  ;;  %v1047_v39 = vld [vmem:[#allocation2 + $0x3] ss:$8 sm:$0xf] }
 0x2b0   :  { %1578 = vmatpush.msra.mxu2 %v7854_v11  ;;  %1598 = vmatpush.msra.mxu3 %v5526_v63 }
 0x2b1   :  { %1539 = vmatpush.msrb.mxu0 %v7856_v61  ;;  %1559 = vmatpush.msrb.mxu1 %v5530_v18 }
 0x2b2   :  { %1579 = vmatpush.msra.mxu2 %v7858_v34  ;;  %1599 = vmatpush.msra.mxu3 %v5534_v43  ;;  %v7860_v34 = vld [vmem:[#allocation10_spill] sm:$0xff] }
 0x2ca   :  { %v1065_v4 = vpop.f32.mrf.mxu0  ;;  %v1085_v48 = vpop.f32.mrf.mxu1 }
 0x2cb   :  { %v1132_v1 = vrot.slane %v1085_v48, 7 }
 0x2cd   :  { %v1135_v63 = vsel %vm501_vm6, %v1065_v4, %v1132_v1 }
 0x2d1   :  { %v1105_v11 = vpop.f32.mrf.mxu2  ;;  %v1125_v55 = vpop.f32.mrf.mxu3 }
 0x2d2   :  { %v1133_v20 = vrot.slane %v1105_v11, 6  ;;  %v1134_v33 = vrot.slane %v1125_v55, 5 }
 0x2d4   :  { %v1136_v61 = vsel %vm503_vm7, %v1133_v20, %v1134_v33  ;;  %v1190_v19 = vpop.f32.mrf.mxu0 }
 0x2d5   :  { %v1137_v18 = vsel %vm505_vm8, %v1135_v63, %v1136_v61  ;;  %v1191_v35 = vadd.f32 %v1190_v19, %v7860_v34 }
 0x2d6   :  { %v1139_v31 = vadd.f32 %v1137_v18, %v1047_v39 }
 0x2d8   :  { %v3115_v26 = vmul.f32 -1.442695, %v1139_v31  ;;  %v1210_v43 = vpop.f32.mrf.mxu1  ;;  %v1160_v19 = vrot.slane %v1139_v31, 3 }
 0x2d9   :  { %v1211_v7 = vadd.f32 %v1210_v43, %v1191_v35 }
 0x2da   :  { %3199 = vpow2.f32 %v3115_v26  ;;  %v1230_v48 = vpop.f32.mrf.mxu2 }
 0x2db   :  { %v3116_v54 = vmul.f32 -1.442695, %v1211_v7  ;;  %v1231_v11 = vadd.f32 %v1230_v48, %v7861_v10 }
 0x2dd   :  { %3201 = vpow2.f32 %v3116_v54 }
 0x2de   :  { %v1250_v55 = vpop.f32.mrf.mxu3 }
 0x2df   :  { %v1251_v1 = vadd.f32 %v1250_v55, %v1231_v11  ;;  %v7862_v55 = vld [vmem:[#allocation12_spill] sm:$0xff] }
 0x2e0   :  { %v3200_v4 = vpop.eup %3199 }
 0x2e1   :  { %v1143_v33 = vadd.f32 1.0, %v3200_v4  ;;  %v3117_v20 = vmul.f32 -1.442695, %v1251_v1 }
 0x2e3   :  { %v3202_v23 = vpop.eup %3201  ;;  %3203 = vrcp.f32 %v1143_v33  ;;  %v1155_v43 = vand.u32 2147483648, %v1143_v33  ;;  %vm1149_vm0 = vweird.f32 %v1143_v33 }
 0x2e4   :  { %v5542_v63 = vadd.f32 1.0, %v3202_v23  ;;  %3205 = vpow2.f32 %v3117_v20  ;;  %v1153_v23 = vand.u32 2147483647, %v1143_v33 }
 0x2e5   :  { %v1156_v31 = vor.u32 1.1754944e-38, %v1155_v43 }
 0x2e6   :  { %3207 = vrcp.f32 %v5542_v63  ;;  %vm1154_vm2 = vcmp.eq.f32.partialorder %v1153_v23, 8.507059e+37  ;;  %vm1350_vm10 = vweird.f32 %v5542_v63 }
 0x2e9   :  { %v3204_v39 = vpop.eup %3203 }
 0x2ea   :  { %v3206_v35 = vpop.eup %3205  ;;  %v1145_v26 = vmul.f32 %v3204_v39, %v1143_v33  ;;  %vm1150_vm15 = vweird.f32 %v3204_v39 }
 0x2eb   :  { %v1343_v7 = vadd.f32 1.0, %v3206_v35  ;;  %vm1151_vm1 = vmor %vm1149_vm0, %vm1150_vm15 }
 0x2ec   :  { %v5545_v18 = vpop.eup %3207  ;;  %v1146_v54 = vsub.f32 1.0, %v1145_v26 }
 0x2ed   :  { %v1346_v61 = vmul.f32 %v5545_v18, %v5542_v63  ;;  %3209 = vrcp.f32 %v1343_v7  ;;  %vm1365_vm4 = vweird.f32 %v1343_v7  ;;  %vm1351_vm5 = vweird.f32 %v5545_v18 }
 0x2ee   :  { %v1147_v48 = vmul.f32 %v3204_v39, %v1146_v54  ;;  %v1270_v11 = vpop.f32.mrf.mxu0  ;;  %3211 = vtanh.f32 %v1160_v19  ;;  %v1290_v20 = vpop.f32.mrf.mxu1  ;;  %vm1352_vm11 = vmor %vm1350_vm10, %vm1351_vm5 }
 0x2ef   :  { %v1271_v1 = vadd.f32 %v1270_v11, %v7862_v55  ;;  %v1347_v35 = vsub.f32 1.0, %v1346_v61 }
 0x2f0   :  { %v1148_v4 = vadd.f32 %v3204_v39, %v1147_v48 }
 0x2f1   :  { %v1291_v10 = vadd.f32 %v1290_v20, %v1271_v1  ;;  %v1348_v19 = vmul.f32 %v5545_v18, %v1347_v35  ;;  %v1354_v20 = vand.u32 2147483647, %v5542_v63 }
 0x2f2   :  { %v1152_v26 = vsel %vm1151_vm1, %v3204_v39, %v1148_v4 }
 0x2f3   :  { %v3210_v34 = vpop.eup %3209  ;;  %v1157_v46 = vsel %vm1154_vm2, %v1156_v31, %v1152_v26  ;;  %v3118_v27 = vmul.f32 -1.442695, %v1291_v10  ;;  %v1371_v10 = vand.u32 2147483648, %v1343_v7  ;;  %vm1355_vm13 = vcmp.eq.f32.partialorder %v1354_v20, 8.507059e+37 }
 0x2f4   :  { %v1164_v62 = vrot.slane %v1157_v46, 1  ;;  %v1361_v54 = vmul.f32 %v3210_v34, %v1343_v7  ;;  %v3212_v36 = vpop.eup %3211  ;;  %vm1366_vm3 = vweird.f32 %v3210_v34 }
 0x2f5   :  { %3213 = vpow2.f32 %v3118_v27  ;;  %v1310_v50 = vpop.f32.mrf.mxu2  ;;  %v1167_v33 = vmul.f32 %v3212_v36, %v1157_v46  ;;  %v1330_v61 = vpop.f32.mrf.mxu3  ;;  %v1349_v27 = vadd.f32 %v5545_v18, %v1348_v19  ;;  %vm1367_vm9 = vmor %vm1365_vm4, %vm1366_vm3  ;;  %v1372_v35 = vor.u32 1.1754944e-38, %v1371_v10  ;;  %v5584_v10 = vld [vmem:[#allocation6 + $0x3d0] sm:$0xff] }
 0x2f6   :  { %v1166_v48 = vmul.f32 %v1164_v62, %v5180_v49  ;;  %v1362_v11 = vsub.f32 1.0, %v1361_v54  ;;  %v1311_v43 = vadd.f32 %v1310_v50, %v7737_v60  ;;  %v1369_v49 = vand.u32 2147483647, %v1343_v7 }
 0x2f7   :  { %v1356_v50 = vand.u32 2147483648, %v5542_v63  ;;  %v1353_v26 = vsel %vm1352_vm11, %v5545_v18, %v1349_v27  ;;  %v1170_v7 = vrot.slane %v1157_v46, 2  ;;  %v5576_v18 = vld [vmem:[#allocation6 + $0x3f0] sm:$0xff] }
 0x2f8   :  { %v5553_v1 = vadd.f32 %v1167_v33, %v1166_v48  ;;  %v1363_v39 = vmul.f32 %v3210_v34, %v1362_v11  ;;  %v1331_v23 = vadd.f32 %v1330_v61, %v1311_v43  ;;  %vm1370_vm12 = vcmp.eq.f32.partialorder %v1369_v49, 8.507059e+37  ;;  %v5599_v49 = vld [vmem:[#allocation6 + $0x3b8] sm:$0xff] }
 0x2f9   :  { %v1357_v54 = vor.u32 1.1754944e-38, %v1356_v50  ;;  %v5608_v50 = vld [vmem:[#allocation6 + $0x398] sm:$0xff] }
 0x2fa   :  { %3215 = vtanh.f32 %v5553_v1  ;;  %v1364_v4 = vadd.f32 %v3210_v34, %v1363_v39 }
 0x2fb   :  { %v3214_v36 = vpop.eup %3213  ;;  %3217 = vtanh.f32 %v1331_v23  ;;  %v1358_v43 = vsel %vm1355_vm13, %v1357_v54, %v1353_v26  ;;  %v5643_v26 = vld [vmem:[#allocation6 + $0x310] sm:$0xff]  ;;  %v5733_v54 = vld [vmem:[#allocation4 + $0x1c8] sm:$0xff] }
 0x2fc   :  { %v5559_v62 = vadd.f32 1.0, %v3214_v36  ;;  %v1368_v31 = vsel %vm1367_vm9, %v3210_v34, %v1364_v4  ;;  %v5594_v4 = vld [vmem:[#allocation6 + $0x3b0] sm:$0xff]  ;;  %7865 = vst [vmem:[#allocation61_spill] sm:$0xff] %v5733_v54 }
 0x2fd   :  { %v1373_v19 = vsel %vm1370_vm12, %v1372_v35, %v1368_v31  ;;  %v5624_v35 = vld [vmem:[#allocation6 + $0x350] sm:$0xff] }
 0x2fe   :  { %3219 = vrcp.f32 %v5559_v62  ;;  %v1391_v61 = vmul.f32 %v1373_v19, %v5197_v21  ;;  %v5580_v21 = vld [vmem:[#allocation6 + $0x3f8] sm:$0xff]  ;;  %v1386_v27 = vand.u32 2147483648, %v5559_v62  ;;  %vm1380_vm15 = vweird.f32 %v5559_v62  ;;  %v5736_v19 = vld [vmem:[#allocation4 + $0x1d0] sm:$0xff] }
 0x2ff   :  { %7866 = vst [vmem:[#allocation64_spill] sm:$0xff] %v5736_v19 }
 0x300   :  { %v3216_v48 = vpop.eup %3215  ;;  %v1387_v36 = vor.u32 1.1754944e-38, %v1386_v27  ;;  %v5766_v27 = vld [vmem:[#allocation4 + $0x160] sm:$0xff] }
 0x301   :  { %v3218_v33 = vpop.eup %3217  ;;  %v5565_v11 = vmul.f32 %v3216_v48, %v1170_v7  ;;  %v5730_v7 = vld [vmem:[#allocation4 + $0x1c0] sm:$0xff]  ;;  %v5739_v48 = vld [vmem:[#allocation4 + $0x1d8] sm:$0xff]  ;;  %7876 = vst [vmem:[#allocation84_spill] sm:$0xff] %v5766_v27 }
 0x302   :  { %v1392_v63 = vmul.f32 %v3218_v33, %v1358_v43  ;;  %7864 = vst [vmem:[#allocation60_spill] sm:$0xff] %v5730_v7  ;;  %v5742_v33 = vld [vmem:[#allocation4 + $0x1a0] sm:$0xff]  ;;  %v5748_v43 = vld [vmem:[#allocation4 + $0x1b0] sm:$0xff] }
 0x303   :  { %1415 = vmatmul.f32.vlgmr.msra.gmra.mxu0 %v5565_v11  ;;  %1435 = vmatmul.f32.vlgmr.msra.gmra.mxu1 %v5565_v11  ;;  %7867 = vst [vmem:[#allocation65_spill] sm:$0xff] %v5739_v48 }
 0x304   :  { %v3220_v34 = vpop.eup %3219  ;;  %v5570_v39 = vadd.f32 %v1392_v63, %v1391_v61  ;;  %1455 = vmatmul.f32.vlgmr.msrb.gmra.mxu2 %v5565_v11  ;;  %1475 = vmatmul.f32.vlgmr.msrb.gmra.mxu3 %v5565_v11  ;;  %7868 = vst [vmem:[#allocation68_spill] sm:$0xff] %v5742_v33  ;;  %v5751_v61 = vld [vmem:[#allocation4 + $0x1b8] sm:$0xff]  ;;  %v5754_v63 = vld [vmem:[#allocation4 + $0x180] sm:$0xff] }
 0x305   :  { %v1376_v46 = vmul.f32 %v3220_v34, %v5559_v62  ;;  %1604 = vmatpush.msra.mxu0 %v5202_v28  ;;  %1624 = vmatpush.msra.mxu1 %v5576_v18  ;;  %v5590_v28 = vld [vmem:[#allocation6 + $0x3d8] sm:$0xff]  ;;  %vm1381_vm14 = vweird.f32 %v3220_v34  ;;  %7870 = vst [vmem:[#allocation72_spill] sm:$0xff] %v5748_v43 }
 0x306   :  { %1644 = vmatpush.msrb.mxu2 %v5206_v14  ;;  %1664 = vmatpush.msrb.mxu3 %v5580_v21  ;;  %3221 = vtanh.f32 %v5570_v39  ;;  %vm1382_vm0 = vmor %vm1380_vm15, %vm1381_vm14  ;;  %7871 = vst [vmem:[#allocation73_spill] sm:$0xff] %v5751_v61 }
 0x307   :  { %v1377_v23 = vsub.f32 1.0, %v1376_v46  ;;  %1605 = vmatpush.msra.mxu0 %v5210_v37  ;;  %1625 = vmatpush.msra.mxu1 %v5584_v10  ;;  %v1384_v37 = vand.u32 2147483647, %v5559_v62  ;;  %v5614_v62 = vld [vmem:[#allocation6 + $0x370] sm:$0xff]  ;;  %7872 = vst [vmem:[#allocation76_spill] sm:$0xff] %v5754_v63 }
 0x308   :  { %1645 = vmatpush.msrb.mxu2 %v5216_v13  ;;  %1665 = vmatpush.msrb.mxu3 %v5590_v28  ;;  %v5604_v13 = vld [vmem:[#allocation6 + $0x390] sm:$0xff] }
 0x309   :  { %v1378_v14 = vmul.f32 %v3220_v34, %v1377_v23  ;;  %1606 = vmatpush.msra.mxu0 %v5220_v2  ;;  %1626 = vmatpush.msra.mxu1 %v5594_v4  ;;  %vm1385_vm1 = vcmp.eq.f32.partialorder %v1384_v37, 8.507059e+37  ;;  %v5760_v46 = vld [vmem:[#allocation4 + $0x190] sm:$0xff]  ;;  %v5763_v23 = vld [vmem:[#allocation4 + $0x198] sm:$0xff] }
 0x30a   :  { %1646 = vmatpush.msrb.mxu2 %v5225_v12  ;;  %1666 = vmatpush.msrb.mxu3 %v5599_v49  ;;  %7874 = vst [vmem:[#allocation80_spill] sm:$0xff] %v5760_v46  ;;  %v5772_v37 = vld [vmem:[#allocation4 + $0x170] sm:$0xff] }
 0x30b   :  { %1607 = vmatpush.msra.mxu0 %v5230_v16  ;;  %1627 = vmatpush.msra.mxu1 %v5604_v13  ;;  %v1379_v2 = vadd.f32 %v3220_v34, %v1378_v14  ;;  %7875 = vst [vmem:[#allocation81_spill] sm:$0xff] %v5763_v23  ;;  %v5769_v14 = vld [vmem:[#allocation4 + $0x168] sm:$0xff] }
 0x30c   :  { %1647 = vmatpush.msrb.mxu2 %v5234_v32  ;;  %1667 = vmatpush.msrb.mxu3 %v5608_v50  ;;  %v3222_v16 = vpop.eup %3221  ;;  %v5618_v32 = vld [vmem:[#allocation6 + $0x378] sm:$0xff]  ;;  %7877 = vst [vmem:[#allocation85_spill] sm:$0xff] %v5769_v14 }
 0x30d   :  { %1540 = vmatmul.f32.vlgmr.msrb.gmra.mxu0 %v5565_v11  ;;  %1580 = vmatmul.f32.vlgmr.msra.gmra.mxu2 %v5565_v11  ;;  %v1383_v12 = vsel %vm1382_vm0, %v3220_v34, %v1379_v2  ;;  %v5757_v34 = vld [vmem:[#allocation4 + $0x188] sm:$0xff]  ;;  %7878 = vst [vmem:[#allocation88_spill] sm:$0xff] %v5772_v37  ;;  %v5775_v2 = vld [vmem:[#allocation4 + $0x178] sm:$0xff] }
 0x30e   :  { %1608 = vmatpush.msra.mxu0 %v5240_v8  ;;  %1628 = vmatpush.msra.mxu1 %v5614_v62  ;;  %v1388_v20 = vsel %vm1385_vm1, %v1387_v36, %v1383_v12  ;;  %v5631_v8 = vld [vmem:[#allocation6 + $0x358] sm:$0xff]  ;;  %7873 = vst [vmem:[#allocation77_spill] sm:$0xff] %v5757_v34  ;;  %v5778_v36 = vld [vmem:[#allocation4 + $0x140] sm:$0xff]  ;;  %v5781_v12 = vld [vmem:[#allocation4 + $0x148] sm:$0xff] }
 0x30f   :  { %1648 = vmatpush.msrb.mxu2 %v5244_v47  ;;  %1668 = vmatpush.msrb.mxu3 %v5618_v32  ;;  %v5621_v31 = vmul.f32 %v3222_v16, %v1388_v20  ;;  %v5635_v47 = vld [vmem:[#allocation6 + $0x330] sm:$0xff]  ;;  %7879 = vst [vmem:[#allocation89_spill] sm:$0xff] %v5775_v2  ;;  %v5787_v20 = vld [vmem:[#allocation4 + $0x158] sm:$0xff] }
 0x310   :  { %1609 = vmatpush.msra.mxu0 %v5250_v45  ;;  %1629 = vmatpush.msra.mxu1 %v5624_v35  ;;  %v5639_v45 = vld [vmem:[#allocation6 + $0x338] sm:$0xff]  ;;  %7880 = vst [vmem:[#allocation30_spill] sm:$0xff] %v5778_v36  ;;  %v5784_v16 = vld [vmem:[#allocation4 + $0x150] sm:$0xff] }
 0x311   :  { %1396 = vst [vmem:[#allocation3 + $0x2] sm:$0x1] %v5621_v31  ;;  %1560 = vmatmul.f32.vlgmr.msrb.gmra.mxu1 %v5621_v31  ;;  %1600 = vmatmul.f32.vlgmr.msra.gmra.mxu3 %v5621_v31 }
 0x312   :  { %1649 = vmatpush.msrb.mxu2 %v5257_v57  ;;  %1669 = vmatpush.msrb.mxu3 %v5631_v8  ;;  %v5647_v57 = vld [vmem:[#allocation6 + $0x318] sm:$0xff]  ;;  %7881 = vst [vmem:[#allocation31_spill] sm:$0xff] %v5781_v12 }
 0x313   :  { %1610 = vmatpush.msra.mxu0 %v5261_v42  ;;  %1630 = vmatpush.msra.mxu1 %v5635_v47  ;;  %v5651_v42 = vld [vmem:[#allocation6 + $0x2f0] sm:$0xff]  ;;  %7882 = vst [vmem:[#allocation34_spill] sm:$0xff] %v5784_v16 }
 0x314   :  { %1650 = vmatpush.msrb.mxu2 %v5265_v59  ;;  %1670 = vmatpush.msrb.mxu3 %v5639_v45  ;;  %v5655_v59 = vld [vmem:[#allocation6 + $0x2f8] sm:$0xff]  ;;  %7883 = vst [vmem:[#allocation35_spill] sm:$0xff] %v5787_v20 }
 0x315   :  { %1611 = vmatpush.msra.mxu0 %v5269_v22  ;;  %1631 = vmatpush.msra.mxu1 %v5643_v26  ;;  %v5659_v22 = vld [vmem:[#allocation6 + $0x2d0] sm:$0xff] }
 0x316   :  { %1651 = vmatpush.msrb.mxu2 %v5273_v44  ;;  %1671 = vmatpush.msrb.mxu3 %v5647_v57  ;;  %v5663_v44 = vld [vmem:[#allocation6 + $0x2d8] sm:$0xff] }
 0x317   :  { %1612 = vmatpush.msra.mxu0 %v5277_v24  ;;  %1632 = vmatpush.msra.mxu1 %v5651_v42  ;;  %v5667_v24 = vld [vmem:[#allocation6 + $0x2b0] sm:$0xff] }
 0x318   :  { %1652 = vmatpush.msrb.mxu2 %v5281_v5  ;;  %1672 = vmatpush.msrb.mxu3 %v5655_v59  ;;  %v5671_v5 = vld [vmem:[#allocation6 + $0x2b8] sm:$0xff] }
 0x319   :  { %1613 = vmatpush.msra.mxu0 %v5285_v40  ;;  %1633 = vmatpush.msra.mxu1 %v5659_v22  ;;  %v5675_v40 = vld [vmem:[#allocation6 + $0x290] sm:$0xff] }
 0x31a   :  { %1653 = vmatpush.msrb.mxu2 %v5289_v58  ;;  %1673 = vmatpush.msrb.mxu3 %v5663_v44  ;;  %v5679_v58 = vld [vmem:[#allocation6 + $0x298] sm:$0xff] }
 0x31b   :  { %1614 = vmatpush.msra.mxu0 %v5293_v29  ;;  %1634 = vmatpush.msra.mxu1 %v5667_v24  ;;  %v5683_v29 = vld [vmem:[#allocation6 + $0x270] sm:$0xff] }
 0x31c   :  { %1654 = vmatpush.msrb.mxu2 %v5297_v9  ;;  %1674 = vmatpush.msrb.mxu3 %v5671_v5  ;;  %v5687_v9 = vld [vmem:[#allocation6 + $0x278] sm:$0xff] }
 0x31d   :  { %1615 = vmatpush.msra.mxu0 %v5301_v52  ;;  %1635 = vmatpush.msra.mxu1 %v5675_v40  ;;  %v5691_v52 = vld [vmem:[#allocation6 + $0x250] sm:$0xff] }
 0x31e   :  { %1655 = vmatpush.msrb.mxu2 %v5305_v41  ;;  %1675 = vmatpush.msrb.mxu3 %v5679_v58  ;;  %v5695_v41 = vld [vmem:[#allocation6 + $0x258] sm:$0xff] }
 0x31f   :  { %1616 = vmatpush.msra.mxu0 %v5309_v15  ;;  %1636 = vmatpush.msra.mxu1 %v5683_v29  ;;  %v5699_v15 = vld [vmem:[#allocation6 + $0x230] sm:$0xff] }
 0x320   :  { %1656 = vmatpush.msrb.mxu2 %v5313_v6  ;;  %1676 = vmatpush.msrb.mxu3 %v5687_v9  ;;  %v5703_v6 = vld [vmem:[#allocation6 + $0x238] sm:$0xff] }
 0x321   :  { %1617 = vmatpush.msra.mxu0 %v5317_v51  ;;  %1637 = vmatpush.msra.mxu1 %v5691_v52  ;;  %v5707_v51 = vld [vmem:[#allocation6 + $0x210] sm:$0xff] }
 0x322   :  { %1657 = vmatpush.msrb.mxu2 %v5321_v30  ;;  %1677 = vmatpush.msrb.mxu3 %v5695_v41  ;;  %v5711_v30 = vld [vmem:[#allocation6 + $0x218] sm:$0xff] }
 0x323   :  { %1618 = vmatpush.msra.mxu0 %v5325_v38  ;;  %1638 = vmatpush.msra.mxu1 %v5699_v15  ;;  %v5718_v38 = vld [vmem:[#allocation4 + $0x1e0] sm:$0xff] }
 0x324   :  { %1658 = vmatpush.msrb.mxu2 %v5329_v0  ;;  %1678 = vmatpush.msrb.mxu3 %v5703_v6  ;;  %v5721_v0 = vld [vmem:[#allocation4 + $0x1e8] sm:$0xff] }
 0x325   :  { %1619 = vmatpush.msra.mxu0 %v5333_v56  ;;  %1639 = vmatpush.msra.mxu1 %v5707_v51  ;;  %v5724_v56 = vld [vmem:[#allocation4 + $0x1f0] sm:$0xff] }
 0x326   :  { %1659 = vmatpush.msrb.mxu2 %v5337_v3  ;;  %1679 = vmatpush.msrb.mxu3 %v5711_v30  ;;  %v5727_v3 = vld [vmem:[#allocation4 + $0x1f8] sm:$0xff] }
 0x327   :  { %1620 = vmatmul.f32.vlgmr.msra.gmra.mxu0 %v5565_v11  ;;  %1640 = vmatmul.f32.vlgmr.msra.gmra.mxu1 %v5621_v31  ;;  %7863 = vst [vmem:[#allocation57_spill] sm:$0xff] %v5727_v3 }
 0x328   :  { %1660 = vmatmul.f32.vlgmr.msrb.gmra.mxu2 %v5565_v11  ;;  %1680 = vmatmul.f32.vlgmr.msrb.gmra.mxu3 %v5621_v31  ;;  %v5745_v11 = vld [vmem:[#allocation4 + $0x1a8] sm:$0xff]  ;;  %v5790_v31 = vld [vmem:[#allocation4 + $0x120] sm:$0xff] }
 0x329   :  { %1750 = vmatpush.msrb.mxu0 %v5718_v38  ;;  %1770 = vmatpush.msrb.mxu1 %v5721_v0  ;;  %7869 = vst [vmem:[#allocation69_spill] sm:$0xff] %v5745_v11 }
 0x32a   :  { %1790 = vmatpush.msra.mxu2 %v5724_v56  ;;  %1810 = vmatpush.msra.mxu3 %v5727_v3  ;;  %7884 = vst [vmem:[#allocation38_spill] sm:$0xff] %v5790_v31 }
 0x32b   :  { %1751 = vmatpush.msrb.mxu0 %v5730_v7  ;;  %1771 = vmatpush.msrb.mxu1 %v5733_v54 }
 0x32c   :  { %1791 = vmatpush.msra.mxu2 %v5736_v19  ;;  %1811 = vmatpush.msra.mxu3 %v5739_v48 }
 0x32d   :  { %1752 = vmatpush.msrb.mxu0 %v5742_v33  ;;  %1772 = vmatpush.msrb.mxu1 %v5745_v11  ;;  %v7986_v33 = vld [vmem:[#allocation11_spill] sm:$0xff] }
 0x32e   :  { %1792 = vmatpush.msra.mxu2 %v5748_v43  ;;  %1812 = vmatpush.msra.mxu3 %v5751_v61 }
 0x32f   :  { %1753 = vmatpush.msrb.mxu0 %v5754_v63  ;;  %1773 = vmatpush.msrb.mxu1 %v5757_v34  ;;  %v7985_v34 = vld [vmem:[#allocation10_spill] sm:$0xff] }
 0x330   :  { %1793 = vmatpush.msra.mxu2 %v5760_v46  ;;  %1813 = vmatpush.msra.mxu3 %v5763_v23  ;;  %v1398_v46 = vld [vmem:[#allocation2 + $0x4] ss:$8 sm:$0xf] }
 0x331   :  { %1754 = vmatpush.msrb.mxu0 %v5766_v27  ;;  %1774 = vmatpush.msrb.mxu1 %v5769_v14 }
 0x332   :  { %1794 = vmatpush.msra.mxu2 %v5772_v37  ;;  %1814 = vmatpush.msra.mxu3 %v5775_v2  ;;  %v5793_v2 = vld [vmem:[#allocation4 + $0x128] sm:$0xff] }
 0x333   :  { %1755 = vmatpush.msrb.mxu0 %v5778_v36  ;;  %1775 = vmatpush.msrb.mxu1 %v5781_v12  ;;  %7885 = vst [vmem:[#allocation39_spill] sm:$0xff] %v5793_v2  ;;  %v5796_v36 = vld [vmem:[#allocation4 + $0x130] sm:$0xff]  ;;  %v5799_v12 = vld [vmem:[#allocation4 + $0x138] sm:$0xff] }
 0x334   :  { %1795 = vmatpush.msra.mxu2 %v5784_v16  ;;  %1815 = vmatpush.msra.mxu3 %v5787_v20  ;;  %7886 = vst [vmem:[#allocation42_spill] sm:$0xff] %v5796_v36  ;;  %v5802_v16 = vld [vmem:[#allocation4 + $0x100] sm:$0xff]  ;;  %v5805_v20 = vld [vmem:[#allocation4 + $0x108] sm:$0xff] }
 0x335   :  { %1756 = vmatpush.msrb.mxu0 %v5790_v31  ;;  %1776 = vmatpush.msrb.mxu1 %v5793_v2  ;;  %7887 = vst [vmem:[#allocation43_spill] sm:$0xff] %v5799_v12  ;;  %v5808_v31 = vld [vmem:[#allocation4 + $0x110] sm:$0xff]  ;;  %v5811_v2 = vld [vmem:[#allocation4 + $0x118] sm:$0xff] }
 0x336   :  { %1796 = vmatpush.msra.mxu2 %v5796_v36  ;;  %1816 = vmatpush.msra.mxu3 %v5799_v12  ;;  %7888 = vst [vmem:[#allocation46_spill] sm:$0xff] %v5802_v16  ;;  %v5814_v36 = vld [vmem:[#allocation4 + $0xe0] sm:$0xff]  ;;  %v5817_v12 = vld [vmem:[#allocation4 + $0xe8] sm:$0xff] }
 0x337   :  { %1757 = vmatpush.msrb.mxu0 %v5802_v16  ;;  %7889 = vst [vmem:[#allocation47_spill] sm:$0xff] %v5805_v20  ;;  %1777 = vmatpush.msrb.mxu1 %v5805_v20  ;;  %v5820_v16 = vld [vmem:[#allocation4 + $0xf0] sm:$0xff]  ;;  %v5823_v20 = vld [vmem:[#allocation4 + $0xf8] sm:$0xff] }
 0x338   :  { %7890 = vst [vmem:[#allocation50_spill] sm:$0xff] %v5808_v31  ;;  %1797 = vmatpush.msra.mxu2 %v5808_v31  ;;  %1817 = vmatpush.msra.mxu3 %v5811_v2  ;;  %v5826_v31 = vld [vmem:[#allocation4 + $0xc0] sm:$0xff] }
 0x339   :  { %7891 = vst [vmem:[#allocation51_spill] sm:$0xff] %v5811_v2  ;;  %1758 = vmatpush.msrb.mxu0 %v5814_v36  ;;  %1778 = vmatpush.msrb.mxu1 %v5817_v12  ;;  %v5829_v2 = vld [vmem:[#allocation4 + $0xc8] sm:$0xff] }
 0x33a   :  { %7892 = vst [vmem:[#allocation54_spill] sm:$0xff] %v5814_v36  ;;  %1798 = vmatpush.msra.mxu2 %v5820_v16  ;;  %1818 = vmatpush.msra.mxu3 %v5823_v20  ;;  %v5832_v36 = vld [vmem:[#allocation4 + $0xd0] sm:$0xff] }
 0x33b   :  { %7893 = vst [vmem:[#allocation55_spill] sm:$0xff] %v5817_v12  ;;  %1759 = vmatpush.msrb.mxu0 %v5826_v31  ;;  %1779 = vmatpush.msrb.mxu1 %v5829_v2  ;;  %v5835_v12 = vld [vmem:[#allocation4 + $0xd8] sm:$0xff] }
 0x33c   :  { %7894 = vst [vmem:[#allocation58_spill] sm:$0xff] %v5820_v16  ;;  %1799 = vmatpush.msra.mxu2 %v5832_v36  ;;  %1819 = vmatpush.msra.mxu3 %v5835_v12  ;;  %v5838_v16 = vld [vmem:[#allocation4 + $0xa0] sm:$0xff] }
 0x33d   :  { %7895 = vst [vmem:[#allocation59_spill] sm:$0xff] %v5823_v20  ;;  %1760 = vmatpush.msrb.mxu0 %v5838_v16  ;;  %v5841_v20 = vld [vmem:[#allocation4 + $0xa8] sm:$0xff] }
 0x33e   :  { %7896 = vst [vmem:[#allocation62_spill] sm:$0xff] %v5826_v31  ;;  %1780 = vmatpush.msrb.mxu1 %v5841_v20  ;;  %v5844_v31 = vld [vmem:[#allocation4 + $0xb0] sm:$0xff] }
 0x33f   :  { %7897 = vst [vmem:[#allocation63_spill] sm:$0xff] %v5829_v2  ;;  %1800 = vmatpush.msra.mxu2 %v5844_v31  ;;  %v5847_v2 = vld [vmem:[#allocation4 + $0xb8] sm:$0xff] }
 0x340   :  { %7898 = vst [vmem:[#allocation66_spill] sm:$0xff] %v5832_v36  ;;  %1820 = vmatpush.msra.mxu3 %v5847_v2  ;;  %v5850_v36 = vld [vmem:[#allocation4 + $0x80] sm:$0xff] }
 0x341   :  { %7899 = vst [vmem:[#allocation67_spill] sm:$0xff] %v5835_v12  ;;  %1761 = vmatpush.msrb.mxu0 %v5850_v36  ;;  %v5853_v12 = vld [vmem:[#allocation4 + $0x88] sm:$0xff] }
 0x342   :  { %7900 = vst [vmem:[#allocation70_spill] sm:$0xff] %v5838_v16  ;;  %1781 = vmatpush.msrb.mxu1 %v5853_v12  ;;  %v5856_v16 = vld [vmem:[#allocation4 + $0x90] sm:$0xff] }
 0x343   :  { %7901 = vst [vmem:[#allocation71_spill] sm:$0xff] %v5841_v20  ;;  %1801 = vmatpush.msra.mxu2 %v5856_v16  ;;  %v5859_v20 = vld [vmem:[#allocation4 + $0x98] sm:$0xff] }
 0x344   :  { %7902 = vst [vmem:[#allocation74_spill] sm:$0xff] %v5844_v31  ;;  %1821 = vmatpush.msra.mxu3 %v5859_v20  ;;  %v5862_v31 = vld [vmem:[#allocation4 + $0x60] sm:$0xff] }
 0x345   :  { %7903 = vst [vmem:[#allocation75_spill] sm:$0xff] %v5847_v2  ;;  %1762 = vmatpush.msrb.mxu0 %v5862_v31  ;;  %v5865_v2 = vld [vmem:[#allocation4 + $0x68] sm:$0xff] }
 0x346   :  { %7904 = vst [vmem:[#allocation78_spill] sm:$0xff] %v5850_v36  ;;  %1782 = vmatpush.msrb.mxu1 %v5865_v2  ;;  %v5868_v36 = vld [vmem:[#allocation4 + $0x70] sm:$0xff] }
 0x347   :  { %7905 = vst [vmem:[#allocation79_spill] sm:$0xff] %v5853_v12  ;;  %1802 = vmatpush.msra.mxu2 %v5868_v36  ;;  %v5871_v12 = vld [vmem:[#allocation4 + $0x78] sm:$0xff] }
 0x348   :  { %7906 = vst [vmem:[#allocation82_spill] sm:$0xff] %v5856_v16  ;;  %1822 = vmatpush.msra.mxu3 %v5871_v12  ;;  %v5874_v16 = vld [vmem:[#allocation4 + $0x40] sm:$0xff] }
 0x349   :  { %7907 = vst [vmem:[#allocation83_spill] sm:$0xff] %v5859_v20  ;;  %1763 = vmatpush.msrb.mxu0 %v5874_v16  ;;  %v5877_v20 = vld [vmem:[#allocation4 + $0x48] sm:$0xff] }
 0x34a   :  { %7908 = vst [vmem:[#allocation86_spill] sm:$0xff] %v5862_v31  ;;  %1783 = vmatpush.msrb.mxu1 %v5877_v20  ;;  %v5880_v31 = vld [vmem:[#allocation4 + $0x50] sm:$0xff] }
 0x34b   :  { %7909 = vst [vmem:[#allocation87_spill] sm:$0xff] %v5865_v2  ;;  %1803 = vmatpush.msra.mxu2 %v5880_v31  ;;  %v5883_v2 = vld [vmem:[#allocation4 + $0x58] sm:$0xff] }
 0x34c   :  { %7910 = vst [vmem:[#allocation90_spill] sm:$0xff] %v5868_v36  ;;  %1823 = vmatpush.msra.mxu3 %v5883_v2  ;;  %v5886_v36 = vld [vmem:[#allocation4 + $0x20] sm:$0xff] }
 0x34d   :  { %7911 = vst [vmem:[#allocation91_spill] sm:$0xff] %v5871_v12  ;;  %1764 = vmatpush.msrb.mxu0 %v5886_v36  ;;  %v5889_v12 = vld [vmem:[#allocation4 + $0x28] sm:$0xff] }
 0x34e   :  { %7912 = vst [vmem:[#allocation92_spill] sm:$0xff] %v5874_v16  ;;  %1784 = vmatpush.msrb.mxu1 %v5889_v12  ;;  %v5892_v16 = vld [vmem:[#allocation4 + $0x30] sm:$0xff] }
 0x34f   :  { %7913 = vst [vmem:[#allocation93_spill] sm:$0xff] %v5877_v20  ;;  %1804 = vmatpush.msra.mxu2 %v5892_v16  ;;  %v5895_v20 = vld [vmem:[#allocation4 + $0x38] sm:$0xff] }
 0x350   :  { %7914 = vst [vmem:[#allocation94_spill] sm:$0xff] %v5880_v31  ;;  %1824 = vmatpush.msra.mxu3 %v5895_v20  ;;  %v5898_v31 = vld [vmem:[#allocation4] sm:$0xff] }
 0x351   :  { %7915 = vst [vmem:[#allocation95_spill] sm:$0xff] %v5883_v2  ;;  %1765 = vmatpush.msrb.mxu0 %v5898_v31  ;;  %v5901_v2 = vld [vmem:[#allocation4 + $0x8] sm:$0xff] }
 0x352   :  { %7916 = vst [vmem:[#allocation96_spill] sm:$0xff] %v5886_v36  ;;  %1785 = vmatpush.msrb.mxu1 %v5901_v2  ;;  %v5904_v36 = vld [vmem:[#allocation4 + $0x10] sm:$0xff] }
 0x353   :  { %7917 = vst [vmem:[#allocation97_spill] sm:$0xff] %v5889_v12  ;;  %1805 = vmatpush.msra.mxu2 %v5904_v36  ;;  %v5907_v12 = vld [vmem:[#allocation4 + $0x18] sm:$0xff] }
 0x354   :  { %7918 = vst [vmem:[#allocation98_spill] sm:$0xff] %v5892_v16  ;;  %1825 = vmatpush.msra.mxu3 %v5907_v12  ;;  %v5910_v16 = vld [vmem:[#allocation6 + $0x1e0] sm:$0xff]  ;;  %1895 = vmatpush.msra.mxu1 %v5410_v53  ;;  %v7930_v53 = vld [vmem:[#allocation15_spill] sm:$0xff] }
 0x355   :  { %7919 = vst [vmem:[#allocation99_spill] sm:$0xff] %v5895_v20  ;;  %1875 = vmatpush.msra.mxu0 %v5910_v16  ;;  %v5914_v20 = vld [vmem:[#allocation6 + $0x1e8] sm:$0xff] }
 0x356   :  { %7920 = vst [vmem:[#allocation100_spill] sm:$0xff] %v5898_v31  ;;  %1915 = vmatpush.msrb.mxu2 %v5914_v20  ;;  %1935 = vmatpush.msrb.mxu3 %v5414_v17  ;;  %v7932_v17 = vld [vmem:[#allocation16_spill] sm:$0xff] }
 0x357   :  { %7921 = vst [vmem:[#allocation101_spill] sm:$0xff] %v5901_v2  ;;  %v5918_v2 = vld [vmem:[#allocation6 + $0x1c0] sm:$0xff]  ;;  %1896 = vmatpush.msra.mxu1 %v5418_v25  ;;  %v7934_v25 = vld [vmem:[#allocation17_spill] sm:$0xff] }
 0x358   :  { %7922 = vst [vmem:[#allocation102_spill] sm:$0xff] %v5904_v36  ;;  %1876 = vmatpush.msra.mxu0 %v5918_v2  ;;  %v5922_v36 = vld [vmem:[#allocation6 + $0x1c8] sm:$0xff] }
 0x359   :  { %7923 = vst [vmem:[#allocation103_spill] sm:$0xff] %v5907_v12  ;;  %1916 = vmatpush.msrb.mxu2 %v5922_v36  ;;  %v7928_v12 = vld [vmem:[#allocation14_spill] sm:$0xff]  ;;  %1897 = vmatpush.msra.mxu1 %v7930_v53  ;;  %v7938_v53 = vld [vmem:[#allocation19_spill] sm:$0xff] }
 0x35a   :  { %7924 = vst [vmem:[#allocation104_spill] sm:$0xff] %v5910_v16  ;;  %1936 = vmatpush.msrb.mxu3 %v7928_v12  ;;  %v5926_v16 = vld [vmem:[#allocation6 + $0x1a0] sm:$0xff] }
 0x35b   :  { %7925 = vst [vmem:[#allocation105_spill] sm:$0xff] %v5914_v20  ;;  %1877 = vmatpush.msra.mxu0 %v5926_v16  ;;  %v5930_v20 = vld [vmem:[#allocation6 + $0x1a8] sm:$0xff]  ;;  %1898 = vmatpush.msra.mxu1 %v7934_v25  ;;  %v7936_v12 = vld [vmem:[#allocation18_spill] sm:$0xff]  ;;  %v7942_v25 = vld [vmem:[#allocation21_spill] sm:$0xff] }
 0x35c   :  { %7926 = vst [vmem:[#allocation106_spill] sm:$0xff] %v5918_v2  ;;  %1917 = vmatpush.msrb.mxu2 %v5930_v20  ;;  %1937 = vmatpush.msrb.mxu3 %v7932_v17  ;;  %v5934_v2 = vld [vmem:[#allocation6 + $0x180] sm:$0xff]  ;;  %v7940_v17 = vld [vmem:[#allocation20_spill] sm:$0xff] }
 0x35d   :  { %7927 = vst [vmem:[#allocation107_spill] sm:$0xff] %v5922_v36  ;;  %1878 = vmatpush.msra.mxu0 %v5934_v2  ;;  %v5938_v36 = vld [vmem:[#allocation6 + $0x188] sm:$0xff]  ;;  %1899 = vmatpush.msra.mxu1 %v7938_v53 }
 0x35e   :  { %7929 = vst [vmem:[#allocation14_spill] sm:$0xff] %v5926_v16  ;;  %1918 = vmatpush.msrb.mxu2 %v5938_v36  ;;  %1938 = vmatpush.msrb.mxu3 %v7936_v12  ;;  %v5942_v16 = vld [vmem:[#allocation6 + $0x160] sm:$0xff]  ;;  %v7946_v53 = vld [vmem:[#allocation23_spill] sm:$0xff] }
 0x35f   :  { %7931 = vst [vmem:[#allocation15_spill] sm:$0xff] %v5930_v20  ;;  %1879 = vmatpush.msra.mxu0 %v5942_v16  ;;  %v5946_v20 = vld [vmem:[#allocation6 + $0x168] sm:$0xff]  ;;  %1900 = vmatpush.msra.mxu1 %v7942_v25  ;;  %v7944_v12 = vld [vmem:[#allocation22_spill] sm:$0xff]  ;;  %v7950_v25 = vld [vmem:[#allocation25_spill] sm:$0xff] }
 0x360   :  { %7933 = vst [vmem:[#allocation16_spill] sm:$0xff] %v5934_v2  ;;  %1919 = vmatpush.msrb.mxu2 %v5946_v20  ;;  %1939 = vmatpush.msrb.mxu3 %v7940_v17  ;;  %v5950_v2 = vld [vmem:[#allocation6 + $0x140] sm:$0xff]  ;;  %v7948_v17 = vld [vmem:[#allocation24_spill] sm:$0xff] }
 0x361   :  { %7935 = vst [vmem:[#allocation17_spill] sm:$0xff] %v5938_v36  ;;  %1880 = vmatpush.msra.mxu0 %v5950_v2  ;;  %v5954_v36 = vld [vmem:[#allocation6 + $0x148] sm:$0xff]  ;;  %1901 = vmatpush.msra.mxu1 %v7946_v53 }
 0x362   :  { %7937 = vst [vmem:[#allocation18_spill] sm:$0xff] %v5942_v16  ;;  %1920 = vmatpush.msrb.mxu2 %v5954_v36  ;;  %1940 = vmatpush.msrb.mxu3 %v7944_v12  ;;  %v5958_v16 = vld [vmem:[#allocation6 + $0x120] sm:$0xff]  ;;  %v7954_v53 = vld [vmem:[#allocation27_spill] sm:$0xff] }
 0x363   :  { %7939 = vst [vmem:[#allocation19_spill] sm:$0xff] %v5946_v20  ;;  %1881 = vmatpush.msra.mxu0 %v5958_v16  ;;  %v5962_v20 = vld [vmem:[#allocation6 + $0x128] sm:$0xff]  ;;  %1902 = vmatpush.msra.mxu1 %v7950_v25  ;;  %v7952_v12 = vld [vmem:[#allocation26_spill] sm:$0xff]  ;;  %v7958_v25 = vld [vmem:[#allocation29_spill] sm:$0xff] }
 0x364   :  { %7941 = vst [vmem:[#allocation20_spill] sm:$0xff] %v5950_v2  ;;  %1921 = vmatpush.msrb.mxu2 %v5962_v20  ;;  %1941 = vmatpush.msrb.mxu3 %v7948_v17  ;;  %v5966_v2 = vld [vmem:[#allocation6 + $0x100] sm:$0xff]  ;;  %v7956_v17 = vld [vmem:[#allocation28_spill] sm:$0xff] }
 0x365   :  { %7943 = vst [vmem:[#allocation21_spill] sm:$0xff] %v5954_v36  ;;  %1882 = vmatpush.msra.mxu0 %v5966_v2  ;;  %v5970_v36 = vld [vmem:[#allocation6 + $0x108] sm:$0xff]  ;;  %1903 = vmatpush.msra.mxu1 %v7954_v53  ;;  %v7962_v53 = vld [vmem:[#allocation33_spill] sm:$0xff] }
 0x366   :  { %7945 = vst [vmem:[#allocation22_spill] sm:$0xff] %v5958_v16  ;;  %1922 = vmatpush.msrb.mxu2 %v5970_v36  ;;  %1942 = vmatpush.msrb.mxu3 %v7952_v12  ;;  %v5974_v16 = vld [vmem:[#allocation6 + $0xe0] sm:$0xff]  ;;  %v7960_v12 = vld [vmem:[#allocation32_spill] sm:$0xff] }
 0x367   :  { %7947 = vst [vmem:[#allocation23_spill] sm:$0xff] %v5962_v20  ;;  %1883 = vmatpush.msra.mxu0 %v5974_v16  ;;  %v5978_v20 = vld [vmem:[#allocation6 + $0xe8] sm:$0xff]  ;;  %1904 = vmatpush.msra.mxu1 %v7958_v25  ;;  %v7966_v25 = vld [vmem:[#allocation37_spill] sm:$0xff] }
 0x368   :  { %7949 = vst [vmem:[#allocation24_spill] sm:$0xff] %v5966_v2  ;;  %1923 = vmatpush.msrb.mxu2 %v5978_v20  ;;  %1943 = vmatpush.msrb.mxu3 %v7956_v17  ;;  %v5982_v2 = vld [vmem:[#allocation6 + $0xc0] sm:$0xff]  ;;  %v7964_v17 = vld [vmem:[#allocation36_spill] sm:$0xff] }
 0x369   :  { %7951 = vst [vmem:[#allocation25_spill] sm:$0xff] %v5970_v36  ;;  %1884 = vmatpush.msra.mxu0 %v5982_v2  ;;  %v5986_v36 = vld [vmem:[#allocation6 + $0xc8] sm:$0xff]  ;;  %1905 = vmatpush.msra.mxu1 %v7962_v53  ;;  %v7970_v53 = vld [vmem:[#allocation41_spill] sm:$0xff] }
 0x36a   :  { %7953 = vst [vmem:[#allocation26_spill] sm:$0xff] %v5974_v16  ;;  %1924 = vmatpush.msrb.mxu2 %v5986_v36  ;;  %1944 = vmatpush.msrb.mxu3 %v7960_v12  ;;  %v5990_v16 = vld [vmem:[#allocation6 + $0xa0] sm:$0xff]  ;;  %v7968_v12 = vld [vmem:[#allocation40_spill] sm:$0xff] }
 0x36b   :  { %7955 = vst [vmem:[#allocation27_spill] sm:$0xff] %v5978_v20  ;;  %1885 = vmatpush.msra.mxu0 %v5990_v16  ;;  %v5994_v20 = vld [vmem:[#allocation6 + $0xa8] sm:$0xff]  ;;  %1906 = vmatpush.msra.mxu1 %v7966_v25  ;;  %v7974_v25 = vld [vmem:[#allocation45_spill] sm:$0xff] }
 0x36c   :  { %7957 = vst [vmem:[#allocation28_spill] sm:$0xff] %v5982_v2  ;;  %1925 = vmatpush.msrb.mxu2 %v5994_v20  ;;  %1945 = vmatpush.msrb.mxu3 %v7964_v17  ;;  %v5998_v2 = vld [vmem:[#allocation6 + $0x80] sm:$0xff]  ;;  %v7972_v17 = vld [vmem:[#allocation44_spill] sm:$0xff] }
 0x36d   :  { %7959 = vst [vmem:[#allocation29_spill] sm:$0xff] %v5986_v36  ;;  %1886 = vmatpush.msra.mxu0 %v5998_v2  ;;  %v6002_v36 = vld [vmem:[#allocation6 + $0x88] sm:$0xff]  ;;  %1907 = vmatpush.msra.mxu1 %v7970_v53  ;;  %v7978_v53 = vld [vmem:[#allocation49_spill] sm:$0xff] }
 0x36e   :  { %7961 = vst [vmem:[#allocation32_spill] sm:$0xff] %v5990_v16  ;;  %1926 = vmatpush.msrb.mxu2 %v6002_v36  ;;  %1946 = vmatpush.msrb.mxu3 %v7968_v12  ;;  %v6006_v16 = vld [vmem:[#allocation6 + $0x60] sm:$0xff]  ;;  %v7976_v12 = vld [vmem:[#allocation48_spill] sm:$0xff] }
 0x36f   :  { %7963 = vst [vmem:[#allocation33_spill] sm:$0xff] %v5994_v20  ;;  %1887 = vmatpush.msra.mxu0 %v6006_v16  ;;  %v6010_v20 = vld [vmem:[#allocation6 + $0x68] sm:$0xff]  ;;  %1908 = vmatpush.msra.mxu1 %v7974_v25  ;;  %v7982_v25 = vld [vmem:[#allocation53_spill] sm:$0xff] }
 0x370   :  { %7965 = vst [vmem:[#allocation36_spill] sm:$0xff] %v5998_v2  ;;  %1927 = vmatpush.msrb.mxu2 %v6010_v20  ;;  %1947 = vmatpush.msrb.mxu3 %v7972_v17  ;;  %v6014_v2 = vld [vmem:[#allocation6 + $0x40] sm:$0xff]  ;;  %v7980_v17 = vld [vmem:[#allocation52_spill] sm:$0xff] }
 0x371   :  { %7967 = vst [vmem:[#allocation37_spill] sm:$0xff] %v6002_v36  ;;  %1888 = vmatpush.msra.mxu0 %v6014_v2  ;;  %v6018_v36 = vld [vmem:[#allocation6 + $0x48] sm:$0xff]  ;;  %1909 = vmatpush.msra.mxu1 %v7978_v53 }
 0x372   :  { %7969 = vst [vmem:[#allocation40_spill] sm:$0xff] %v6006_v16  ;;  %1928 = vmatpush.msrb.mxu2 %v6018_v36  ;;  %1948 = vmatpush.msrb.mxu3 %v7976_v12  ;;  %v6022_v16 = vld [vmem:[#allocation6 + $0x20] sm:$0xff]  ;;  %v7984_v12 = vld [vmem:[#allocation56_spill] sm:$0xff] }
 0x373   :  { %7971 = vst [vmem:[#allocation41_spill] sm:$0xff] %v6010_v20  ;;  %1889 = vmatpush.msra.mxu0 %v6022_v16  ;;  %v6026_v20 = vld [vmem:[#allocation6 + $0x28] sm:$0xff]  ;;  %1910 = vmatpush.msra.mxu1 %v7982_v25 }
 0x374   :  { %7973 = vst [vmem:[#allocation44_spill] sm:$0xff] %v6014_v2  ;;  %1929 = vmatpush.msrb.mxu2 %v6026_v20  ;;  %1949 = vmatpush.msrb.mxu3 %v7980_v17  ;;  %v6030_v2 = vld [vmem:[#allocation6] sm:$0xff] }
 0x375   :  { %7975 = vst [vmem:[#allocation45_spill] sm:$0xff] %v6018_v36  ;;  %1890 = vmatpush.msra.mxu0 %v6030_v2  ;;  %v6034_v36 = vld [vmem:[#allocation6 + $0x8] sm:$0xff] }
 0x376   :  { %7977 = vst [vmem:[#allocation48_spill] sm:$0xff] %v6022_v16  ;;  %1930 = vmatpush.msrb.mxu2 %v6034_v36  ;;  %1950 = vmatpush.msrb.mxu3 %v7984_v12 }
 0x377   :  { %7979 = vst [vmem:[#allocation49_spill] sm:$0xff] %v6026_v20 }
 0x378   :  { %7981 = vst [vmem:[#allocation52_spill] sm:$0xff] %v6030_v2 }
 0x379   :  { %7983 = vst [vmem:[#allocation53_spill] sm:$0xff] %v6034_v36 }
 0x380   :  { %v1416_v16 = vpop.f32.mrf.mxu0  ;;  %v1436_v53 = vpop.f32.mrf.mxu1 }
 0x381   :  { %v1483_v31 = vrot.slane %v1436_v53, 7 }
 0x383   :  { %v1486_v17 = vsel %vm501_vm6, %v1416_v16, %v1483_v31 }
 0x387   :  { %v1456_v37 = vpop.f32.mrf.mxu2  ;;  %v1476_v14 = vpop.f32.mrf.mxu3 }
 0x388   :  { %v1484_v20 = vrot.slane %v1456_v37, 6  ;;  %v1485_v27 = vrot.slane %v1476_v14, 5 }
 0x38a   :  { %v1487_v23 = vsel %vm503_vm7, %v1484_v20, %v1485_v27  ;;  %v1541_v2 = vpop.f32.mrf.mxu0 }
 0x38b   :  { %v1488_v25 = vsel %vm505_vm8, %v1486_v17, %v1487_v23  ;;  %v1542_v63 = vadd.f32 %v1541_v2, %v7985_v34 }
 0x38c   :  { %v1490_v36 = vadd.f32 %v1488_v25, %v1398_v46 }
 0x38e   :  { %v3119_v61 = vmul.f32 -1.442695, %v1490_v36  ;;  %v1561_v12 = vpop.f32.mrf.mxu1  ;;  %v1511_v2 = vrot.slane %v1490_v36, 3 }
 0x38f   :  { %v1562_v43 = vadd.f32 %v1561_v12, %v1542_v63 }
 0x390   :  { %3223 = vpow2.f32 %v3119_v61  ;;  %v1581_v53 = vpop.f32.mrf.mxu2 }
 0x391   :  { %v3120_v11 = vmul.f32 -1.442695, %v1562_v43  ;;  %v1582_v37 = vadd.f32 %v1581_v53, %v7986_v33 }
 0x393   :  { %3225 = vpow2.f32 %v3120_v11 }
 0x394   :  { %v1601_v14 = vpop.f32.mrf.mxu3 }
 0x395   :  { %v1602_v16 = vadd.f32 %v1601_v14, %v1582_v37 }
 0x396   :  { %v3224_v31 = vpop.eup %3223 }
 0x397   :  { %v1494_v27 = vadd.f32 1.0, %v3224_v31  ;;  %v3121_v20 = vmul.f32 -1.442695, %v1602_v16 }
 0x399   :  { %v3226_v48 = vpop.eup %3225  ;;  %3227 = vrcp.f32 %v1494_v27  ;;  %v1506_v25 = vand.u32 2147483648, %v1494_v27  ;;  %vm1500_vm3 = vweird.f32 %v1494_v27 }
 0x39a   :  { %v6043_v23 = vadd.f32 1.0, %v3226_v48  ;;  %3229 = vpow2.f32 %v3121_v20  ;;  %v1504_v48 = vand.u32 2147483647, %v1494_v27 }
 0x39b   :  { %v1507_v36 = vor.u32 1.1754944e-38, %v1506_v25 }
 0x39c   :  { %3231 = vrcp.f32 %v6043_v23  ;;  %vm1505_vm5 = vcmp.eq.f32.partialorder %v1504_v48, 8.507059e+37  ;;  %vm1701_vm13 = vweird.f32 %v6043_v23 }
 0x39f   :  { %v3228_v46 = vpop.eup %3227 }
 0x3a0   :  { %v3230_v63 = vpop.eup %3229  ;;  %v1496_v61 = vmul.f32 %v3228_v46, %v1494_v27  ;;  %vm1501_vm2 = vweird.f32 %v3228_v46 }
 0x3a1   :  { %v1694_v43 = vadd.f32 1.0, %v3230_v63  ;;  %vm1502_vm4 = vmor %vm1500_vm3, %vm1501_vm2 }
 0x3a2   :  { %v6046_v17 = vpop.eup %3231  ;;  %v1497_v11 = vsub.f32 1.0, %v1496_v61 }
 0x3a3   :  { %v1697_v12 = vmul.f32 %v6046_v17, %v6043_v23  ;;  %3233 = vrcp.f32 %v1694_v43  ;;  %vm1716_vm10 = vweird.f32 %v1694_v43  ;;  %vm1702_vm11 = vweird.f32 %v6046_v17 }
 0x3a4   :  { %v1498_v53 = vmul.f32 %v3228_v46, %v1497_v11  ;;  %v1621_v37 = vpop.f32.mrf.mxu0  ;;  %3235 = vtanh.f32 %v1511_v2  ;;  %v1641_v31 = vpop.f32.mrf.mxu1  ;;  %vm1703_vm14 = vmor %vm1701_vm13, %vm1702_vm11 }
 0x3a5   :  { %v1622_v14 = vadd.f32 %v1621_v37, %v7862_v55  ;;  %v1698_v20 = vsub.f32 1.0, %v1697_v12 }
 0x3a6   :  { %v1499_v16 = vadd.f32 %v3228_v46, %v1498_v53 }
 0x3a7   :  { %v1642_v63 = vadd.f32 %v1641_v31, %v1622_v14  ;;  %v1699_v2 = vmul.f32 %v6046_v17, %v1698_v20 }
 0x3a8   :  { %v1503_v61 = vsel %vm1502_vm4, %v3228_v46, %v1499_v16  ;;  %v1722_v16 = vand.u32 2147483648, %v1694_v43 }
 0x3a9   :  { %v3234_v33 = vpop.eup %3233  ;;  %v1508_v34 = vsel %vm1505_vm5, %v1507_v36, %v1503_v61  ;;  %v3122_v19 = vmul.f32 -1.442695, %v1642_v63  ;;  %v1705_v36 = vand.u32 2147483647, %v6043_v23 }
 0x3aa   :  { %v1515_v54 = vrot.slane %v1508_v34, 1  ;;  %v1712_v11 = vmul.f32 %v3234_v33, %v1694_v43  ;;  %v3236_v7 = vpop.eup %3235  ;;  %vm1717_vm9 = vweird.f32 %v3234_v33  ;;  %v1723_v63 = vor.u32 1.1754944e-38, %v1722_v16  ;;  %v6084_v16 = vld [vmem:[#allocation6 + $0x1d0] sm:$0xff] }
 0x3ab   :  { %3237 = vpow2.f32 %v3122_v19  ;;  %v1661_v3 = vpop.f32.mrf.mxu2  ;;  %v1518_v27 = vmul.f32 %v3236_v7, %v1508_v34  ;;  %v1681_v12 = vpop.f32.mrf.mxu3  ;;  %v1700_v19 = vadd.f32 %v6046_v17, %v1699_v2  ;;  %vm1718_vm12 = vmor %vm1716_vm10, %vm1717_vm9  ;;  %vm1706_vm0 = vcmp.eq.f32.partialorder %v1705_v36, 8.507059e+37  ;;  %v6114_v36 = vld [vmem:[#allocation6 + $0x170] sm:$0xff] }
 0x3ac   :  { %v1517_v53 = vmul.f32 %v1515_v54, %v5553_v1  ;;  %v1713_v37 = vsub.f32 1.0, %v1712_v11  ;;  %v1662_v25 = vadd.f32 %v1661_v3, %v7737_v60  ;;  %v1720_v1 = vand.u32 2147483647, %v1694_v43 }
 0x3ad   :  { %v1707_v3 = vand.u32 2147483648, %v6043_v23  ;;  %v1704_v61 = vsel %vm1703_vm14, %v6046_v17, %v1700_v19  ;;  %v1521_v43 = vrot.slane %v1508_v34, 2  ;;  %v6076_v17 = vld [vmem:[#allocation6 + $0x1f0] sm:$0xff] }
 0x3ae   :  { %v6054_v14 = vadd.f32 %v1518_v27, %v1517_v53  ;;  %v1714_v46 = vmul.f32 %v3234_v33, %v1713_v37  ;;  %v1682_v48 = vadd.f32 %v1681_v12, %v1662_v25  ;;  %vm1721_vm15 = vcmp.eq.f32.partialorder %v1720_v1, 8.507059e+37  ;;  %v6099_v1 = vld [vmem:[#allocation6 + $0x1b8] sm:$0xff] }
 0x3af   :  { %v1708_v11 = vor.u32 1.1754944e-38, %v1707_v3 }
 0x3b0   :  { %3239 = vtanh.f32 %v6054_v14  ;;  %v1715_v31 = vadd.f32 %v3234_v33, %v1714_v46 }
 0x3b1   :  { %v3238_v7 = vpop.eup %3237  ;;  %3241 = vtanh.f32 %v1682_v48  ;;  %v1709_v25 = vsel %vm1706_vm0, %v1708_v11, %v1704_v61  ;;  %v6139_v61 = vld [vmem:[#allocation6 + $0x138] sm:$0xff]  ;;  %v7992_v11 = vld [vmem:[#allocation68_spill] sm:$0xff] }
 0x3b2   :  { %v6060_v54 = vadd.f32 1.0, %v3238_v7  ;;  %v1719_v20 = vsel %vm1718_vm12, %v3234_v33, %v1715_v31  ;;  %v6090_v31 = vld [vmem:[#allocation6 + $0x1d8] sm:$0xff]  ;;  %v6104_v7 = vld [vmem:[#allocation6 + $0x190] sm:$0xff] }
 0x3b3   :  { %v1724_v2 = vsel %vm1721_vm15, %v1723_v63, %v1719_v20  ;;  %v6118_v20 = vld [vmem:[#allocation6 + $0x178] sm:$0xff]  ;;  %v6124_v63 = vld [vmem:[#allocation6 + $0x150] sm:$0xff] }
 0x3b4   :  { %3243 = vrcp.f32 %v6060_v54  ;;  %v1742_v12 = vmul.f32 %v1724_v2, %v5570_v39  ;;  %v6080_v39 = vld [vmem:[#allocation6 + $0x1f8] sm:$0xff]  ;;  %v1737_v19 = vand.u32 2147483648, %v6060_v54  ;;  %vm1731_vm2 = vweird.f32 %v6060_v54 }
 0x3b5   :  { %v7993_v2 = vld [vmem:[#allocation69_spill] sm:$0xff] }
 0x3b6   :  { %v3240_v53 = vpop.eup %3239  ;;  %v1738_v3 = vor.u32 1.1754944e-38, %v1737_v19  ;;  %v8006_v19 = vld [vmem:[#allocation34_spill] sm:$0xff] }
 0x3b7   :  { %v3242_v27 = vpop.eup %3241  ;;  %v6066_v37 = vmul.f32 %v3240_v53, %v1521_v43  ;;  %v6147_v43 = vld [vmem:[#allocation6 + $0x118] sm:$0xff]  ;;  %v7994_v53 = vld [vmem:[#allocation72_spill] sm:$0xff] }
 0x3b8   :  { %v1743_v23 = vmul.f32 %v3242_v27, %v1709_v25  ;;  %v7998_v27 = vld [vmem:[#allocation80_spill] sm:$0xff] }
 0x3b9   :  { %1766 = vmatmul.f32.vlgmr.msrb.gmra.mxu0 %v6066_v37  ;;  %1786 = vmatmul.f32.vlgmr.msrb.gmra.mxu1 %v6066_v37  ;;  %v8000_v25 = vld [vmem:[#allocation84_spill] sm:$0xff] }
 0x3ba   :  { %v3244_v33 = vpop.eup %3243  ;;  %v6071_v46 = vadd.f32 %v1743_v23, %v1742_v12  ;;  %1806 = vmatmul.f32.vlgmr.msra.gmra.mxu2 %v6066_v37  ;;  %1826 = vmatmul.f32.vlgmr.msra.gmra.mxu3 %v6066_v37  ;;  %v8001_v12 = vld [vmem:[#allocation85_spill] sm:$0xff]  ;;  %v8002_v23 = vld [vmem:[#allocation88_spill] sm:$0xff] }
 0x3bb   :  { %v1727_v34 = vmul.f32 %v3244_v33, %v6060_v54  ;;  %1955 = vmatpush.msrb.mxu0 %v6076_v17  ;;  %1975 = vmatpush.msrb.mxu1 %v5576_v18  ;;  %vm1732_vm1 = vweird.f32 %v3244_v33 }
 0x3bc   :  { %1995 = vmatpush.msra.mxu2 %v6080_v39  ;;  %2015 = vmatpush.msra.mxu3 %v5580_v21  ;;  %3245 = vtanh.f32 %v6071_v46  ;;  %v6094_v21 = vld [vmem:[#allocation6 + $0x1b0] sm:$0xff]  ;;  %vm1733_vm3 = vmor %vm1731_vm2, %vm1732_vm1 }
 0x3bd   :  { %v1728_v48 = vsub.f32 1.0, %v1727_v34  ;;  %1956 = vmatpush.msrb.mxu0 %v6084_v16  ;;  %1976 = vmatpush.msrb.mxu1 %v5584_v10  ;;  %v1735_v10 = vand.u32 2147483647, %v6060_v54  ;;  %v8004_v34 = vld [vmem:[#allocation30_spill] sm:$0xff] }
 0x3be   :  { %1996 = vmatpush.msra.mxu2 %v6090_v31  ;;  %2016 = vmatpush.msra.mxu3 %v5590_v28 }
 0x3bf   :  { %v1729_v18 = vmul.f32 %v3244_v33, %v1728_v48  ;;  %1957 = vmatpush.msrb.mxu0 %v6094_v21  ;;  %1977 = vmatpush.msrb.mxu1 %v5594_v4  ;;  %v6108_v4 = vld [vmem:[#allocation6 + $0x198] sm:$0xff]  ;;  %vm1736_vm4 = vcmp.eq.f32.partialorder %v1735_v10, 8.507059e+37  ;;  %v8005_v48 = vld [vmem:[#allocation31_spill] sm:$0xff]  ;;  %v8008_v10 = vld [vmem:[#allocation38_spill] sm:$0xff] }
 0x3c0   :  { %1997 = vmatpush.msra.mxu2 %v6099_v1  ;;  %2017 = vmatpush.msra.mxu3 %v5599_v49 }
 0x3c1   :  { %1958 = vmatpush.msrb.mxu0 %v6104_v7  ;;  %1978 = vmatpush.msrb.mxu1 %v5604_v13  ;;  %v1730_v28 = vadd.f32 %v3244_v33, %v1729_v18  ;;  %v8007_v18 = vld [vmem:[#allocation35_spill] sm:$0xff] }
 0x3c2   :  { %1998 = vmatpush.msra.mxu2 %v6108_v4  ;;  %2018 = vmatpush.msra.mxu3 %v5608_v50  ;;  %v3246_v54 = vpop.eup %3245 }
 0x3c3   :  { %1891 = vmatmul.f32.vlgmr.msra.gmra.mxu0 %v6066_v37  ;;  %1931 = vmatmul.f32.vlgmr.msrb.gmra.mxu2 %v6066_v37  ;;  %v1734_v49 = vsel %vm1733_vm3, %v3244_v33, %v1730_v28  ;;  %v8003_v33 = vld [vmem:[#allocation89_spill] sm:$0xff]  ;;  %v8009_v28 = vld [vmem:[#allocation39_spill] sm:$0xff] }
 0x3c4   :  { %1959 = vmatpush.msrb.mxu0 %v6114_v36  ;;  %1979 = vmatpush.msrb.mxu1 %v5614_v62  ;;  %v1739_v13 = vsel %vm1736_vm4, %v1738_v3, %v1734_v49  ;;  %v6131_v62 = vld [vmem:[#allocation6 + $0x158] sm:$0xff]  ;;  %v8010_v3 = vld [vmem:[#allocation42_spill] sm:$0xff]  ;;  %v8011_v49 = vld [vmem:[#allocation43_spill] sm:$0xff] }
 0x3c5   :  { %1999 = vmatpush.msra.mxu2 %v6118_v20  ;;  %2019 = vmatpush.msra.mxu3 %v5618_v32  ;;  %v6122_v50 = vmul.f32 %v3246_v54, %v1739_v13  ;;  %v6135_v32 = vld [vmem:[#allocation6 + $0x130] sm:$0xff]  ;;  %v8012_v54 = vld [vmem:[#allocation46_spill] sm:$0xff]  ;;  %v8013_v13 = vld [vmem:[#allocation47_spill] sm:$0xff] }
 0x3c6   :  { %1960 = vmatpush.msrb.mxu0 %v6124_v63  ;;  %1980 = vmatpush.msrb.mxu1 %v5624_v35  ;;  %v6143_v35 = vld [vmem:[#allocation6 + $0x110] sm:$0xff] }
 0x3c7   :  { %1747 = vst [vmem:[#allocation3 + $0x3] sm:$0x1] %v6122_v50  ;;  %1911 = vmatmul.f32.vlgmr.msra.gmra.mxu1 %v6122_v50  ;;  %1951 = vmatmul.f32.vlgmr.msrb.gmra.mxu3 %v6122_v50 }
 0x3c8   :  { %2000 = vmatpush.msra.mxu2 %v6131_v62  ;;  %2020 = vmatpush.msra.mxu3 %v5631_v8  ;;  %v6151_v8 = vld [vmem:[#allocation6 + $0xf0] sm:$0xff] }
 0x3c9   :  { %1961 = vmatpush.msrb.mxu0 %v6135_v32  ;;  %1981 = vmatpush.msrb.mxu1 %v5635_v47  ;;  %v6155_v47 = vld [vmem:[#allocation6 + $0xf8] sm:$0xff] }
 0x3ca   :  { %2001 = vmatpush.msra.mxu2 %v6139_v61  ;;  %2021 = vmatpush.msra.mxu3 %v5639_v45  ;;  %v6159_v45 = vld [vmem:[#allocation6 + $0xd0] sm:$0xff] }
 0x3cb   :  { %1962 = vmatpush.msrb.mxu0 %v6143_v35  ;;  %1982 = vmatpush.msrb.mxu1 %v5643_v26  ;;  %v6163_v26 = vld [vmem:[#allocation6 + $0xd8] sm:$0xff] }
 0x3cc   :  { %2002 = vmatpush.msra.mxu2 %v6147_v43  ;;  %2022 = vmatpush.msra.mxu3 %v5647_v57  ;;  %v6167_v57 = vld [vmem:[#allocation6 + $0xb0] sm:$0xff] }
 0x3cd   :  { %1963 = vmatpush.msrb.mxu0 %v6151_v8  ;;  %1983 = vmatpush.msrb.mxu1 %v5651_v42  ;;  %v6171_v42 = vld [vmem:[#allocation6 + $0xb8] sm:$0xff] }
 0x3ce   :  { %2003 = vmatpush.msra.mxu2 %v6155_v47  ;;  %2023 = vmatpush.msra.mxu3 %v5655_v59  ;;  %v6175_v59 = vld [vmem:[#allocation6 + $0x90] sm:$0xff] }
 0x3cf   :  { %1964 = vmatpush.msrb.mxu0 %v6159_v45  ;;  %1984 = vmatpush.msrb.mxu1 %v5659_v22  ;;  %v6179_v22 = vld [vmem:[#allocation6 + $0x98] sm:$0xff] }
 0x3d0   :  { %2004 = vmatpush.msra.mxu2 %v6163_v26  ;;  %2024 = vmatpush.msra.mxu3 %v5663_v44  ;;  %v6183_v44 = vld [vmem:[#allocation6 + $0x70] sm:$0xff] }
 0x3d1   :  { %1965 = vmatpush.msrb.mxu0 %v6167_v57  ;;  %1985 = vmatpush.msrb.mxu1 %v5667_v24  ;;  %v6187_v24 = vld [vmem:[#allocation6 + $0x78] sm:$0xff] }
 0x3d2   :  { %2005 = vmatpush.msra.mxu2 %v6171_v42  ;;  %2025 = vmatpush.msra.mxu3 %v5671_v5  ;;  %v6191_v5 = vld [vmem:[#allocation6 + $0x50] sm:$0xff] }
 0x3d3   :  { %1966 = vmatpush.msrb.mxu0 %v6175_v59  ;;  %1986 = vmatpush.msrb.mxu1 %v5675_v40  ;;  %v6195_v40 = vld [vmem:[#allocation6 + $0x58] sm:$0xff] }
 0x3d4   :  { %2006 = vmatpush.msra.mxu2 %v6179_v22  ;;  %2026 = vmatpush.msra.mxu3 %v5679_v58  ;;  %v6199_v58 = vld [vmem:[#allocation6 + $0x30] sm:$0xff] }
 0x3d5   :  { %1967 = vmatpush.msrb.mxu0 %v6183_v44  ;;  %1987 = vmatpush.msrb.mxu1 %v5683_v29  ;;  %v6203_v29 = vld [vmem:[#allocation6 + $0x38] sm:$0xff] }
 0x3d6   :  { %2007 = vmatpush.msra.mxu2 %v6187_v24  ;;  %2027 = vmatpush.msra.mxu3 %v5687_v9  ;;  %v6207_v9 = vld [vmem:[#allocation6 + $0x10] sm:$0xff] }
 0x3d7   :  { %1968 = vmatpush.msrb.mxu0 %v6191_v5  ;;  %1988 = vmatpush.msrb.mxu1 %v5691_v52  ;;  %v6211_v52 = vld [vmem:[#allocation6 + $0x18] sm:$0xff] }
 0x3d8   :  { %2008 = vmatpush.msra.mxu2 %v6195_v40  ;;  %2028 = vmatpush.msra.mxu3 %v5695_v41  ;;  %v7987_v41 = vld [vmem:[#allocation57_spill] sm:$0xff] }
 0x3d9   :  { %1969 = vmatpush.msrb.mxu0 %v6199_v58  ;;  %1989 = vmatpush.msrb.mxu1 %v5699_v15  ;;  %v7988_v15 = vld [vmem:[#allocation60_spill] sm:$0xff] }
 0x3da   :  { %2009 = vmatpush.msra.mxu2 %v6203_v29  ;;  %2029 = vmatpush.msra.mxu3 %v5703_v6  ;;  %v7989_v6 = vld [vmem:[#allocation61_spill] sm:$0xff] }
 0x3db   :  { %1970 = vmatpush.msrb.mxu0 %v6207_v9  ;;  %1990 = vmatpush.msrb.mxu1 %v5707_v51  ;;  %v7990_v51 = vld [vmem:[#allocation64_spill] sm:$0xff] }
 0x3dc   :  { %2010 = vmatpush.msra.mxu2 %v6211_v52  ;;  %2030 = vmatpush.msra.mxu3 %v5711_v30  ;;  %v7991_v30 = vld [vmem:[#allocation65_spill] sm:$0xff] }
 0x3dd   :  { %1971 = vmatmul.f32.vlgmr.msrb.gmra.mxu0 %v6066_v37  ;;  %1991 = vmatmul.f32.vlgmr.msrb.gmra.mxu1 %v6122_v50 }
 0x3de   :  { %2011 = vmatmul.f32.vlgmr.msra.gmra.mxu2 %v6066_v37  ;;  %2031 = vmatmul.f32.vlgmr.msra.gmra.mxu3 %v6122_v50  ;;  %v7999_v37 = vld [vmem:[#allocation81_spill] sm:$0xff]  ;;  %v8014_v50 = vld [vmem:[#allocation50_spill] sm:$0xff] }
 0x3df   :  { %2101 = vmatpush.msra.mxu0 %v5718_v38  ;;  %2121 = vmatpush.msra.mxu1 %v5721_v0  ;;  %v7995_v38 = vld [vmem:[#allocation73_spill] sm:$0xff]  ;;  %v7996_v0 = vld [vmem:[#allocation76_spill] sm:$0xff] }
 0x3e0   :  { %2141 = vmatpush.msrb.mxu2 %v5724_v56  ;;  %2161 = vmatpush.msrb.mxu3 %v7987_v41  ;;  %v7997_v56 = vld [vmem:[#allocation77_spill] sm:$0xff]  ;;  %v8015_v41 = vld [vmem:[#allocation51_spill] sm:$0xff] }
 0x3e1   :  { %2102 = vmatpush.msra.mxu0 %v7988_v15  ;;  %2122 = vmatpush.msra.mxu1 %v7989_v6  ;;  %v8016_v15 = vld [vmem:[#allocation54_spill] sm:$0xff]  ;;  %v8017_v6 = vld [vmem:[#allocation55_spill] sm:$0xff] }
 0x3e2   :  { %2142 = vmatpush.msrb.mxu2 %v7990_v51  ;;  %2162 = vmatpush.msrb.mxu3 %v7991_v30  ;;  %v8018_v51 = vld [vmem:[#allocation58_spill] sm:$0xff]  ;;  %v8019_v30 = vld [vmem:[#allocation59_spill] sm:$0xff] }
 0x3e3   :  { %2103 = vmatpush.msra.mxu0 %v7992_v11  ;;  %2123 = vmatpush.msra.mxu1 %v7993_v2  ;;  %v8020_v11 = vld [vmem:[#allocation62_spill] sm:$0xff]  ;;  %v8021_v2 = vld [vmem:[#allocation63_spill] sm:$0xff] }
 0x3e4   :  { %2143 = vmatpush.msrb.mxu2 %v7994_v53  ;;  %2163 = vmatpush.msrb.mxu3 %v7995_v38  ;;  %v8022_v53 = vld [vmem:[#allocation66_spill] sm:$0xff]  ;;  %v8023_v38 = vld [vmem:[#allocation67_spill] sm:$0xff] }
 0x3e5   :  { %2104 = vmatpush.msra.mxu0 %v7996_v0  ;;  %2124 = vmatpush.msra.mxu1 %v7997_v56  ;;  %v8024_v0 = vld [vmem:[#allocation70_spill] sm:$0xff]  ;;  %v8025_v56 = vld [vmem:[#allocation71_spill] sm:$0xff] }
 0x3e6   :  { %2144 = vmatpush.msrb.mxu2 %v7998_v27  ;;  %2164 = vmatpush.msrb.mxu3 %v7999_v37  ;;  %v8026_v27 = vld [vmem:[#allocation74_spill] sm:$0xff]  ;;  %v8027_v37 = vld [vmem:[#allocation75_spill] sm:$0xff] }
 0x3e7   :  { %2105 = vmatpush.msra.mxu0 %v8000_v25  ;;  %2125 = vmatpush.msra.mxu1 %v8001_v12  ;;  %v8028_v25 = vld [vmem:[#allocation78_spill] sm:$0xff]  ;;  %v8029_v12 = vld [vmem:[#allocation79_spill] sm:$0xff] }
 0x3e8   :  { %2145 = vmatpush.msrb.mxu2 %v8002_v23  ;;  %2165 = vmatpush.msrb.mxu3 %v8003_v33  ;;  %v8030_v23 = vld [vmem:[#allocation82_spill] sm:$0xff]  ;;  %v8031_v33 = vld [vmem:[#allocation83_spill] sm:$0xff] }
 0x3e9   :  { %2106 = vmatpush.msra.mxu0 %v8004_v34  ;;  %2126 = vmatpush.msra.mxu1 %v8005_v48  ;;  %v8032_v34 = vld [vmem:[#allocation86_spill] sm:$0xff]  ;;  %v8033_v48 = vld [vmem:[#allocation87_spill] sm:$0xff] }
 0x3ea   :  { %2146 = vmatpush.msrb.mxu2 %v8006_v19  ;;  %2166 = vmatpush.msrb.mxu3 %v8007_v18  ;;  %v8034_v19 = vld [vmem:[#allocation90_spill] sm:$0xff]  ;;  %v8035_v18 = vld [vmem:[#allocation91_spill] sm:$0xff] }
 0x3eb   :  { %2107 = vmatpush.msra.mxu0 %v8008_v10  ;;  %2127 = vmatpush.msra.mxu1 %v8009_v28  ;;  %v8036_v10 = vld [vmem:[#allocation92_spill] sm:$0xff]  ;;  %v8037_v28 = vld [vmem:[#allocation93_spill] sm:$0xff] }
 0x3ec   :  { %2147 = vmatpush.msrb.mxu2 %v8010_v3  ;;  %2167 = vmatpush.msrb.mxu3 %v8011_v49  ;;  %v8038_v3 = vld [vmem:[#allocation94_spill] sm:$0xff]  ;;  %v8039_v49 = vld [vmem:[#allocation95_spill] sm:$0xff] }
 0x3ed   :  { %2108 = vmatpush.msra.mxu0 %v8012_v54  ;;  %2128 = vmatpush.msra.mxu1 %v8013_v13  ;;  %v8040_v54 = vld [vmem:[#allocation96_spill] sm:$0xff]  ;;  %v8041_v13 = vld [vmem:[#allocation97_spill] sm:$0xff] }
 0x3ee   :  { %2148 = vmatpush.msrb.mxu2 %v8014_v50  ;;  %2168 = vmatpush.msrb.mxu3 %v8015_v41  ;;  %v8042_v50 = vld [vmem:[#allocation98_spill] sm:$0xff]  ;;  %v8043_v41 = vld [vmem:[#allocation99_spill] sm:$0xff] }
 0x3ef   :  { %2109 = vmatpush.msra.mxu0 %v8016_v15  ;;  %2129 = vmatpush.msra.mxu1 %v8017_v6  ;;  %v8044_v15 = vld [vmem:[#allocation100_spill] sm:$0xff]  ;;  %v8045_v6 = vld [vmem:[#allocation101_spill] sm:$0xff] }
 0x3f0   :  { %2149 = vmatpush.msrb.mxu2 %v8018_v51  ;;  %2169 = vmatpush.msrb.mxu3 %v8019_v30  ;;  %v8046_v51 = vld [vmem:[#allocation102_spill] sm:$0xff]  ;;  %v8047_v30 = vld [vmem:[#allocation103_spill] sm:$0xff] }
 0x3f1   :  { %2110 = vmatpush.msra.mxu0 %v8020_v11  ;;  %2130 = vmatpush.msra.mxu1 %v8021_v2  ;;  %v8048_v11 = vld [vmem:[#allocation104_spill] sm:$0xff]  ;;  %v6284_v2 = vld [vmem:[#allocation6 + $0x3e0] sm:$0xff] }
 0x3f2   :  { %2150 = vmatpush.msrb.mxu2 %v8022_v53  ;;  %2170 = vmatpush.msrb.mxu3 %v8023_v38  ;;  %v8049_v53 = vld [vmem:[#allocation105_spill] sm:$0xff]  ;;  %v6288_v38 = vld [vmem:[#allocation6 + $0x3e8] sm:$0xff] }
 0x3f3   :  { %2111 = vmatpush.msra.mxu0 %v8024_v0  ;;  %2131 = vmatpush.msra.mxu1 %v8025_v56  ;;  %v8050_v0 = vld [vmem:[#allocation106_spill] sm:$0xff] }
 0x3f4   :  { %2151 = vmatpush.msrb.mxu2 %v8026_v27  ;;  %2171 = vmatpush.msrb.mxu3 %v8027_v37  ;;  %v6292_v56 = vld [vmem:[#allocation6 + $0x3c0] sm:$0xff]  ;;  %v8051_v27 = vld [vmem:[#allocation107_spill] sm:$0xff] }
 0x3f5   :  { %2112 = vmatpush.msra.mxu0 %v8028_v25  ;;  %2132 = vmatpush.msra.mxu1 %v8029_v12  ;;  %v6296_v37 = vld [vmem:[#allocation6 + $0x3c8] sm:$0xff]  ;;  %v8053_v25 = vld [vmem:[#allocation14_spill] sm:$0xff] }
 0x3f6   :  { %2152 = vmatpush.msrb.mxu2 %v8030_v23  ;;  %2172 = vmatpush.msrb.mxu3 %v8031_v33  ;;  %8052 = vst [vmem:[#allocation56_spill] sm:$0xff] %v6296_v37  ;;  %v6300_v12 = vld [vmem:[#allocation6 + $0x3a0] sm:$0xff]  ;;  %v8055_v23 = vld [vmem:[#allocation15_spill] sm:$0xff] }
 0x3f7   :  { %2113 = vmatpush.msra.mxu0 %v8032_v34  ;;  %2133 = vmatpush.msra.mxu1 %v8033_v48  ;;  %8054 = vst [vmem:[#allocation57_spill] sm:$0xff] %v6300_v12  ;;  %v6304_v33 = vld [vmem:[#allocation6 + $0x3a8] sm:$0xff]  ;;  %v8057_v34 = vld [vmem:[#allocation16_spill] sm:$0xff]  ;;  %v6308_v48 = vld [vmem:[#allocation6 + $0x380] sm:$0xff] }
 0x3f8   :  { %2153 = vmatpush.msrb.mxu2 %v8034_v19  ;;  %2173 = vmatpush.msrb.mxu3 %v8035_v18  ;;  %8056 = vst [vmem:[#allocation60_spill] sm:$0xff] %v6304_v33  ;;  %v8059_v19 = vld [vmem:[#allocation17_spill] sm:$0xff]  ;;  %v6312_v18 = vld [vmem:[#allocation6 + $0x388] sm:$0xff] }
 0x3f9   :  { %2114 = vmatpush.msra.mxu0 %v8036_v10  ;;  %2134 = vmatpush.msra.mxu1 %v8037_v28  ;;  %8058 = vst [vmem:[#allocation61_spill] sm:$0xff] %v6308_v48  ;;  %v8061_v10 = vld [vmem:[#allocation18_spill] sm:$0xff] }
 0x3fa   :  { %2154 = vmatpush.msrb.mxu2 %v8038_v3  ;;  %2174 = vmatpush.msrb.mxu3 %v8039_v49  ;;  %8060 = vst [vmem:[#allocation64_spill] sm:$0xff] %v6312_v18  ;;  %v6316_v28 = vld [vmem:[#allocation6 + $0x360] sm:$0xff]  ;;  %v8063_v3 = vld [vmem:[#allocation19_spill] sm:$0xff] }
 0x3fb   :  { %2115 = vmatpush.msra.mxu0 %v8040_v54  ;;  %2135 = vmatpush.msra.mxu1 %v8041_v13  ;;  %8062 = vst [vmem:[#allocation65_spill] sm:$0xff] %v6316_v28  ;;  %v6320_v49 = vld [vmem:[#allocation6 + $0x368] sm:$0xff]  ;;  %v8065_v54 = vld [vmem:[#allocation20_spill] sm:$0xff]  ;;  %v6324_v13 = vld [vmem:[#allocation6 + $0x340] sm:$0xff] }
 0x3fc   :  { %2155 = vmatpush.msrb.mxu2 %v8042_v50  ;;  %2175 = vmatpush.msrb.mxu3 %v8043_v41  ;;  %8064 = vst [vmem:[#allocation68_spill] sm:$0xff] %v6320_v49  ;;  %v8067_v50 = vld [vmem:[#allocation21_spill] sm:$0xff]  ;;  %v6328_v41 = vld [vmem:[#allocation6 + $0x348] sm:$0xff] }
 0x3fd   :  { %2116 = vmatpush.msra.mxu0 %v8044_v15  ;;  %2136 = vmatpush.msra.mxu1 %v8045_v6  ;;  %8066 = vst [vmem:[#allocation69_spill] sm:$0xff] %v6324_v13  ;;  %v8069_v15 = vld [vmem:[#allocation22_spill] sm:$0xff] }
 0x3fe   :  { %2156 = vmatpush.msrb.mxu2 %v8046_v51  ;;  %2176 = vmatpush.msrb.mxu3 %v8047_v30  ;;  %8068 = vst [vmem:[#allocation72_spill] sm:$0xff] %v6328_v41  ;;  %v6332_v6 = vld [vmem:[#allocation6 + $0x320] sm:$0xff]  ;;  %v8071_v51 = vld [vmem:[#allocation23_spill] sm:$0xff] }
 0x3ff   :  { %2226 = vmatpush.msrb.mxu0 %v8048_v11  ;;  %2246 = vmatpush.msrb.mxu1 %v6284_v2  ;;  %8070 = vst [vmem:[#allocation73_spill] sm:$0xff] %v6332_v6  ;;  %v6336_v30 = vld [vmem:[#allocation6 + $0x328] sm:$0xff]  ;;  %v8073_v11 = vld [vmem:[#allocation24_spill] sm:$0xff] }
 0x400   :  { %2266 = vmatpush.msra.mxu2 %v8049_v53  ;;  %2286 = vmatpush.msra.mxu3 %v6288_v38  ;;  %8072 = vst [vmem:[#allocation76_spill] sm:$0xff] %v6336_v30  ;;  %v6340_v53 = vld [vmem:[#allocation6 + $0x300] sm:$0xff] }
 0x401   :  { %2227 = vmatpush.msrb.mxu0 %v8050_v0  ;;  %2247 = vmatpush.msrb.mxu1 %v6292_v56  ;;  %8074 = vst [vmem:[#allocation77_spill] sm:$0xff] %v6340_v53  ;;  %v8075_v0 = vld [vmem:[#allocation25_spill] sm:$0xff] }
 0x402   :  { %2267 = vmatpush.msra.mxu2 %v8051_v27  ;;  %2287 = vmatpush.msra.mxu3 %v6296_v37  ;;  %v6344_v27 = vld [vmem:[#allocation6 + $0x308] sm:$0xff] }
 0x403   :  { %2228 = vmatpush.msrb.mxu0 %v8053_v25  ;;  %2248 = vmatpush.msrb.mxu1 %v6300_v12  ;;  %8076 = vst [vmem:[#allocation80_spill] sm:$0xff] %v6344_v27  ;;  %v8077_v25 = vld [vmem:[#allocation26_spill] sm:$0xff] }
 0x404   :  { %2268 = vmatpush.msra.mxu2 %v8055_v23  ;;  %2288 = vmatpush.msra.mxu3 %v6304_v33  ;;  %v6348_v23 = vld [vmem:[#allocation6 + $0x2e0] sm:$0xff] }
 0x405   :  { %2229 = vmatpush.msrb.mxu0 %v8057_v34  ;;  %2249 = vmatpush.msrb.mxu1 %v6308_v48  ;;  %8078 = vst [vmem:[#allocation81_spill] sm:$0xff] %v6348_v23  ;;  %v8079_v34 = vld [vmem:[#allocation27_spill] sm:$0xff] }
 0x406   :  { %2269 = vmatpush.msra.mxu2 %v8059_v19  ;;  %2289 = vmatpush.msra.mxu3 %v6312_v18  ;;  %v6352_v19 = vld [vmem:[#allocation6 + $0x2e8] sm:$0xff] }
 0x407   :  { %2230 = vmatpush.msrb.mxu0 %v8061_v10  ;;  %2250 = vmatpush.msrb.mxu1 %v6316_v28  ;;  %8080 = vst [vmem:[#allocation84_spill] sm:$0xff] %v6352_v19  ;;  %v8081_v10 = vld [vmem:[#allocation28_spill] sm:$0xff]  ;;  %v8110_v28 = vld [vmem:[#allocation11_spill] sm:$0xff] }
 0x408   :  { %2270 = vmatpush.msra.mxu2 %v8063_v3  ;;  %2290 = vmatpush.msra.mxu3 %v6320_v49  ;;  %v6356_v3 = vld [vmem:[#allocation6 + $0x2c0] sm:$0xff] }
 0x409   :  { %2231 = vmatpush.msrb.mxu0 %v8065_v54  ;;  %2251 = vmatpush.msrb.mxu1 %v6324_v13  ;;  %8082 = vst [vmem:[#allocation85_spill] sm:$0xff] %v6356_v3  ;;  %v8083_v54 = vld [vmem:[#allocation29_spill] sm:$0xff] }
 0x40a   :  { %2271 = vmatpush.msra.mxu2 %v8067_v50  ;;  %2291 = vmatpush.msra.mxu3 %v6328_v41  ;;  %v6360_v50 = vld [vmem:[#allocation6 + $0x2c8] sm:$0xff] }
 0x40b   :  { %2232 = vmatpush.msrb.mxu0 %v8069_v15  ;;  %2252 = vmatpush.msrb.mxu1 %v6332_v6  ;;  %8084 = vst [vmem:[#allocation88_spill] sm:$0xff] %v6360_v50  ;;  %v8085_v15 = vld [vmem:[#allocation32_spill] sm:$0xff] }
 0x40c   :  { %2272 = vmatpush.msra.mxu2 %v8071_v51  ;;  %2292 = vmatpush.msra.mxu3 %v6336_v30  ;;  %v6364_v51 = vld [vmem:[#allocation6 + $0x2a0] sm:$0xff] }
 0x40d   :  { %2233 = vmatpush.msrb.mxu0 %v8073_v11  ;;  %2253 = vmatpush.msrb.mxu1 %v6340_v53  ;;  %8086 = vst [vmem:[#allocation89_spill] sm:$0xff] %v6364_v51  ;;  %v8087_v11 = vld [vmem:[#allocation33_spill] sm:$0xff] }
 0x40e   :  { %2273 = vmatpush.msra.mxu2 %v8075_v0  ;;  %2293 = vmatpush.msra.mxu3 %v6344_v27  ;;  %v6368_v0 = vld [vmem:[#allocation6 + $0x2a8] sm:$0xff] }
 0x40f   :  { %2234 = vmatpush.msrb.mxu0 %v8077_v25  ;;  %2254 = vmatpush.msrb.mxu1 %v6348_v23  ;;  %8088 = vst [vmem:[#allocation30_spill] sm:$0xff] %v6368_v0  ;;  %v8089_v25 = vld [vmem:[#allocation36_spill] sm:$0xff] }
 0x410   :  { %2274 = vmatpush.msra.mxu2 %v8079_v34  ;;  %2294 = vmatpush.msra.mxu3 %v6352_v19  ;;  %v6372_v34 = vld [vmem:[#allocation6 + $0x280] sm:$0xff] }
 0x411   :  { %2235 = vmatpush.msrb.mxu0 %v8081_v10  ;;  %2255 = vmatpush.msrb.mxu1 %v6356_v3  ;;  %8090 = vst [vmem:[#allocation31_spill] sm:$0xff] %v6372_v34  ;;  %v8091_v10 = vld [vmem:[#allocation37_spill] sm:$0xff] }
 0x412   :  { %2275 = vmatpush.msra.mxu2 %v8083_v54  ;;  %2295 = vmatpush.msra.mxu3 %v6360_v50  ;;  %v6376_v54 = vld [vmem:[#allocation6 + $0x288] sm:$0xff] }
 0x413   :  { %2236 = vmatpush.msrb.mxu0 %v8085_v15  ;;  %2256 = vmatpush.msrb.mxu1 %v6364_v51  ;;  %8092 = vst [vmem:[#allocation34_spill] sm:$0xff] %v6376_v54  ;;  %v8093_v15 = vld [vmem:[#allocation40_spill] sm:$0xff]  ;;  %v6380_v51 = vld [vmem:[#allocation6 + $0x260] sm:$0xff] }
 0x414   :  { %2276 = vmatpush.msra.mxu2 %v8087_v11  ;;  %2296 = vmatpush.msra.mxu3 %v6368_v0  ;;  %8094 = vst [vmem:[#allocation35_spill] sm:$0xff] %v6380_v51  ;;  %v8095_v11 = vld [vmem:[#allocation41_spill] sm:$0xff]  ;;  %v6384_v0 = vld [vmem:[#allocation6 + $0x268] sm:$0xff] }
 0x415   :  { %2237 = vmatpush.msrb.mxu0 %v8089_v25  ;;  %2257 = vmatpush.msrb.mxu1 %v6372_v34  ;;  %8096 = vst [vmem:[#allocation38_spill] sm:$0xff] %v6384_v0  ;;  %v8097_v25 = vld [vmem:[#allocation44_spill] sm:$0xff]  ;;  %v6388_v34 = vld [vmem:[#allocation6 + $0x240] sm:$0xff] }
 0x416   :  { %2277 = vmatpush.msra.mxu2 %v8091_v10  ;;  %2297 = vmatpush.msra.mxu3 %v6376_v54  ;;  %8098 = vst [vmem:[#allocation39_spill] sm:$0xff] %v6388_v34  ;;  %v8099_v10 = vld [vmem:[#allocation45_spill] sm:$0xff]  ;;  %v6392_v54 = vld [vmem:[#allocation6 + $0x248] sm:$0xff] }
 0x417   :  { %2238 = vmatpush.msrb.mxu0 %v8093_v15  ;;  %2258 = vmatpush.msrb.mxu1 %v6380_v51  ;;  %8100 = vst [vmem:[#allocation42_spill] sm:$0xff] %v6392_v54  ;;  %v8101_v15 = vld [vmem:[#allocation48_spill] sm:$0xff]  ;;  %v6396_v51 = vld [vmem:[#allocation6 + $0x220] sm:$0xff] }
 0x418   :  { %2278 = vmatpush.msra.mxu2 %v8095_v11  ;;  %2298 = vmatpush.msra.mxu3 %v6384_v0  ;;  %8102 = vst [vmem:[#allocation43_spill] sm:$0xff] %v6396_v51  ;;  %v8103_v11 = vld [vmem:[#allocation49_spill] sm:$0xff]  ;;  %v6400_v0 = vld [vmem:[#allocation6 + $0x228] sm:$0xff] }
 0x419   :  { %2239 = vmatpush.msrb.mxu0 %v8097_v25  ;;  %2259 = vmatpush.msrb.mxu1 %v6388_v34  ;;  %8104 = vst [vmem:[#allocation46_spill] sm:$0xff] %v6400_v0  ;;  %v8105_v25 = vld [vmem:[#allocation52_spill] sm:$0xff]  ;;  %v6404_v34 = vld [vmem:[#allocation6 + $0x200] sm:$0xff] }
 0x41a   :  { %2279 = vmatpush.msra.mxu2 %v8099_v10  ;;  %2299 = vmatpush.msra.mxu3 %v6392_v54  ;;  %8106 = vst [vmem:[#allocation47_spill] sm:$0xff] %v6404_v34  ;;  %v8107_v10 = vld [vmem:[#allocation53_spill] sm:$0xff]  ;;  %v6408_v54 = vld [vmem:[#allocation6 + $0x208] sm:$0xff] }
 0x41b   :  { %2240 = vmatpush.msrb.mxu0 %v8101_v15  ;;  %2260 = vmatpush.msrb.mxu1 %v6396_v51  ;;  %8108 = vst [vmem:[#allocation50_spill] sm:$0xff] %v6408_v54  ;;  %v1749_v53 = vld [vmem:[#allocation2 + $0x5] ss:$8 sm:$0xf] }
 0x41c   :  { %2280 = vmatpush.msra.mxu2 %v8103_v11  ;;  %2300 = vmatpush.msra.mxu3 %v6400_v0 }
 0x41d   :  { %2241 = vmatpush.msrb.mxu0 %v8105_v25  ;;  %2261 = vmatpush.msrb.mxu1 %v6404_v34 }
 0x41e   :  { %2281 = vmatpush.msra.mxu2 %v8107_v10  ;;  %2301 = vmatpush.msra.mxu3 %v6408_v54  ;;  %v8109_v10 = vld [vmem:[#allocation10_spill] sm:$0xff] }
 0x436   :  { %v1767_v15 = vpop.f32.mrf.mxu0  ;;  %v1787_v51 = vpop.f32.mrf.mxu1 }
 0x437   :  { %v1834_v50 = vrot.slane %v1787_v51, 7 }
 0x439   :  { %v1837_v0 = vsel %vm501_vm6, %v1767_v15, %v1834_v50 }
 0x43d   :  { %v1807_v11 = vpop.f32.mrf.mxu2  ;;  %v1827_v3 = vpop.f32.mrf.mxu3 }
 0x43e   :  { %v1835_v19 = vrot.slane %v1807_v11, 6  ;;  %v1836_v23 = vrot.slane %v1827_v3, 5 }
 0x440   :  { %v1838_v25 = vsel %vm503_vm7, %v1835_v19, %v1836_v23  ;;  %v1892_v27 = vpop.f32.mrf.mxu0 }
 0x441   :  { %v1839_v34 = vsel %vm505_vm8, %v1837_v0, %v1838_v25  ;;  %v1893_v30 = vadd.f32 %v1892_v27, %v8109_v10 }
 0x442   :  { %v1841_v6 = vadd.f32 %v1839_v34, %v1749_v53 }
 0x444   :  { %v3123_v41 = vmul.f32 -1.442695, %v1841_v6  ;;  %v1912_v54 = vpop.f32.mrf.mxu1  ;;  %v1862_v27 = vrot.slane %v1841_v6, 3 }
 0x445   :  { %v1913_v13 = vadd.f32 %v1912_v54, %v1893_v30 }
 0x446   :  { %3247 = vpow2.f32 %v3123_v41  ;;  %v1932_v51 = vpop.f32.mrf.mxu2 }
 0x447   :  { %v3124_v49 = vmul.f32 -1.442695, %v1913_v13  ;;  %v1933_v11 = vadd.f32 %v1932_v51, %v8110_v28 }
 0x449   :  { %3249 = vpow2.f32 %v3124_v49 }
 0x44a   :  { %v1952_v3 = vpop.f32.mrf.mxu3 }
 0x44b   :  { %v1953_v50 = vadd.f32 %v1952_v3, %v1933_v11 }
 0x44c   :  { %v3248_v15 = vpop.eup %3247 }
 0x44d   :  { %v1845_v23 = vadd.f32 1.0, %v3248_v15  ;;  %v3125_v19 = vmul.f32 -1.442695, %v1953_v50 }
 0x44f   :  { %v3250_v18 = vpop.eup %3249  ;;  %3251 = vrcp.f32 %v1845_v23  ;;  %v1857_v54 = vand.u32 2147483648, %v1845_v23  ;;  %vm1851_vm9 = vweird.f32 %v1845_v23 }
 0x450   :  { %v6416_v0 = vadd.f32 1.0, %v3250_v18  ;;  %3253 = vpow2.f32 %v3125_v19  ;;  %v1855_v18 = vand.u32 2147483647, %v1845_v23 }
 0x451   :  { %v1858_v6 = vor.u32 1.1754944e-38, %v1857_v54 }
 0x452   :  { %3255 = vrcp.f32 %v6416_v0  ;;  %vm1856_vm11 = vcmp.eq.f32.partialorder %v1855_v18, 8.507059e+37  ;;  %vm2052_vm0 = vweird.f32 %v6416_v0 }
 0x455   :  { %v3252_v53 = vpop.eup %3251 }
 0x456   :  { %v3254_v30 = vpop.eup %3253  ;;  %v1847_v41 = vmul.f32 %v3252_v53, %v1845_v23  ;;  %vm1852_vm5 = vweird.f32 %v3252_v53 }
 0x457   :  { %v2045_v13 = vadd.f32 1.0, %v3254_v30  ;;  %vm1853_vm10 = vmor %vm1851_vm9, %vm1852_vm5 }
 0x458   :  { %v6419_v34 = vpop.eup %3255  ;;  %v1848_v49 = vsub.f32 1.0, %v1847_v41 }
 0x459   :  { %v2048_v25 = vmul.f32 %v6419_v34, %v6416_v0  ;;  %3257 = vrcp.f32 %v2045_v13  ;;  %vm2067_vm13 = vweird.f32 %v2045_v13  ;;  %vm2053_vm14 = vweird.f32 %v6419_v34 }
 0x45a   :  { %v1849_v51 = vmul.f32 %v3252_v53, %v1848_v49  ;;  %v1972_v11 = vpop.f32.mrf.mxu0  ;;  %3259 = vtanh.f32 %v1862_v27  ;;  %v1992_v15 = vpop.f32.mrf.mxu1  ;;  %vm2054_vm1 = vmor %vm2052_vm0, %vm2053_vm14 }
 0x45b   :  { %v1973_v3 = vadd.f32 %v1972_v11, %v7862_v55  ;;  %v2049_v19 = vsub.f32 1.0, %v2048_v25 }
 0x45c   :  { %v1850_v50 = vadd.f32 %v3252_v53, %v1849_v51 }
 0x45d   :  { %v1993_v30 = vadd.f32 %v1992_v15, %v1973_v3  ;;  %v2050_v27 = vmul.f32 %v6419_v34, %v2049_v19 }
 0x45e   :  { %v1854_v41 = vsel %vm1853_vm10, %v3252_v53, %v1850_v50  ;;  %v2073_v50 = vand.u32 2147483648, %v2045_v13 }
 0x45f   :  { %v3258_v28 = vpop.eup %3257  ;;  %v1859_v10 = vsel %vm1856_vm11, %v1858_v6, %v1854_v41  ;;  %v3126_v48 = vmul.f32 -1.442695, %v1993_v30  ;;  %v2056_v6 = vand.u32 2147483647, %v6416_v0 }
 0x460   :  { %v1866_v33 = vrot.slane %v1859_v10, 1  ;;  %v2063_v49 = vmul.f32 %v3258_v28, %v2045_v13  ;;  %v3260_v12 = vpop.eup %3259  ;;  %vm2068_vm12 = vweird.f32 %v3258_v28  ;;  %v2074_v30 = vor.u32 1.1754944e-38, %v2073_v50  ;;  %v6458_v50 = vld [vmem:[#allocation6 + $0x3d0] sm:$0xff] }
 0x461   :  { %3261 = vpow2.f32 %v3126_v48  ;;  %v2012_v37 = vpop.f32.mrf.mxu2  ;;  %v1869_v23 = vmul.f32 %v3260_v12, %v1859_v10  ;;  %v2032_v25 = vpop.f32.mrf.mxu3  ;;  %v2051_v48 = vadd.f32 %v6419_v34, %v2050_v27  ;;  %vm2069_vm15 = vmor %vm2067_vm13, %vm2068_vm12  ;;  %vm2057_vm3 = vcmp.eq.f32.partialorder %v2056_v6, 8.507059e+37 }
 0x462   :  { %v1868_v51 = vmul.f32 %v1866_v33, %v6054_v14  ;;  %v2064_v11 = vsub.f32 1.0, %v2063_v49  ;;  %v2013_v54 = vadd.f32 %v2012_v37, %v7737_v60  ;;  %v2071_v14 = vand.u32 2147483647, %v2045_v13 }
 0x463   :  { %v2058_v37 = vand.u32 2147483648, %v6416_v0  ;;  %v2055_v41 = vsel %vm2054_vm1, %v6419_v34, %v2051_v48  ;;  %v1872_v13 = vrot.slane %v1859_v10, 2  ;;  %v6450_v34 = vld [vmem:[#allocation6 + $0x3f0] sm:$0xff] }
 0x464   :  { %v6427_v3 = vadd.f32 %v1869_v23, %v1868_v51  ;;  %v2065_v53 = vmul.f32 %v3258_v28, %v2064_v11  ;;  %v2033_v18 = vadd.f32 %v2032_v25, %v2013_v54  ;;  %vm2072_vm2 = vcmp.eq.f32.partialorder %v2071_v14, 8.507059e+37  ;;  %v6473_v14 = vld [vmem:[#allocation6 + $0x3b8] sm:$0xff] }
 0x465   :  { %v2059_v49 = vor.u32 1.1754944e-38, %v2058_v37  ;;  %v6482_v37 = vld [vmem:[#allocation6 + $0x398] sm:$0xff] }
 0x466   :  { %3263 = vtanh.f32 %v6427_v3  ;;  %v2066_v15 = vadd.f32 %v3258_v28, %v2065_v53 }
 0x467   :  { %v3262_v12 = vpop.eup %3261  ;;  %3265 = vtanh.f32 %v2033_v18  ;;  %v2060_v54 = vsel %vm2057_vm3, %v2059_v49, %v2055_v41  ;;  %v6517_v41 = vld [vmem:[#allocation6 + $0x310] sm:$0xff]  ;;  %v3728_v49 = vld [vmem:[#allocation4 + $0x1c8] sm:$0xff] }
 0x468   :  { %v6433_v33 = vadd.f32 1.0, %v3262_v12  ;;  %v2070_v19 = vsel %vm2069_vm15, %v3258_v28, %v2066_v15  ;;  %v6468_v15 = vld [vmem:[#allocation6 + $0x3b0] sm:$0xff] }
 0x469   :  { %v2075_v27 = vsel %vm2072_vm2, %v2074_v30, %v2070_v19  ;;  %v6498_v30 = vld [vmem:[#allocation6 + $0x350] sm:$0xff] }
 0x46a   :  { %3267 = vrcp.f32 %v6433_v33  ;;  %v2093_v25 = vmul.f32 %v2075_v27, %v6071_v46  ;;  %v6454_v46 = vld [vmem:[#allocation6 + $0x3f8] sm:$0xff]  ;;  %v2088_v48 = vand.u32 2147483648, %v6433_v33  ;;  %vm2082_vm5 = vweird.f32 %v6433_v33  ;;  %v3729_v27 = vld [vmem:[#allocation4 + $0x1d0] sm:$0xff] }
 0x46c   :  { %v3264_v51 = vpop.eup %3263  ;;  %v2089_v12 = vor.u32 1.1754944e-38, %v2088_v48  ;;  %v3739_v48 = vld [vmem:[#allocation4 + $0x160] sm:$0xff] }
 0x46d   :  { %v3266_v23 = vpop.eup %3265  ;;  %v6439_v11 = vmul.f32 %v3264_v51, %v1872_v13  ;;  %v3726_v13 = vld [vmem:[#allocation4 + $0x1f8] sm:$0xff] }
 0x46e   :  { %v2094_v0 = vmul.f32 %v3266_v23, %v2060_v54  ;;  %v3730_v51 = vld [vmem:[#allocation4 + $0x1d8] sm:$0xff]  ;;  %v3731_v23 = vld [vmem:[#allocation4 + $0x1a0] sm:$0xff]  ;;  %v3733_v54 = vld [vmem:[#allocation4 + $0x1b0] sm:$0xff] }
 0x46f   :  { %2117 = vmatmul.f32.vlgmr.msra.gmra.mxu0 %v6439_v11  ;;  %2137 = vmatmul.f32.vlgmr.msra.gmra.mxu1 %v6439_v11 }
 0x470   :  { %v3268_v28 = vpop.eup %3267  ;;  %v6444_v53 = vadd.f32 %v2094_v0, %v2093_v25  ;;  %2157 = vmatmul.f32.vlgmr.msrb.gmra.mxu2 %v6439_v11  ;;  %2177 = vmatmul.f32.vlgmr.msrb.gmra.mxu3 %v6439_v11  ;;  %v3734_v25 = vld [vmem:[#allocation4 + $0x1b8] sm:$0xff]  ;;  %v3735_v0 = vld [vmem:[#allocation4 + $0x180] sm:$0xff] }
 0x471   :  { %v2078_v10 = vmul.f32 %v3268_v28, %v6433_v33  ;;  %2306 = vmatpush.msra.mxu0 %v6076_v17  ;;  %2326 = vmatpush.msra.mxu1 %v6450_v34  ;;  %v6464_v17 = vld [vmem:[#allocation6 + $0x3d8] sm:$0xff]  ;;  %vm2083_vm4 = vweird.f32 %v3268_v28 }
 0x472   :  { %2346 = vmatpush.msrb.mxu2 %v6080_v39  ;;  %2366 = vmatpush.msrb.mxu3 %v6454_v46  ;;  %3269 = vtanh.f32 %v6444_v53  ;;  %vm2084_vm9 = vmor %vm2082_vm5, %vm2083_vm4 }
 0x473   :  { %v2079_v18 = vsub.f32 1.0, %v2078_v10  ;;  %2307 = vmatpush.msra.mxu0 %v6084_v16  ;;  %2327 = vmatpush.msra.mxu1 %v6458_v50  ;;  %v2086_v16 = vand.u32 2147483647, %v6433_v33  ;;  %v6488_v33 = vld [vmem:[#allocation6 + $0x370] sm:$0xff] }
 0x474   :  { %2347 = vmatpush.msrb.mxu2 %v6090_v31  ;;  %2367 = vmatpush.msrb.mxu3 %v6464_v17  ;;  %v6478_v31 = vld [vmem:[#allocation6 + $0x390] sm:$0xff] }
 0x475   :  { %v2080_v39 = vmul.f32 %v3268_v28, %v2079_v18  ;;  %2308 = vmatpush.msra.mxu0 %v6094_v21  ;;  %2328 = vmatpush.msra.mxu1 %v6468_v15  ;;  %vm2087_vm10 = vcmp.eq.f32.partialorder %v2086_v16, 8.507059e+37  ;;  %v3737_v10 = vld [vmem:[#allocation4 + $0x190] sm:$0xff]  ;;  %v3738_v18 = vld [vmem:[#allocation4 + $0x198] sm:$0xff] }
 0x476   :  { %2348 = vmatpush.msrb.mxu2 %v6099_v1  ;;  %2368 = vmatpush.msrb.mxu3 %v6473_v14  ;;  %v3741_v16 = vld [vmem:[#allocation4 + $0x170] sm:$0xff] }
 0x477   :  { %2309 = vmatpush.msra.mxu0 %v6104_v7  ;;  %2329 = vmatpush.msra.mxu1 %v6478_v31  ;;  %v2081_v21 = vadd.f32 %v3268_v28, %v2080_v39  ;;  %v3740_v39 = vld [vmem:[#allocation4 + $0x168] sm:$0xff] }
 0x478   :  { %2349 = vmatpush.msrb.mxu2 %v6108_v4  ;;  %2369 = vmatpush.msrb.mxu3 %v6482_v37  ;;  %v3270_v7 = vpop.eup %3269  ;;  %v6492_v4 = vld [vmem:[#allocation6 + $0x378] sm:$0xff] }
 0x479   :  { %2242 = vmatmul.f32.vlgmr.msrb.gmra.mxu0 %v6439_v11  ;;  %2282 = vmatmul.f32.vlgmr.msra.gmra.mxu2 %v6439_v11  ;;  %v2085_v1 = vsel %vm2084_vm9, %v3268_v28, %v2081_v21  ;;  %v3736_v28 = vld [vmem:[#allocation4 + $0x188] sm:$0xff]  ;;  %v3742_v21 = vld [vmem:[#allocation4 + $0x178] sm:$0xff] }
 0x47a   :  { %2310 = vmatpush.msra.mxu0 %v6114_v36  ;;  %2330 = vmatpush.msra.mxu1 %v6488_v33  ;;  %v2090_v6 = vsel %vm2087_vm10, %v2089_v12, %v2085_v1  ;;  %v6505_v36 = vld [vmem:[#allocation6 + $0x358] sm:$0xff]  ;;  %v3743_v12 = vld [vmem:[#allocation4 + $0x140] sm:$0xff]  ;;  %v3744_v1 = vld [vmem:[#allocation4 + $0x148] sm:$0xff] }
 0x47b   :  { %2350 = vmatpush.msrb.mxu2 %v6118_v20  ;;  %2370 = vmatpush.msrb.mxu3 %v6492_v4  ;;  %v6495_v19 = vmul.f32 %v3270_v7, %v2090_v6  ;;  %v6509_v20 = vld [vmem:[#allocation6 + $0x330] sm:$0xff]  ;;  %v3746_v6 = vld [vmem:[#allocation4 + $0x158] sm:$0xff] }
 0x47c   :  { %2311 = vmatpush.msra.mxu0 %v6124_v63  ;;  %2331 = vmatpush.msra.mxu1 %v6498_v30  ;;  %v6513_v63 = vld [vmem:[#allocation6 + $0x338] sm:$0xff]  ;;  %v3745_v7 = vld [vmem:[#allocation4 + $0x150] sm:$0xff] }
 0x47d   :  { %2098 = vst [vmem:[#allocation3 + $0x4] sm:$0x1] %v6495_v19  ;;  %2262 = vmatmul.f32.vlgmr.msrb.gmra.mxu1 %v6495_v19  ;;  %2302 = vmatmul.f32.vlgmr.msra.gmra.mxu3 %v6495_v19 }
 0x47e   :  { %2351 = vmatpush.msrb.mxu2 %v6131_v62  ;;  %2371 = vmatpush.msrb.mxu3 %v6505_v36  ;;  %v6521_v62 = vld [vmem:[#allocation6 + $0x318] sm:$0xff] }
 0x47f   :  { %2312 = vmatpush.msra.mxu0 %v6135_v32  ;;  %2332 = vmatpush.msra.mxu1 %v6509_v20  ;;  %v6525_v32 = vld [vmem:[#allocation6 + $0x2f0] sm:$0xff] }
 0x480   :  { %2352 = vmatpush.msrb.mxu2 %v6139_v61  ;;  %2372 = vmatpush.msrb.mxu3 %v6513_v63  ;;  %v6529_v61 = vld [vmem:[#allocation6 + $0x2f8] sm:$0xff] }
 0x481   :  { %2313 = vmatpush.msra.mxu0 %v6143_v35  ;;  %2333 = vmatpush.msra.mxu1 %v6517_v41  ;;  %v6533_v35 = vld [vmem:[#allocation6 + $0x2d0] sm:$0xff] }
 0x482   :  { %2353 = vmatpush.msrb.mxu2 %v6147_v43  ;;  %2373 = vmatpush.msrb.mxu3 %v6521_v62  ;;  %v6537_v43 = vld [vmem:[#allocation6 + $0x2d8] sm:$0xff] }
 0x483   :  { %2314 = vmatpush.msra.mxu0 %v6151_v8  ;;  %2334 = vmatpush.msra.mxu1 %v6525_v32  ;;  %v6541_v8 = vld [vmem:[#allocation6 + $0x2b0] sm:$0xff] }
 0x484   :  { %2354 = vmatpush.msrb.mxu2 %v6155_v47  ;;  %2374 = vmatpush.msrb.mxu3 %v6529_v61  ;;  %v6545_v47 = vld [vmem:[#allocation6 + $0x2b8] sm:$0xff] }
 0x485   :  { %2315 = vmatpush.msra.mxu0 %v6159_v45  ;;  %2335 = vmatpush.msra.mxu1 %v6533_v35  ;;  %v6549_v45 = vld [vmem:[#allocation6 + $0x290] sm:$0xff] }
 0x486   :  { %2355 = vmatpush.msrb.mxu2 %v6163_v26  ;;  %2375 = vmatpush.msrb.mxu3 %v6537_v43  ;;  %8111 = vst [vmem:[#allocation51_spill] sm:$0xff] %v6549_v45  ;;  %v6553_v26 = vld [vmem:[#allocation6 + $0x298] sm:$0xff] }
 0x487   :  { %2316 = vmatpush.msra.mxu0 %v6167_v57  ;;  %2336 = vmatpush.msra.mxu1 %v6541_v8  ;;  %8112 = vst [vmem:[#allocation54_spill] sm:$0xff] %v6553_v26  ;;  %v6557_v57 = vld [vmem:[#allocation6 + $0x270] sm:$0xff] }
 0x488   :  { %2356 = vmatpush.msrb.mxu2 %v6171_v42  ;;  %2376 = vmatpush.msrb.mxu3 %v6545_v47  ;;  %8113 = vst [vmem:[#allocation55_spill] sm:$0xff] %v6557_v57  ;;  %v6561_v42 = vld [vmem:[#allocation6 + $0x278] sm:$0xff] }
 0x489   :  { %2317 = vmatpush.msra.mxu0 %v6175_v59  ;;  %2337 = vmatpush.msra.mxu1 %v6549_v45  ;;  %8114 = vst [vmem:[#allocation58_spill] sm:$0xff] %v6561_v42  ;;  %v6565_v59 = vld [vmem:[#allocation6 + $0x250] sm:$0xff] }
 0x48a   :  { %2357 = vmatpush.msrb.mxu2 %v6179_v22  ;;  %2377 = vmatpush.msrb.mxu3 %v6553_v26  ;;  %8115 = vst [vmem:[#allocation59_spill] sm:$0xff] %v6565_v59  ;;  %v6569_v22 = vld [vmem:[#allocation6 + $0x258] sm:$0xff] }
 0x48b   :  { %2318 = vmatpush.msra.mxu0 %v6183_v44  ;;  %2338 = vmatpush.msra.mxu1 %v6557_v57  ;;  %v6573_v44 = vld [vmem:[#allocation6 + $0x230] sm:$0xff] }
 0x48c   :  { %2358 = vmatpush.msrb.mxu2 %v6187_v24  ;;  %2378 = vmatpush.msrb.mxu3 %v6561_v42  ;;  %8116 = vst [vmem:[#allocation62_spill] sm:$0xff] %v6573_v44  ;;  %v6577_v24 = vld [vmem:[#allocation6 + $0x238] sm:$0xff] }
 0x48d   :  { %2319 = vmatpush.msra.mxu0 %v6191_v5  ;;  %2339 = vmatpush.msra.mxu1 %v6565_v59  ;;  %8117 = vst [vmem:[#allocation63_spill] sm:$0xff] %v6577_v24  ;;  %v6581_v5 = vld [vmem:[#allocation6 + $0x210] sm:$0xff] }
 0x48e   :  { %2359 = vmatpush.msrb.mxu2 %v6195_v40  ;;  %2379 = vmatpush.msrb.mxu3 %v6569_v22  ;;  %8118 = vst [vmem:[#allocation66_spill] sm:$0xff] %v6581_v5  ;;  %v6585_v40 = vld [vmem:[#allocation6 + $0x218] sm:$0xff] }
 0x48f   :  { %2320 = vmatpush.msra.mxu0 %v6199_v58  ;;  %2340 = vmatpush.msra.mxu1 %v6573_v44  ;;  %8119 = vst [vmem:[#allocation67_spill] sm:$0xff] %v6585_v40  ;;  %v3723_v58 = vld [vmem:[#allocation4 + $0x1e0] sm:$0xff] }
 0x490   :  { %2360 = vmatpush.msrb.mxu2 %v6203_v29  ;;  %2380 = vmatpush.msrb.mxu3 %v6577_v24  ;;  %v3724_v29 = vld [vmem:[#allocation4 + $0x1e8] sm:$0xff] }
 0x491   :  { %2321 = vmatpush.msra.mxu0 %v6207_v9  ;;  %2341 = vmatpush.msra.mxu1 %v6581_v5  ;;  %v3725_v9 = vld [vmem:[#allocation4 + $0x1f0] sm:$0xff] }
 0x492   :  { %2361 = vmatpush.msrb.mxu2 %v6211_v52  ;;  %2381 = vmatpush.msrb.mxu3 %v6585_v40  ;;  %v3727_v52 = vld [vmem:[#allocation4 + $0x1c0] sm:$0xff] }
 0x493   :  { %2322 = vmatmul.f32.vlgmr.msra.gmra.mxu0 %v6439_v11  ;;  %2342 = vmatmul.f32.vlgmr.msra.gmra.mxu1 %v6495_v19 }
 0x494   :  { %2362 = vmatmul.f32.vlgmr.msrb.gmra.mxu2 %v6439_v11  ;;  %2382 = vmatmul.f32.vlgmr.msrb.gmra.mxu3 %v6495_v19  ;;  %v3732_v11 = vld [vmem:[#allocation4 + $0x1a8] sm:$0xff]  ;;  %v3747_v19 = vld [vmem:[#allocation4 + $0x120] sm:$0xff] }
 0x495   :  { %2452 = vmatpush.msrb.mxu0 %v3723_v58  ;;  %2472 = vmatpush.msrb.mxu1 %v3724_v29  ;;  %v3748_v58 = vld [vmem:[#allocation4 + $0x128] sm:$0xff]  ;;  %v3749_v29 = vld [vmem:[#allocation4 + $0x130] sm:$0xff] }
 0x496   :  { %2492 = vmatpush.msra.mxu2 %v3725_v9  ;;  %2512 = vmatpush.msra.mxu3 %v3726_v13  ;;  %v3750_v9 = vld [vmem:[#allocation4 + $0x138] sm:$0xff]  ;;  %v3751_v13 = vld [vmem:[#allocation4 + $0x100] sm:$0xff] }
 0x497   :  { %2453 = vmatpush.msrb.mxu0 %v3727_v52  ;;  %2473 = vmatpush.msrb.mxu1 %v3728_v49  ;;  %v3752_v52 = vld [vmem:[#allocation4 + $0x108] sm:$0xff]  ;;  %v3753_v49 = vld [vmem:[#allocation4 + $0x110] sm:$0xff] }
 0x498   :  { %2493 = vmatpush.msra.mxu2 %v3729_v27  ;;  %2513 = vmatpush.msra.mxu3 %v3730_v51  ;;  %v3754_v27 = vld [vmem:[#allocation4 + $0x118] sm:$0xff]  ;;  %v3755_v51 = vld [vmem:[#allocation4 + $0xe0] sm:$0xff] }
 0x499   :  { %2454 = vmatpush.msrb.mxu0 %v3731_v23  ;;  %2474 = vmatpush.msrb.mxu1 %v3732_v11  ;;  %v3756_v23 = vld [vmem:[#allocation4 + $0xe8] sm:$0xff]  ;;  %v3757_v11 = vld [vmem:[#allocation4 + $0xf0] sm:$0xff] }
 0x49a   :  { %2494 = vmatpush.msra.mxu2 %v3733_v54  ;;  %2514 = vmatpush.msra.mxu3 %v3734_v25  ;;  %v3758_v54 = vld [vmem:[#allocation4 + $0xf8] sm:$0xff]  ;;  %v3759_v25 = vld [vmem:[#allocation4 + $0xc0] sm:$0xff] }
 0x49b   :  { %2455 = vmatpush.msrb.mxu0 %v3735_v0  ;;  %2475 = vmatpush.msrb.mxu1 %v3736_v28  ;;  %v3760_v0 = vld [vmem:[#allocation4 + $0xc8] sm:$0xff]  ;;  %v3761_v28 = vld [vmem:[#allocation4 + $0xd0] sm:$0xff] }
 0x49c   :  { %2495 = vmatpush.msra.mxu2 %v3737_v10  ;;  %2515 = vmatpush.msra.mxu3 %v3738_v18  ;;  %v3762_v10 = vld [vmem:[#allocation4 + $0xd8] sm:$0xff]  ;;  %v3763_v18 = vld [vmem:[#allocation4 + $0xa0] sm:$0xff] }
 0x49d   :  { %2456 = vmatpush.msrb.mxu0 %v3739_v48  ;;  %2476 = vmatpush.msrb.mxu1 %v3740_v39  ;;  %v3764_v48 = vld [vmem:[#allocation4 + $0xa8] sm:$0xff]  ;;  %v3765_v39 = vld [vmem:[#allocation4 + $0xb0] sm:$0xff] }
 0x49e   :  { %2496 = vmatpush.msra.mxu2 %v3741_v16  ;;  %2516 = vmatpush.msra.mxu3 %v3742_v21  ;;  %v3766_v16 = vld [vmem:[#allocation4 + $0xb8] sm:$0xff]  ;;  %v3767_v21 = vld [vmem:[#allocation4 + $0x80] sm:$0xff] }
 0x49f   :  { %2457 = vmatpush.msrb.mxu0 %v3743_v12  ;;  %2477 = vmatpush.msrb.mxu1 %v3744_v1  ;;  %v3768_v12 = vld [vmem:[#allocation4 + $0x88] sm:$0xff]  ;;  %v3769_v1 = vld [vmem:[#allocation4 + $0x90] sm:$0xff] }
 0x4a0   :  { %2497 = vmatpush.msra.mxu2 %v3745_v7  ;;  %2517 = vmatpush.msra.mxu3 %v3746_v6  ;;  %v3770_v7 = vld [vmem:[#allocation4 + $0x98] sm:$0xff]  ;;  %v3771_v6 = vld [vmem:[#allocation4 + $0x60] sm:$0xff] }
 0x4a1   :  { %2458 = vmatpush.msrb.mxu0 %v3747_v19  ;;  %2478 = vmatpush.msrb.mxu1 %v3748_v58  ;;  %v3772_v19 = vld [vmem:[#allocation4 + $0x68] sm:$0xff]  ;;  %v3773_v58 = vld [vmem:[#allocation4 + $0x70] sm:$0xff] }
 0x4a2   :  { %2498 = vmatpush.msra.mxu2 %v3749_v29  ;;  %2518 = vmatpush.msra.mxu3 %v3750_v9  ;;  %v3774_v29 = vld [vmem:[#allocation4 + $0x78] sm:$0xff]  ;;  %v3775_v9 = vld [vmem:[#allocation4 + $0x40] sm:$0xff] }
 0x4a3   :  { %2459 = vmatpush.msrb.mxu0 %v3751_v13  ;;  %2479 = vmatpush.msrb.mxu1 %v3752_v52  ;;  %v3776_v13 = vld [vmem:[#allocation4 + $0x48] sm:$0xff]  ;;  %v3777_v52 = vld [vmem:[#allocation4 + $0x50] sm:$0xff] }
 0x4a4   :  { %2499 = vmatpush.msra.mxu2 %v3753_v49  ;;  %2519 = vmatpush.msra.mxu3 %v3754_v27  ;;  %v3778_v49 = vld [vmem:[#allocation4 + $0x58] sm:$0xff]  ;;  %v3779_v27 = vld [vmem:[#allocation4 + $0x20] sm:$0xff] }
 0x4a5   :  { %2460 = vmatpush.msrb.mxu0 %v3755_v51  ;;  %2480 = vmatpush.msrb.mxu1 %v3756_v23  ;;  %v3780_v51 = vld [vmem:[#allocation4 + $0x28] sm:$0xff]  ;;  %v3781_v23 = vld [vmem:[#allocation4 + $0x30] sm:$0xff] }
 0x4a6   :  { %2500 = vmatpush.msra.mxu2 %v3757_v11  ;;  %2520 = vmatpush.msra.mxu3 %v3758_v54  ;;  %v3782_v11 = vld [vmem:[#allocation4 + $0x38] sm:$0xff]  ;;  %v3783_v54 = vld [vmem:[#allocation4] sm:$0xff] }
 0x4a7   :  { %2461 = vmatpush.msrb.mxu0 %v3759_v25  ;;  %2481 = vmatpush.msrb.mxu1 %v3760_v0  ;;  %v3784_v25 = vld [vmem:[#allocation4 + $0x8] sm:$0xff]  ;;  %v3785_v0 = vld [vmem:[#allocation4 + $0x10] sm:$0xff] }
 0x4a8   :  { %2501 = vmatpush.msra.mxu2 %v3761_v28  ;;  %2521 = vmatpush.msra.mxu3 %v3762_v10  ;;  %v3786_v28 = vld [vmem:[#allocation4 + $0x18] sm:$0xff]  ;;  %v6592_v10 = vld [vmem:[#allocation6 + $0x1e0] sm:$0xff] }
 0x4a9   :  { %2462 = vmatpush.msrb.mxu0 %v3763_v18  ;;  %2482 = vmatpush.msrb.mxu1 %v3764_v48  ;;  %v6596_v18 = vld [vmem:[#allocation6 + $0x1e8] sm:$0xff]  ;;  %v6600_v48 = vld [vmem:[#allocation6 + $0x1c0] sm:$0xff] }
 0x4aa   :  { %2502 = vmatpush.msra.mxu2 %v3765_v39  ;;  %2522 = vmatpush.msra.mxu3 %v3766_v16  ;;  %v6604_v39 = vld [vmem:[#allocation6 + $0x1c8] sm:$0xff]  ;;  %v8121_v16 = vld [vmem:[#allocation56_spill] sm:$0xff] }
 0x4ab   :  { %2463 = vmatpush.msrb.mxu0 %v3767_v21  ;;  %2483 = vmatpush.msrb.mxu1 %v3768_v12  ;;  %8120 = vst [vmem:[#allocation70_spill] sm:$0xff] %v6604_v39  ;;  %v6608_v21 = vld [vmem:[#allocation6 + $0x1a0] sm:$0xff]  ;;  %v6612_v12 = vld [vmem:[#allocation6 + $0x1a8] sm:$0xff] }
 0x4ac   :  { %2503 = vmatpush.msra.mxu2 %v3769_v1  ;;  %2523 = vmatpush.msra.mxu3 %v3770_v7  ;;  %8122 = vst [vmem:[#allocation71_spill] sm:$0xff] %v6608_v21  ;;  %v6616_v1 = vld [vmem:[#allocation6 + $0x180] sm:$0xff]  ;;  %v6620_v7 = vld [vmem:[#allocation6 + $0x188] sm:$0xff] }
 0x4ad   :  { %2464 = vmatpush.msrb.mxu0 %v3771_v6  ;;  %2484 = vmatpush.msrb.mxu1 %v3772_v19  ;;  %8124 = vst [vmem:[#allocation74_spill] sm:$0xff] %v6612_v12  ;;  %v8129_v6 = vld [vmem:[#allocation64_spill] sm:$0xff]  ;;  %v6624_v19 = vld [vmem:[#allocation6 + $0x160] sm:$0xff] }
 0x4ae   :  { %2504 = vmatpush.msra.mxu2 %v3773_v58  ;;  %2524 = vmatpush.msra.mxu3 %v3774_v29  ;;  %8126 = vst [vmem:[#allocation75_spill] sm:$0xff] %v6616_v1  ;;  %v8131_v58 = vld [vmem:[#allocation65_spill] sm:$0xff]  ;;  %v6628_v29 = vld [vmem:[#allocation6 + $0x168] sm:$0xff] }
 0x4af   :  { %2465 = vmatpush.msrb.mxu0 %v3775_v9  ;;  %2485 = vmatpush.msrb.mxu1 %v3776_v13  ;;  %8128 = vst [vmem:[#allocation78_spill] sm:$0xff] %v6620_v7  ;;  %v8133_v9 = vld [vmem:[#allocation68_spill] sm:$0xff]  ;;  %v6632_v13 = vld [vmem:[#allocation6 + $0x140] sm:$0xff] }
 0x4b0   :  { %2505 = vmatpush.msra.mxu2 %v3777_v52  ;;  %2525 = vmatpush.msra.mxu3 %v3778_v49  ;;  %8130 = vst [vmem:[#allocation79_spill] sm:$0xff] %v6624_v19  ;;  %v8135_v52 = vld [vmem:[#allocation69_spill] sm:$0xff]  ;;  %v6636_v49 = vld [vmem:[#allocation6 + $0x148] sm:$0xff] }
 0x4b1   :  { %2466 = vmatpush.msrb.mxu0 %v3779_v27  ;;  %2486 = vmatpush.msrb.mxu1 %v3780_v51  ;;  %8132 = vst [vmem:[#allocation82_spill] sm:$0xff] %v6628_v29  ;;  %v8137_v27 = vld [vmem:[#allocation72_spill] sm:$0xff]  ;;  %v6640_v51 = vld [vmem:[#allocation6 + $0x120] sm:$0xff] }
 0x4b2   :  { %2506 = vmatpush.msra.mxu2 %v3781_v23  ;;  %2526 = vmatpush.msra.mxu3 %v3782_v11  ;;  %8134 = vst [vmem:[#allocation83_spill] sm:$0xff] %v6632_v13  ;;  %v8139_v23 = vld [vmem:[#allocation73_spill] sm:$0xff]  ;;  %v6644_v11 = vld [vmem:[#allocation6 + $0x128] sm:$0xff] }
 0x4b3   :  { %2467 = vmatpush.msrb.mxu0 %v3783_v54  ;;  %2487 = vmatpush.msrb.mxu1 %v3784_v25  ;;  %8136 = vst [vmem:[#allocation86_spill] sm:$0xff] %v6636_v49  ;;  %v8141_v54 = vld [vmem:[#allocation76_spill] sm:$0xff]  ;;  %v6648_v25 = vld [vmem:[#allocation6 + $0x100] sm:$0xff] }
 0x4b4   :  { %2507 = vmatpush.msra.mxu2 %v3785_v0  ;;  %2527 = vmatpush.msra.mxu3 %v3786_v28  ;;  %8138 = vst [vmem:[#allocation87_spill] sm:$0xff] %v6640_v51  ;;  %v8143_v0 = vld [vmem:[#allocation77_spill] sm:$0xff]  ;;  %v6652_v28 = vld [vmem:[#allocation6 + $0x108] sm:$0xff] }
 0x4b5   :  { %2577 = vmatpush.msra.mxu0 %v6592_v10  ;;  %2597 = vmatpush.msra.mxu1 %v6284_v2  ;;  %v8123_v2 = vld [vmem:[#allocation57_spill] sm:$0xff]  ;;  %8140 = vst [vmem:[#allocation90_spill] sm:$0xff] %v6644_v11 }
 0x4b6   :  { %2617 = vmatpush.msrb.mxu2 %v6596_v18  ;;  %2637 = vmatpush.msrb.mxu3 %v6288_v38  ;;  %v8125_v38 = vld [vmem:[#allocation60_spill] sm:$0xff]  ;;  %8142 = vst [vmem:[#allocation91_spill] sm:$0xff] %v6648_v25 }
 0x4b7   :  { %2578 = vmatpush.msra.mxu0 %v6600_v48  ;;  %2598 = vmatpush.msra.mxu1 %v6292_v56  ;;  %v8127_v56 = vld [vmem:[#allocation61_spill] sm:$0xff]  ;;  %8144 = vst [vmem:[#allocation92_spill] sm:$0xff] %v6652_v28 }
 0x4b8   :  { %2618 = vmatpush.msrb.mxu2 %v6604_v39  ;;  %2638 = vmatpush.msrb.mxu3 %v8121_v16  ;;  %v8145_v16 = vld [vmem:[#allocation80_spill] sm:$0xff] }
 0x4b9   :  { %2579 = vmatpush.msra.mxu0 %v6608_v21  ;;  %2599 = vmatpush.msra.mxu1 %v8123_v2  ;;  %v6656_v2 = vld [vmem:[#allocation6 + $0xe0] sm:$0xff] }
 0x4ba   :  { %2619 = vmatpush.msrb.mxu2 %v6612_v12  ;;  %2639 = vmatpush.msrb.mxu3 %v8125_v38  ;;  %8146 = vst [vmem:[#allocation93_spill] sm:$0xff] %v6656_v2  ;;  %v8147_v38 = vld [vmem:[#allocation81_spill] sm:$0xff] }
 0x4bb   :  { %2580 = vmatpush.msra.mxu0 %v6616_v1  ;;  %2600 = vmatpush.msra.mxu1 %v8127_v56  ;;  %v6660_v56 = vld [vmem:[#allocation6 + $0xe8] sm:$0xff] }
 0x4bc   :  { %2620 = vmatpush.msrb.mxu2 %v6620_v7  ;;  %2640 = vmatpush.msrb.mxu3 %v8129_v6  ;;  %8148 = vst [vmem:[#allocation94_spill] sm:$0xff] %v6660_v56  ;;  %v8149_v6 = vld [vmem:[#allocation84_spill] sm:$0xff] }
 0x4bd   :  { %2581 = vmatpush.msra.mxu0 %v6624_v19  ;;  %2601 = vmatpush.msra.mxu1 %v8131_v58  ;;  %v6664_v58 = vld [vmem:[#allocation6 + $0xc0] sm:$0xff]  ;;  %v8179_v19 = vld [vmem:[#allocation11_spill] sm:$0xff] }
 0x4be   :  { %2621 = vmatpush.msrb.mxu2 %v6628_v29  ;;  %2641 = vmatpush.msrb.mxu3 %v8133_v9  ;;  %8150 = vst [vmem:[#allocation95_spill] sm:$0xff] %v6664_v58  ;;  %v8151_v9 = vld [vmem:[#allocation85_spill] sm:$0xff] }
 0x4bf   :  { %2582 = vmatpush.msra.mxu0 %v6632_v13  ;;  %2602 = vmatpush.msra.mxu1 %v8135_v52  ;;  %v6668_v52 = vld [vmem:[#allocation6 + $0xc8] sm:$0xff] }
 0x4c0   :  { %2622 = vmatpush.msrb.mxu2 %v6636_v49  ;;  %2642 = vmatpush.msrb.mxu3 %v8137_v27  ;;  %8152 = vst [vmem:[#allocation96_spill] sm:$0xff] %v6668_v52  ;;  %v8153_v27 = vld [vmem:[#allocation88_spill] sm:$0xff] }
 0x4c1   :  { %2583 = vmatpush.msra.mxu0 %v6640_v51  ;;  %2603 = vmatpush.msra.mxu1 %v8139_v23  ;;  %v6672_v23 = vld [vmem:[#allocation6 + $0xa0] sm:$0xff] }
 0x4c2   :  { %2623 = vmatpush.msrb.mxu2 %v6644_v11  ;;  %2643 = vmatpush.msrb.mxu3 %v8141_v54  ;;  %8154 = vst [vmem:[#allocation97_spill] sm:$0xff] %v6672_v23  ;;  %v8155_v54 = vld [vmem:[#allocation89_spill] sm:$0xff]  ;;  %v8178_v11 = vld [vmem:[#allocation10_spill] sm:$0xff] }
 0x4c3   :  { %2584 = vmatpush.msra.mxu0 %v6648_v25  ;;  %2604 = vmatpush.msra.mxu1 %v8143_v0  ;;  %v6676_v0 = vld [vmem:[#allocation6 + $0xa8] sm:$0xff] }
 0x4c4   :  { %2624 = vmatpush.msrb.mxu2 %v6652_v28  ;;  %2644 = vmatpush.msrb.mxu3 %v8145_v16  ;;  %8156 = vst [vmem:[#allocation98_spill] sm:$0xff] %v6676_v0  ;;  %v8157_v16 = vld [vmem:[#allocation30_spill] sm:$0xff] }
 0x4c5   :  { %2585 = vmatpush.msra.mxu0 %v6656_v2  ;;  %2605 = vmatpush.msra.mxu1 %v8147_v38  ;;  %v6680_v38 = vld [vmem:[#allocation6 + $0x80] sm:$0xff] }
 0x4c6   :  { %2625 = vmatpush.msrb.mxu2 %v6660_v56  ;;  %2645 = vmatpush.msrb.mxu3 %v8149_v6  ;;  %8158 = vst [vmem:[#allocation99_spill] sm:$0xff] %v6680_v38  ;;  %v8159_v6 = vld [vmem:[#allocation31_spill] sm:$0xff] }
 0x4c7   :  { %2586 = vmatpush.msra.mxu0 %v6664_v58  ;;  %2606 = vmatpush.msra.mxu1 %v8151_v9  ;;  %v6684_v9 = vld [vmem:[#allocation6 + $0x88] sm:$0xff] }
 0x4c8   :  { %2626 = vmatpush.msrb.mxu2 %v6668_v52  ;;  %2646 = vmatpush.msrb.mxu3 %v8153_v27  ;;  %8160 = vst [vmem:[#allocation100_spill] sm:$0xff] %v6684_v9  ;;  %v8161_v27 = vld [vmem:[#allocation34_spill] sm:$0xff] }
 0x4c9   :  { %2587 = vmatpush.msra.mxu0 %v6672_v23  ;;  %2607 = vmatpush.msra.mxu1 %v8155_v54  ;;  %v6688_v23 = vld [vmem:[#allocation6 + $0x60] sm:$0xff]  ;;  %v8163_v54 = vld [vmem:[#allocation35_spill] sm:$0xff] }
 0x4ca   :  { %2627 = vmatpush.msrb.mxu2 %v6676_v0  ;;  %2647 = vmatpush.msrb.mxu3 %v8157_v16  ;;  %8162 = vst [vmem:[#allocation101_spill] sm:$0xff] %v6688_v23  ;;  %v6692_v0 = vld [vmem:[#allocation6 + $0x68] sm:$0xff]  ;;  %v8165_v16 = vld [vmem:[#allocation38_spill] sm:$0xff] }
 0x4cb   :  { %2588 = vmatpush.msra.mxu0 %v6680_v38  ;;  %2608 = vmatpush.msra.mxu1 %v8159_v6  ;;  %8164 = vst [vmem:[#allocation102_spill] sm:$0xff] %v6692_v0  ;;  %v6696_v38 = vld [vmem:[#allocation6 + $0x40] sm:$0xff]  ;;  %v8167_v6 = vld [vmem:[#allocation39_spill] sm:$0xff] }
 0x4cc   :  { %2628 = vmatpush.msrb.mxu2 %v6684_v9  ;;  %2648 = vmatpush.msrb.mxu3 %v8161_v27  ;;  %8166 = vst [vmem:[#allocation103_spill] sm:$0xff] %v6696_v38  ;;  %v6700_v9 = vld [vmem:[#allocation6 + $0x48] sm:$0xff]  ;;  %v8169_v27 = vld [vmem:[#allocation42_spill] sm:$0xff] }
 0x4cd   :  { %2589 = vmatpush.msra.mxu0 %v6688_v23  ;;  %2609 = vmatpush.msra.mxu1 %v8163_v54  ;;  %8168 = vst [vmem:[#allocation104_spill] sm:$0xff] %v6700_v9  ;;  %v6704_v23 = vld [vmem:[#allocation6 + $0x20] sm:$0xff]  ;;  %v8171_v54 = vld [vmem:[#allocation43_spill] sm:$0xff] }
 0x4ce   :  { %2629 = vmatpush.msrb.mxu2 %v6692_v0  ;;  %2649 = vmatpush.msrb.mxu3 %v8165_v16  ;;  %8170 = vst [vmem:[#allocation105_spill] sm:$0xff] %v6704_v23  ;;  %v6708_v0 = vld [vmem:[#allocation6 + $0x28] sm:$0xff]  ;;  %v8173_v16 = vld [vmem:[#allocation46_spill] sm:$0xff] }
 0x4cf   :  { %2590 = vmatpush.msra.mxu0 %v6696_v38  ;;  %2610 = vmatpush.msra.mxu1 %v8167_v6  ;;  %8172 = vst [vmem:[#allocation106_spill] sm:$0xff] %v6708_v0  ;;  %v6712_v38 = vld [vmem:[#allocation6] sm:$0xff]  ;;  %v8175_v6 = vld [vmem:[#allocation47_spill] sm:$0xff] }
 0x4d0   :  { %2630 = vmatpush.msrb.mxu2 %v6700_v9  ;;  %2650 = vmatpush.msrb.mxu3 %v8169_v27  ;;  %8174 = vst [vmem:[#allocation107_spill] sm:$0xff] %v6712_v38  ;;  %v6716_v9 = vld [vmem:[#allocation6 + $0x8] sm:$0xff]  ;;  %v8177_v27 = vld [vmem:[#allocation50_spill] sm:$0xff] }
 0x4d1   :  { %2591 = vmatpush.msra.mxu0 %v6704_v23  ;;  %2611 = vmatpush.msra.mxu1 %v8171_v54  ;;  %8176 = vst [vmem:[#allocation14_spill] sm:$0xff] %v6716_v9  ;;  %v2100_v25 = vld [vmem:[#allocation2 + $0x6] ss:$8 sm:$0xf] }
 0x4d2   :  { %2631 = vmatpush.msrb.mxu2 %v6708_v0  ;;  %2651 = vmatpush.msrb.mxu3 %v8173_v16 }
 0x4d3   :  { %2592 = vmatpush.msra.mxu0 %v6712_v38  ;;  %2612 = vmatpush.msra.mxu1 %v8175_v6 }
 0x4d4   :  { %2632 = vmatpush.msrb.mxu2 %v6716_v9  ;;  %2652 = vmatpush.msrb.mxu3 %v8177_v27 }
 0x4ec   :  { %v2118_v23 = vpop.f32.mrf.mxu0  ;;  %v2138_v54 = vpop.f32.mrf.mxu1 }
 0x4ed   :  { %v2185_v52 = vrot.slane %v2138_v54, 7 }
 0x4ef   :  { %v2188_v16 = vsel %vm501_vm6, %v2118_v23, %v2185_v52 }
 0x4f3   :  { %v2158_v58 = vpop.f32.mrf.mxu2  ;;  %v2178_v56 = vpop.f32.mrf.mxu3 }
 0x4f4   :  { %v2186_v0 = vrot.slane %v2158_v58, 6  ;;  %v2187_v2 = vrot.slane %v2178_v56, 5 }
 0x4f6   :  { %v2189_v28 = vsel %vm503_vm7, %v2186_v0, %v2187_v2  ;;  %v2243_v38 = vpop.f32.mrf.mxu0 }
 0x4f7   :  { %v2190_v6 = vsel %vm505_vm8, %v2188_v16, %v2189_v28  ;;  %v2244_v51 = vadd.f32 %v2243_v38, %v8178_v11 }
 0x4f8   :  { %v2192_v9 = vadd.f32 %v2190_v6, %v2100_v25 }
 0x4fa   :  { %v3127_v49 = vmul.f32 -1.442695, %v2192_v9  ;;  %v2263_v27 = vpop.f32.mrf.mxu1  ;;  %v2213_v38 = vrot.slane %v2192_v9, 3 }
 0x4fb   :  { %v2264_v13 = vadd.f32 %v2263_v27, %v2244_v51 }
 0x4fc   :  { %3271 = vpow2.f32 %v3127_v49  ;;  %v2283_v54 = vpop.f32.mrf.mxu2 }
 0x4fd   :  { %v3128_v29 = vmul.f32 -1.442695, %v2264_v13  ;;  %v2284_v58 = vadd.f32 %v2283_v54, %v8179_v19 }
 0x4ff   :  { %3273 = vpow2.f32 %v3128_v29 }
 0x500   :  { %v2303_v56 = vpop.f32.mrf.mxu3 }
 0x501   :  { %v2304_v52 = vadd.f32 %v2303_v56, %v2284_v58 }
 0x502   :  { %v3272_v23 = vpop.eup %3271 }
 0x503   :  { %v2196_v2 = vadd.f32 1.0, %v3272_v23  ;;  %v3129_v0 = vmul.f32 -1.442695, %v2304_v52 }
 0x505   :  { %v3274_v7 = vpop.eup %3273  ;;  %3275 = vrcp.f32 %v2196_v2  ;;  %v2208_v6 = vand.u32 2147483648, %v2196_v2  ;;  %vm2202_vm12 = vweird.f32 %v2196_v2 }
 0x506   :  { %v6725_v28 = vadd.f32 1.0, %v3274_v7  ;;  %3277 = vpow2.f32 %v3129_v0  ;;  %v2206_v7 = vand.u32 2147483647, %v2196_v2 }
 0x507   :  { %v2209_v9 = vor.u32 1.1754944e-38, %v2208_v6 }
 0x508   :  { %3279 = vrcp.f32 %v6725_v28  ;;  %vm2207_vm14 = vcmp.eq.f32.partialorder %v2206_v7, 8.507059e+37  ;;  %vm2403_vm3 = vweird.f32 %v6725_v28 }
 0x50b   :  { %v3276_v25 = vpop.eup %3275 }
 0x50c   :  { %v3278_v51 = vpop.eup %3277  ;;  %v2198_v49 = vmul.f32 %v3276_v25, %v2196_v2  ;;  %vm2203_vm11 = vweird.f32 %v3276_v25 }
 0x50d   :  { %v2396_v13 = vadd.f32 1.0, %v3278_v51  ;;  %vm2204_vm13 = vmor %vm2202_vm12, %vm2203_vm11 }
 0x50e   :  { %v6728_v16 = vpop.eup %3279  ;;  %v2199_v29 = vsub.f32 1.0, %v2198_v49 }
 0x50f   :  { %v2399_v27 = vmul.f32 %v6728_v16, %v6725_v28  ;;  %3281 = vrcp.f32 %v2396_v13  ;;  %vm2418_vm0 = vweird.f32 %v2396_v13  ;;  %vm2404_vm1 = vweird.f32 %v6728_v16 }
 0x510   :  { %v2200_v54 = vmul.f32 %v3276_v25, %v2199_v29  ;;  %v2323_v58 = vpop.f32.mrf.mxu0  ;;  %3283 = vtanh.f32 %v2213_v38  ;;  %v2343_v23 = vpop.f32.mrf.mxu1  ;;  %vm2405_vm4 = vmor %vm2403_vm3, %vm2404_vm1 }
 0x511   :  { %v2324_v56 = vadd.f32 %v2323_v58, %v7862_v55  ;;  %v2400_v0 = vsub.f32 1.0, %v2399_v27  ;;  %v6873_v55 = vld [vmem:[#allocation6 + $0x50] sm:$0xff] }
 0x512   :  { %v2201_v52 = vadd.f32 %v3276_v25, %v2200_v54 }
 0x513   :  { %v2344_v51 = vadd.f32 %v2343_v23, %v2324_v56  ;;  %v2401_v38 = vmul.f32 %v6728_v16, %v2400_v0 }
 0x514   :  { %v2205_v49 = vsel %vm2204_vm13, %v3276_v25, %v2201_v52  ;;  %v2424_v52 = vand.u32 2147483648, %v2396_v13 }
 0x515   :  { %v3282_v19 = vpop.eup %3281  ;;  %v2210_v11 = vsel %vm2207_vm14, %v2209_v9, %v2205_v49  ;;  %v3130_v1 = vmul.f32 -1.442695, %v2344_v51  ;;  %v2407_v9 = vand.u32 2147483647, %v6725_v28 }
 0x516   :  { %v2217_v12 = vrot.slane %v2210_v11, 1  ;;  %v2414_v29 = vmul.f32 %v3282_v19, %v2396_v13  ;;  %v3284_v21 = vpop.eup %3283  ;;  %vm2419_vm15 = vweird.f32 %v3282_v19  ;;  %v2425_v51 = vor.u32 1.1754944e-38, %v2424_v52  ;;  %v6766_v52 = vld [vmem:[#allocation6 + $0x1d0] sm:$0xff] }
 0x517   :  { %3285 = vpow2.f32 %v3130_v1  ;;  %v2363_v39 = vpop.f32.mrf.mxu2  ;;  %v2220_v2 = vmul.f32 %v3284_v21, %v2210_v11  ;;  %v2383_v27 = vpop.f32.mrf.mxu3  ;;  %v2402_v1 = vadd.f32 %v6728_v16, %v2401_v38  ;;  %vm2420_vm2 = vmor %vm2418_vm0, %vm2419_vm15  ;;  %vm2408_vm9 = vcmp.eq.f32.partialorder %v2407_v9, 8.507059e+37  ;;  %v6781_v9 = vld [vmem:[#allocation6 + $0x1b8] sm:$0xff] }
 0x518   :  { %v2219_v54 = vmul.f32 %v2217_v12, %v6427_v3  ;;  %v2415_v58 = vsub.f32 1.0, %v2414_v29  ;;  %v2364_v6 = vadd.f32 %v2363_v39, %v7737_v60  ;;  %v2422_v3 = vand.u32 2147483647, %v2396_v13  ;;  %v6869_v60 = vld [vmem:[#allocation6 + $0x78] sm:$0xff] }
 0x519   :  { %v2409_v39 = vand.u32 2147483648, %v6725_v28  ;;  %v2406_v49 = vsel %vm2405_vm4, %v6728_v16, %v2402_v1  ;;  %v2223_v13 = vrot.slane %v2210_v11, 2  ;;  %v6758_v16 = vld [vmem:[#allocation6 + $0x1f0] sm:$0xff] }
 0x51a   :  { %v6736_v56 = vadd.f32 %v2220_v2, %v2219_v54  ;;  %v2416_v25 = vmul.f32 %v3282_v19, %v2415_v58  ;;  %v2384_v7 = vadd.f32 %v2383_v27, %v2364_v6  ;;  %vm2423_vm5 = vcmp.eq.f32.partialorder %v2422_v3, 8.507059e+37 }
 0x51b   :  { %v2410_v29 = vor.u32 1.1754944e-38, %v2409_v39 }
 0x51c   :  { %8180 = vst [vmem:[#allocation15_spill] sm:$0xff] %v6736_v56  ;;  %3287 = vtanh.f32 %v6736_v56  ;;  %v2417_v23 = vadd.f32 %v3282_v19, %v2416_v25  ;;  %v6865_v56 = vld [vmem:[#allocation6 + $0x70] sm:$0xff] }
 0x51d   :  { %v3286_v21 = vpop.eup %3285  ;;  %3289 = vtanh.f32 %v2384_v7  ;;  %v2411_v6 = vsel %vm2408_vm9, %v2410_v29, %v2406_v49 }
 0x51e   :  { %v6742_v12 = vadd.f32 1.0, %v3286_v21  ;;  %v2421_v0 = vsel %vm2420_vm2, %v3282_v19, %v2417_v23  ;;  %v6772_v23 = vld [vmem:[#allocation6 + $0x1d8] sm:$0xff]  ;;  %v6776_v21 = vld [vmem:[#allocation6 + $0x1b0] sm:$0xff] }
 0x51f   :  { %v2426_v38 = vsel %vm2423_vm5, %v2425_v51, %v2421_v0  ;;  %v6786_v0 = vld [vmem:[#allocation6 + $0x190] sm:$0xff] }
 0x520   :  { %3291 = vrcp.f32 %v6742_v12  ;;  %v2444_v27 = vmul.f32 %v2426_v38, %v6444_v53  ;;  %v6762_v53 = vld [vmem:[#allocation6 + $0x1f8] sm:$0xff]  ;;  %v2439_v1 = vand.u32 2147483648, %v6742_v12  ;;  %v2437_v39 = vand.u32 2147483647, %v6742_v12  ;;  %v6796_v38 = vld [vmem:[#allocation6 + $0x170] sm:$0xff] }
 0x521   :  { %vm2433_vm11 = vweird.f32 %v6742_v12 }
 0x522   :  { %v3288_v54 = vpop.eup %3287  ;;  %v2440_v49 = vor.u32 1.1754944e-38, %v2439_v1  ;;  %vm2438_vm13 = vcmp.eq.f32.partialorder %v2437_v39, 8.507059e+37  ;;  %v6829_v1 = vld [vmem:[#allocation6 + $0x118] sm:$0xff] }
 0x523   :  { %v3290_v2 = vpop.eup %3289  ;;  %v6748_v58 = vmul.f32 %v3288_v54, %v2223_v13  ;;  %v6790_v13 = vld [vmem:[#allocation6 + $0x198] sm:$0xff] }
 0x524   :  { %v2445_v28 = vmul.f32 %v3290_v2, %v2411_v6  ;;  %v6800_v2 = vld [vmem:[#allocation6 + $0x178] sm:$0xff] }
 0x525   :  { %2468 = vmatmul.f32.vlgmr.msrb.gmra.mxu0 %v6748_v58  ;;  %2488 = vmatmul.f32.vlgmr.msrb.gmra.mxu1 %v6748_v58  ;;  %v6837_v39 = vld [vmem:[#allocation6 + $0xf8] sm:$0xff] }
 0x526   :  { %v3292_v19 = vpop.eup %3291  ;;  %v6753_v25 = vadd.f32 %v2445_v28, %v2444_v27  ;;  %2508 = vmatmul.f32.vlgmr.msra.gmra.mxu2 %v6748_v58  ;;  %2528 = vmatmul.f32.vlgmr.msra.gmra.mxu3 %v6748_v58  ;;  %v6806_v27 = vld [vmem:[#allocation6 + $0x150] sm:$0xff]  ;;  %v6813_v28 = vld [vmem:[#allocation6 + $0x158] sm:$0xff] }
 0x527   :  { %v2429_v11 = vmul.f32 %v3292_v19, %v6742_v12  ;;  %2657 = vmatpush.msrb.mxu0 %v6758_v16  ;;  %2677 = vmatpush.msrb.mxu1 %v6450_v34  ;;  %vm2434_vm10 = vweird.f32 %v3292_v19 }
 0x528   :  { %8181 = vst [vmem:[#allocation16_spill] sm:$0xff] %v6753_v25  ;;  %2697 = vmatpush.msra.mxu2 %v6762_v53  ;;  %2717 = vmatpush.msra.mxu3 %v6454_v46  ;;  %3293 = vtanh.f32 %v6753_v25  ;;  %vm2435_vm12 = vmor %vm2433_vm11, %vm2434_vm10  ;;  %v6861_v25 = vld [vmem:[#allocation6 + $0x98] sm:$0xff] }
 0x529   :  { %v2430_v7 = vsub.f32 1.0, %v2429_v11  ;;  %2658 = vmatpush.msrb.mxu0 %v6766_v52  ;;  %2678 = vmatpush.msrb.mxu1 %v6458_v50  ;;  %v6821_v11 = vld [vmem:[#allocation6 + $0x138] sm:$0xff] }
 0x52a   :  { %2698 = vmatpush.msra.mxu2 %v6772_v23  ;;  %2718 = vmatpush.msra.mxu3 %v6464_v17 }
 0x52b   :  { %v2431_v3 = vmul.f32 %v3292_v19, %v2430_v7  ;;  %2659 = vmatpush.msrb.mxu0 %v6776_v21  ;;  %2679 = vmatpush.msrb.mxu1 %v6468_v15  ;;  %v6825_v7 = vld [vmem:[#allocation6 + $0x110] sm:$0xff] }
 0x52c   :  { %2699 = vmatpush.msra.mxu2 %v6781_v9  ;;  %2719 = vmatpush.msra.mxu3 %v6473_v14 }
 0x52d   :  { %2660 = vmatpush.msrb.mxu0 %v6786_v0  ;;  %2680 = vmatpush.msrb.mxu1 %v6478_v31  ;;  %v2432_v51 = vadd.f32 %v3292_v19, %v2431_v3  ;;  %v6833_v3 = vld [vmem:[#allocation6 + $0xf0] sm:$0xff] }
 0x52e   :  { %2700 = vmatpush.msra.mxu2 %v6790_v13  ;;  %2720 = vmatpush.msra.mxu3 %v6482_v37  ;;  %v3294_v29 = vpop.eup %3293 }
 0x52f   :  { %2593 = vmatmul.f32.vlgmr.msra.gmra.mxu0 %v6748_v58  ;;  %2633 = vmatmul.f32.vlgmr.msrb.gmra.mxu2 %v6748_v58  ;;  %v2436_v12 = vsel %vm2435_vm12, %v3292_v19, %v2432_v51  ;;  %v6817_v19 = vld [vmem:[#allocation6 + $0x130] sm:$0xff] }
 0x530   :  { %2661 = vmatpush.msrb.mxu0 %v6796_v38  ;;  %2681 = vmatpush.msrb.mxu1 %v6488_v33  ;;  %v2441_v54 = vsel %vm2438_vm13, %v2440_v49, %v2436_v12  ;;  %v6841_v51 = vld [vmem:[#allocation6 + $0xd0] sm:$0xff]  ;;  %v6845_v49 = vld [vmem:[#allocation6 + $0xd8] sm:$0xff] }
 0x531   :  { %2701 = vmatpush.msra.mxu2 %v6800_v2  ;;  %2721 = vmatpush.msra.mxu3 %v6492_v4  ;;  %v6804_v6 = vmul.f32 %v3294_v29, %v2441_v54  ;;  %v6849_v12 = vld [vmem:[#allocation6 + $0xb0] sm:$0xff]  ;;  %v6853_v29 = vld [vmem:[#allocation6 + $0xb8] sm:$0xff] }
 0x532   :  { %2662 = vmatpush.msrb.mxu0 %v6806_v27  ;;  %2682 = vmatpush.msrb.mxu1 %v6498_v30  ;;  %v6857_v54 = vld [vmem:[#allocation6 + $0x90] sm:$0xff] }
 0x533   :  { %2449 = vst [vmem:[#allocation3 + $0x5] sm:$0x1] %v6804_v6  ;;  %2613 = vmatmul.f32.vlgmr.msra.gmra.mxu1 %v6804_v6  ;;  %2653 = vmatmul.f32.vlgmr.msrb.gmra.mxu3 %v6804_v6 }
 0x534   :  { %2702 = vmatpush.msra.mxu2 %v6813_v28  ;;  %2722 = vmatpush.msra.mxu3 %v6505_v36 }
 0x535   :  { %2663 = vmatpush.msrb.mxu0 %v6817_v19  ;;  %2683 = vmatpush.msrb.mxu1 %v6509_v20 }
 0x536   :  { %2703 = vmatpush.msra.mxu2 %v6821_v11  ;;  %2723 = vmatpush.msra.mxu3 %v6513_v63 }
 0x537   :  { %2664 = vmatpush.msrb.mxu0 %v6825_v7  ;;  %2684 = vmatpush.msrb.mxu1 %v6517_v41 }
 0x538   :  { %2704 = vmatpush.msra.mxu2 %v6829_v1  ;;  %2724 = vmatpush.msra.mxu3 %v6521_v62 }
 0x539   :  { %2665 = vmatpush.msrb.mxu0 %v6833_v3  ;;  %2685 = vmatpush.msrb.mxu1 %v6525_v32 }
 0x53a   :  { %2705 = vmatpush.msra.mxu2 %v6837_v39  ;;  %2725 = vmatpush.msra.mxu3 %v6529_v61 }
 0x53b   :  { %2666 = vmatpush.msrb.mxu0 %v6841_v51  ;;  %2686 = vmatpush.msrb.mxu1 %v6533_v35 }
 0x53c   :  { %2706 = vmatpush.msra.mxu2 %v6845_v49  ;;  %2726 = vmatpush.msra.mxu3 %v6537_v43 }
 0x53d   :  { %2667 = vmatpush.msrb.mxu0 %v6849_v12  ;;  %2687 = vmatpush.msrb.mxu1 %v6541_v8 }
 0x53e   :  { %2707 = vmatpush.msra.mxu2 %v6853_v29  ;;  %2727 = vmatpush.msra.mxu3 %v6545_v47 }
 0x53f   :  { %2668 = vmatpush.msrb.mxu0 %v6857_v54  ;;  %2688 = vmatpush.msrb.mxu1 %v6549_v45  ;;  %v6877_v45 = vld [vmem:[#allocation6 + $0x58] sm:$0xff] }
 0x540   :  { %2708 = vmatpush.msra.mxu2 %v6861_v25  ;;  %2728 = vmatpush.msra.mxu3 %v6553_v26  ;;  %v6881_v26 = vld [vmem:[#allocation6 + $0x30] sm:$0xff] }
 0x541   :  { %2669 = vmatpush.msrb.mxu0 %v6865_v56  ;;  %2689 = vmatpush.msrb.mxu1 %v6557_v57  ;;  %v6885_v57 = vld [vmem:[#allocation6 + $0x38] sm:$0xff] }
 0x542   :  { %2709 = vmatpush.msra.mxu2 %v6869_v60  ;;  %2729 = vmatpush.msra.mxu3 %v6561_v42  ;;  %v6889_v42 = vld [vmem:[#allocation6 + $0x10] sm:$0xff] }
 0x543   :  { %2670 = vmatpush.msrb.mxu0 %v6873_v55  ;;  %2690 = vmatpush.msrb.mxu1 %v6565_v59  ;;  %8182 = vst [vmem:[#allocation17_spill] sm:$0xff] %v6889_v42  ;;  %v6893_v59 = vld [vmem:[#allocation6 + $0x18] sm:$0xff] }
 0x544   :  { %2710 = vmatpush.msra.mxu2 %v6877_v45  ;;  %2730 = vmatpush.msra.mxu3 %v6569_v22  ;;  %8183 = vst [vmem:[#allocation18_spill] sm:$0xff] %v6893_v59 }
 0x545   :  { %2671 = vmatpush.msrb.mxu0 %v6881_v26  ;;  %2691 = vmatpush.msrb.mxu1 %v6573_v44  ;;  %v8184_v44 = vld [vmem:[#allocation70_spill] sm:$0xff] }
 0x546   :  { %2711 = vmatpush.msra.mxu2 %v6885_v57  ;;  %2731 = vmatpush.msra.mxu3 %v6577_v24  ;;  %v3851_v24 = vld [vmem:[#allocation6 + $0x3e0] sm:$0xff] }
 0x547   :  { %2672 = vmatpush.msrb.mxu0 %v6889_v42  ;;  %2692 = vmatpush.msrb.mxu1 %v6581_v5  ;;  %v3852_v5 = vld [vmem:[#allocation6 + $0x3e8] sm:$0xff] }
 0x548   :  { %2712 = vmatpush.msra.mxu2 %v6893_v59  ;;  %2732 = vmatpush.msra.mxu3 %v6585_v40  ;;  %v3853_v40 = vld [vmem:[#allocation6 + $0x3c0] sm:$0xff]  ;;  %v3854_v59 = vld [vmem:[#allocation6 + $0x3c8] sm:$0xff] }
 0x549   :  { %2673 = vmatmul.f32.vlgmr.msrb.gmra.mxu0 %v6748_v58  ;;  %2693 = vmatmul.f32.vlgmr.msrb.gmra.mxu1 %v6804_v6  ;;  %v8185_v42 = vld [vmem:[#allocation71_spill] sm:$0xff] }
 0x54a   :  { %2713 = vmatmul.f32.vlgmr.msra.gmra.mxu2 %v6748_v58  ;;  %2733 = vmatmul.f32.vlgmr.msra.gmra.mxu3 %v6804_v6  ;;  %v8186_v58 = vld [vmem:[#allocation74_spill] sm:$0xff] }
 0x54b   :  { %2801 = vmatpush.msra.mxu0 %v6592_v10  ;;  %2841 = vmatpush.msrb.mxu2 %v6596_v18  ;;  %v3855_v6 = vld [vmem:[#allocation6 + $0x3a0] sm:$0xff]  ;;  %v3856_v10 = vld [vmem:[#allocation6 + $0x3a8] sm:$0xff] }
 0x54c   :  { %2821 = vmatpush.msra.mxu1 %v3851_v24  ;;  %2861 = vmatpush.msrb.mxu3 %v3852_v5  ;;  %v8187_v18 = vld [vmem:[#allocation75_spill] sm:$0xff]  ;;  %v8188_v24 = vld [vmem:[#allocation78_spill] sm:$0xff] }
 0x54d   :  { %2802 = vmatpush.msra.mxu0 %v6600_v48  ;;  %2842 = vmatpush.msrb.mxu2 %v8184_v44  ;;  %v3857_v5 = vld [vmem:[#allocation6 + $0x380] sm:$0xff]  ;;  %v3858_v48 = vld [vmem:[#allocation6 + $0x388] sm:$0xff] }
 0x54e   :  { %2822 = vmatpush.msra.mxu1 %v3853_v40  ;;  %2862 = vmatpush.msrb.mxu3 %v3854_v59  ;;  %v8189_v44 = vld [vmem:[#allocation79_spill] sm:$0xff]  ;;  %v8190_v40 = vld [vmem:[#allocation82_spill] sm:$0xff] }
 0x54f   :  { %2803 = vmatpush.msra.mxu0 %v8185_v42  ;;  %2843 = vmatpush.msrb.mxu2 %v8186_v58  ;;  %v3859_v59 = vld [vmem:[#allocation6 + $0x360] sm:$0xff]  ;;  %v3860_v42 = vld [vmem:[#allocation6 + $0x368] sm:$0xff] }
 0x550   :  { %2823 = vmatpush.msra.mxu1 %v3855_v6  ;;  %2863 = vmatpush.msrb.mxu3 %v3856_v10  ;;  %v8191_v58 = vld [vmem:[#allocation83_spill] sm:$0xff]  ;;  %v8192_v6 = vld [vmem:[#allocation86_spill] sm:$0xff] }
 0x551   :  { %2804 = vmatpush.msra.mxu0 %v8187_v18  ;;  %2844 = vmatpush.msrb.mxu2 %v8188_v24  ;;  %v3861_v10 = vld [vmem:[#allocation6 + $0x340] sm:$0xff]  ;;  %v3862_v18 = vld [vmem:[#allocation6 + $0x348] sm:$0xff] }
 0x552   :  { %2824 = vmatpush.msra.mxu1 %v3857_v5  ;;  %2864 = vmatpush.msrb.mxu3 %v3858_v48  ;;  %v8193_v24 = vld [vmem:[#allocation87_spill] sm:$0xff]  ;;  %v8194_v5 = vld [vmem:[#allocation90_spill] sm:$0xff] }
 0x553   :  { %2805 = vmatpush.msra.mxu0 %v8189_v44  ;;  %2845 = vmatpush.msrb.mxu2 %v8190_v40  ;;  %v3863_v48 = vld [vmem:[#allocation6 + $0x320] sm:$0xff]  ;;  %v3864_v44 = vld [vmem:[#allocation6 + $0x328] sm:$0xff] }
 0x554   :  { %2825 = vmatpush.msra.mxu1 %v3859_v59  ;;  %2865 = vmatpush.msrb.mxu3 %v3860_v42  ;;  %v8195_v40 = vld [vmem:[#allocation91_spill] sm:$0xff]  ;;  %v8196_v59 = vld [vmem:[#allocation92_spill] sm:$0xff]  ;;  %v3865_v42 = vld [vmem:[#allocation6 + $0x300] sm:$0xff] }
 0x555   :  { %2806 = vmatpush.msra.mxu0 %v8191_v58  ;;  %2846 = vmatpush.msrb.mxu2 %v8192_v6  ;;  %v3866_v58 = vld [vmem:[#allocation6 + $0x308] sm:$0xff]  ;;  %v8197_v6 = vld [vmem:[#allocation93_spill] sm:$0xff] }
 0x556   :  { %2826 = vmatpush.msra.mxu1 %v3861_v10  ;;  %2866 = vmatpush.msrb.mxu3 %v3862_v18  ;;  %v8198_v10 = vld [vmem:[#allocation94_spill] sm:$0xff] }
 0x557   :  { %2807 = vmatpush.msra.mxu0 %v8193_v24  ;;  %2847 = vmatpush.msrb.mxu2 %v8194_v5  ;;  %v3867_v18 = vld [vmem:[#allocation6 + $0x2e0] sm:$0xff]  ;;  %v3868_v24 = vld [vmem:[#allocation6 + $0x2e8] sm:$0xff] }
 0x558   :  { %2827 = vmatpush.msra.mxu1 %v3863_v48  ;;  %2867 = vmatpush.msrb.mxu3 %v3864_v44  ;;  %v8199_v5 = vld [vmem:[#allocation95_spill] sm:$0xff]  ;;  %v8200_v48 = vld [vmem:[#allocation96_spill] sm:$0xff]  ;;  %v3869_v44 = vld [vmem:[#allocation6 + $0x2c0] sm:$0xff] }
 0x559   :  { %2808 = vmatpush.msra.mxu0 %v8195_v40  ;;  %2848 = vmatpush.msrb.mxu2 %v8196_v59  ;;  %v3870_v40 = vld [vmem:[#allocation6 + $0x2c8] sm:$0xff]  ;;  %v8201_v59 = vld [vmem:[#allocation97_spill] sm:$0xff] }
 0x55a   :  { %2828 = vmatpush.msra.mxu1 %v3865_v42  ;;  %2868 = vmatpush.msrb.mxu3 %v3866_v58  ;;  %v8202_v42 = vld [vmem:[#allocation98_spill] sm:$0xff] }
 0x55b   :  { %2809 = vmatpush.msra.mxu0 %v8197_v6  ;;  %2849 = vmatpush.msrb.mxu2 %v8198_v10  ;;  %v3871_v58 = vld [vmem:[#allocation6 + $0x2a0] sm:$0xff]  ;;  %v3872_v6 = vld [vmem:[#allocation6 + $0x2a8] sm:$0xff] }
 0x55c   :  { %2829 = vmatpush.msra.mxu1 %v3867_v18  ;;  %2869 = vmatpush.msrb.mxu3 %v3868_v24  ;;  %v8203_v10 = vld [vmem:[#allocation99_spill] sm:$0xff]  ;;  %v8204_v18 = vld [vmem:[#allocation100_spill] sm:$0xff]  ;;  %v3873_v24 = vld [vmem:[#allocation6 + $0x280] sm:$0xff] }
 0x55d   :  { %2810 = vmatpush.msra.mxu0 %v8199_v5  ;;  %2850 = vmatpush.msrb.mxu2 %v8200_v48  ;;  %v3874_v5 = vld [vmem:[#allocation6 + $0x288] sm:$0xff]  ;;  %v8205_v48 = vld [vmem:[#allocation101_spill] sm:$0xff] }
 0x55e   :  { %2830 = vmatpush.msra.mxu1 %v3869_v44  ;;  %2870 = vmatpush.msrb.mxu3 %v3870_v40  ;;  %v8206_v44 = vld [vmem:[#allocation102_spill] sm:$0xff] }
 0x55f   :  { %2811 = vmatpush.msra.mxu0 %v8201_v59  ;;  %2851 = vmatpush.msrb.mxu2 %v8202_v42  ;;  %v3875_v40 = vld [vmem:[#allocation6 + $0x260] sm:$0xff]  ;;  %v3876_v59 = vld [vmem:[#allocation6 + $0x268] sm:$0xff] }
 0x560   :  { %2831 = vmatpush.msra.mxu1 %v3871_v58  ;;  %2871 = vmatpush.msrb.mxu3 %v3872_v6  ;;  %v8207_v42 = vld [vmem:[#allocation103_spill] sm:$0xff]  ;;  %v8208_v58 = vld [vmem:[#allocation104_spill] sm:$0xff]  ;;  %v3877_v6 = vld [vmem:[#allocation6 + $0x240] sm:$0xff] }
 0x561   :  { %2812 = vmatpush.msra.mxu0 %v8203_v10  ;;  %2852 = vmatpush.msrb.mxu2 %v8204_v18  ;;  %v3878_v10 = vld [vmem:[#allocation6 + $0x248] sm:$0xff]  ;;  %v8209_v18 = vld [vmem:[#allocation105_spill] sm:$0xff] }
 0x562   :  { %2832 = vmatpush.msra.mxu1 %v3873_v24  ;;  %2872 = vmatpush.msrb.mxu3 %v3874_v5  ;;  %v8210_v24 = vld [vmem:[#allocation106_spill] sm:$0xff] }
 0x563   :  { %2813 = vmatpush.msra.mxu0 %v8205_v48  ;;  %2853 = vmatpush.msrb.mxu2 %v8206_v44  ;;  %v3879_v5 = vld [vmem:[#allocation6 + $0x220] sm:$0xff]  ;;  %v3880_v48 = vld [vmem:[#allocation6 + $0x228] sm:$0xff] }
 0x564   :  { %2833 = vmatpush.msra.mxu1 %v3875_v40  ;;  %2873 = vmatpush.msrb.mxu3 %v3876_v59  ;;  %v8211_v44 = vld [vmem:[#allocation107_spill] sm:$0xff]  ;;  %v8212_v40 = vld [vmem:[#allocation14_spill] sm:$0xff] }
 0x565   :  { %2814 = vmatpush.msra.mxu0 %v8207_v42  ;;  %2854 = vmatpush.msrb.mxu2 %v8208_v58  ;;  %v3881_v59 = vld [vmem:[#allocation6 + $0x200] sm:$0xff]  ;;  %v3882_v42 = vld [vmem:[#allocation6 + $0x208] sm:$0xff] }
 0x566   :  { %2834 = vmatpush.msra.mxu1 %v3877_v6  ;;  %2874 = vmatpush.msrb.mxu3 %v3878_v10 }
 0x567   :  { %2815 = vmatpush.msra.mxu0 %v8209_v18  ;;  %2855 = vmatpush.msrb.mxu2 %v8210_v24 }
 0x568   :  { %2835 = vmatpush.msra.mxu1 %v3879_v5  ;;  %2875 = vmatpush.msrb.mxu3 %v3880_v48 }
 0x569   :  { %2816 = vmatpush.msra.mxu0 %v8211_v44  ;;  %2856 = vmatpush.msrb.mxu2 %v8212_v40 }
 0x56a   :  { %2836 = vmatpush.msra.mxu1 %v3881_v59  ;;  %2876 = vmatpush.msrb.mxu3 %v3882_v42 }
 0x56b   :  { %2881 = vmatpush.msrb.mxu0 %v6758_v16  ;;  %2921 = vmatpush.msra.mxu2 %v6762_v53  ;;  %v8225_v53 = vld [vmem:[#allocation11_spill] sm:$0xff] }
 0x56c   :  { %2901 = vmatpush.msrb.mxu1 %v6450_v34  ;;  %2941 = vmatpush.msra.mxu3 %v6454_v46  ;;  %v8213_v34 = vld [vmem:[#allocation51_spill] sm:$0xff]  ;;  %v8214_v46 = vld [vmem:[#allocation54_spill] sm:$0xff] }
 0x56d   :  { %2882 = vmatpush.msrb.mxu0 %v6766_v52  ;;  %2922 = vmatpush.msra.mxu2 %v6772_v23 }
 0x56e   :  { %2902 = vmatpush.msrb.mxu1 %v6458_v50  ;;  %2942 = vmatpush.msra.mxu3 %v6464_v17  ;;  %v8215_v50 = vld [vmem:[#allocation55_spill] sm:$0xff]  ;;  %v8216_v17 = vld [vmem:[#allocation58_spill] sm:$0xff] }
 0x56f   :  { %2883 = vmatpush.msrb.mxu0 %v6776_v21  ;;  %2923 = vmatpush.msra.mxu2 %v6781_v9 }
 0x570   :  { %2903 = vmatpush.msrb.mxu1 %v6468_v15  ;;  %2943 = vmatpush.msra.mxu3 %v6473_v14  ;;  %v8217_v15 = vld [vmem:[#allocation59_spill] sm:$0xff]  ;;  %v8219_v14 = vld [vmem:[#allocation18_spill] sm:$0xff] }
 0x571   :  { %2884 = vmatpush.msrb.mxu0 %v6786_v0  ;;  %2924 = vmatpush.msra.mxu2 %v6790_v13 }
 0x572   :  { %2904 = vmatpush.msrb.mxu1 %v6478_v31  ;;  %2944 = vmatpush.msra.mxu3 %v6482_v37  ;;  %v8220_v31 = vld [vmem:[#allocation62_spill] sm:$0xff] }
 0x573   :  { %2885 = vmatpush.msrb.mxu0 %v6796_v38  ;;  %2925 = vmatpush.msra.mxu2 %v6800_v2  ;;  %v8222_v37 = vld [vmem:[#allocation66_spill] sm:$0xff] }
 0x574   :  { %2905 = vmatpush.msrb.mxu1 %v6488_v33  ;;  %2945 = vmatpush.msra.mxu3 %v6492_v4  ;;  %v8223_v33 = vld [vmem:[#allocation67_spill] sm:$0xff] }
 0x575   :  { %2886 = vmatpush.msrb.mxu0 %v6806_v27  ;;  %2926 = vmatpush.msra.mxu2 %v6813_v28 }
 0x576   :  { %2906 = vmatpush.msrb.mxu1 %v6498_v30  ;;  %2946 = vmatpush.msra.mxu3 %v6505_v36 }
 0x577   :  { %2887 = vmatpush.msrb.mxu0 %v6817_v19  ;;  %2927 = vmatpush.msra.mxu2 %v6821_v11 }
 0x578   :  { %2907 = vmatpush.msrb.mxu1 %v6509_v20  ;;  %2947 = vmatpush.msra.mxu3 %v6513_v63 }
 0x579   :  { %2888 = vmatpush.msrb.mxu0 %v6825_v7  ;;  %2928 = vmatpush.msra.mxu2 %v6829_v1 }
 0x57a   :  { %2908 = vmatpush.msrb.mxu1 %v6517_v41  ;;  %2948 = vmatpush.msra.mxu3 %v6521_v62 }
 0x57b   :  { %2889 = vmatpush.msrb.mxu0 %v6833_v3  ;;  %2929 = vmatpush.msra.mxu2 %v6837_v39 }
 0x57c   :  { %2909 = vmatpush.msrb.mxu1 %v6525_v32  ;;  %2949 = vmatpush.msra.mxu3 %v6529_v61 }
 0x57d   :  { %2890 = vmatpush.msrb.mxu0 %v6841_v51  ;;  %2930 = vmatpush.msra.mxu2 %v6845_v49 }
 0x57e   :  { %2910 = vmatpush.msrb.mxu1 %v6533_v35  ;;  %2950 = vmatpush.msra.mxu3 %v6537_v43  ;;  %v2451_v43 = vld [vmem:[#allocation2 + $0x7] ss:$8 sm:$0xf] }
 0x57f   :  { %2891 = vmatpush.msrb.mxu0 %v6849_v12  ;;  %2931 = vmatpush.msra.mxu2 %v6853_v29 }
 0x580   :  { %2911 = vmatpush.msrb.mxu1 %v6541_v8  ;;  %2951 = vmatpush.msra.mxu3 %v6545_v47  ;;  %v8224_v47 = vld [vmem:[#allocation10_spill] sm:$0xff] }
 0x581   :  { %2892 = vmatpush.msrb.mxu0 %v6857_v54  ;;  %2932 = vmatpush.msra.mxu2 %v6861_v25  ;;  %v8226_v54 = vld [vmem:[#allocation12_spill] sm:$0xff] }
 0x582   :  { %2912 = vmatpush.msrb.mxu1 %v8213_v34  ;;  %2952 = vmatpush.msra.mxu3 %v8214_v46 }
 0x583   :  { %2893 = vmatpush.msrb.mxu0 %v6865_v56  ;;  %2933 = vmatpush.msra.mxu2 %v6869_v60  ;;  %v8218_v60 = vld [vmem:[#allocation17_spill] sm:$0xff] }
 0x584   :  { %2913 = vmatpush.msrb.mxu1 %v8215_v50  ;;  %2953 = vmatpush.msra.mxu3 %v8216_v17 }
 0x585   :  { %2894 = vmatpush.msrb.mxu0 %v6873_v55  ;;  %2934 = vmatpush.msra.mxu2 %v6877_v45  ;;  %v8221_v55 = vld [vmem:[#allocation63_spill] sm:$0xff] }
 0x586   :  { %2914 = vmatpush.msrb.mxu1 %v8217_v15  ;;  %2954 = vmatpush.msra.mxu3 %v6569_v22 }
 0x587   :  { %2895 = vmatpush.msrb.mxu0 %v6881_v26  ;;  %2935 = vmatpush.msra.mxu2 %v6885_v57 }
 0x588   :  { %2915 = vmatpush.msrb.mxu1 %v8220_v31  ;;  %2955 = vmatpush.msra.mxu3 %v8221_v55  ;;  %v8228_v31 = vld [vmem:[#allocation15_spill] sm:$0xff] }
 0x589   :  { %2896 = vmatpush.msrb.mxu0 %v8218_v60  ;;  %2936 = vmatpush.msra.mxu2 %v8219_v14  ;;  %v8227_v60 = vld [vmem:[#allocation13_spill] sm:$0xff] }
 0x58a   :  { %2916 = vmatpush.msrb.mxu1 %v8222_v37  ;;  %2956 = vmatpush.msra.mxu3 %v8223_v33 }
 0x5a2   :  { %v2469_v4 = vpop.f32.mrf.mxu0  ;;  %v2489_v30 = vpop.f32.mrf.mxu1 }
 0x5a3   :  { %v2536_v36 = vrot.slane %v2489_v30, 7 }
 0x5a5   :  { %v2539_v32 = vsel %vm501_vm6, %v2469_v4, %v2536_v36 }
 0x5a9   :  { %v2509_v20 = vpop.f32.mrf.mxu2  ;;  %v2529_v63 = vpop.f32.mrf.mxu3 }
 0x5aa   :  { %v2537_v41 = vrot.slane %v2509_v20, 6  ;;  %v2538_v62 = vrot.slane %v2529_v63, 5 }
 0x5ac   :  { %v2540_v61 = vsel %vm503_vm7, %v2537_v41, %v2538_v62  ;;  %v2594_v35 = vpop.f32.mrf.mxu0 }
 0x5ad   :  { %v2541_v8 = vsel %vm505_vm8, %v2539_v32, %v2540_v61  ;;  %v2595_v45 = vadd.f32 %v2594_v35, %v8224_v47 }
 0x5ae   :  { %v2543_v26 = vadd.f32 %v2541_v8, %v2451_v43 }
 0x5b0   :  { %v3131_v57 = vmul.f32 -1.442695, %v2543_v26  ;;  %v2614_v22 = vpop.f32.mrf.mxu1  ;;  %v2564_v11 = vrot.slane %v2543_v26, 3 }
 0x5b1   :  { %v2615_v56 = vadd.f32 %v2614_v22, %v2595_v45 }
 0x5b2   :  { %3295 = vpow2.f32 %v3131_v57  ;;  %v2634_v25 = vpop.f32.mrf.mxu2 }
 0x5b3   :  { %v3132_v16 = vmul.f32 -1.442695, %v2615_v56  ;;  %v2635_v52 = vadd.f32 %v2634_v25, %v8225_v53 }
 0x5b5   :  { %3297 = vpow2.f32 %v3132_v16 }
 0x5b6   :  { %v2654_v23 = vpop.f32.mrf.mxu3 }
 0x5b7   :  { %v2655_v21 = vadd.f32 %v2654_v23, %v2635_v52 }
 0x5b8   :  { %v3296_v9 = vpop.eup %3295 }
 0x5b9   :  { %v2547_v0 = vadd.f32 1.0, %v3296_v9  ;;  %v3133_v13 = vmul.f32 -1.442695, %v2655_v21  ;;  %v8229_v21 = vld [vmem:[#allocation16_spill] sm:$0xff] }
 0x5bb   :  { %v3298_v38 = vpop.eup %3297  ;;  %3299 = vrcp.f32 %v2547_v0  ;;  %v2559_v51 = vand.u32 2147483648, %v2547_v0  ;;  %v2557_v29 = vand.u32 2147483647, %v2547_v0  ;;  %vm2553_vm7 = vweird.f32 %v2547_v0 }
 0x5bc   :  { %v7002_v2 = vadd.f32 1.0, %v3298_v38  ;;  %3301 = vpow2.f32 %v3133_v13 }
 0x5bd   :  { %v2560_v5 = vor.u32 1.1754944e-38, %v2559_v51  ;;  %vm2558_vm14 = vcmp.eq.f32.partialorder %v2557_v29, 8.507059e+37  ;;  %v3041_v29 = vld [vmem:[%s7091_s6 + $0x78] sm:$0xff] }
 0x5be   :  { %3303 = vrcp.f32 %v7002_v2  ;;  %v2760_v41 = vand.u32 2147483648, %v7002_v2  ;;  %vm2754_vm3 = vweird.f32 %v7002_v2  ;;  %v2758_v35 = vand.u32 2147483647, %v7002_v2 }
 0x5c0   :  { %v2761_v57 = vor.u32 1.1754944e-38, %v2760_v41  ;;  %vm2759_vm9 = vcmp.eq.f32.partialorder %v2758_v35, 8.507059e+37  ;;  %v3029_v41 = vld [vmem:[%s7091_s6 + $0x18] sm:$0xff] }
 0x5c1   :  { %v3300_v27 = vpop.eup %3299 }
 0x5c2   :  { %v3302_v28 = vpop.eup %3301  ;;  %v2549_v19 = vmul.f32 %v3300_v27, %v2547_v0  ;;  %vm2554_vm6 = vweird.f32 %v3300_v27 }
 0x5c3   :  { %v2747_v7 = vadd.f32 1.0, %v3302_v28  ;;  %vm2555_vm8 = vmor %vm2553_vm7, %vm2554_vm6 }
 0x5c4   :  { %v7005_v1 = vpop.eup %3303  ;;  %v2550_v3 = vsub.f32 1.0, %v2549_v19 }
 0x5c5   :  { %v2750_v39 = vmul.f32 %v7005_v1, %v7002_v2  ;;  %3305 = vrcp.f32 %v2747_v7  ;;  %v2775_v20 = vand.u32 2147483648, %v2747_v7  ;;  %vm2755_vm0 = vweird.f32 %v7005_v1 }
 0x5c6   :  { %v2674_v49 = vpop.f32.mrf.mxu0  ;;  %v2551_v12 = vmul.f32 %v3300_v27, %v2550_v3  ;;  %3307 = vtanh.f32 %v2564_v11  ;;  %v2694_v6 = vpop.f32.mrf.mxu1  ;;  %vm2769_vm1 = vweird.f32 %v2747_v7  ;;  %v2773_v32 = vand.u32 2147483647, %v2747_v7  ;;  %vm2756_vm4 = vmor %vm2754_vm3, %vm2755_vm0 }
 0x5c7   :  { %v2675_v58 = vadd.f32 %v2674_v49, %v8226_v54  ;;  %v2751_v18 = vsub.f32 1.0, %v2750_v39  ;;  %v2776_v45 = vor.u32 1.1754944e-38, %v2775_v20  ;;  %v3030_v20 = vld [vmem:[%s7091_s6 + $0x20] sm:$0xff] }
 0x5c8   :  { %v2552_v10 = vadd.f32 %v3300_v27, %v2551_v12  ;;  %vm2774_vm5 = vcmp.eq.f32.partialorder %v2773_v32, 8.507059e+37  ;;  %v3028_v32 = vld [vmem:[%s7091_s6 + $0x10] sm:$0xff] }
 0x5c9   :  { %v2695_v24 = vadd.f32 %v2694_v6, %v2675_v58  ;;  %v2752_v17 = vmul.f32 %v7005_v1, %v2751_v18  ;;  %v3040_v58 = vld [vmem:[%s7091_s6 + $0x70] sm:$0xff] }
 0x5ca   :  { %v2556_v48 = vsel %vm2555_vm8, %v3300_v27, %v2552_v10  ;;  %v3039_v10 = vld [vmem:[%s7091_s6 + $0x68] sm:$0xff] }
 0x5cb   :  { %v3306_v44 = vpop.eup %3305  ;;  %v3134_v40 = vmul.f32 -1.442695, %v2695_v24  ;;  %v2561_v59 = vsel %vm2558_vm14, %v2560_v5, %v2556_v48  ;;  %v2753_v63 = vadd.f32 %v7005_v1, %v2752_v17  ;;  %v3038_v5 = vld [vmem:[%s7091_s6 + $0x60] sm:$0xff]  ;;  %v3035_v17 = vld [vmem:[%s7091_s6 + $0x48] sm:$0xff] }
 0x5cc   :  { %v2765_v42 = vmul.f32 %v3306_v44, %v2747_v7  ;;  %v2568_v34 = vrot.slane %v2561_v59, 1  ;;  %v3308_v46 = vpop.eup %3307  ;;  %vm2770_vm15 = vweird.f32 %v3306_v44  ;;  %v2574_v16 = vrot.slane %v2561_v59, 2 }
 0x5cd   :  { %3309 = vpow2.f32 %v3134_v40  ;;  %v2714_v50 = vpop.f32.mrf.mxu2  ;;  %v2571_v37 = vmul.f32 %v3308_v46, %v2561_v59  ;;  %v2734_v33 = vpop.f32.mrf.mxu3  ;;  %vm2771_vm2 = vmor %vm2769_vm1, %vm2770_vm15  ;;  %v2757_v26 = vsel %vm2756_vm4, %v7005_v1, %v2753_v63  ;;  %v3037_v40 = vld [vmem:[%s7091_s6 + $0x58] sm:$0xff] }
 0x5ce   :  { %v2766_v15 = vsub.f32 1.0, %v2765_v42  ;;  %v2715_v14 = vadd.f32 %v2714_v50, %v8227_v60  ;;  %v2570_v55 = vmul.f32 %v2568_v34, %v8228_v31  ;;  %v2762_v25 = vsel %vm2759_vm9, %v2761_v57, %v2757_v26  ;;  %v3036_v42 = vld [vmem:[%s7091_s6 + $0x50] sm:$0xff] }
 0x5d0   :  { %v2767_v4 = vmul.f32 %v3306_v44, %v2766_v15  ;;  %v2735_v30 = vadd.f32 %v2734_v33, %v2715_v14  ;;  %v2572_v36 = vadd.f32 %v2571_v37, %v2570_v55 }
 0x5d2   :  { %v2768_v62 = vadd.f32 %v3306_v44, %v2767_v4  ;;  %3311 = vtanh.f32 %v2735_v30  ;;  %v3032_v4 = vld [vmem:[%s7091_s6 + $0x30] sm:$0xff]  ;;  %v3031_v30 = vld [vmem:[%s7091_s6 + $0x28] sm:$0xff] }
 0x5d3   :  { %v3310_v61 = vpop.eup %3309  ;;  %3313 = vtanh.f32 %v2572_v36 }
 0x5d4   :  { %v2748_v43 = vadd.f32 1.0, %v3310_v61  ;;  %v2772_v8 = vsel %vm2771_vm2, %v3306_v44, %v2768_v62 }
 0x5d5   :  { %v2777_v22 = vsel %vm2774_vm5, %v2776_v45, %v2772_v8  ;;  %v3027_v45 = vld [vmem:[%s7091_s6 + $0x8] sm:$0xff] }
 0x5d6   :  { %3315 = vrcp.f32 %v2748_v43  ;;  %v2795_v9 = vmul.f32 %v2777_v22, %v8229_v21  ;;  %v2790_v28 = vand.u32 2147483648, %v2748_v43  ;;  %v2788_v11 = vand.u32 2147483647, %v2748_v43  ;;  %v3026_v22 = vld [vmem:[%s7091_s6] sm:$0xff] }
 0x5d7   :  { %vm2784_vm11 = vweird.f32 %v2748_v43 }
 0x5d8   :  { %v3312_v56 = vpop.eup %3311  ;;  %v2791_v1 = vor.u32 1.1754944e-38, %v2790_v28  ;;  %vm2789_vm13 = vcmp.eq.f32.partialorder %v2788_v11, 8.507059e+37 }
 0x5d9   :  { %v3314_v52 = vpop.eup %3313  ;;  %v2796_v23 = vmul.f32 %v3312_v56, %v2762_v25 }
 0x5da   :  { %v2576_v0 = vmul.f32 %v3314_v52, %v2574_v16 }
 0x5db   :  { %v7020_v38 = vadd.f32 %v2796_v23, %v2795_v9 }
 0x5dc   :  { %v3316_v13 = vpop.eup %3315  ;;  %2817 = vmatmul.f32.vlgmr.msra.gmra.mxu0 %v2576_v0  ;;  %2857 = vmatmul.f32.vlgmr.msrb.gmra.mxu2 %v2576_v0 }
 0x5dd   :  { %v2780_v2 = vmul.f32 %v3316_v13, %v2748_v43  ;;  %3317 = vtanh.f32 %v7020_v38  ;;  %vm2785_vm10 = vweird.f32 %v3316_v13  ;;  %3046 = vmatpush.msra.mxu0 %v3041_v29 }
 0x5de   :  { %vm2786_vm12 = vmor %vm2784_vm11, %vm2785_vm10  ;;  %vm3066_vm10 = vcmask 15360  }
 0x5df   :  { %v2781_v27 = vsub.f32 1.0, %v2780_v2  ;;  %3047 = vmatpush.msra.mxu0 %v3040_v58 }
 0x5e1   :  { %v2782_v19 = vmul.f32 %v3316_v13, %v2781_v27  ;;  %3048 = vmatpush.msra.mxu0 %v3039_v10 }
 0x5e3   :  { %v2783_v7 = vadd.f32 %v3316_v13, %v2782_v19  ;;  %v3318_v39 = vpop.eup %3317  ;;  %3049 = vmatpush.msra.mxu0 %v3038_v5 }
 0x5e4   :  { %2897 = vmatmul.f32.vlgmr.msrb.gmra.mxu0 %v2576_v0  ;;  %2937 = vmatmul.f32.vlgmr.msra.gmra.mxu2 %v2576_v0 }
 0x5e5   :  { %v2787_v3 = vsel %vm2786_vm12, %v3316_v13, %v2783_v7  ;;  %3050 = vmatpush.msra.mxu0 %v3037_v40 }
 0x5e6   :  { %v2792_v51 = vsel %vm2789_vm13, %v2791_v1, %v2787_v3 }
 0x5e7   :  { %v2799_v49 = vmul.f32 %v3318_v39, %v2792_v51  ;;  %3051 = vmatpush.msra.mxu0 %v3036_v42 }
 0x5e9   :  { %2800 = vst [vmem:[#allocation3 + $0x6] sm:$0x1] %v2799_v49  ;;  %2837 = vmatmul.f32.vlgmr.msra.gmra.mxu1 %v2799_v49  ;;  %2877 = vmatmul.f32.vlgmr.msrb.gmra.mxu3 %v2799_v49 }
 0x5ea   :  { %3052 = vmatpush.msra.mxu0 %v3035_v17 }
 0x5f1   :  { %2917 = vmatmul.f32.vlgmr.msrb.gmra.mxu1 %v2799_v49  ;;  %2957 = vmatmul.f32.vlgmr.msra.gmra.mxu3 %v2799_v49 }
 0x659   :  { %v2818_v12 = vpop.f32.mrf.mxu0 }
 0x65a   :  { %v2819_v6 = vadd.f32 %v2818_v12, %v8224_v47 }
 0x65f   :  { %v2858_v48 = vpop.f32.mrf.mxu2 }
 0x660   :  { %v2859_v47 = vadd.f32 %v2858_v48, %v8225_v53  ;;  %v3034_v53 = vld [vmem:[%s7091_s6 + $0x40] sm:$0xff] }
 0x661   :  { %v2898_v59 = vpop.f32.mrf.mxu0  ;;  %3053 = vmatpush.msra.mxu0 %v3034_v53 }
 0x662   :  { %v2899_v46 = vadd.f32 %v2898_v59, %v8226_v54  ;;  %v3033_v54 = vld [vmem:[%s7091_s6 + $0x38] sm:$0xff] }
 0x663   :  { %3054 = vmatpush.msra.mxu0 %v3033_v54 }
 0x665   :  { %3055 = vmatpush.msra.mxu0 %v3032_v4 }
 0x666   :  { %v2838_v18 = vpop.f32.mrf.mxu1 }
 0x667   :  { %v2839_v24 = vadd.f32 %v2838_v18, %v2819_v6  ;;  %3056 = vmatpush.msra.mxu0 %v3031_v30  ;;  %v2938_v8 = vpop.f32.mrf.mxu2 }
 0x668   :  { %v2939_v56 = vadd.f32 %v2938_v8, %v8227_v60 }
 0x669   :  { %v3135_v44 = vmul.f32 -1.442695, %v2839_v24  ;;  %3057 = vmatpush.msra.mxu0 %v3030_v20 }
 0x66b   :  { %3319 = vpow2.f32 %v3135_v44  ;;  %3058 = vmatpush.msra.mxu0 %v3029_v41 }
 0x66c   :  { %v2878_v34 = vpop.f32.mrf.mxu3 }
 0x66d   :  { %v2879_v50 = vadd.f32 %v2878_v34, %v2859_v47  ;;  %3059 = vmatpush.msra.mxu0 %v3028_v32 }
 0x66e   :  { %v2918_v15 = vpop.f32.mrf.mxu1 }
 0x66f   :  { %v3136_v14 = vmul.f32 -1.442695, %v2879_v50  ;;  %v2919_v31 = vadd.f32 %v2918_v15, %v2899_v46  ;;  %3060 = vmatpush.msra.mxu0 %v3027_v45 }
 0x671   :  { %v3320_v55 = vpop.eup %3319  ;;  %3321 = vpow2.f32 %v3136_v14  ;;  %v3137_v37 = vmul.f32 -1.442695, %v2919_v31  ;;  %3061 = vmatpush.msra.mxu0 %v3026_v22 }
 0x672   :  { %v2970_v33 = vadd.f32 1.0, %v3320_v55 }
 0x673   :  { %3323 = vpow2.f32 %v3137_v37 }
 0x674   :  { %3325 = vrcp.f32 %v2970_v33  ;;  %v2958_v57 = vpop.f32.mrf.mxu3  ;;  %v2984_v0 = vand.u32 2147483648, %v2970_v33  ;;  %vm2978_vm7 = vweird.f32 %v2970_v33  ;;  %v2982_v27 = vand.u32 2147483647, %v2970_v33 }
 0x675   :  { %v2959_v52 = vadd.f32 %v2958_v57, %v2939_v56 }
 0x676   :  { %v2985_v1 = vor.u32 1.1754944e-38, %v2984_v0  ;;  %vm2983_vm0 = vcmp.eq.f32.partialorder %v2982_v27, 8.507059e+37 }
 0x677   :  { %v3322_v36 = vpop.eup %3321 }
 0x678   :  { %v2971_v63 = vadd.f32 1.0, %v3322_v36 }
 0x679   :  { %v3324_v62 = vpop.eup %3323 }
 0x67a   :  { %v3326_v61 = vpop.eup %3325  ;;  %3327 = vrcp.f32 %v2971_v63  ;;  %v2972_v35 = vadd.f32 1.0, %v3324_v62  ;;  %v2999_v28 = vand.u32 2147483648, %v2971_v63  ;;  %v2997_v11 = vand.u32 2147483647, %v2971_v63 }
 0x67b   :  { %v2974_v43 = vmul.f32 %v3326_v61, %v2970_v33  ;;  %vm2979_vm6 = vweird.f32 %v3326_v61  ;;  %vm2993_vm15 = vweird.f32 %v2971_v63 }
 0x67c   :  { %3329 = vrcp.f32 %v2972_v35  ;;  %vm2980_vm8 = vmor %vm2978_vm7, %vm2979_vm6  ;;  %v3000_v39 = vor.u32 1.1754944e-38, %v2999_v28  ;;  %vm2998_vm2 = vcmp.eq.f32.partialorder %v2997_v11, 8.507059e+37  ;;  %v3014_v5 = vand.u32 2147483648, %v2972_v35 }
 0x67d   :  { %v2975_v26 = vsub.f32 1.0, %v2974_v43  ;;  %3331 = vtanh.f32 %v2959_v52  ;;  %vm3008_vm4 = vweird.f32 %v2972_v35  ;;  %v3012_v48 = vand.u32 2147483647, %v2972_v35 }
 0x67e   :  { %v3015_v40 = vor.u32 1.1754944e-38, %v3014_v5 }
 0x67f   :  { %v2976_v25 = vmul.f32 %v3326_v61, %v2975_v26  ;;  %vm3013_vm9 = vcmp.eq.f32.partialorder %v3012_v48, 8.507059e+37 }
 0x680   :  { %v3328_v16 = vpop.eup %3327 }
 0x681   :  { %v2989_v23 = vmul.f32 %v3328_v16, %v2971_v63  ;;  %v2977_v21 = vadd.f32 %v3326_v61, %v2976_v25  ;;  %vm2994_vm14 = vweird.f32 %v3328_v16 }
 0x682   :  { %v3330_v9 = vpop.eup %3329  ;;  %vm2995_vm1 = vmor %vm2993_vm15, %vm2994_vm14 }
 0x683   :  { %v2990_v13 = vsub.f32 1.0, %v2989_v23  ;;  %v3004_v2 = vmul.f32 %v3330_v9, %v2972_v35  ;;  %v2981_v60 = vsel %vm2980_vm8, %v3326_v61, %v2977_v21  ;;  %v3332_v12 = vpop.eup %3331  ;;  %vm3009_vm3 = vweird.f32 %v3330_v9 }
 0x684   :  { %v2986_v51 = vsel %vm2983_vm0, %v2985_v1, %v2981_v60  ;;  %vm3010_vm5 = vmor %vm3008_vm4, %vm3009_vm3 }
 0x685   :  { %v2991_v19 = vmul.f32 %v3328_v16, %v2990_v13  ;;  %v3005_v7 = vsub.f32 1.0, %v3004_v2  ;;  %v3020_v10 = vmul.f32 %v3332_v12, %v2986_v51 }
 0x687   :  { %v2992_v3 = vadd.f32 %v3328_v16, %v2991_v19  ;;  %v3006_v29 = vmul.f32 %v3330_v9, %v3005_v7 }
 0x689   :  { %v2996_v49 = vsel %vm2995_vm1, %v3328_v16, %v2992_v3  ;;  %v3007_v24 = vadd.f32 %v3330_v9, %v3006_v29 }
 0x68a   :  { %v3001_v58 = vsel %vm2998_vm2, %v3000_v39, %v2996_v49 }
 0x68b   :  { %v3019_v6 = vmul.f32 %v3001_v58, %v7020_v38  ;;  %v3011_v44 = vsel %vm3010_vm5, %v3330_v9, %v3007_v24  ;;  %v3142_v38 = vld [vmem:[%s7092_s7] ss:$0 sm:$0xff] }
 0x68c   :  { %v3016_v47 = vsel %vm3013_vm9, %v3015_v40, %v3011_v44 }
 0x68d   :  { %v3021_v18 = vadd.f32 %v3020_v10, %v3019_v6 }
 0x68f   :  { %3333 = vtanh.f32 %v3021_v18 }
 0x695   :  { %v3334_v59 = vpop.eup %3333 }
 0x696   :  { %v3023_v42 = vmul.f32 %v3334_v59, %v3016_v47 }
 0x698   :  { %3024 = vst [vmem:[#allocation3 + $0x7] sm:$0x1] %v3023_v42 }
 0x69f   :  { %v3025_v34 = vld [vmem:[#allocation3] sm:$0xff] }
 0x6a0   :  { %3062 = vmatmul.f32.vlgmr.msra.gmra.mxu0 %v3025_v34 }
 0x71d   :  { %v3063_v46 = vpop.f32.mrf.mxu0 }
 0x71e   :  { %v3064_v50 = vadd.f32 %v3142_v38, %v3063_v46 }
 0x720   :  { %v3067_v17 = vsel %vm3066_vm10, %v3064_v50, -inf }
 0x721   :  { %3068 = vmax.xlane.f32.xlu0 %v3067_v17 }
 0x794   :  { %v3069_v15 = vpop.xlane.xlu0 %3068 }
 0x795   :  { %v3070_v14 = vsub.f32 %v3064_v50, %v3069_v15 }
 0x797   :  { %v3071_v31 = vmul.f32 1.442695, %v3070_v14 }
 0x799   :  { %3335 = vpow2.f32 %v3071_v31 }
 0x79f   :  { %v3336_v53 = vpop.eup %3335 }
 0x7a0   :  { %v3073_v55 = vsel %vm3066_vm10, %v3336_v53, 0.0 }
 0x7a1   :  { %3074 = vadd.xlane.f32.xlu0 %v3073_v55 }
 0x814   :  { %v3075_v37 = vpop.xlane.xlu0 %3074 }
 0x815   :  { %3337 = vrcp.f32 %v3075_v37  ;;  %v3087_v30 = vand.u32 2147483648, %v3075_v37  ;;  %v3085_v20 = vand.u32 2147483647, %v3075_v37  ;;  %vm3081_vm12 = vweird.f32 %v3075_v37 }
 0x817   :  { %v3088_v41 = vor.u32 1.1754944e-38, %v3087_v30  ;;  %vm3086_vm6 = vcmp.eq.f32.partialorder %v3085_v20, 8.507059e+37 }
 0x81b   :  { %v3338_v54 = vpop.eup %3337 }
 0x81c   :  { %v3077_v33 = vmul.f32 %v3338_v54, %v3075_v37  ;;  %vm3082_vm11 = vweird.f32 %v3338_v54 }
 0x81d   :  { %vm3083_vm13 = vmor %vm3081_vm12, %vm3082_vm11 }
 0x81e   :  { %v3078_v4 = vsub.f32 1.0, %v3077_v33 }
 0x820   :  { %v3079_v36 = vmul.f32 %v3338_v54, %v3078_v4 }
 0x822   :  { %v3080_v63 = vadd.f32 %v3338_v54, %v3079_v36 }
 0x824   :  { %v3084_v62 = vsel %vm3083_vm13, %v3338_v54, %v3080_v63 }
 0x825   :  { %v3089_v32 = vsel %vm3086_vm6, %v3088_v41, %v3084_v62 }
 0x826   :  { %v3090_v61 = vmul.f32 %v3336_v53, %v3089_v32 }
 0x828   :  { %3091 = vst.msk [vmem:[%s7093_s8] sm:$0xff] %vm3066_vm10, %v3090_v61 }
 0x829   :  { %3096 = vsyncpa [#allocation5], 1 }
 0x82a   :  { %3097 = vsyncpa [#allocation7], 1 }

</bundles_post_ra>
